<compile_context>
chip_gen: v5e
topology: v5e:2x2
jax: 0.10.0
libtpu: 0.0.40
codegen_flags: <defaults>
</compile_context>

<pallas_src>
import jax
import jax.numpy as jnp
from jax.experimental import pallas as pl
from jax.experimental.pallas import tpu as pltpu

# Model hyper-parameters (small, but structurally identical to the PyTorch module).
CIN_LAYER_SIZE = (16, 16, 16)   # must be even except last (split_half=True)
DNN_LAYER_SIZE = (32, 32)
SPLIT_HALF = True


def xdeepfm_kernel(x0_ref, xflat_ref, bsum_ref,
                   dsel_ref, convw_ref, convb_ref,
                   dnnw0_ref, dnnw1_ref, dnnb_ref, fcw_ref,
                   out_ref):
    x0 = x0_ref[...]                              # (F, N) f32, N = tile_b*D, lane = b*D + d
    _, N = x0.shape
    x0_bf = x0.astype(jnp.bfloat16)               # cast once; reused by every CIN chunk matmul

    n_layers = len(CIN_LAYER_SIZE)
    hidden = x0                                   # (h, N) f32
    head_row = jnp.zeros((1, N), jnp.float32)     # folded final-FC CIN row (lane = b*D + d)

    chunk = 0      # running index into the stacked per-chunk conv weights
    b_off = 0      # running row offset into the stacked conv biases
    fc_off = 0     # running row offset into the stacked final-FC column

    # ---------------- CIN tower ----------------
    for i, size in enumerate(CIN_LAYER_SIZE):
        h = hidden.shape[0]
        # chunked bilinear CIN layer (no (h*F, N) outer-product temporaries):
        #   z[s, n] = sum_a hidden[a, n] * (W_a @ x0)[s, n] + bias[s]
        acc = None
        for a in range(h):
            w_a = convw_ref[chunk + a]            # (size, F) bf16, static index
            t = jnp.dot(w_a, x0_bf, preferred_element_type=jnp.float32)   # (size, N) MXU
            term = t * hidden[a:a + 1, :]         # f32 VPU (portable to v5e)
            acc = term if acc is None else acc + term
        chunk += h
        z = jnp.maximum(acc + convb_ref[b_off:b_off + size, :], 0.0)      # (size, N) f32
        b_off += size

        if SPLIT_HALF and i != n_layers - 1:
            hidden = z[:size // 2, :]             # next hidden layer
            direct = z[size // 2:, :]             # direct connection
        else:
            direct = z
        dc = direct.shape[0]
        fw = fcw_ref[fc_off:fc_off + dc, :]       # (dc, 1) f32 final-FC columns for this layer
        fc_off += dc
        # fold this layer's final-FC columns into the lane-dense head row; the
        # expensive sum over D happens ONCE, after the loop.
        head_row = head_row + jnp.sum(fw * direct, axis=0, keepdims=True)

    # sum over the embedding dim: ONE (1, N) x (N, tile_b) bf16 MXU matmul against
    # the 0/1 block-ones matrix (exact in bf16), instead of 3 f32 matmuls.
    cin_head = jnp.dot(head_row.astype(jnp.bfloat16), dsel_ref[...],
                       preferred_element_type=jnp.float32)                # (1, tile_b)

    # ---------------- DNN tower (channel-major: features x batch) ----------------
    xf = xflat_ref[...]                           # (F*D, tile_b) bf16 (pre-cast on host)
    s0, s1 = DNN_LAYER_SIZE
    h1 = jnp.maximum(
        jnp.dot(dnnw0_ref[...], xf, preferred_element_type=jnp.float32)
        + dnnb_ref[0:s0, :], 0.0)                                         # (s0, tile_b)
    h2 = jnp.maximum(
        jnp.dot(dnnw1_ref[...], h1.astype(jnp.bfloat16),
                preferred_element_type=jnp.float32)
        + dnnb_ref[s0:s0 + s1, :], 0.0)                                   # (s1, tile_b)
    dnn_head = jnp.sum(fcw_ref[fc_off:fc_off + s1, :] * h2,
                       axis=0, keepdims=True)                             # (1, tile_b)

    # ---------------- head (lane-dense (1, tile_b) output) ----------------
    # bsum_ref already carries the scalar final-FC bias (folded on the host).
    out_ref[...] = cin_head + dnn_head + bsum_ref[...]


def make_params(key, num_features, num_fields, dim):
    input_dim = num_fields * dim
    keys = iter(jax.random.split(key, 32))
    params = {}
    # feature bias embedding (xavier-normal-ish, deterministic)
    std = (2.0 / (num_features + 1)) ** 0.5
    params['feature_bias_table'] = std * jax.random.normal(
        next(keys), (num_features, 1), jnp.float32)
    # CIN 1x1 conv weights
    field_nums = [num_fields]
    conv_w, conv_b = [], []
    for size in CIN_LAYER_SIZE:
        in_ch = field_nums[-1] * field_nums[0]
        conv_w.append(0.1 * jax.random.normal(next(keys), (size, in_ch), jnp.float32))
        conv_b.append(0.01 * jax.random.normal(next(keys), (1, size), jnp.float32))
        field_nums.append(size // 2 if SPLIT_HALF else size)
    params['conv_w'], params['conv_b'] = conv_w, conv_b
    # DNN weights
    dnn_w, dnn_b = [], []
    last = input_dim
    for size in DNN_LAYER_SIZE:
        dnn_w.append((1.0 / last ** 0.5) *
                     jax.random.normal(next(keys), (size, last), jnp.float32))
        dnn_b.append(0.01 * jax.random.normal(next(keys), (1, size), jnp.float32))
        last = size
    params['dnn_w'], params['dnn_b'] = dnn_w, dnn_b
    # final fc
    if SPLIT_HALF:
        hidden_size = sum(CIN_LAYER_SIZE[:-1]) // 2 + CIN_LAYER_SIZE[-1]
    else:
        hidden_size = sum(CIN_LAYER_SIZE)
    fc_in = hidden_size + DNN_LAYER_SIZE[-1]
    params['fc_w'] = (1.0 / fc_in ** 0.5) * jax.random.normal(
        next(keys), (1, fc_in), jnp.float32)
    params['fc_b'] = 0.01 * jax.random.normal(next(keys), (1, 1), jnp.float32)
    return params


def xdeepfm_forward(inputs, feature_ids, feature_vals, params, tile_b=128):
    B, F, D = inputs.shape

    # ---- XLA glue: data-dependent embedding gather + feature-bias reduction ----
    # TODO(synk): the nn.Embedding gather stays in XLA (jnp.take); a Pallas DMA
    # gather adds nothing for a (num_features, 1) table reduced to one row here.
    fbias = jnp.take(params['feature_bias_table'], feature_ids, axis=0)[..., 0]  # (B, F)
    bias_sum = jnp.sum(fbias * feature_vals, axis=1) + params['fc_b'][0, 0]      # fc bias folded

    # pad the batch to a multiple of the tile (padded rows are sliced off at the end)
    pad = (-B) % tile_b
    if pad:
        inputs = jnp.pad(inputs, ((0, pad), (0, 0), (0, 0)))
        bias_sum = jnp.pad(bias_sum, (0, pad))
    Bp = B + pad
    grid = (Bp // tile_b,)

    # channel-major layouts: channels/features on sublanes, batch (x embed) on lanes
    x0_cm = jnp.transpose(inputs, (1, 0, 2)).reshape(F, Bp * D)                   # (F, Bp*D) f32
    xflat_cm = jnp.transpose(inputs.reshape(Bp, F * D), (1, 0)).astype(jnp.bfloat16)
    bsum_row = bias_sum.reshape(1, Bp)

    # 0/1 block-ones matrix so "sum over embed dim D" is ONE bf16 MXU matmul (exact)
    lane = jnp.arange(tile_b * D, dtype=jnp.int32)[:, None]
    col = jnp.arange(tile_b, dtype=jnp.int32)[None, :]
    dsel = (lane // D == col).astype(jnp.bfloat16)                                # (tile_b*D, tile_b)

    # ---- pack weights once on the host: bf16 matmul operands, f32 biases ----
    assert all(s == CIN_LAYER_SIZE[0] for s in CIN_LAYER_SIZE), \
        "stacked conv weights assume uniform CIN layer size"
    conv_chunks = []
    for w in params['conv_w']:
        h_i = w.shape[1] // F
        assert w.shape[1] == h_i * F
        for a in range(h_i):
            conv_chunks.append(w[:, a * F:(a + 1) * F])
    convw = jnp.stack(conv_chunks).astype(jnp.bfloat16)                            # (sum h_i, size, F)
    convb = jnp.concatenate([b.reshape(-1, 1) for b in params['conv_b']], axis=0)  # (sum sizes, 1) f32
    dnnw0 = params['dnn_w'][0].astype(jnp.bfloat16)                                # (s0, F*D)
    dnnw1 = params['dnn_w'][1].astype(jnp.bfloat16)                                # (s1, s0)
    dnnb = jnp.concatenate([b.reshape(-1, 1) for b in params['dnn_b']], axis=0)    # (s0+s1, 1) f32
    fcw = params['fc_w'].reshape(-1, 1)                                            # (hidden+s1, 1) f32

    weight_args = [dsel, convw, convb, dnnw0, dnnw1, dnnb, fcw]

    def _const_spec(arr):
        nd = arr.ndim
        return pl.BlockSpec(arr.shape, lambda i: (0,) * nd)   # VMEM-resident, never re-fetched

    in_specs = [
        pl.BlockSpec((F, tile_b * D), lambda i: (0, i)),       # x0 (CIN layout), batch-tiled
        pl.BlockSpec((F * D, tile_b), lambda i: (0, i)),       # flattened input (DNN layout), bf16
        pl.BlockSpec((1, tile_b), lambda i: (0, i)),           # precomputed bias row (+ fc bias)
    ] + [_const_spec(a) for a in weight_args]

    out = pl.pallas_call(
        xdeepfm_kernel,
        out_shape=jax.ShapeDtypeStruct((1, Bp), jnp.float32),  # lane-dense output row
        grid=grid,
        in_specs=in_specs,
        out_specs=pl.BlockSpec((1, tile_b), lambda i: (0, i)),
        compiler_params=pltpu.CompilerParams(
            dimension_semantics=("parallel",)),                # batch axis megacore-shardable
    )(x0_cm, xflat_cm, bsum_row, *weight_args)
    return out[0, :B]


def reference_forward(inputs, feature_ids, feature_vals, params):
    """Pure-JAX re-implementation of the PyTorch forward (for verification)."""
    input_biases = jnp.take(params['feature_bias_table'],
                            feature_ids, axis=0)[..., 0] * feature_vals
    B, F, D = inputs.shape
    hidden_layers = [inputs]
    finals = []
    for i, size in enumerate(CIN_LAYER_SIZE):
        x = jnp.einsum('bhd,bmd->bhmd', hidden_layers[-1], hidden_layers[0])
        x = x.reshape(B, hidden_layers[-1].shape[1] * F, D)
        w, b = params['conv_w'][i], params['conv_b'][i]
        x = jnp.einsum('bcd,sc->bsd', x, w) + b[0][None, :, None]
        x = jax.nn.relu(x)
        if SPLIT_HALF and i != len(CIN_LAYER_SIZE) - 1:
            nh, dc = x[:, :size // 2], x[:, size // 2:]
        else:
            dc, nh = x, x
        finals.append(dc)
        hidden_layers.append(nh)
    cin = jnp.sum(jnp.concatenate(finals, axis=1), axis=-1)
    dnn = inputs.reshape(B, F * D)
    for w, b in zip(params['dnn_w'], params['dnn_b']):
        dnn = jax.nn.relu(dnn @ w.T + b[0])
    cat = jnp.concatenate([cin, dnn], axis=1)
    return (cat @ params['fc_w'].T + params['fc_b'][0])[:, 0] \
        + jnp.sum(input_biases, axis=1)


if __name__ == "__main__":
    B, F, D = 256, 8, 16            # batch, num_fields, embedding dim
    num_features = 100
    key = jax.random.PRNGKey(0)
    k_in, k_ids, k_vals, k_params = jax.random.split(key, 4)
    inputs = 0.1 * jax.random.normal(k_in, (B, F, D), jnp.float32)
    feature_ids = jax.random.randint(k_ids, (B, F), 0, num_features)
    feature_vals = jax.random.uniform(k_vals, (B, F), jnp.float32)
    params = make_params(k_params, num_features, F, D)

    # tile_b=128 -> grid of 2 parallel steps (keeps both v7x TensorCores busy).
    out = xdeepfm_forward(inputs, feature_ids, feature_vals, params, tile_b=128)
    out = jax.block_until_ready(out)
    assert out.shape == (B,)

    ref = reference_forward(inputs, feature_ids, feature_vals, params)
    # Tolerance accounts for bf16 matmul operands in the kernel (f32 accumulation).
    if not jnp.allclose(out, ref, rtol=2e-2, atol=2e-2):
        max_err = jnp.max(jnp.abs(out - ref))
        raise AssertionError(f"mismatch: max|diff|={max_err}")
    print("KERNEL_OK")
</pallas_src>

<mosaic_0001>
module attributes {stable_mosaic.version = 11 : i64} {
  func.func @xdeepfm_kernel(%arg0: i32, %arg1: memref<8x2048xf32, #tpu.memory_space<vmem>>, %arg2: memref<128x128xbf16, #tpu.memory_space<vmem>>, %arg3: memref<1x128xf32, #tpu.memory_space<vmem>>, %arg4: memref<2048x128xbf16, #tpu.memory_space<vmem>>, %arg5: memref<24x16x8xbf16, #tpu.memory_space<vmem>>, %arg6: memref<48x1xf32, #tpu.memory_space<vmem>>, %arg7: memref<32x128xbf16, #tpu.memory_space<vmem>>, %arg8: memref<32x32xbf16, #tpu.memory_space<vmem>>, %arg9: memref<64x1xf32, #tpu.memory_space<vmem>>, %arg10: memref<64x1xf32, #tpu.memory_space<vmem>>, %arg11: memref<1x128xf32, #tpu.memory_space<vmem>>) attributes {dimension_semantics = [#tpu.dimension_semantics<parallel>], iteration_bounds = array<i64: 2>, scalar_prefetch = 0 : i64, scratch_operands = 0 : i64, tpu.core_type = #tpu.core_type<tc>, window_params = [{transform_indices = @transform_0, window_bounds = array<i64: 8, 2048>}, {transform_indices = @transform_1, window_bounds = array<i64: 128, 128>}, {transform_indices = @transform_2, window_bounds = array<i64: 1, 128>}, {pipeline_mode = #tpu.pipeline_mode<synchronous>, transform_indices = @transform_3, window_bounds = array<i64: 2048, 128>}, {pipeline_mode = #tpu.pipeline_mode<synchronous>, transform_indices = @transform_4, window_bounds = array<i64: 24, 16, 8>}, {pipeline_mode = #tpu.pipeline_mode<synchronous>, transform_indices = @transform_5, window_bounds = array<i64: 48, 1>}, {pipeline_mode = #tpu.pipeline_mode<synchronous>, transform_indices = @transform_6, window_bounds = array<i64: 32, 128>}, {pipeline_mode = #tpu.pipeline_mode<synchronous>, transform_indices = @transform_7, window_bounds = array<i64: 32, 32>}, {pipeline_mode = #tpu.pipeline_mode<synchronous>, transform_indices = @transform_8, window_bounds = array<i64: 64, 1>}, {pipeline_mode = #tpu.pipeline_mode<synchronous>, transform_indices = @transform_9, window_bounds = array<i64: 64, 1>}, {transform_indices = @transform_10, window_bounds = array<i64: 1, 128>}]} {
    %c0 = arith.constant 0 : index
    %c0_0 = arith.constant 0 : index
    %0 = vector.load %arg1[%c0, %c0_0] : memref<8x2048xf32, #tpu.memory_space<vmem>>, vector<8x2048xf32>
    %1 = arith.truncf %0 : vector<8x2048xf32> to vector<8x2048xbf16>
    %cst = arith.constant 0.000000e+00 : f32
    %2 = vector.broadcast %cst : f32 to vector<1x2048xf32>
    %c0_1 = arith.constant 0 : index
    %c0_2 = arith.constant 0 : index
    %c0_3 = arith.constant 0 : index
    %3 = vector.load %arg5[%c0_1, %c0_2, %c0_3] : memref<24x16x8xbf16, #tpu.memory_space<vmem>>, vector<1x16x8xbf16>
    %4 = vector.shape_cast %3 : vector<1x16x8xbf16> to vector<16x8xbf16>
    %cst_4 = arith.constant dense<0.000000e+00> : vector<16x2048xf32>
    %5 = tpu.matmul %4, %1, %cst_4 {dimension_numbers = #tpu.dot_dimension_numbers<[1], [0], [0], [1], [0, 0, 1, 1], [], []>} : vector<16x8xbf16>, vector<8x2048xbf16>, vector<16x2048xf32> -> vector<16x2048xf32>
    %6 = vector.extract_strided_slice %0 {offsets = [0, 0], sizes = [1, 2048], strides = [1, 1]} : vector<8x2048xf32> to vector<1x2048xf32>
    %7 = vector.broadcast %6 : vector<1x2048xf32> to vector<16x2048xf32>
    %8 = arith.mulf %5, %7 : vector<16x2048xf32>
    %c1 = arith.constant 1 : index
    %c0_5 = arith.constant 0 : index
    %c0_6 = arith.constant 0 : index
    %9 = vector.load %arg5[%c1, %c0_5, %c0_6] : memref<24x16x8xbf16, #tpu.memory_space<vmem>>, vector<1x16x8xbf16>
    %10 = vector.shape_cast %9 : vector<1x16x8xbf16> to vector<16x8xbf16>
    %cst_7 = arith.constant dense<0.000000e+00> : vector<16x2048xf32>
    %11 = tpu.matmul %10, %1, %cst_7 {dimension_numbers = #tpu.dot_dimension_numbers<[1], [0], [0], [1], [0, 0, 1, 1], [], []>} : vector<16x8xbf16>, vector<8x2048xbf16>, vector<16x2048xf32> -> vector<16x2048xf32>
    %12 = vector.extract_strided_slice %0 {offsets = [1, 0], sizes = [1, 2048], strides = [1, 1]} : vector<8x2048xf32> to vector<1x2048xf32>
    %13 = vector.broadcast %12 : vector<1x2048xf32> to vector<16x2048xf32>
    %14 = arith.mulf %11, %13 : vector<16x2048xf32>
    %15 = arith.addf %8, %14 : vector<16x2048xf32>
    %c2 = arith.constant 2 : index
    %c0_8 = arith.constant 0 : index
    %c0_9 = arith.constant 0 : index
    %16 = vector.load %arg5[%c2, %c0_8, %c0_9] : memref<24x16x8xbf16, #tpu.memory_space<vmem>>, vector<1x16x8xbf16>
    %17 = vector.shape_cast %16 : vector<1x16x8xbf16> to vector<16x8xbf16>
    %cst_10 = arith.constant dense<0.000000e+00> : vector<16x2048xf32>
    %18 = tpu.matmul %17, %1, %cst_10 {dimension_numbers = #tpu.dot_dimension_numbers<[1], [0], [0], [1], [0, 0, 1, 1], [], []>} : vector<16x8xbf16>, vector<8x2048xbf16>, vector<16x2048xf32> -> vector<16x2048xf32>
    %19 = vector.extract_strided_slice %0 {offsets = [2, 0], sizes = [1, 2048], strides = [1, 1]} : vector<8x2048xf32> to vector<1x2048xf32>
    %20 = vector.broadcast %19 : vector<1x2048xf32> to vector<16x2048xf32>
    %21 = arith.mulf %18, %20 : vector<16x2048xf32>
    %22 = arith.addf %15, %21 : vector<16x2048xf32>
    %c3 = arith.constant 3 : index
    %c0_11 = arith.constant 0 : index
    %c0_12 = arith.constant 0 : index
    %23 = vector.load %arg5[%c3, %c0_11, %c0_12] : memref<24x16x8xbf16, #tpu.memory_space<vmem>>, vector<1x16x8xbf16>
    %24 = vector.shape_cast %23 : vector<1x16x8xbf16> to vector<16x8xbf16>
    %cst_13 = arith.constant dense<0.000000e+00> : vector<16x2048xf32>
    %25 = tpu.matmul %24, %1, %cst_13 {dimension_numbers = #tpu.dot_dimension_numbers<[1], [0], [0], [1], [0, 0, 1, 1], [], []>} : vector<16x8xbf16>, vector<8x2048xbf16>, vector<16x2048xf32> -> vector<16x2048xf32>
    %26 = vector.extract_strided_slice %0 {offsets = [3, 0], sizes = [1, 2048], strides = [1, 1]} : vector<8x2048xf32> to vector<1x2048xf32>
    %27 = vector.broadcast %26 : vector<1x2048xf32> to vector<16x2048xf32>
    %28 = arith.mulf %25, %27 : vector<16x2048xf32>
    %29 = arith.addf %22, %28 : vector<16x2048xf32>
    %c4 = arith.constant 4 : index
    %c0_14 = arith.constant 0 : index
    %c0_15 = arith.constant 0 : index
    %30 = vector.load %arg5[%c4, %c0_14, %c0_15] : memref<24x16x8xbf16, #tpu.memory_space<vmem>>, vector<1x16x8xbf16>
    %31 = vector.shape_cast %30 : vector<1x16x8xbf16> to vector<16x8xbf16>
    %cst_16 = arith.constant dense<0.000000e+00> : vector<16x2048xf32>
    %32 = tpu.matmul %31, %1, %cst_16 {dimension_numbers = #tpu.dot_dimension_numbers<[1], [0], [0], [1], [0, 0, 1, 1], [], []>} : vector<16x8xbf16>, vector<8x2048xbf16>, vector<16x2048xf32> -> vector<16x2048xf32>
    %33 = vector.extract_strided_slice %0 {offsets = [4, 0], sizes = [1, 2048], strides = [1, 1]} : vector<8x2048xf32> to vector<1x2048xf32>
    %34 = vector.broadcast %33 : vector<1x2048xf32> to vector<16x2048xf32>
    %35 = arith.mulf %32, %34 : vector<16x2048xf32>
    %36 = arith.addf %29, %35 : vector<16x2048xf32>
    %c5 = arith.constant 5 : index
    %c0_17 = arith.constant 0 : index
    %c0_18 = arith.constant 0 : index
    %37 = vector.load %arg5[%c5, %c0_17, %c0_18] : memref<24x16x8xbf16, #tpu.memory_space<vmem>>, vector<1x16x8xbf16>
    %38 = vector.shape_cast %37 : vector<1x16x8xbf16> to vector<16x8xbf16>
    %cst_19 = arith.constant dense<0.000000e+00> : vector<16x2048xf32>
    %39 = tpu.matmul %38, %1, %cst_19 {dimension_numbers = #tpu.dot_dimension_numbers<[1], [0], [0], [1], [0, 0, 1, 1], [], []>} : vector<16x8xbf16>, vector<8x2048xbf16>, vector<16x2048xf32> -> vector<16x2048xf32>
    %40 = vector.extract_strided_slice %0 {offsets = [5, 0], sizes = [1, 2048], strides = [1, 1]} : vector<8x2048xf32> to vector<1x2048xf32>
    %41 = vector.broadcast %40 : vector<1x2048xf32> to vector<16x2048xf32>
    %42 = arith.mulf %39, %41 : vector<16x2048xf32>
    %43 = arith.addf %36, %42 : vector<16x2048xf32>
    %c6 = arith.constant 6 : index
    %c0_20 = arith.constant 0 : index
    %c0_21 = arith.constant 0 : index
    %44 = vector.load %arg5[%c6, %c0_20, %c0_21] : memref<24x16x8xbf16, #tpu.memory_space<vmem>>, vector<1x16x8xbf16>
    %45 = vector.shape_cast %44 : vector<1x16x8xbf16> to vector<16x8xbf16>
    %cst_22 = arith.constant dense<0.000000e+00> : vector<16x2048xf32>
    %46 = tpu.matmul %45, %1, %cst_22 {dimension_numbers = #tpu.dot_dimension_numbers<[1], [0], [0], [1], [0, 0, 1, 1], [], []>} : vector<16x8xbf16>, vector<8x2048xbf16>, vector<16x2048xf32> -> vector<16x2048xf32>
    %47 = vector.extract_strided_slice %0 {offsets = [6, 0], sizes = [1, 2048], strides = [1, 1]} : vector<8x2048xf32> to vector<1x2048xf32>
    %48 = vector.broadcast %47 : vector<1x2048xf32> to vector<16x2048xf32>
    %49 = arith.mulf %46, %48 : vector<16x2048xf32>
    %50 = arith.addf %43, %49 : vector<16x2048xf32>
    %c7 = arith.constant 7 : index
    %c0_23 = arith.constant 0 : index
    %c0_24 = arith.constant 0 : index
    %51 = vector.load %arg5[%c7, %c0_23, %c0_24] : memref<24x16x8xbf16, #tpu.memory_space<vmem>>, vector<1x16x8xbf16>
    %52 = vector.shape_cast %51 : vector<1x16x8xbf16> to vector<16x8xbf16>
    %cst_25 = arith.constant dense<0.000000e+00> : vector<16x2048xf32>
    %53 = tpu.matmul %52, %1, %cst_25 {dimension_numbers = #tpu.dot_dimension_numbers<[1], [0], [0], [1], [0, 0, 1, 1], [], []>} : vector<16x8xbf16>, vector<8x2048xbf16>, vector<16x2048xf32> -> vector<16x2048xf32>
    %54 = vector.extract_strided_slice %0 {offsets = [7, 0], sizes = [1, 2048], strides = [1, 1]} : vector<8x2048xf32> to vector<1x2048xf32>
    %55 = vector.broadcast %54 : vector<1x2048xf32> to vector<16x2048xf32>
    %56 = arith.mulf %53, %55 : vector<16x2048xf32>
    %57 = arith.addf %50, %56 : vector<16x2048xf32>
    %c0_26 = arith.constant 0 : index
    %c0_27 = arith.constant 0 : index
    %58 = vector.load %arg6[%c0_26, %c0_27] : memref<48x1xf32, #tpu.memory_space<vmem>>, vector<16x1xf32>
    %59 = vector.broadcast %58 : vector<16x1xf32> to vector<16x2048xf32>
    %60 = arith.addf %57, %59 : vector<16x2048xf32>
    %cst_28 = arith.constant 0.000000e+00 : f32
    %61 = vector.broadcast %cst_28 : f32 to vector<16x2048xf32>
    %62 = arith.maximumf %60, %61 : vector<16x2048xf32>
    %63 = vector.extract_strided_slice %62 {offsets = [0, 0], sizes = [8, 2048], strides = [1, 1]} : vector<16x2048xf32> to vector<8x2048xf32>
    %64 = vector.extract_strided_slice %62 {offsets = [8, 0], sizes = [8, 2048], strides = [1, 1]} : vector<16x2048xf32> to vector<8x2048xf32>
    %c0_29 = arith.constant 0 : index
    %c0_30 = arith.constant 0 : index
    %65 = vector.load %arg10[%c0_29, %c0_30] : memref<64x1xf32, #tpu.memory_space<vmem>>, vector<8x1xf32>
    %66 = vector.broadcast %65 : vector<8x1xf32> to vector<8x2048xf32>
    %67 = arith.mulf %66, %64 : vector<8x2048xf32>
    %cst_31 = arith.constant dense<0.000000e+00> : vector<2048xf32>
    %68 = vector.multi_reduction <add>, %67, %cst_31 [0] : vector<8x2048xf32> to vector<2048xf32>
    %69 = vector.shape_cast %68 : vector<2048xf32> to vector<1x2048xf32>
    %70 = arith.addf %2, %69 : vector<1x2048xf32>
    %c8 = arith.constant 8 : index
    %c0_32 = arith.constant 0 : index
    %c0_33 = arith.constant 0 : index
    %71 = vector.load %arg5[%c8, %c0_32, %c0_33] : memref<24x16x8xbf16, #tpu.memory_space<vmem>>, vector<1x16x8xbf16>
    %72 = vector.shape_cast %71 : vector<1x16x8xbf16> to vector<16x8xbf16>
    %cst_34 = arith.constant dense<0.000000e+00> : vector<16x2048xf32>
    %73 = tpu.matmul %72, %1, %cst_34 {dimension_numbers = #tpu.dot_dimension_numbers<[1], [0], [0], [1], [0, 0, 1, 1], [], []>} : vector<16x8xbf16>, vector<8x2048xbf16>, vector<16x2048xf32> -> vector<16x2048xf32>
    %74 = vector.extract_strided_slice %63 {offsets = [0, 0], sizes = [1, 2048], strides = [1, 1]} : vector<8x2048xf32> to vector<1x2048xf32>
    %75 = vector.broadcast %74 : vector<1x2048xf32> to vector<16x2048xf32>
    %76 = arith.mulf %73, %75 : vector<16x2048xf32>
    %c9 = arith.constant 9 : index
    %c0_35 = arith.constant 0 : index
    %c0_36 = arith.constant 0 : index
    %77 = vector.load %arg5[%c9, %c0_35, %c0_36] : memref<24x16x8xbf16, #tpu.memory_space<vmem>>, vector<1x16x8xbf16>
    %78 = vector.shape_cast %77 : vector<1x16x8xbf16> to vector<16x8xbf16>
    %cst_37 = arith.constant dense<0.000000e+00> : vector<16x2048xf32>
    %79 = tpu.matmul %78, %1, %cst_37 {dimension_numbers = #tpu.dot_dimension_numbers<[1], [0], [0], [1], [0, 0, 1, 1], [], []>} : vector<16x8xbf16>, vector<8x2048xbf16>, vector<16x2048xf32> -> vector<16x2048xf32>
    %80 = vector.extract_strided_slice %63 {offsets = [1, 0], sizes = [1, 2048], strides = [1, 1]} : vector<8x2048xf32> to vector<1x2048xf32>
    %81 = vector.broadcast %80 : vector<1x2048xf32> to vector<16x2048xf32>
    %82 = arith.mulf %79, %81 : vector<16x2048xf32>
    %83 = arith.addf %76, %82 : vector<16x2048xf32>
    %c10 = arith.constant 10 : index
    %c0_38 = arith.constant 0 : index
    %c0_39 = arith.constant 0 : index
    %84 = vector.load %arg5[%c10, %c0_38, %c0_39] : memref<24x16x8xbf16, #tpu.memory_space<vmem>>, vector<1x16x8xbf16>
    %85 = vector.shape_cast %84 : vector<1x16x8xbf16> to vector<16x8xbf16>
    %cst_40 = arith.constant dense<0.000000e+00> : vector<16x2048xf32>
    %86 = tpu.matmul %85, %1, %cst_40 {dimension_numbers = #tpu.dot_dimension_numbers<[1], [0], [0], [1], [0, 0, 1, 1], [], []>} : vector<16x8xbf16>, vector<8x2048xbf16>, vector<16x2048xf32> -> vector<16x2048xf32>
    %87 = vector.extract_strided_slice %63 {offsets = [2, 0], sizes = [1, 2048], strides = [1, 1]} : vector<8x2048xf32> to vector<1x2048xf32>
    %88 = vector.broadcast %87 : vector<1x2048xf32> to vector<16x2048xf32>
    %89 = arith.mulf %86, %88 : vector<16x2048xf32>
    %90 = arith.addf %83, %89 : vector<16x2048xf32>
    %c11 = arith.constant 11 : index
    %c0_41 = arith.constant 0 : index
    %c0_42 = arith.constant 0 : index
    %91 = vector.load %arg5[%c11, %c0_41, %c0_42] : memref<24x16x8xbf16, #tpu.memory_space<vmem>>, vector<1x16x8xbf16>
    %92 = vector.shape_cast %91 : vector<1x16x8xbf16> to vector<16x8xbf16>
    %cst_43 = arith.constant dense<0.000000e+00> : vector<16x2048xf32>
    %93 = tpu.matmul %92, %1, %cst_43 {dimension_numbers = #tpu.dot_dimension_numbers<[1], [0], [0], [1], [0, 0, 1, 1], [], []>} : vector<16x8xbf16>, vector<8x2048xbf16>, vector<16x2048xf32> -> vector<16x2048xf32>
    %94 = vector.extract_strided_slice %63 {offsets = [3, 0], sizes = [1, 2048], strides = [1, 1]} : vector<8x2048xf32> to vector<1x2048xf32>
    %95 = vector.broadcast %94 : vector<1x2048xf32> to vector<16x2048xf32>
    %96 = arith.mulf %93, %95 : vector<16x2048xf32>
    %97 = arith.addf %90, %96 : vector<16x2048xf32>
    %c12 = arith.constant 12 : index
    %c0_44 = arith.constant 0 : index
    %c0_45 = arith.constant 0 : index
    %98 = vector.load %arg5[%c12, %c0_44, %c0_45] : memref<24x16x8xbf16, #tpu.memory_space<vmem>>, vector<1x16x8xbf16>
    %99 = vector.shape_cast %98 : vector<1x16x8xbf16> to vector<16x8xbf16>
    %cst_46 = arith.constant dense<0.000000e+00> : vector<16x2048xf32>
    %100 = tpu.matmul %99, %1, %cst_46 {dimension_numbers = #tpu.dot_dimension_numbers<[1], [0], [0], [1], [0, 0, 1, 1], [], []>} : vector<16x8xbf16>, vector<8x2048xbf16>, vector<16x2048xf32> -> vector<16x2048xf32>
    %101 = vector.extract_strided_slice %63 {offsets = [4, 0], sizes = [1, 2048], strides = [1, 1]} : vector<8x2048xf32> to vector<1x2048xf32>
    %102 = vector.broadcast %101 : vector<1x2048xf32> to vector<16x2048xf32>
    %103 = arith.mulf %100, %102 : vector<16x2048xf32>
    %104 = arith.addf %97, %103 : vector<16x2048xf32>
    %c13 = arith.constant 13 : index
    %c0_47 = arith.constant 0 : index
    %c0_48 = arith.constant 0 : index
    %105 = vector.load %arg5[%c13, %c0_47, %c0_48] : memref<24x16x8xbf16, #tpu.memory_space<vmem>>, vector<1x16x8xbf16>
    %106 = vector.shape_cast %105 : vector<1x16x8xbf16> to vector<16x8xbf16>
    %cst_49 = arith.constant dense<0.000000e+00> : vector<16x2048xf32>
    %107 = tpu.matmul %106, %1, %cst_49 {dimension_numbers = #tpu.dot_dimension_numbers<[1], [0], [0], [1], [0, 0, 1, 1], [], []>} : vector<16x8xbf16>, vector<8x2048xbf16>, vector<16x2048xf32> -> vector<16x2048xf32>
    %108 = vector.extract_strided_slice %63 {offsets = [5, 0], sizes = [1, 2048], strides = [1, 1]} : vector<8x2048xf32> to vector<1x2048xf32>
    %109 = vector.broadcast %108 : vector<1x2048xf32> to vector<16x2048xf32>
    %110 = arith.mulf %107, %109 : vector<16x2048xf32>
    %111 = arith.addf %104, %110 : vector<16x2048xf32>
    %c14 = arith.constant 14 : index
    %c0_50 = arith.constant 0 : index
    %c0_51 = arith.constant 0 : index
    %112 = vector.load %arg5[%c14, %c0_50, %c0_51] : memref<24x16x8xbf16, #tpu.memory_space<vmem>>, vector<1x16x8xbf16>
    %113 = vector.shape_cast %112 : vector<1x16x8xbf16> to vector<16x8xbf16>
    %cst_52 = arith.constant dense<0.000000e+00> : vector<16x2048xf32>
    %114 = tpu.matmul %113, %1, %cst_52 {dimension_numbers = #tpu.dot_dimension_numbers<[1], [0], [0], [1], [0, 0, 1, 1], [], []>} : vector<16x8xbf16>, vector<8x2048xbf16>, vector<16x2048xf32> -> vector<16x2048xf32>
    %115 = vector.extract_strided_slice %63 {offsets = [6, 0], sizes = [1, 2048], strides = [1, 1]} : vector<8x2048xf32> to vector<1x2048xf32>
    %116 = vector.broadcast %115 : vector<1x2048xf32> to vector<16x2048xf32>
    %117 = arith.mulf %114, %116 : vector<16x2048xf32>
    %118 = arith.addf %111, %117 : vector<16x2048xf32>
    %c15 = arith.constant 15 : index
    %c0_53 = arith.constant 0 : index
    %c0_54 = arith.constant 0 : index
    %119 = vector.load %arg5[%c15, %c0_53, %c0_54] : memref<24x16x8xbf16, #tpu.memory_space<vmem>>, vector<1x16x8xbf16>
    %120 = vector.shape_cast %119 : vector<1x16x8xbf16> to vector<16x8xbf16>
    %cst_55 = arith.constant dense<0.000000e+00> : vector<16x2048xf32>
    %121 = tpu.matmul %120, %1, %cst_55 {dimension_numbers = #tpu.dot_dimension_numbers<[1], [0], [0], [1], [0, 0, 1, 1], [], []>} : vector<16x8xbf16>, vector<8x2048xbf16>, vector<16x2048xf32> -> vector<16x2048xf32>
    %122 = vector.extract_strided_slice %63 {offsets = [7, 0], sizes = [1, 2048], strides = [1, 1]} : vector<8x2048xf32> to vector<1x2048xf32>
    %123 = vector.broadcast %122 : vector<1x2048xf32> to vector<16x2048xf32>
    %124 = arith.mulf %121, %123 : vector<16x2048xf32>
    %125 = arith.addf %118, %124 : vector<16x2048xf32>
    %c16 = arith.constant 16 : index
    %c0_56 = arith.constant 0 : index
    %126 = vector.load %arg6[%c16, %c0_56] : memref<48x1xf32, #tpu.memory_space<vmem>>, vector<16x1xf32>
    %127 = vector.broadcast %126 : vector<16x1xf32> to vector<16x2048xf32>
    %128 = arith.addf %125, %127 : vector<16x2048xf32>
    %cst_57 = arith.constant 0.000000e+00 : f32
    %129 = vector.broadcast %cst_57 : f32 to vector<16x2048xf32>
    %130 = arith.maximumf %128, %129 : vector<16x2048xf32>
    %131 = vector.extract_strided_slice %130 {offsets = [0, 0], sizes = [8, 2048], strides = [1, 1]} : vector<16x2048xf32> to vector<8x2048xf32>
    %132 = vector.extract_strided_slice %130 {offsets = [8, 0], sizes = [8, 2048], strides = [1, 1]} : vector<16x2048xf32> to vector<8x2048xf32>
    %c8_58 = arith.constant 8 : index
    %c0_59 = arith.constant 0 : index
    %133 = vector.load %arg10[%c8_58, %c0_59] : memref<64x1xf32, #tpu.memory_space<vmem>>, vector<8x1xf32>
    %134 = vector.broadcast %133 : vector<8x1xf32> to vector<8x2048xf32>
    %135 = arith.mulf %134, %132 : vector<8x2048xf32>
    %cst_60 = arith.constant dense<0.000000e+00> : vector<2048xf32>
    %136 = vector.multi_reduction <add>, %135, %cst_60 [0] : vector<8x2048xf32> to vector<2048xf32>
    %137 = vector.shape_cast %136 : vector<2048xf32> to vector<1x2048xf32>
    %138 = arith.addf %70, %137 : vector<1x2048xf32>
    %c16_61 = arith.constant 16 : index
    %c0_62 = arith.constant 0 : index
    %c0_63 = arith.constant 0 : index
    %139 = vector.load %arg5[%c16_61, %c0_62, %c0_63] : memref<24x16x8xbf16, #tpu.memory_space<vmem>>, vector<1x16x8xbf16>
    %140 = vector.shape_cast %139 : vector<1x16x8xbf16> to vector<16x8xbf16>
    %cst_64 = arith.constant dense<0.000000e+00> : vector<16x2048xf32>
    %141 = tpu.matmul %140, %1, %cst_64 {dimension_numbers = #tpu.dot_dimension_numbers<[1], [0], [0], [1], [0, 0, 1, 1], [], []>} : vector<16x8xbf16>, vector<8x2048xbf16>, vector<16x2048xf32> -> vector<16x2048xf32>
    %142 = vector.extract_strided_slice %131 {offsets = [0, 0], sizes = [1, 2048], strides = [1, 1]} : vector<8x2048xf32> to vector<1x2048xf32>
    %143 = vector.broadcast %142 : vector<1x2048xf32> to vector<16x2048xf32>
    %144 = arith.mulf %141, %143 : vector<16x2048xf32>
    %c17 = arith.constant 17 : index
    %c0_65 = arith.constant 0 : index
    %c0_66 = arith.constant 0 : index
    %145 = vector.load %arg5[%c17, %c0_65, %c0_66] : memref<24x16x8xbf16, #tpu.memory_space<vmem>>, vector<1x16x8xbf16>
    %146 = vector.shape_cast %145 : vector<1x16x8xbf16> to vector<16x8xbf16>
    %cst_67 = arith.constant dense<0.000000e+00> : vector<16x2048xf32>
    %147 = tpu.matmul %146, %1, %cst_67 {dimension_numbers = #tpu.dot_dimension_numbers<[1], [0], [0], [1], [0, 0, 1, 1], [], []>} : vector<16x8xbf16>, vector<8x2048xbf16>, vector<16x2048xf32> -> vector<16x2048xf32>
    %148 = vector.extract_strided_slice %131 {offsets = [1, 0], sizes = [1, 2048], strides = [1, 1]} : vector<8x2048xf32> to vector<1x2048xf32>
    %149 = vector.broadcast %148 : vector<1x2048xf32> to vector<16x2048xf32>
    %150 = arith.mulf %147, %149 : vector<16x2048xf32>
    %151 = arith.addf %144, %150 : vector<16x2048xf32>
    %c18 = arith.constant 18 : index
    %c0_68 = arith.constant 0 : index
    %c0_69 = arith.constant 0 : index
    %152 = vector.load %arg5[%c18, %c0_68, %c0_69] : memref<24x16x8xbf16, #tpu.memory_space<vmem>>, vector<1x16x8xbf16>
    %153 = vector.shape_cast %152 : vector<1x16x8xbf16> to vector<16x8xbf16>
    %cst_70 = arith.constant dense<0.000000e+00> : vector<16x2048xf32>
    %154 = tpu.matmul %153, %1, %cst_70 {dimension_numbers = #tpu.dot_dimension_numbers<[1], [0], [0], [1], [0, 0, 1, 1], [], []>} : vector<16x8xbf16>, vector<8x2048xbf16>, vector<16x2048xf32> -> vector<16x2048xf32>
    %155 = vector.extract_strided_slice %131 {offsets = [2, 0], sizes = [1, 2048], strides = [1, 1]} : vector<8x2048xf32> to vector<1x2048xf32>
    %156 = vector.broadcast %155 : vector<1x2048xf32> to vector<16x2048xf32>
    %157 = arith.mulf %154, %156 : vector<16x2048xf32>
    %158 = arith.addf %151, %157 : vector<16x2048xf32>
    %c19 = arith.constant 19 : index
    %c0_71 = arith.constant 0 : index
    %c0_72 = arith.constant 0 : index
    %159 = vector.load %arg5[%c19, %c0_71, %c0_72] : memref<24x16x8xbf16, #tpu.memory_space<vmem>>, vector<1x16x8xbf16>
    %160 = vector.shape_cast %159 : vector<1x16x8xbf16> to vector<16x8xbf16>
    %cst_73 = arith.constant dense<0.000000e+00> : vector<16x2048xf32>
    %161 = tpu.matmul %160, %1, %cst_73 {dimension_numbers = #tpu.dot_dimension_numbers<[1], [0], [0], [1], [0, 0, 1, 1], [], []>} : vector<16x8xbf16>, vector<8x2048xbf16>, vector<16x2048xf32> -> vector<16x2048xf32>
    %162 = vector.extract_strided_slice %131 {offsets = [3, 0], sizes = [1, 2048], strides = [1, 1]} : vector<8x2048xf32> to vector<1x2048xf32>
    %163 = vector.broadcast %162 : vector<1x2048xf32> to vector<16x2048xf32>
    %164 = arith.mulf %161, %163 : vector<16x2048xf32>
    %165 = arith.addf %158, %164 : vector<16x2048xf32>
    %c20 = arith.constant 20 : index
    %c0_74 = arith.constant 0 : index
    %c0_75 = arith.constant 0 : index
    %166 = vector.load %arg5[%c20, %c0_74, %c0_75] : memref<24x16x8xbf16, #tpu.memory_space<vmem>>, vector<1x16x8xbf16>
    %167 = vector.shape_cast %166 : vector<1x16x8xbf16> to vector<16x8xbf16>
    %cst_76 = arith.constant dense<0.000000e+00> : vector<16x2048xf32>
    %168 = tpu.matmul %167, %1, %cst_76 {dimension_numbers = #tpu.dot_dimension_numbers<[1], [0], [0], [1], [0, 0, 1, 1], [], []>} : vector<16x8xbf16>, vector<8x2048xbf16>, vector<16x2048xf32> -> vector<16x2048xf32>
    %169 = vector.extract_strided_slice %131 {offsets = [4, 0], sizes = [1, 2048], strides = [1, 1]} : vector<8x2048xf32> to vector<1x2048xf32>
    %170 = vector.broadcast %169 : vector<1x2048xf32> to vector<16x2048xf32>
    %171 = arith.mulf %168, %170 : vector<16x2048xf32>
    %172 = arith.addf %165, %171 : vector<16x2048xf32>
    %c21 = arith.constant 21 : index
    %c0_77 = arith.constant 0 : index
    %c0_78 = arith.constant 0 : index
    %173 = vector.load %arg5[%c21, %c0_77, %c0_78] : memref<24x16x8xbf16, #tpu.memory_space<vmem>>, vector<1x16x8xbf16>
    %174 = vector.shape_cast %173 : vector<1x16x8xbf16> to vector<16x8xbf16>
    %cst_79 = arith.constant dense<0.000000e+00> : vector<16x2048xf32>
    %175 = tpu.matmul %174, %1, %cst_79 {dimension_numbers = #tpu.dot_dimension_numbers<[1], [0], [0], [1], [0, 0, 1, 1], [], []>} : vector<16x8xbf16>, vector<8x2048xbf16>, vector<16x2048xf32> -> vector<16x2048xf32>
    %176 = vector.extract_strided_slice %131 {offsets = [5, 0], sizes = [1, 2048], strides = [1, 1]} : vector<8x2048xf32> to vector<1x2048xf32>
    %177 = vector.broadcast %176 : vector<1x2048xf32> to vector<16x2048xf32>
    %178 = arith.mulf %175, %177 : vector<16x2048xf32>
    %179 = arith.addf %172, %178 : vector<16x2048xf32>
    %c22 = arith.constant 22 : index
    %c0_80 = arith.constant 0 : index
    %c0_81 = arith.constant 0 : index
    %180 = vector.load %arg5[%c22, %c0_80, %c0_81] : memref<24x16x8xbf16, #tpu.memory_space<vmem>>, vector<1x16x8xbf16>
    %181 = vector.shape_cast %180 : vector<1x16x8xbf16> to vector<16x8xbf16>
    %cst_82 = arith.constant dense<0.000000e+00> : vector<16x2048xf32>
    %182 = tpu.matmul %181, %1, %cst_82 {dimension_numbers = #tpu.dot_dimension_numbers<[1], [0], [0], [1], [0, 0, 1, 1], [], []>} : vector<16x8xbf16>, vector<8x2048xbf16>, vector<16x2048xf32> -> vector<16x2048xf32>
    %183 = vector.extract_strided_slice %131 {offsets = [6, 0], sizes = [1, 2048], strides = [1, 1]} : vector<8x2048xf32> to vector<1x2048xf32>
    %184 = vector.broadcast %183 : vector<1x2048xf32> to vector<16x2048xf32>
    %185 = arith.mulf %182, %184 : vector<16x2048xf32>
    %186 = arith.addf %179, %185 : vector<16x2048xf32>
    %c23 = arith.constant 23 : index
    %c0_83 = arith.constant 0 : index
    %c0_84 = arith.constant 0 : index
    %187 = vector.load %arg5[%c23, %c0_83, %c0_84] : memref<24x16x8xbf16, #tpu.memory_space<vmem>>, vector<1x16x8xbf16>
    %188 = vector.shape_cast %187 : vector<1x16x8xbf16> to vector<16x8xbf16>
    %cst_85 = arith.constant dense<0.000000e+00> : vector<16x2048xf32>
    %189 = tpu.matmul %188, %1, %cst_85 {dimension_numbers = #tpu.dot_dimension_numbers<[1], [0], [0], [1], [0, 0, 1, 1], [], []>} : vector<16x8xbf16>, vector<8x2048xbf16>, vector<16x2048xf32> -> vector<16x2048xf32>
    %190 = vector.extract_strided_slice %131 {offsets = [7, 0], sizes = [1, 2048], strides = [1, 1]} : vector<8x2048xf32> to vector<1x2048xf32>
    %191 = vector.broadcast %190 : vector<1x2048xf32> to vector<16x2048xf32>
    %192 = arith.mulf %189, %191 : vector<16x2048xf32>
    %193 = arith.addf %186, %192 : vector<16x2048xf32>
    %c32 = arith.constant 32 : index
    %c0_86 = arith.constant 0 : index
    %194 = vector.load %arg6[%c32, %c0_86] : memref<48x1xf32, #tpu.memory_space<vmem>>, vector<16x1xf32>
    %195 = vector.broadcast %194 : vector<16x1xf32> to vector<16x2048xf32>
    %196 = arith.addf %193, %195 : vector<16x2048xf32>
    %cst_87 = arith.constant 0.000000e+00 : f32
    %197 = vector.broadcast %cst_87 : f32 to vector<16x2048xf32>
    %198 = arith.maximumf %196, %197 : vector<16x2048xf32>
    %c16_88 = arith.constant 16 : index
    %c0_89 = arith.constant 0 : index
    %199 = vector.load %arg10[%c16_88, %c0_89] : memref<64x1xf32, #tpu.memory_space<vmem>>, vector<16x1xf32>
    %200 = vector.broadcast %199 : vector<16x1xf32> to vector<16x2048xf32>
    %201 = arith.mulf %200, %198 : vector<16x2048xf32>
    %cst_90 = arith.constant dense<0.000000e+00> : vector<2048xf32>
    %202 = vector.multi_reduction <add>, %201, %cst_90 [0] : vector<16x2048xf32> to vector<2048xf32>
    %203 = vector.shape_cast %202 : vector<2048xf32> to vector<1x2048xf32>
    %204 = arith.addf %138, %203 : vector<1x2048xf32>
    %205 = arith.truncf %204 : vector<1x2048xf32> to vector<1x2048xbf16>
    %c0_91 = arith.constant 0 : index
    %c0_92 = arith.constant 0 : index
    %206 = vector.load %arg4[%c0_91, %c0_92] : memref<2048x128xbf16, #tpu.memory_space<vmem>>, vector<2048x128xbf16>
    %cst_93 = arith.constant dense<0.000000e+00> : vector<1x128xf32>
    %207 = tpu.matmul %205, %206, %cst_93 {dimension_numbers = #tpu.dot_dimension_numbers<[1], [0], [0], [1], [0, 0, 1, 1], [], []>} : vector<1x2048xbf16>, vector<2048x128xbf16>, vector<1x128xf32> -> vector<1x128xf32>
    %c0_94 = arith.constant 0 : index
    %c0_95 = arith.constant 0 : index
    %208 = vector.load %arg2[%c0_94, %c0_95] : memref<128x128xbf16, #tpu.memory_space<vmem>>, vector<128x128xbf16>
    %c0_96 = arith.constant 0 : index
    %c0_97 = arith.constant 0 : index
    %209 = vector.load %arg7[%c0_96, %c0_97] : memref<32x128xbf16, #tpu.memory_space<vmem>>, vector<32x128xbf16>
    %cst_98 = arith.constant dense<0.000000e+00> : vector<32x128xf32>
    %210 = tpu.matmul %209, %208, %cst_98 {dimension_numbers = #tpu.dot_dimension_numbers<[1], [0], [0], [1], [0, 0, 1, 1], [], []>} : vector<32x128xbf16>, vector<128x128xbf16>, vector<32x128xf32> -> vector<32x128xf32>
    %c0_99 = arith.constant 0 : index
    %c0_100 = arith.constant 0 : index
    %211 = vector.load %arg9[%c0_99, %c0_100] : memref<64x1xf32, #tpu.memory_space<vmem>>, vector<32x1xf32>
    %212 = vector.broadcast %211 : vector<32x1xf32> to vector<32x128xf32>
    %213 = arith.addf %210, %212 : vector<32x128xf32>
    %cst_101 = arith.constant 0.000000e+00 : f32
    %214 = vector.broadcast %cst_101 : f32 to vector<32x128xf32>
    %215 = arith.maximumf %213, %214 : vector<32x128xf32>
    %c0_102 = arith.constant 0 : index
    %c0_103 = arith.constant 0 : index
    %216 = vector.load %arg8[%c0_102, %c0_103] : memref<32x32xbf16, #tpu.memory_space<vmem>>, vector<32x32xbf16>
    %217 = arith.truncf %215 : vector<32x128xf32> to vector<32x128xbf16>
    %cst_104 = arith.constant dense<0.000000e+00> : vector<32x128xf32>
    %218 = tpu.matmul %216, %217, %cst_104 {dimension_numbers = #tpu.dot_dimension_numbers<[1], [0], [0], [1], [0, 0, 1, 1], [], []>} : vector<32x32xbf16>, vector<32x128xbf16>, vector<32x128xf32> -> vector<32x128xf32>
    %c32_105 = arith.constant 32 : index
    %c0_106 = arith.constant 0 : index
    %219 = vector.load %arg9[%c32_105, %c0_106] : memref<64x1xf32, #tpu.memory_space<vmem>>, vector<32x1xf32>
    %220 = vector.broadcast %219 : vector<32x1xf32> to vector<32x128xf32>
    %221 = arith.addf %218, %220 : vector<32x128xf32>
    %cst_107 = arith.constant 0.000000e+00 : f32
    %222 = vector.broadcast %cst_107 : f32 to vector<32x128xf32>
    %223 = arith.maximumf %221, %222 : vector<32x128xf32>
    %c32_108 = arith.constant 32 : index
    %c0_109 = arith.constant 0 : index
    %224 = vector.load %arg10[%c32_108, %c0_109] : memref<64x1xf32, #tpu.memory_space<vmem>>, vector<32x1xf32>
    %225 = vector.broadcast %224 : vector<32x1xf32> to vector<32x128xf32>
    %226 = arith.mulf %225, %223 : vector<32x128xf32>
    %cst_110 = arith.constant dense<0.000000e+00> : vector<128xf32>
    %227 = vector.multi_reduction <add>, %226, %cst_110 [0] : vector<32x128xf32> to vector<128xf32>
    %228 = vector.shape_cast %227 : vector<128xf32> to vector<1x128xf32>
    %229 = arith.addf %207, %228 : vector<1x128xf32>
    %c0_111 = arith.constant 0 : index
    %c0_112 = arith.constant 0 : index
    %230 = vector.load %arg3[%c0_111, %c0_112] : memref<1x128xf32, #tpu.memory_space<vmem>>, vector<1x128xf32>
    %231 = arith.addf %229, %230 : vector<1x128xf32>
    %c0_113 = arith.constant 0 : index
    %c0_114 = arith.constant 0 : index
    %232 = vector.load %arg11[%c0_113, %c0_114] : memref<1x128xf32, #tpu.memory_space<vmem>>, vector<1x128xf32>
    tpu.vector_store %arg11[%c0_113, %c0_114], %231 {strides = array<i32>} : memref<1x128xf32, #tpu.memory_space<vmem>>, vector<1x128xf32>,
    return
  }
  func.func @transform_0(%arg0: i32) -> (i32, i32) {
    %c0_i32 = arith.constant 0 : i32
    %c0_i32_0 = arith.constant 0 : i32
    return %c0_i32, %arg0 : i32, i32
  }
  func.func @transform_1(%arg0: i32) -> (i32, i32) {
    %c0_i32 = arith.constant 0 : i32
    %c0_i32_0 = arith.constant 0 : i32
    return %c0_i32, %arg0 : i32, i32
  }
  func.func @transform_2(%arg0: i32) -> (i32, i32) {
    %c0_i32 = arith.constant 0 : i32
    %c0_i32_0 = arith.constant 0 : i32
    return %c0_i32, %arg0 : i32, i32
  }
  func.func @transform_3(%arg0: i32) -> (i32, i32) {
    %c0_i32 = arith.constant 0 : i32
    %c0_i32_0 = arith.constant 0 : i32
    %c0_i32_1 = arith.constant 0 : i32
    return %c0_i32, %c0_i32_0 : i32, i32
  }
  func.func @transform_4(%arg0: i32) -> (i32, i32, i32) {
    %c0_i32 = arith.constant 0 : i32
    %c0_i32_0 = arith.constant 0 : i32
    %c0_i32_1 = arith.constant 0 : i32
    %c0_i32_2 = arith.constant 0 : i32
    return %c0_i32, %c0_i32_0, %c0_i32_1 : i32, i32, i32
  }
  func.func @transform_5(%arg0: i32) -> (i32, i32) {
    %c0_i32 = arith.constant 0 : i32
    %c0_i32_0 = arith.constant 0 : i32
    %c0_i32_1 = arith.constant 0 : i32
    return %c0_i32, %c0_i32_0 : i32, i32
  }
  func.func @transform_6(%arg0: i32) -> (i32, i32) {
    %c0_i32 = arith.constant 0 : i32
    %c0_i32_0 = arith.constant 0 : i32
    %c0_i32_1 = arith.constant 0 : i32
    return %c0_i32, %c0_i32_0 : i32, i32
  }
  func.func @transform_7(%arg0: i32) -> (i32, i32) {
    %c0_i32 = arith.constant 0 : i32
    %c0_i32_0 = arith.constant 0 : i32
    %c0_i32_1 = arith.constant 0 : i32
    return %c0_i32, %c0_i32_0 : i32, i32
  }
  func.func @transform_8(%arg0: i32) -> (i32, i32) {
    %c0_i32 = arith.constant 0 : i32
    %c0_i32_0 = arith.constant 0 : i32
    %c0_i32_1 = arith.constant 0 : i32
    return %c0_i32, %c0_i32_0 : i32, i32
  }
  func.func @transform_9(%arg0: i32) -> (i32, i32) {
    %c0_i32 = arith.constant 0 : i32
    %c0_i32_0 = arith.constant 0 : i32
    %c0_i32_1 = arith.constant 0 : i32
    return %c0_i32, %c0_i32_0 : i32, i32
  }
  func.func @transform_10(%arg0: i32) -> (i32, i32) {
    %c0_i32 = arith.constant 0 : i32
    %c0_i32_0 = arith.constant 0 : i32
    return %c0_i32, %arg0 : i32, i32
  }
}

</mosaic_0001>

<bundles_post_ra>
// kernel: tpu_custom_call.1
= control target key start
LH: loop header
LB: loop body
LE: loop exit
PB: predicated region body
PF: predicated region fallthrough
CT: control target
= control target key end

     0   :  { %s16525_s0 = inlined_call_operand.vmem [shape: f32[8,4096], index: 0, kind: input, shape index: {}]   ;;  %s16526_s1 = inlined_call_operand.hbm [shape: bf16[128,256], index: 1, kind: input, shape index: {}]   ;;  %s16527_s2 = inlined_call_operand.vmem [shape: f32[1,256], index: 2, kind: input, shape index: {}]   ;;  %s16528_s3 = inlined_call_operand.hbm [shape: bf16[2048,128], index: 3, kind: input, shape index: {}]   ;;  %s16529_s4 = inlined_call_operand.vmem [shape: bf16[24,16,8], index: 4, kind: input, shape index: {}]   ;;  %s16530_s5 = inlined_call_operand.vmem [shape: f32[48,1], index: 5, kind: input, shape index: {}]   ;;  %s16531_s6 = inlined_call_operand.vmem [shape: bf16[32,128], index: 6, kind: input, shape index: {}]   ;;  %s16532_s7 = inlined_call_operand.vmem [shape: bf16[32,32], index: 7, kind: input, shape index: {}]   ;;  %s16533_s8 = inlined_call_operand.vmem [shape: f32[64,1], index: 8, kind: input, shape index: {}]   ;;  %s16534_s9 = inlined_call_operand.vmem [shape: f32[64,1], index: 9, kind: input, shape index: {}]   ;;  %s16535_s10 = inlined_call_operand.hbm [shape: f32[1,256], index: 10, kind: output, shape index: {}]  }
   0x1   :  { %16672 = sst [smem:[#allocation80_spill]] %s16528_s3 }
   0x2   :  { %15 = vsyncpa [#allocation3], 0 }
   0x3   :  { %17 = vsyncpa [#allocation3 + $0x1], 0 }
   0x4   :  { %18 = vsyncpa [#allocation6], 0 }
   0x5   :  { %19 = vsyncpa [#allocation4], 0 }
   0x6   :  { %21 = vsyncpa [#allocation4 + $0x1], 0  ;;  %s11792_s13 = smov 0   ;;  %s11794_s14 = smov 0  }
   0x7   :  { %s11796_s15 = smov 0   ;;  %s11798_s16 = smov 0  }
   0x8 LB: > { %16673 = sst [smem:[#allocation11_spill]] %s11726_s15  ;;  %s11813_s17 = sadd.s32 4294967295, %s11730_s16   ;;  %s11730_s16 = sphi %s11798_s16, %s17314_s16   ;;  %s11726_s15 = sphi %s11796_s15, %s17316_s15   ;;  %s11722_s14 = sphi %s11794_s14, %s17318_s14   ;;  %s11718_s13 = sphi %s11792_s13, %s17317_s13  }
   0x9   : > { %16674 = sst [smem:[#allocation12_spill]] %s11730_s16  ;;  %s10240_s18 = sadd.s32 4294967294, %s11730_s16  }
   0xa   : > { %p73_p0 = scmp.ne.s32.totalorder %s11722_s14, %s11718_s13  ;;  %p74_p1 = scmp.eq.s32.totalorder %s11813_s17, 0 }
   0xb   : > { %p270_p2 = scmp.eq.s32.totalorder %s11813_s17, 1  ;;  %p276_p3 = scmp.eq.s32.totalorder %s10240_s18, 1 }
   0xc   : > { %p11822_p4 = por %p74_p1, %p73_p0  ;;  %p10241_p5 = scmp.ge.s32.totalorder %s11730_s16, 1 }
   0xd   : > { %p11827_p6 = por %p276_p3, %p73_p0  ;;  %p283_p7 = scmp.lt.s32.totalorder %s11730_s16, 3 }
   0xe   : > { %s16677_s3 = sld [smem:[#allocation80_spill]]  ;;  %s11732_s25 = smov [#allocation5]  }
   0xf   : > { %p11835_p8 = pnand %p10241_p5, %p283_p7  ;;  %s296_s26 = sshll.u32 %s11732_s25, 4  ;;  %s297_s26 = int_to_ptr.vmem [resolvable:$true] %s296_s26 }
  0x10   : > { %s11845_s27 = sadd.s32 1, %s11730_s16   ;;  %s16536_s28 = smov 64  }
  0x11   : > { %p11513_p9 = pneg %p11835_p8  ;;  %16679 = sst [smem:[#allocation13_spill]] %s11845_s27 }
  0x12   : > { %s16537_s29 = smov 4   ;;  %s57_s30 = ssub.s32 %s11730_s16, %s11845_s27 }
  0x13   : > { %p11514_p10 = pnand %p11513_p9, %p74_p1  ;;  %s60_s11 = sadd.s32 1, %s11726_s15 }
  0x14   : > { %s294_s23 = sshll.u32 %s16677_s3, 4  ;;  %p58_p12 = scmp.eq.s32.totalorder %s57_s30, 0  ;;  %s295_s23 = int_to_ptr.hbm [resolvable:$true] %s294_s23 }
  0x15   : > { %11516 = dma.hbm_to_vmem [thread:$0]  (!%p11514_p10), %s295_s23, 16384, %s297_s26, [#allocation6], %s16536_s28, %s16536_s28, %s16537_s29  }
  0x16   : > { %p67_p13 = scmp.ne.s32.totalorder %s11726_s15, %s11722_s14  ;;  %p68_p0 = scmp.eq.s32.totalorder %s11730_s16, 0 }
  0x17   : > { %p11526_p3 = scmp.lt.s32.totalorder %s11730_s16, 2  ;;  %s337_s21 = sand.u32 1, %s11726_s15  }
  0x18   : > { %s11858_s12 = scalar_select %p58_p12, %s11726_s15, %s60_s11  }
  0x19   : > { %p69_p5 = por %p68_p0, %p67_p13  ;;  %p11862_p7 = por %p270_p2, %p67_p13 }
  0x1a   : > { %16680 = sst [smem:[#allocation14_spill]] %s11858_s12  ;;  %s10245_s22 = sshll.u32 %s11730_s16, 2 }
  0x1b   : > { %s10244_s25 = sshll.u32 %s337_s21, 6  ;;  %s345_s26 = scalar_lea.hbm %s16526_s1, %s10245_s22 }
  0x1c   : > { %s346_s30 = sshll.u32 %s345_s26, 4  ;;  %s341_s28 = scalar_lea.vmem [#allocation2], %s10244_s25  ;;  %s347_s30 = int_to_ptr.hbm [resolvable:$true] %s346_s30 }
  0x1d   : > { %s348_s29 = sshll.u32 %s341_s28, 4  ;;  %p11873_p9 = pnand %p11526_p3, %p69_p5  ;;  %s349_s29 = int_to_ptr.vmem [resolvable:$true] %s348_s29 }
  0x1e   : > { %s338_s12 = scalar_lea.sflag [#allocation3], %s337_s21  ;;  %s11630_s27 = sshra.s32 %s347_s30, 4  ;;  %s11631_s27 = int_to_ptr.hbm [resolvable:$true] %s11630_s27 }
  0x1f   : > { %s11632_s15 = scalar_lea.hbm %s11631_s27, 64  ;;  %p11634_p10 = pneg %p11873_p9 }
  0x20   : > { %p11633_p2 = scmp.ne.s32.totalorder %s11631_s27, %s11632_s15  ;;  %s11637_s28 = scalar_lea.hbm %s16526_s1, 128 }
  0x21   : > { %p11638_p0 = scmp.lt.s32.totalorder %s11631_s27, %s16526_s1  ;;  %p11639_p3 = scmp.lt.s32.totalorder %s11637_s28, %s11632_s15 }
  0x22   : > { %p11635_p12 = pnand %p11634_p10, %p11633_p2 }
  0x23   : > { %p11640_p5 = por %p11639_p3, %p11638_p0 }
  0x24   : > { %p11636_p13 = pneg %p11635_p12 }
  0x26   : > { %p11641_p11 = pnand %p11640_p5, %p11636_p13 }
  0x28   : > { %11644 = shalt.err (!%p11641_p11)
}
  0x29   : > { %s11735_s21 = smov 128   ;;  %s16683_s26 = smov 4  }
  0x2a   : > { %s16684_s16 = smov 64   ;;  %366 = sbr.rel (%p11835_p8) target bundleno = 2015 (0x7df), region = 60 }
  0x2b   : > { %11520 = dma.hbm_to_vmem [thread:$0]  (!%p11873_p9), %s347_s30, 1024, %s349_s29, %s338_s12, %s11735_s21, %s16684_s16, %s16683_s26  }
  0x2f   : > { %s11892_s3 = sand.u32 1, %s11722_s14  }
  0x30   : > { %s10247_s27 = sshll.u32 %s11892_s3, 6  ;;  %s369_s15 = scalar_lea.sflag [#allocation3], %s11892_s3 }
  0x31   : > { %s11896_s22 = scalar_lea.vmem [#allocation2], %s10247_s27 }
  0x32   : > { %11705 = dma.done.wait (%p11822_p4), %s369_s15, 1024  }
  0x33   : > { %11707 = vsyncadd (%p11822_p4), %s369_s15, 4294966272 }
  0x34   : > { %11709 = dma.done.wait (%p74_p1), [#allocation6], 16384  }
  0x35   : > { %11711 = vsyncadd (%p74_p1), [#allocation6], 4294950912  ;;  %s10249_s16 = sshll.u32 %s11813_s17, 4  ;;  %vm475_vm0 = vcmask 1043456   ;;  %v11933_v7 = vld [vmem:[%s16529_s4] sm:$0xff]  ;;  %vm471_vm1 = vcmask 64512   ;;  %s10139_s15 = scalar_lea.hbm %s16535_s10, %s11813_s17 }
  0x36   : > { %p423_p8 = scmp.lt.s32.totalorder %s10249_s16, 31  ;;  %v11342_v49 = vld [vmem:[%s16529_s4 + $0x8] sm:$0xff]  ;;  %v12131_v50 = vld [vmem:[%s16529_s4 + $0x10] sm:$0xff]  ;;  %vm9084_vm2 = vcmask 261120   ;;  %p428_p1 = scmp.lt.s32.totalorder %s11813_s17, 1 }
  0x37   : > { %s10131_s29 = scalar_lea.sflag [#allocation4], %s11892_s3  ;;  %s11680_s28 = scalar_lea.hbm %s16535_s10, 2 }
  0x38   : > { %s17320_s16 = smov (!%p423_p8, %s10249_s16), 31 }
  0x39   : > { %s10250_s24 = sshll.u32 %s17320_s16, 3  ;;  %s421_s16 = scalar_lea.vmem [#allocation7], %s11892_s3 }
  0x3a   : > { %s11910_s30 = scalar_lea.vmem %s16525_s0, %s10250_s24  ;;  %s10143_s24 = sshll.u32 %s10139_s15, 4  ;;  %s10144_s24 = int_to_ptr.hbm [resolvable:$true] %s10143_s24 }
  0x3b   : > { %v11913_v0 = vld [vmem:[%s11910_s30] sm:$0xff]  ;;  %v11916_v1 = vld [vmem:[%s11910_s30 + $0x8] sm:$0xff]  ;;  %v11919_v2 = vld [vmem:[%s11910_s30 + $0x18] sm:$0xff]  ;;  %s429_s25 = scalar_select %p428_p1, %s11813_s17, 1 }
  0x3c   : > { %16685 = vst [vmem:[#allocation15_spill] sm:$0xff] %v11913_v0  ;;  %v448_v3 = vpack.c.bf16 %v11913_v0, %v11913_v0  ;;  %v449_v4 = vpack.c.bf16 %v11916_v1, %v11916_v1  ;;  %v451_v5 = vpack.c.bf16 %v11919_v2, %v11919_v2  ;;  %v11928_v6 = vld [vmem:[%s11910_s30 + $0x20] sm:$0xff]  ;;  %v11936_v8 = vld [vmem:[%s11910_s30 + $0x10] sm:$0xff]  ;;  %v11943_v11 = vld [vmem:[%s11910_s30 + $0x28] sm:$0xff]  ;;  %s11674_s12 = sshra.s32 %s10144_s24, 4  ;;  %s11675_s12 = int_to_ptr.hbm [resolvable:$true] %s11674_s12 }
  0x3d   : > { %16686 = vst [vmem:[#allocation16_spill] sm:$0xff] %v11919_v2  ;;  %v452_v9 = vpack.c.bf16 %v11928_v6, %v11928_v6  ;;  %v450_v10 = vpack.c.bf16 %v11936_v8, %v11936_v8  ;;  %v11946_v12 = vld [vmem:[%s11910_s30 + $0x38] sm:$0xff]  ;;  %v11949_v13 = vld [vmem:[%s11910_s30 + $0x40] sm:$0xff]  ;;  %v453_v17 = vpack.c.bf16 %v11943_v11, %v11943_v11  ;;  %v11963_v18 = vld [vmem:[%s11910_s30 + $0x30] sm:$0xff]  ;;  %s11676_s19 = scalar_lea.hbm %s11675_s12, 1  ;;  %p11681_p2 = scmp.lt.s32.totalorder %s11675_s12, %s16535_s10 }
  0x3e   : > { %16687 = vst [vmem:[#allocation17_spill] sm:$0xff] %v11928_v6  ;;  %v11952_v14 = vsel %vm475_vm0, %v448_v3, 0  ;;  %v11955_v15 = vsel %vm475_vm0, %v449_v4, 0  ;;  %v11958_v16 = vsel %vm475_vm0, %v451_v5, 0  ;;  %v11966_v19 = vld [vmem:[%s11910_s30 + $0x48] sm:$0xff]  ;;  %v11969_v20 = vld [vmem:[%s11910_s30 + $0x58] sm:$0xff]  ;;  %v455_v23 = vpack.c.bf16 %v11946_v12, %v11946_v12  ;;  %p11677_p4 = scmp.ne.s32.totalorder %s11675_s12, %s11676_s19  ;;  %p11682_p10 = scmp.lt.s32.totalorder %s11680_s28, %s11676_s19 }
  0x3f   : > { %16688 = vst [vmem:[#allocation18_spill] sm:$0xff] %v11946_v12  ;;  %531 = vmatpush.bf16.msra.mxu2 %v11952_v14  ;;  %545 = vmatpush.bf16.msra.mxu1 %v11955_v15  ;;  %v11974_v21 = vsel %vm475_vm0, %v452_v9, 0  ;;  %v11977_v22 = vsel %vm475_vm0, %v450_v10, 0  ;;  %v456_v24 = vpack.c.bf16 %v11949_v13, %v11949_v13  ;;  %v11984_v25 = vld [vmem:[%s11910_s30 + $0x60] sm:$0xff]  ;;  %v11989_v26 = vsel %vm475_vm0, %v453_v17, 0  ;;  %v12034_v37 = vld [vmem:[%s11910_s30 + $0x50] sm:$0xff] }
  0x40   : > { %16689 = vst [vmem:[#allocation19_spill] sm:$0xff] %v11952_v14  ;;  %573 = vmatpush.bf16.msra.mxu3 %v11958_v16  ;;  %587 = vmatpush.bf16.msra.mxu0 %v11974_v21  ;;  %v454_v27 = vpack.c.bf16 %v11963_v18, %v11963_v18  ;;  %v457_v28 = vpack.c.bf16 %v11966_v19, %v11966_v19  ;;  %v12000_v30 = vsel %vm475_vm0, %v455_v23, 0  ;;  %v12037_v38 = vld [vmem:[%s11910_s30 + $0x68] sm:$0xff]  ;;  %v12040_v39 = vld [vmem:[%s11910_s30 + $0x78] sm:$0xff]  ;;  %v12070_v46 = vld [vmem:[%s11910_s30 + $0x70] sm:$0xff]  ;;  %p11678_p11 = pnand %p11677_p4, %p11862_p7  ;;  %p11683_p12 = por %p11682_p10, %p11681_p2 }
  0x41   : > { %16690 = vst [vmem:[#allocation20_spill] sm:$0xff] %v11955_v15  ;;  %v459_v29 = vpack.c.bf16 %v11969_v20, %v11969_v20  ;;  %v12003_v31 = vsel %vm475_vm0, %v456_v24, 0  ;;  %v460_v32 = vpack.c.bf16 %v11984_v25, %v11984_v25  ;;  %v458_v40 = vpack.c.bf16 %v12034_v37, %v12034_v37 }
  0x42   : > { %16691 = vst [vmem:[#allocation21_spill] sm:$0xff] %v11958_v16  ;;  %10255 = vmatmul.msk.bf16.vlgmr.msra.gmra.mxu2 %vm471_vm1, %v11933_v7  ;;  %10256 = vmatmul.msk.bf16.vlgmr.msra.gmra.mxu1 %vm471_vm1, %v11933_v7  ;;  %v12012_v33 = vsel %vm475_vm0, %v454_v27, 0  ;;  %v12015_v34 = vsel %vm475_vm0, %v457_v28, 0  ;;  %v461_v41 = vpack.c.bf16 %v12037_v38, %v12037_v38  ;;  %v463_v42 = vpack.c.bf16 %v12040_v39, %v12040_v39  ;;  %p11679_p9 = pneg %p11678_p11 }
  0x43   : > { %16692 = vst [vmem:[#allocation22_spill] sm:$0xff] %v11974_v21  ;;  %559 = vmatpush.bf16.msrb.mxu2 %v11977_v22  ;;  %601 = vmatpush.bf16.msrb.mxu1 %v11989_v26  ;;  %v12022_v35 = vsel %vm475_vm0, %v459_v29, 0  ;;  %v12025_v36 = vsel %vm475_vm0, %v460_v32, 0  ;;  %v12049_v43 = vsel %vm475_vm0, %v458_v40, 0  ;;  %v462_v47 = vpack.c.bf16 %v12070_v46, %v12070_v46 }
  0x44   : > { %16693 = vst [vmem:[#allocation23_spill] sm:$0xff] %v11977_v22  ;;  %10258 = vmatmul.msk.bf16.vlgmr.msra.gmra.mxu3 %vm471_vm1, %v11933_v7  ;;  %10259 = vmatmul.msk.bf16.vlgmr.msra.gmra.mxu0 %vm471_vm1, %v11933_v7  ;;  %v12052_v44 = vsel %vm475_vm0, %v461_v41, 0  ;;  %v12059_v45 = vsel %vm475_vm0, %v463_v42, 0  ;;  %v748_v27 = vperm.slane %v11913_v0, 0  ;;  %v1031_v29 = vperm.slane %v11913_v0, 1  ;;  %v12228_v42 = vld [vmem:[%s16529_s4 + $0x18] sm:$0xff]  ;;  %p11684_p13 = pnand %p11683_p12, %p11679_p9 }
  0x45   : > { %16694 = vst [vmem:[#allocation24_spill] sm:$0xff] %v11989_v26  ;;  %629 = vmatpush.bf16.msrb.mxu3 %v12000_v30  ;;  %643 = vmatpush.bf16.msrb.mxu0 %v12003_v31  ;;  %v12075_v48 = vsel %vm475_vm0, %v462_v47, 0 }
  0x46   : > { %16695 = vst [vmem:[#allocation25_spill] sm:$0xff] %v12000_v30 }
  0x47   : > { %16696 = vst [vmem:[#allocation26_spill] sm:$0xff] %v12003_v31  ;;  %615 = vmatpush.bf16.msra.mxu2 %v12012_v33  ;;  %657 = vmatpush.bf16.msra.mxu1 %v12015_v34 }
  0x48   : > { %16697 = vst [vmem:[#allocation27_spill] sm:$0xff] %v12012_v33 }
  0x49   : > { %16698 = vst [vmem:[#allocation28_spill] sm:$0xff] %v12015_v34  ;;  %685 = vmatpush.bf16.msra.mxu3 %v12022_v35  ;;  %699 = vmatpush.bf16.msra.mxu0 %v12025_v36 }
  0x4a   : > { %16699 = vst [vmem:[#allocation29_spill] sm:$0xff] %v12022_v35 }
  0x4b   : > { %16700 = vst [vmem:[#allocation30_spill] sm:$0xff] %v12025_v36 }
  0x4c   : > { %16701 = vst [vmem:[#allocation31_spill] sm:$0xff] %v12034_v37  ;;  %v749_v37 = vperm.slane %v11916_v1, 0 }
  0x4d   : > { %16702 = vst [vmem:[#allocation32_spill] sm:$0xff] %v12040_v39 }
  0x4e   : > { %16703 = vst [vmem:[#allocation33_spill] sm:$0xff] %v12049_v43 }
  0x4f   : > { %16704 = vst [vmem:[#allocation34_spill] sm:$0xff] %v12052_v44 }
  0x50   : > { %16705 = vst [vmem:[#allocation35_spill] sm:$0xff] %v12059_v45 }
  0x51   : > { %16706 = vst [vmem:[#allocation36_spill] sm:$0xff] %v12070_v46 }
  0x52   : > { %10257 = vmatmul.msk.bf16.vlgmr.msrb.gmra.mxu2 %vm471_vm1, %v11933_v7  ;;  %10260 = vmatmul.msk.bf16.vlgmr.msrb.gmra.mxu1 %vm471_vm1, %v11933_v7  ;;  %16707 = vst [vmem:[#allocation37_spill] sm:$0xff] %v12075_v48 }
  0x53   : > { %671 = vmatpush.bf16.msrb.mxu2 %v12049_v43  ;;  %713 = vmatpush.bf16.msrb.mxu1 %v12052_v44 }
  0x54   : > { %10262 = vmatmul.msk.bf16.vlgmr.msrb.gmra.mxu3 %vm471_vm1, %v11933_v7  ;;  %10263 = vmatmul.msk.bf16.vlgmr.msrb.gmra.mxu0 %vm471_vm1, %v11933_v7 }
  0x55   : > { %741 = vmatpush.bf16.msrb.mxu3 %v12059_v45  ;;  %814 = vmatpush.bf16.msrb.mxu0 %v11952_v14 }
  0x62   : > { %10261 = vmatmul.msk.bf16.vlgmr.msra.gmra.mxu2 %vm471_vm1, %v11933_v7  ;;  %10264 = vmatmul.msk.bf16.vlgmr.msra.gmra.mxu1 %vm471_vm1, %v11933_v7 }
  0x63   : > { %727 = vmatpush.bf16.msra.mxu2 %v12075_v48  ;;  %828 = vmatpush.bf16.msra.mxu1 %v11955_v15 }
  0x64   : > { %10266 = vmatmul.msk.bf16.vlgmr.msra.gmra.mxu3 %vm471_vm1, %v11933_v7  ;;  %10267 = vmatmul.msk.bf16.vlgmr.msra.gmra.mxu0 %vm471_vm1, %v11933_v7 }
  0x65   : > { %856 = vmatpush.bf16.msra.mxu3 %v11958_v16  ;;  %870 = vmatpush.bf16.msra.mxu0 %v11974_v21 }
  0x72   : > { %10265 = vmatmul.msk.bf16.vlgmr.msrb.gmra.mxu2 %vm471_vm1, %v11933_v7  ;;  %10268 = vmatmul.msk.bf16.vlgmr.msrb.gmra.mxu1 %vm471_vm1, %v11933_v7 }
  0x73   : > { %842 = vmatpush.bf16.msrb.mxu2 %v11977_v22  ;;  %884 = vmatpush.bf16.msrb.mxu1 %v11989_v26 }
  0x74   : > { %10270 = vmatmul.msk.bf16.vlgmr.msrb.gmra.mxu3 %vm471_vm1, %v11933_v7  ;;  %10277 = vmatmul.msk.bf16.vlgmr.msrb.gmra.mxu0 %vm471_vm1, %v11342_v49 }
  0x75   : > { %912 = vmatpush.bf16.msrb.mxu3 %v12000_v30  ;;  %926 = vmatpush.bf16.msrb.mxu0 %v12003_v31 }
  0x82   : > { %10269 = vmatmul.msk.bf16.vlgmr.msra.gmra.mxu2 %vm471_vm1, %v11933_v7  ;;  %10278 = vmatmul.msk.bf16.vlgmr.msra.gmra.mxu1 %vm471_vm1, %v11342_v49 }
  0x83   : > { %898 = vmatpush.bf16.msra.mxu2 %v12012_v33  ;;  %940 = vmatpush.bf16.msra.mxu1 %v12015_v34 }
  0x84   : > { %10280 = vmatmul.msk.bf16.vlgmr.msra.gmra.mxu3 %vm471_vm1, %v11342_v49  ;;  %10281 = vmatmul.msk.bf16.vlgmr.msra.gmra.mxu0 %vm471_vm1, %v11342_v49 }
  0x85   : > { %968 = vmatpush.bf16.msra.mxu3 %v12022_v35  ;;  %982 = vmatpush.bf16.msra.mxu0 %v12025_v36 }
  0x92   : > { %10279 = vmatmul.msk.bf16.vlgmr.msrb.gmra.mxu2 %vm471_vm1, %v11342_v49  ;;  %10282 = vmatmul.msk.bf16.vlgmr.msrb.gmra.mxu1 %vm471_vm1, %v11342_v49 }
  0x93   : > { %954 = vmatpush.bf16.msrb.mxu2 %v12049_v43  ;;  %996 = vmatpush.bf16.msrb.mxu1 %v12052_v44 }
  0x94   : > { %10284 = vmatmul.msk.bf16.vlgmr.msrb.gmra.mxu3 %vm471_vm1, %v11342_v49  ;;  %10285 = vmatmul.msk.bf16.vlgmr.msrb.gmra.mxu0 %vm471_vm1, %v11342_v49 }
  0x95   : > { %1024 = vmatpush.bf16.msrb.mxu3 %v12059_v45  ;;  %1129 = vmatpush.bf16.msrb.mxu0 %v11952_v14 }
  0xa2   : > { %10283 = vmatmul.msk.bf16.vlgmr.msra.gmra.mxu2 %vm471_vm1, %v11342_v49  ;;  %10286 = vmatmul.msk.bf16.vlgmr.msra.gmra.mxu1 %vm471_vm1, %v11342_v49 }
  0xa3   : > { %1010 = vmatpush.bf16.msra.mxu2 %v12075_v48  ;;  %1143 = vmatpush.bf16.msra.mxu1 %v11955_v15 }
  0xa4   : > { %10288 = vmatmul.msk.bf16.vlgmr.msra.gmra.mxu3 %vm471_vm1, %v11342_v49  ;;  %10289 = vmatmul.msk.bf16.vlgmr.msra.gmra.mxu0 %vm471_vm1, %v11342_v49 }
  0xa5   : > { %1171 = vmatpush.bf16.msra.mxu3 %v11958_v16  ;;  %1185 = vmatpush.bf16.msra.mxu0 %v11974_v21 }
  0xb2   : > { %10287 = vmatmul.msk.bf16.vlgmr.msrb.gmra.mxu2 %vm471_vm1, %v11342_v49  ;;  %10290 = vmatmul.msk.bf16.vlgmr.msrb.gmra.mxu1 %vm471_vm1, %v11342_v49 }
  0xb3   : > { %1157 = vmatpush.bf16.msrb.mxu2 %v11977_v22  ;;  %1199 = vmatpush.bf16.msrb.mxu1 %v11989_v26 }
  0xb4   : > { %10292 = vmatmul.msk.bf16.vlgmr.msrb.gmra.mxu3 %vm471_vm1, %v11342_v49  ;;  %10299 = vmatmul.msk.bf16.vlgmr.msrb.gmra.mxu0 %vm471_vm1, %v12131_v50 }
  0xb5   : > { %1227 = vmatpush.bf16.msrb.mxu3 %v12000_v30  ;;  %1241 = vmatpush.bf16.msrb.mxu0 %v12003_v31 }
  0xbf   : > { %v12142_v51 = vpop.f32.mrf.mxu1 }
  0xc1   : > { %v12144_v52 = vpop.f32.mrf.mxu0 }
  0xc2   : > { %10291 = vmatmul.msk.bf16.vlgmr.msra.gmra.mxu2 %vm471_vm1, %v11342_v49  ;;  %10300 = vmatmul.msk.bf16.vlgmr.msra.gmra.mxu1 %vm471_vm1, %v12131_v50 }
  0xc3   : > { %1213 = vmatpush.bf16.msra.mxu2 %v12012_v33  ;;  %1255 = vmatpush.bf16.msra.mxu1 %v12015_v34 }
  0xc4   : > { %10302 = vmatmul.msk.bf16.vlgmr.msra.gmra.mxu3 %vm471_vm1, %v12131_v50  ;;  %10303 = vmatmul.msk.bf16.vlgmr.msra.gmra.mxu0 %vm471_vm1, %v12131_v50 }
  0xc5   : > { %v533_v53 = vpop.f32.mrf.mxu2  ;;  %1283 = vmatpush.bf16.msra.mxu3 %v12022_v35  ;;  %1297 = vmatpush.bf16.msra.mxu0 %v12025_v36 }
  0xc6   : > { %v764_v40 = vmul.f32 %v748_v27, %v533_v53 }
  0xc7   : > { %v12157_v54 = vpop.f32.mrf.mxu3  ;;  %v12159_v55 = vpop.f32.mrf.mxu1 }
  0xc9   : > { %v12161_v56 = vpop.f32.mrf.mxu0 }
  0xcd   : > { %v535_v57 = vpop.f32.mrf.mxu2 }
  0xcf   : > { %v12163_v58 = vpop.f32.mrf.mxu3  ;;  %v12165_v59 = vpop.f32.mrf.mxu1 }
  0xd1   : > { %v12167_v60 = vpop.f32.mrf.mxu0 }
  0xd2   : > { %10301 = vmatmul.msk.bf16.vlgmr.msrb.gmra.mxu2 %vm471_vm1, %v12131_v50  ;;  %10304 = vmatmul.msk.bf16.vlgmr.msrb.gmra.mxu1 %vm471_vm1, %v12131_v50 }
  0xd3   : > { %1269 = vmatpush.bf16.msrb.mxu2 %v12049_v43  ;;  %1311 = vmatpush.bf16.msrb.mxu1 %v12052_v44 }
  0xd4   : > { %10306 = vmatmul.msk.bf16.vlgmr.msrb.gmra.mxu3 %vm471_vm1, %v12131_v50  ;;  %10307 = vmatmul.msk.bf16.vlgmr.msrb.gmra.mxu0 %vm471_vm1, %v12131_v50 }
  0xd5   : > { %v12179_v61 = vpop.f32.mrf.mxu2  ;;  %1339 = vmatpush.bf16.msrb.mxu3 %v12059_v45  ;;  %1444 = vmatpush.bf16.msrb.mxu0 %v11952_v14 }
  0xd7   : > { %v12183_v62 = vpop.f32.mrf.mxu3  ;;  %v12185_v63 = vpop.f32.mrf.mxu1 }
  0xd9   : > { %v12187_v3 = vpop.f32.mrf.mxu0 }
  0xdd   : > { %v12189_v4 = vpop.f32.mrf.mxu2 }
  0xdf   : > { %v12191_v5 = vpop.f32.mrf.mxu3  ;;  %v12193_v7 = vpop.f32.mrf.mxu1 }
  0xe1   : > { %v12195_v9 = vpop.f32.mrf.mxu0 }
  0xe2   : > { %10305 = vmatmul.msk.bf16.vlgmr.msra.gmra.mxu2 %vm471_vm1, %v12131_v50  ;;  %10308 = vmatmul.msk.bf16.vlgmr.msra.gmra.mxu1 %vm471_vm1, %v12131_v50 }
  0xe3   : > { %1325 = vmatpush.bf16.msra.mxu2 %v12075_v48  ;;  %1458 = vmatpush.bf16.msra.mxu1 %v11955_v15 }
  0xe4   : > { %10310 = vmatmul.msk.bf16.vlgmr.msra.gmra.mxu3 %vm471_vm1, %v12131_v50  ;;  %10311 = vmatmul.msk.bf16.vlgmr.msra.gmra.mxu0 %vm471_vm1, %v12131_v50 }
  0xe5   : > { %v12207_v10 = vpop.f32.mrf.mxu2  ;;  %1486 = vmatpush.bf16.msra.mxu3 %v11958_v16  ;;  %1500 = vmatpush.bf16.msra.mxu0 %v11974_v21 }
  0xe7   : > { %v12211_v17 = vpop.f32.mrf.mxu3  ;;  %v12213_v23 = vpop.f32.mrf.mxu1 }
  0xe9   : > { %v12215_v24 = vpop.f32.mrf.mxu0 }
  0xed   : > { %v12218_v28 = vpop.f32.mrf.mxu2 }
  0xef   : > { %v12221_v32 = vpop.f32.mrf.mxu3  ;;  %v12223_v41 = vpop.f32.mrf.mxu1 }
  0xf0   : > { %16708 = vst [vmem:[#allocation38_spill] sm:$0xff] %v12223_v41 }
  0xf1   : > { %v816_v47 = vpop.f32.mrf.mxu0 }
  0xf2   : > { %v1047_v49 = vmul.f32 %v1031_v29, %v816_v47  ;;  %10309 = vmatmul.msk.bf16.vlgmr.msrb.gmra.mxu2 %vm471_vm1, %v12131_v50  ;;  %10312 = vmatmul.msk.bf16.vlgmr.msrb.gmra.mxu1 %vm471_vm1, %v12131_v50 }
  0xf3   : > { %1472 = vmatpush.bf16.msrb.mxu2 %v11977_v22  ;;  %1514 = vmatpush.bf16.msrb.mxu1 %v11989_v26  ;;  %v1032_v22 = vperm.slane %v11916_v1, 1  ;;  %v752_v26 = vperm.slane %v11928_v6, 0 }
  0xf4   : > { %v12234_v46 = vadd.f32 %v1047_v49, %v764_v40  ;;  %10314 = vmatmul.msk.bf16.vlgmr.msrb.gmra.mxu3 %vm471_vm1, %v12131_v50  ;;  %10321 = vmatmul.msk.bf16.vlgmr.msrb.gmra.mxu0 %vm471_vm1, %v12228_v42  ;;  %v780_v40 = vmul.f32 %v748_v27, %v535_v57 }
  0xf5   : > { %v12242_v53 = vpop.f32.mrf.mxu2  ;;  %1542 = vmatpush.bf16.msrb.mxu3 %v12000_v30  ;;  %1556 = vmatpush.bf16.msrb.mxu0 %v12003_v31  ;;  %v1035_v30 = vperm.slane %v11928_v6, 1  ;;  %v765_v31 = vmul.f32 %v749_v37, %v12142_v51  ;;  %v1034_v51 = vperm.slane %v11919_v2, 1 }
  0xf6   : > { %16709 = vst [vmem:[#allocation39_spill] sm:$0xff] %v12234_v46 }
  0xf7   : > { %16710 = vst [vmem:[#allocation40_spill] sm:$0xff] %v12242_v53  ;;  %v12246_v47 = vpop.f32.mrf.mxu3  ;;  %v12248_v49 = vpop.f32.mrf.mxu1 }
  0xf8   : > { %16711 = vst [vmem:[#allocation41_spill] sm:$0xff] %v12246_v47 }
  0xf9   : > { %16712 = vst [vmem:[#allocation42_spill] sm:$0xff] %v12248_v49  ;;  %v818_v46 = vpop.f32.mrf.mxu0 }
  0xfa   : > { %v1063_v39 = vmul.f32 %v1031_v29, %v818_v46  ;;  %v768_v46 = vmul.f32 %v752_v26, %v12144_v52  ;;  %v781_v52 = vmul.f32 %v749_v37, %v12159_v55  ;;  %v756_v55 = vperm.slane %v11949_v13, 0 }
  0xfc   : > { %v12251_v41 = vadd.f32 %v1063_v39, %v780_v40  ;;  %v751_v39 = vperm.slane %v11919_v2, 0  ;;  %v784_v2 = vmul.f32 %v752_v26, %v12161_v56 }
  0xfd   : > { %v12255_v53 = vpop.f32.mrf.mxu2 }
  0xfe   : > { %v783_v37 = vmul.f32 %v751_v39, %v12163_v58 }
  0xff   : > { %v12259_v47 = vpop.f32.mrf.mxu3  ;;  %v830_v57 = vpop.f32.mrf.mxu1 }
 0x100   : > { %v1048_v27 = vmul.f32 %v1032_v22, %v830_v57 }
 0x101   : > { %v872_v49 = vpop.f32.mrf.mxu0 }
 0x102   : > { %v1051_v29 = vmul.f32 %v1035_v30, %v872_v49  ;;  %v12263_v40 = vadd.f32 %v1048_v27, %v765_v31  ;;  %10313 = vmatmul.msk.bf16.vlgmr.msra.gmra.mxu2 %vm471_vm1, %v12131_v50  ;;  %10322 = vmatmul.msk.bf16.vlgmr.msra.gmra.mxu1 %vm471_vm1, %v12228_v42  ;;  %v767_v31 = vmul.f32 %v751_v39, %v12157_v54  ;;  %v753_v54 = vperm.slane %v11943_v11, 0 }
 0x103   : > { %1528 = vmatpush.bf16.msra.mxu2 %v12012_v33  ;;  %1570 = vmatpush.bf16.msra.mxu1 %v12015_v34 }
 0x104   : > { %v12269_v6 = vadd.f32 %v1051_v29, %v768_v46  ;;  %10324 = vmatmul.msk.bf16.vlgmr.msra.gmra.mxu3 %vm471_vm1, %v12228_v42  ;;  %10325 = vmatmul.msk.bf16.vlgmr.msra.gmra.mxu0 %vm471_vm1, %v12228_v42  ;;  %v769_v26 = vmul.f32 %v753_v54, %v12165_v59  ;;  %v1033_v59 = vperm.slane %v11936_v8, 1 }
 0x105   : > { %v12279_v50 = vpop.f32.mrf.mxu2  ;;  %1598 = vmatpush.bf16.msra.mxu3 %v12022_v35  ;;  %1612 = vmatpush.bf16.msra.mxu0 %v12025_v36  ;;  %v1036_v36 = vperm.slane %v11943_v11, 1 }
 0x106   : > { %16713 = vst [vmem:[#allocation43_spill] sm:$0xff] %v12269_v6 }
 0x107   : > { %16714 = vst [vmem:[#allocation44_spill] sm:$0xff] %v12279_v50  ;;  %v858_v49 = vpop.f32.mrf.mxu3  ;;  %v832_v27 = vpop.f32.mrf.mxu1 }
 0x108   : > { %v1050_v57 = vmul.f32 %v1034_v51, %v858_v49  ;;  %v1064_v46 = vmul.f32 %v1032_v22, %v832_v27  ;;  %v1039_v22 = vperm.slane %v11949_v13, 1  ;;  %v755_v27 = vperm.slane %v11946_v12, 0 }
 0x109   : > { %v874_v29 = vpop.f32.mrf.mxu0 }
 0x10a   : > { %v12285_v33 = vadd.f32 %v1050_v57, %v767_v31  ;;  %v1067_v34 = vmul.f32 %v1035_v30, %v874_v29  ;;  %v12288_v6 = vadd.f32 %v1064_v46, %v781_v52  ;;  %v750_v52 = vperm.slane %v11936_v8, 0 }
 0x10c   : > { %v12290_v50 = vadd.f32 %v1067_v34, %v784_v2  ;;  %v772_v34 = vmul.f32 %v756_v55, %v12167_v60  ;;  %v1038_v60 = vperm.slane %v11946_v12, 1  ;;  %v766_v29 = vmul.f32 %v750_v52, %v12179_v61 }
 0x10d   : > { %v12295_v49 = vpop.f32.mrf.mxu2  ;;  %v757_v12 = vperm.slane %v11966_v19, 0 }
 0x10f   : > { %v860_v56 = vpop.f32.mrf.mxu3  ;;  %v886_v31 = vpop.f32.mrf.mxu1 }
 0x110   : > { %v1066_v30 = vmul.f32 %v1034_v51, %v860_v56  ;;  %v1052_v57 = vmul.f32 %v1036_v36, %v886_v31  ;;  %v785_v56 = vmul.f32 %v753_v54, %v12185_v63  ;;  %v782_v63 = vmul.f32 %v750_v52, %v12189_v4 }
 0x111   : > { %v928_v2 = vpop.f32.mrf.mxu0  ;;  %v1040_v54 = vperm.slane %v11966_v19, 1 }
 0x112   : > { %v12302_v58 = vadd.f32 %v1066_v30, %v783_v37  ;;  %v1055_v39 = vmul.f32 %v1039_v22, %v928_v2  ;;  %v12304_v46 = vadd.f32 %v1052_v57, %v769_v26  ;;  %10323 = vmatmul.msk.bf16.vlgmr.msrb.gmra.mxu2 %vm471_vm1, %v12228_v42  ;;  %10326 = vmatmul.msk.bf16.vlgmr.msrb.gmra.mxu1 %vm471_vm1, %v12228_v42 }
 0x113   : > { %1584 = vmatpush.bf16.msrb.mxu2 %v12049_v43  ;;  %1626 = vmatpush.bf16.msrb.mxu1 %v12052_v44  ;;  %v771_v37 = vmul.f32 %v755_v27, %v12183_v62  ;;  %v788_v43 = vmul.f32 %v756_v55, %v12187_v3  ;;  %v1043_v3 = vperm.slane %v11984_v25, 1  ;;  %v773_v55 = vmul.f32 %v757_v12, %v12193_v7 }
 0x114   : > { %v12311_v51 = vadd.f32 %v1055_v39, %v772_v34  ;;  %10328 = vmatmul.msk.bf16.vlgmr.msrb.gmra.mxu3 %vm471_vm1, %v12228_v42  ;;  %10329 = vmatmul.msk.bf16.vlgmr.msrb.gmra.mxu0 %vm471_vm1, %v12228_v42  ;;  %v1037_v7 = vperm.slane %v11963_v18, 1 }
 0x115   : > { %v844_v26 = vpop.f32.mrf.mxu2  ;;  %1654 = vmatpush.bf16.msrb.mxu3 %v12059_v45  ;;  %1759 = vmatpush.bf16.msrb.mxu0 %v11952_v14 }
 0x116   : > { %v1049_v30 = vmul.f32 %v1033_v59, %v844_v26 }
 0x117   : > { %v914_v31 = vpop.f32.mrf.mxu3  ;;  %v888_v2 = vpop.f32.mrf.mxu1 }
 0x118   : > { %v1054_v57 = vmul.f32 %v1038_v60, %v914_v31  ;;  %v12325_v34 = vadd.f32 %v1049_v30, %v766_v29  ;;  %v1068_v61 = vmul.f32 %v1036_v36, %v888_v2  ;;  %v787_v29 = vmul.f32 %v755_v27, %v12191_v5 }
 0x119   : > { %v930_v39 = vpop.f32.mrf.mxu0  ;;  %v760_v36 = vperm.slane %v11984_v25, 0  ;;  %v759_v5 = vperm.slane %v11969_v20, 0 }
 0x11a   : > { %v12328_v44 = vadd.f32 %v1054_v57, %v771_v37  ;;  %v1071_v62 = vmul.f32 %v1039_v22, %v930_v39  ;;  %v12331_v45 = vadd.f32 %v1068_v61, %v785_v56 }
 0x11b   : > { %v776_v57 = vmul.f32 %v760_v36, %v12195_v9  ;;  %v1042_v9 = vperm.slane %v11969_v20, 1  ;;  %v775_v39 = vmul.f32 %v759_v5, %v12211_v17 }
 0x11c   : > { %v12333_v14 = vadd.f32 %v1071_v62, %v788_v43  ;;  %v754_v43 = vperm.slane %v11963_v18, 0 }
 0x11d   : > { %v846_v26 = vpop.f32.mrf.mxu2 }
 0x11e   : > { %v1065_v22 = vmul.f32 %v1033_v59, %v846_v26 }
 0x11f   : > { %v916_v37 = vpop.f32.mrf.mxu3  ;;  %v942_v56 = vpop.f32.mrf.mxu1 }
 0x120   : > { %v1070_v30 = vmul.f32 %v1038_v60, %v916_v37  ;;  %v12342_v31 = vadd.f32 %v1065_v22, %v782_v63  ;;  %v1056_v4 = vmul.f32 %v1040_v54, %v942_v56  ;;  %v770_v60 = vmul.f32 %v754_v43, %v12207_v10 }
 0x121   : > { %v984_v52 = vpop.f32.mrf.mxu0  ;;  %v789_v63 = vmul.f32 %v757_v12, %v12213_v23  ;;  %v792_v56 = vmul.f32 %v760_v36, %v12215_v24  ;;  %v786_v12 = vmul.f32 %v754_v43, %v12218_v28  ;;  %v1044_v23 = vperm.slane %v12037_v38, 1 }
 0x122   : > { %v12346_v27 = vadd.f32 %v1070_v30, %v787_v29  ;;  %v1059_v2 = vmul.f32 %v1043_v3, %v984_v52  ;;  %v12348_v61 = vadd.f32 %v1056_v4, %v773_v55  ;;  %10327 = vmatmul.msk.bf16.vlgmr.msra.gmra.mxu2 %vm471_vm1, %v12228_v42  ;;  %10330 = vmatmul.msk.bf16.vlgmr.msra.gmra.mxu1 %vm471_vm1, %v12228_v42  ;;  %v761_v52 = vperm.slane %v12037_v38, 0 }
 0x123   : > { %1640 = vmatpush.bf16.msra.mxu2 %v12075_v48  ;;  %1773 = vmatpush.bf16.msra.mxu1 %v11955_v15 }
 0x124   : > { %v12355_v59 = vadd.f32 %v1059_v2, %v776_v57  ;;  %10332 = vmatmul.msk.bf16.vlgmr.msra.gmra.mxu3 %vm471_vm1, %v12228_v42  ;;  %10333 = vmatmul.msk.bf16.vlgmr.msra.gmra.mxu0 %vm471_vm1, %v12228_v42 }
 0x125   : > { %v900_v62 = vpop.f32.mrf.mxu2  ;;  %1801 = vmatpush.bf16.msra.mxu3 %v11958_v16  ;;  %1815 = vmatpush.bf16.msra.mxu0 %v11974_v21 }
 0x126   : > { %v1053_v29 = vmul.f32 %v1037_v7, %v900_v62 }
 0x127   : > { %v970_v26 = vpop.f32.mrf.mxu3  ;;  %v944_v22 = vpop.f32.mrf.mxu1 }
 0x128   : > { %v1058_v55 = vmul.f32 %v1042_v9, %v970_v26  ;;  %v12369_v37 = vadd.f32 %v1053_v29, %v770_v60  ;;  %v1072_v10 = vmul.f32 %v1040_v54, %v944_v22  ;;  %v791_v60 = vmul.f32 %v759_v5, %v12221_v32  ;;  %v16715_v29 = vld [vmem:[#allocation38_spill] sm:$0xff]  ;;  %v16718_v5 = vld [vmem:[#allocation32_spill] sm:$0xff] }
 0x129   : > { %v986_v30 = vpop.f32.mrf.mxu0  ;;  %v1346_v54 = vperm.slane %v11913_v0, 2  ;;  %v777_v24 = vmul.f32 %v761_v52, %v16715_v29 }
 0x12a   : > { %v12372_v4 = vadd.f32 %v1058_v55, %v775_v39  ;;  %v1075_v17 = vmul.f32 %v1043_v3, %v986_v30  ;;  %v12375_v57 = vadd.f32 %v1072_v10, %v789_v63  ;;  %v12387_v63 = vld [vmem:[%s16529_s4 + $0x20] sm:$0xff]  ;;  %v763_v10 = vperm.slane %v16718_v5, 0 }
 0x12b   : > { %v16716_v55 = vld [vmem:[#allocation31_spill] sm:$0xff] }
 0x12c   : > { %v12377_v2 = vadd.f32 %v1075_v17, %v792_v56  ;;  %v758_v28 = vperm.slane %v16716_v55, 0  ;;  %v16721_v17 = vld [vmem:[#allocation39_spill] sm:$0xff] }
 0x12d   : > { %v902_v62 = vpop.f32.mrf.mxu2 }
 0x12e   : > { %v1069_v36 = vmul.f32 %v1037_v7, %v902_v62  ;;  %v16723_v62 = vld [vmem:[#allocation40_spill] sm:$0xff] }
 0x12f   : > { %v972_v39 = vpop.f32.mrf.mxu3  ;;  %v998_v26 = vpop.f32.mrf.mxu1  ;;  %v774_v29 = vmul.f32 %v758_v28, %v16723_v62 }
 0x130   : > { %v1074_v3 = vmul.f32 %v1042_v9, %v972_v39  ;;  %v12390_v43 = vadd.f32 %v1069_v36, %v786_v12  ;;  %v1060_v22 = vmul.f32 %v1044_v23, %v998_v26  ;;  %v1041_v9 = vperm.slane %v16716_v55, 1  ;;  %v16725_v36 = vld [vmem:[#allocation24_spill] sm:$0xff]  ;;  %v16726_v39 = vld [vmem:[#allocation41_spill] sm:$0xff] }
 0x131   : > { %v1131_v32 = vpop.f32.mrf.mxu0 }
 0x132   : > { %16717 = vst [vmem:[#allocation38_spill] sm:$0xff] %v12390_v43  ;;  %v12393_v30 = vadd.f32 %v1074_v3, %v791_v60  ;;  %v1362_v56 = vmul.f32 %v1346_v54, %v1131_v32  ;;  %v12395_v7 = vadd.f32 %v1060_v22, %v777_v24  ;;  %10331 = vmatmul.msk.bf16.vlgmr.msrb.gmra.mxu2 %vm471_vm1, %v12228_v42  ;;  %v1046_v60 = vperm.slane %v16718_v5, 1  ;;  %v16724_v24 = vld [vmem:[#allocation23_spill] sm:$0xff]  ;;  %v16727_v22 = vld [vmem:[#allocation25_spill] sm:$0xff]  ;;  %v16728_v32 = vld [vmem:[#allocation26_spill] sm:$0xff] }
 0x133   : > { %10334 = vmatmul.msk.bf16.vlgmr.msrb.gmra.mxu1 %vm471_vm1, %v12228_v42  ;;  %1787 = vmatpush.bf16.msrb.mxu2 %v16724_v24  ;;  %v779_v3 = vmul.f32 %v763_v10, %v16726_v39 }
 0x134   : > { %16719 = vst [vmem:[#allocation45_spill] sm:$0xff] %v12393_v30  ;;  %v12403_v12 = vadd.f32 %v1362_v56, %v16721_v17  ;;  %10336 = vmatmul.msk.bf16.vlgmr.msrb.gmra.mxu3 %vm471_vm1, %v12228_v42  ;;  %10343 = vmatmul.msk.bf16.vlgmr.msrb.gmra.mxu0 %vm471_vm1, %v12387_v63  ;;  %v16729_v56 = vld [vmem:[#allocation42_spill] sm:$0xff] }
 0x135   : > { %16720 = vst [vmem:[#allocation46_spill] sm:$0xff] %v12395_v7  ;;  %1829 = vmatpush.bf16.msrb.mxu1 %v16725_v36  ;;  %v956_v26 = vpop.f32.mrf.mxu2  ;;  %1857 = vmatpush.bf16.msrb.mxu3 %v16727_v22  ;;  %v793_v17 = vmul.f32 %v761_v52, %v16729_v56  ;;  %v1347_v52 = vperm.slane %v11916_v1, 2  ;;  %v16730_v56 = vld [vmem:[#allocation17_spill] sm:$0xff] }
 0x136   : > { %16722 = vst [vmem:[#allocation39_spill] sm:$0xff] %v12403_v12  ;;  %1871 = vmatpush.bf16.msrb.mxu0 %v16728_v32  ;;  %v1057_v12 = vmul.f32 %v1041_v9, %v956_v26  ;;  %v790_v32 = vmul.f32 %v758_v28, %v12255_v53  ;;  %v795_v26 = vmul.f32 %v763_v10, %v12259_v47  ;;  %v16732_v28 = vld [vmem:[#allocation43_spill] sm:$0xff] }
 0x137   : > { %v1026_v55 = vpop.f32.mrf.mxu3  ;;  %v1000_v30 = vpop.f32.mrf.mxu1 }
 0x138   : > { %v1062_v7 = vmul.f32 %v1046_v60, %v1026_v55  ;;  %v12417_v5 = vadd.f32 %v1057_v12, %v774_v29  ;;  %v1076_v62 = vmul.f32 %v1044_v23, %v1000_v30  ;;  %v1350_v12 = vperm.slane %v16730_v56, 2 }
 0x139   : > { %v1133_v43 = vpop.f32.mrf.mxu0 }
 0x13a   : > { %v12419_v24 = vadd.f32 %v1062_v7, %v779_v3  ;;  %v1378_v36 = vmul.f32 %v1346_v54, %v1133_v43  ;;  %v12421_v0 = vadd.f32 %v1076_v62, %v793_v17  ;;  %v16731_v3 = vld [vmem:[#allocation36_spill] sm:$0xff]  ;;  %v16735_v62 = vld [vmem:[#allocation27_spill] sm:$0xff] }
 0x13b   : > { %v762_v54 = vperm.slane %v16731_v3, 0  ;;  %v1045_v47 = vperm.slane %v16731_v3, 1 }
 0x13c   : > { %v12424_v39 = vadd.f32 %v1378_v36, %v12251_v41 }
 0x13d   : > { %v958_v55 = vpop.f32.mrf.mxu2 }
 0x13e   : > { %v1073_v29 = vmul.f32 %v1041_v9, %v958_v55  ;;  %v16733_v9 = vld [vmem:[#allocation16_spill] sm:$0xff]  ;;  %v16737_v55 = vld [vmem:[#allocation30_spill] sm:$0xff] }
 0x13f   : > { %v1028_v23 = vpop.f32.mrf.mxu3  ;;  %v1145_v7 = vpop.f32.mrf.mxu1 }
 0x140   : > { %v1078_v30 = vmul.f32 %v1046_v60, %v1028_v23  ;;  %v12431_v43 = vadd.f32 %v1073_v29, %v790_v32  ;;  %v1363_v17 = vmul.f32 %v1347_v52, %v1145_v7  ;;  %v16734_v60 = vld [vmem:[#allocation44_spill] sm:$0xff] }
 0x141   : > { %v1187_v41 = vpop.f32.mrf.mxu0  ;;  %v778_v32 = vmul.f32 %v762_v54, %v16734_v60 }
 0x142   : > { %v12433_v36 = vadd.f32 %v1078_v30, %v795_v26  ;;  %v1366_v53 = vmul.f32 %v1350_v12, %v1187_v41  ;;  %v12436_v1 = vadd.f32 %v1363_v17, %v12263_v40  ;;  %10335 = vmatmul.msk.bf16.vlgmr.msra.gmra.mxu2 %vm471_vm1, %v12228_v42  ;;  %v1349_v40 = vperm.slane %v16733_v9, 2  ;;  %v16736_v42 = vld [vmem:[#allocation28_spill] sm:$0xff] }
 0x143   : > { %10344 = vmatmul.msk.bf16.vlgmr.msra.gmra.mxu1 %vm471_vm1, %v12387_v63  ;;  %1843 = vmatpush.bf16.msra.mxu2 %v16735_v62 }
 0x144   : > { %v12444_v10 = vadd.f32 %v1366_v53, %v16732_v28  ;;  %10346 = vmatmul.msk.bf16.vlgmr.msra.gmra.mxu3 %vm471_vm1, %v12387_v63  ;;  %10347 = vmatmul.msk.bf16.vlgmr.msra.gmra.mxu0 %vm471_vm1, %v12387_v63 }
 0x145   : > { %1885 = vmatpush.bf16.msra.mxu1 %v16736_v42  ;;  %v1012_v26 = vpop.f32.mrf.mxu2  ;;  %1913 = vmatpush.bf16.msra.mxu3 %v12022_v35 }
 0x146   : > { %1927 = vmatpush.bf16.msra.mxu0 %v16737_v55  ;;  %v1061_v56 = vmul.f32 %v1045_v47, %v1012_v26  ;;  %v794_v55 = vmul.f32 %v762_v54, %v12295_v49  ;;  %v1351_v26 = vperm.slane %v11943_v11, 2  ;;  %v1348_v11 = vperm.slane %v11936_v8, 2  ;;  %v16739_v49 = vld [vmem:[#allocation18_spill] sm:$0xff] }
 0x147   : > { %v1173_v29 = vpop.f32.mrf.mxu3  ;;  %v1147_v30 = vpop.f32.mrf.mxu1  ;;  %v16741_v54 = vld [vmem:[#allocation34_spill] sm:$0xff] }
 0x148   : > { %v1365_v23 = vmul.f32 %v1349_v40, %v1173_v29  ;;  %v12456_v7 = vadd.f32 %v1061_v56, %v778_v32  ;;  %v1379_v17 = vmul.f32 %v1347_v52, %v1147_v30  ;;  %v1354_v32 = vperm.slane %v11949_v13, 2 }
 0x149   : > { %v1189_v41 = vpop.f32.mrf.mxu0 }
 0x14a   : > { %16738 = vst [vmem:[#allocation40_spill] sm:$0xff] %v12456_v7  ;;  %v12459_v53 = vadd.f32 %v1365_v23, %v12285_v33  ;;  %v1382_v28 = vmul.f32 %v1350_v12, %v1189_v41  ;;  %v12462_v9 = vadd.f32 %v1379_v17, %v12288_v6 }
 0x14c   : > { %v12465_v60 = vadd.f32 %v1382_v28, %v12290_v50 }
 0x14d   : > { %v1014_v29 = vpop.f32.mrf.mxu2 }
 0x14e   : > { %v1077_v56 = vmul.f32 %v1045_v47, %v1014_v29 }
 0x14f   : > { %v1175_v52 = vpop.f32.mrf.mxu3  ;;  %v1201_v7 = vpop.f32.mrf.mxu1 }
 0x150   : > { %v1381_v30 = vmul.f32 %v1349_v40, %v1175_v52  ;;  %v12470_v33 = vadd.f32 %v1077_v56, %v794_v55  ;;  %v1367_v12 = vmul.f32 %v1351_v26, %v1201_v7  ;;  %v16742_v40 = vld [vmem:[#allocation35_spill] sm:$0xff] }
 0x151   : > { %v1243_v23 = vpop.f32.mrf.mxu0  ;;  %v16743_v55 = vld [vmem:[#allocation19_spill] sm:$0xff] }
 0x152   : > { %v12473_v6 = vadd.f32 %v1381_v30, %v12302_v58  ;;  %v1370_v50 = vmul.f32 %v1354_v32, %v1243_v23  ;;  %v12476_v17 = vadd.f32 %v1367_v12, %v12304_v46  ;;  %10345 = vmatmul.msk.bf16.vlgmr.msrb.gmra.mxu2 %vm471_vm1, %v12387_v63  ;;  %v1353_v58 = vperm.slane %v16739_v49, 2  ;;  %v16740_v46 = vld [vmem:[#allocation33_spill] sm:$0xff] }
 0x153   : > { %10348 = vmatmul.msk.bf16.vlgmr.msrb.gmra.mxu1 %vm471_vm1, %v12387_v63  ;;  %1899 = vmatpush.bf16.msrb.mxu2 %v16740_v46 }
 0x154   : > { %v12484_v13 = vadd.f32 %v1370_v50, %v12311_v51  ;;  %10350 = vmatmul.msk.bf16.vlgmr.msrb.gmra.mxu3 %vm471_vm1, %v12387_v63  ;;  %10351 = vmatmul.msk.bf16.vlgmr.msrb.gmra.mxu0 %vm471_vm1, %v12387_v63  ;;  %v1355_v50 = vperm.slane %v11966_v19, 2  ;;  %v1352_v19 = vperm.slane %v11963_v18, 2 }
 0x155   : > { %1941 = vmatpush.bf16.msrb.mxu1 %v16741_v54  ;;  %v1159_v47 = vpop.f32.mrf.mxu2  ;;  %1969 = vmatpush.bf16.msrb.mxu3 %v16742_v40 }
 0x156   : > { %2074 = vmatpush.bf16.msrb.mxu0 %v16743_v55  ;;  %v1364_v8 = vmul.f32 %v1348_v11, %v1159_v47  ;;  %v1358_v47 = vperm.slane %v11984_v25, 2 }
 0x157   : > { %v1229_v51 = vpop.f32.mrf.mxu3  ;;  %v1203_v41 = vpop.f32.mrf.mxu1 }
 0x158   : > { %v1369_v7 = vmul.f32 %v1353_v58, %v1229_v51  ;;  %v12496_v28 = vadd.f32 %v1364_v8, %v12325_v34  ;;  %v1383_v29 = vmul.f32 %v1351_v26, %v1203_v41 }
 0x159   : > { %v1245_v56 = vpop.f32.mrf.mxu0 }
 0x15a   : > { %v12499_v52 = vadd.f32 %v1369_v7, %v12328_v44  ;;  %v1386_v30 = vmul.f32 %v1354_v32, %v1245_v56  ;;  %v12502_v12 = vadd.f32 %v1383_v29, %v12331_v45 }
 0x15c   : > { %v12505_v23 = vadd.f32 %v1386_v30, %v12333_v14 }
 0x15d   : > { %v1161_v49 = vpop.f32.mrf.mxu2 }
 0x15e   : > { %v1380_v51 = vmul.f32 %v1348_v11, %v1161_v49 }
 0x15f   : > { %v1231_v34 = vpop.f32.mrf.mxu3  ;;  %v1257_v26 = vpop.f32.mrf.mxu1 }
 0x160   : > { %v1385_v8 = vmul.f32 %v1353_v58, %v1231_v34  ;;  %v12510_v41 = vadd.f32 %v1380_v51, %v12342_v31  ;;  %v1371_v44 = vmul.f32 %v1355_v50, %v1257_v26  ;;  %v1357_v31 = vperm.slane %v11969_v20, 2  ;;  %v16744_v26 = vld [vmem:[#allocation15_spill] sm:$0xff] }
 0x161   : > { %v1299_v32 = vpop.f32.mrf.mxu0  ;;  %v1359_v34 = vperm.slane %v12037_v38, 2 }
 0x162   : > { %v12513_v45 = vadd.f32 %v1385_v8, %v12346_v27  ;;  %v1374_v7 = vmul.f32 %v1358_v47, %v1299_v32  ;;  %v12516_v14 = vadd.f32 %v1371_v44, %v12348_v61  ;;  %10349 = vmatmul.msk.bf16.vlgmr.msra.gmra.mxu2 %vm471_vm1, %v12387_v63  ;;  %v1661_v44 = vperm.slane %v16744_v26, 3  ;;  %v16751_v26 = vld [vmem:[#allocation23_spill] sm:$0xff] }
 0x163   : > { %10352 = vmatmul.msk.bf16.vlgmr.msra.gmra.mxu1 %vm471_vm1, %v12387_v63  ;;  %1955 = vmatpush.bf16.msra.mxu2 %v12075_v48 }
 0x164   : > { %v12524_v25 = vadd.f32 %v1374_v7, %v12355_v59  ;;  %10354 = vmatmul.msk.bf16.vlgmr.msra.gmra.mxu3 %vm471_vm1, %v12387_v63  ;;  %10355 = vmatmul.msk.bf16.vlgmr.msra.gmra.mxu0 %vm471_vm1, %v12387_v63 }
 0x165   : > { %2088 = vmatpush.bf16.msra.mxu1 %v11955_v15  ;;  %v1215_v27 = vpop.f32.mrf.mxu2  ;;  %2116 = vmatpush.bf16.msra.mxu3 %v11958_v16 }
 0x166   : > { %2130 = vmatpush.bf16.msra.mxu0 %v11974_v21  ;;  %v1368_v18 = vmul.f32 %v1352_v19, %v1215_v27 }
 0x167   : > { %v1285_v61 = vpop.f32.mrf.mxu3  ;;  %v1259_v11 = vpop.f32.mrf.mxu1 }
 0x168   : > { %v1373_v59 = vmul.f32 %v1357_v31, %v1285_v61  ;;  %v12536_v58 = vadd.f32 %v1368_v18, %v12369_v37  ;;  %v1387_v29 = vmul.f32 %v1355_v50, %v1259_v11  ;;  %v16746_v18 = vld [vmem:[#allocation45_spill] sm:$0xff] }
 0x169   : > { %v1301_v56 = vpop.f32.mrf.mxu0 }
 0x16a   : > { %v12539_v20 = vadd.f32 %v1373_v59, %v12372_v4  ;;  %v1390_v30 = vmul.f32 %v1358_v47, %v1301_v56  ;;  %v12542_v49 = vadd.f32 %v1387_v29, %v12375_v57  ;;  %v12552_v4 = vld [vmem:[%s16529_s4 + $0x28] sm:$0xff]  ;;  %v16745_v47 = vld [vmem:[#allocation38_spill] sm:$0xff] }
 0x16b   : > { %v16747_v59 = vld [vmem:[#allocation46_spill] sm:$0xff]  ;;  %v16749_v29 = vld [vmem:[#allocation39_spill] sm:$0xff] }
 0x16c   : > { %v12545_v51 = vadd.f32 %v1390_v30, %v12377_v2  ;;  %v16750_v30 = vld [vmem:[#allocation32_spill] sm:$0xff] }
 0x16d   : > { %v1217_v8 = vpop.f32.mrf.mxu2 }
 0x16e   : > { %v1384_v32 = vmul.f32 %v1352_v19, %v1217_v8  ;;  %v16748_v19 = vld [vmem:[#allocation31_spill] sm:$0xff]  ;;  %v1361_v8 = vperm.slane %v16750_v30, 2 }
 0x16f   : > { %v1287_v37 = vpop.f32.mrf.mxu3  ;;  %v1313_v50 = vpop.f32.mrf.mxu1 }
 0x170   : > { %v1389_v7 = vmul.f32 %v1357_v31, %v1287_v37  ;;  %v12555_v57 = vadd.f32 %v1384_v32, %v16745_v47  ;;  %v1375_v27 = vmul.f32 %v1359_v34, %v1313_v50  ;;  %v1356_v31 = vperm.slane %v16748_v19, 2  ;;  %v16752_v32 = vld [vmem:[#allocation24_spill] sm:$0xff] }
 0x171   : > { %v1446_v2 = vpop.f32.mrf.mxu0 }
 0x172   : > { %v12558_v61 = vadd.f32 %v1389_v7, %v16746_v18  ;;  %v1677_v38 = vmul.f32 %v1661_v44, %v1446_v2  ;;  %v12561_v11 = vadd.f32 %v1375_v27, %v16747_v59  ;;  %10353 = vmatmul.msk.bf16.vlgmr.msrb.gmra.mxu2 %vm471_vm1, %v12387_v63  ;;  %v16753_v7 = vld [vmem:[#allocation26_spill] sm:$0xff] }
 0x173   : > { %10356 = vmatmul.msk.bf16.vlgmr.msrb.gmra.mxu1 %vm471_vm1, %v12387_v63  ;;  %2102 = vmatpush.bf16.msrb.mxu2 %v16751_v26 }
 0x174   : > { %v12569_v56 = vadd.f32 %v1677_v38, %v16749_v29  ;;  %10358 = vmatmul.msk.bf16.vlgmr.msrb.gmra.mxu3 %vm471_vm1, %v12387_v63  ;;  %10365 = vmatmul.msk.bf16.vlgmr.msrb.gmra.mxu0 %vm471_vm1, %v12552_v4 }
 0x175   : > { %2144 = vmatpush.bf16.msrb.mxu1 %v16752_v32  ;;  %v1271_v37 = vpop.f32.mrf.mxu2  ;;  %2172 = vmatpush.bf16.msrb.mxu3 %v16727_v22  ;;  %v12597_v32 = vld [vmem:[%s11910_s30 + $0x20] sm:$0xff] }
 0x176   : > { %2186 = vmatpush.bf16.msrb.mxu0 %v16753_v7  ;;  %v1372_v50 = vmul.f32 %v1356_v31, %v1271_v37  ;;  %v12593_v7 = vld [vmem:[%s11910_s30 + $0x8] sm:$0xff] }
 0x177   : > { %v1341_v47 = vpop.f32.mrf.mxu3  ;;  %v1315_v2 = vpop.f32.mrf.mxu1  ;;  %v1662_v37 = vperm.slane %v12593_v7, 3 }
 0x178   : > { %v1377_v27 = vmul.f32 %v1361_v8, %v1341_v47  ;;  %v12581_v18 = vadd.f32 %v1372_v50, %v12417_v5  ;;  %v1391_v38 = vmul.f32 %v1359_v34, %v1315_v2  ;;  %v1665_v5 = vperm.slane %v12597_v32, 3 }
 0x179   : > { %v1448_v59 = vpop.f32.mrf.mxu0 }
 0x17a   : > { %v12584_v19 = vadd.f32 %v1377_v27, %v12419_v24  ;;  %v1693_v29 = vmul.f32 %v1661_v44, %v1448_v59  ;;  %v12587_v30 = vadd.f32 %v1391_v38, %v12421_v0 }
 0x17c   : > { %v12590_v22 = vadd.f32 %v1693_v29, %v12424_v39 }
 0x17d   : > { %v1273_v47 = vpop.f32.mrf.mxu2 }
 0x17e   : > { %v1388_v34 = vmul.f32 %v1356_v31, %v1273_v47  ;;  %v1360_v31 = vperm.slane %v16731_v3, 2  ;;  %v16754_v3 = vld [vmem:[#allocation30_spill] sm:$0xff] }
 0x17f   : > { %v1343_v24 = vpop.f32.mrf.mxu3  ;;  %v1460_v44 = vpop.f32.mrf.mxu1 }
 0x180   : > { %v1393_v50 = vmul.f32 %v1361_v8, %v1343_v24  ;;  %v12601_v0 = vadd.f32 %v1388_v34, %v12431_v43  ;;  %v1678_v27 = vmul.f32 %v1662_v37, %v1460_v44  ;;  %v16755_v34 = vld [vmem:[#allocation40_spill] sm:$0xff] }
 0x181   : > { %v1502_v39 = vpop.f32.mrf.mxu0 }
 0x182   : > { %v12604_v2 = vadd.f32 %v1393_v50, %v12433_v36  ;;  %v1681_v38 = vmul.f32 %v1665_v5, %v1502_v39  ;;  %v12607_v59 = vadd.f32 %v1678_v27, %v12436_v1  ;;  %10357 = vmatmul.msk.bf16.vlgmr.msra.gmra.mxu2 %vm471_vm1, %v12387_v63  ;;  %v12622_v36 = vld [vmem:[%s11910_s30 + $0x18] sm:$0xff] }
 0x183   : > { %10366 = vmatmul.msk.bf16.vlgmr.msra.gmra.mxu1 %vm471_vm1, %v12552_v4  ;;  %v1664_v1 = vperm.slane %v12622_v36, 3  ;;  %2158 = vmatpush.bf16.msra.mxu2 %v16735_v62 }
 0x184   : > { %v12615_v43 = vadd.f32 %v1681_v38, %v12444_v10  ;;  %10368 = vmatmul.msk.bf16.vlgmr.msra.gmra.mxu3 %vm471_vm1, %v12552_v4  ;;  %10369 = vmatmul.msk.bf16.vlgmr.msra.gmra.mxu0 %vm471_vm1, %v12552_v4 }
 0x185   : > { %2200 = vmatpush.bf16.msra.mxu1 %v16736_v42  ;;  %v1327_v63 = vpop.f32.mrf.mxu2  ;;  %2228 = vmatpush.bf16.msra.mxu3 %v12022_v35 }
 0x186   : > { %2242 = vmatpush.bf16.msra.mxu0 %v16754_v3  ;;  %v1376_v10 = vmul.f32 %v1360_v31, %v1327_v63  ;;  %v12642_v3 = vld [vmem:[%s11910_s30 + $0x28] sm:$0xff] }
 0x187   : > { %v1488_v8 = vpop.f32.mrf.mxu3  ;;  %v1462_v47 = vpop.f32.mrf.mxu1  ;;  %v1666_v63 = vperm.slane %v12642_v3, 3 }
 0x188   : > { %v1680_v29 = vmul.f32 %v1664_v1, %v1488_v8  ;;  %v12630_v24 = vadd.f32 %v1376_v10, %v16755_v34  ;;  %v1694_v50 = vmul.f32 %v1662_v37, %v1462_v47  ;;  %v12646_v10 = vld [vmem:[%s11910_s30 + $0x40] sm:$0xff] }
 0x189   : > { %v1504_v44 = vpop.f32.mrf.mxu0  ;;  %v1669_v37 = vperm.slane %v12646_v10, 3 }
 0x18a   : > { %v12633_v27 = vadd.f32 %v1680_v29, %v12459_v53  ;;  %v1697_v39 = vmul.f32 %v1665_v5, %v1504_v44  ;;  %v12636_v38 = vadd.f32 %v1694_v50, %v12462_v9 }
 0x18c   : > { %v12639_v35 = vadd.f32 %v1697_v39, %v12465_v60 }
 0x18d   : > { %v1329_v8 = vpop.f32.mrf.mxu2 }
 0x18e   : > { %v1392_v47 = vmul.f32 %v1360_v31, %v1329_v8  ;;  %v12663_v31 = vld [vmem:[%s11910_s30 + $0x10] sm:$0xff] }
 0x18f   : > { %v1490_v53 = vpop.f32.mrf.mxu3  ;;  %v1516_v29 = vpop.f32.mrf.mxu1 }
 0x190   : > { %v1696_v5 = vmul.f32 %v1664_v1, %v1490_v53  ;;  %v12650_v9 = vadd.f32 %v1392_v47, %v12470_v33  ;;  %v1682_v60 = vmul.f32 %v1666_v63, %v1516_v29  ;;  %v1663_v33 = vperm.slane %v12663_v31, 3 }
 0x191   : > { %v1558_v34 = vpop.f32.mrf.mxu0 }
 0x192   : > { %v12653_v50 = vadd.f32 %v1696_v5, %v12473_v6  ;;  %v1685_v44 = vmul.f32 %v1669_v37, %v1558_v34  ;;  %v12656_v39 = vadd.f32 %v1682_v60, %v12476_v17  ;;  %10367 = vmatmul.msk.bf16.vlgmr.msrb.gmra.mxu2 %vm471_vm1, %v12552_v4  ;;  %v12674_v6 = vld [vmem:[%s11910_s30 + $0x38] sm:$0xff] }
 0x193   : > { %10370 = vmatmul.msk.bf16.vlgmr.msrb.gmra.mxu1 %vm471_vm1, %v12552_v4  ;;  %v1668_v17 = vperm.slane %v12674_v6, 3  ;;  %2214 = vmatpush.bf16.msrb.mxu2 %v16740_v46 }
 0x194   : > { %v12667_v1 = vadd.f32 %v1685_v44, %v12484_v13  ;;  %10372 = vmatmul.msk.bf16.vlgmr.msrb.gmra.mxu3 %vm471_vm1, %v12552_v4  ;;  %10373 = vmatmul.msk.bf16.vlgmr.msrb.gmra.mxu0 %vm471_vm1, %v12552_v4 }
 0x195   : > { %2256 = vmatpush.bf16.msrb.mxu1 %v16741_v54  ;;  %v1474_v8 = vpop.f32.mrf.mxu2  ;;  %2284 = vmatpush.bf16.msrb.mxu3 %v16742_v40 }
 0x196   : > { %2389 = vmatpush.bf16.msrb.mxu0 %v16743_v55  ;;  %v1679_v13 = vmul.f32 %v1663_v33, %v1474_v8  ;;  %v12694_v55 = vld [vmem:[%s11910_s30 + $0x48] sm:$0xff] }
 0x197   : > { %v1544_v47 = vpop.f32.mrf.mxu3  ;;  %v1518_v5 = vpop.f32.mrf.mxu1  ;;  %v1670_v8 = vperm.slane %v12694_v55, 3 }
 0x198   : > { %v1684_v53 = vmul.f32 %v1668_v17, %v1544_v47  ;;  %v12682_v29 = vadd.f32 %v1679_v13, %v12496_v28  ;;  %v1698_v60 = vmul.f32 %v1666_v63, %v1518_v5  ;;  %v12698_v28 = vld [vmem:[%s11910_s30 + $0x60] sm:$0xff] }
 0x199   : > { %v1560_v34 = vpop.f32.mrf.mxu0  ;;  %v1673_v63 = vperm.slane %v12698_v28, 3 }
 0x19a   : > { %v12685_v44 = vadd.f32 %v1684_v53, %v12499_v52  ;;  %v1701_v46 = vmul.f32 %v1669_v37, %v1560_v34  ;;  %v12688_v54 = vadd.f32 %v1698_v60, %v12502_v12 }
 0x19c   : > { %v12691_v40 = vadd.f32 %v1701_v46, %v12505_v23 }
 0x19d   : > { %v1476_v47 = vpop.f32.mrf.mxu2 }
 0x19e   : > { %v1695_v13 = vmul.f32 %v1663_v33, %v1476_v47  ;;  %v12715_v33 = vld [vmem:[%s11910_s30 + $0x30] sm:$0xff] }
 0x19f   : > { %v1546_v52 = vpop.f32.mrf.mxu3  ;;  %v1572_v53 = vpop.f32.mrf.mxu1 }
 0x1a0   : > { %v1700_v37 = vmul.f32 %v1668_v17, %v1546_v52  ;;  %v12702_v12 = vadd.f32 %v1695_v13, %v12510_v41  ;;  %v1686_v46 = vmul.f32 %v1670_v8, %v1572_v53  ;;  %v1667_v41 = vperm.slane %v12715_v33, 3 }
 0x1a1   : > { %v1614_v23 = vpop.f32.mrf.mxu0 }
 0x1a2   : > { %v12705_v5 = vadd.f32 %v1700_v37, %v12513_v45  ;;  %v1689_v60 = vmul.f32 %v1673_v63, %v1614_v23  ;;  %v12708_v34 = vadd.f32 %v1686_v46, %v12516_v14  ;;  %10371 = vmatmul.msk.bf16.vlgmr.msra.gmra.mxu2 %vm471_vm1, %v12552_v4  ;;  %v12726_v45 = vld [vmem:[%s11910_s30 + $0x58] sm:$0xff] }
 0x1a3   : > { %10374 = vmatmul.msk.bf16.vlgmr.msra.gmra.mxu1 %vm471_vm1, %v12552_v4  ;;  %16756 = vst [vmem:[#allocation41_spill] sm:$0xff] %v12726_v45  ;;  %v1672_v14 = vperm.slane %v12726_v45, 3  ;;  %2270 = vmatpush.bf16.msra.mxu2 %v12075_v48 }
 0x1a4   : > { %v12719_v17 = vadd.f32 %v1689_v60, %v12524_v25  ;;  %10376 = vmatmul.msk.bf16.vlgmr.msra.gmra.mxu3 %vm471_vm1, %v12552_v4  ;;  %10377 = vmatmul.msk.bf16.vlgmr.msra.gmra.mxu0 %vm471_vm1, %v12552_v4 }
 0x1a5   : > { %2403 = vmatpush.bf16.msra.mxu1 %v11955_v15  ;;  %v1530_v47 = vpop.f32.mrf.mxu2  ;;  %2431 = vmatpush.bf16.msra.mxu3 %v11958_v16 }
 0x1a6   : > { %2445 = vmatpush.bf16.msra.mxu0 %v11974_v21  ;;  %v1683_v25 = vmul.f32 %v1667_v41, %v1530_v47  ;;  %v12746_v21 = vld [vmem:[%s11910_s30 + $0x68] sm:$0xff] }
 0x1a7   : > { %v1600_v13 = vpop.f32.mrf.mxu3  ;;  %v1574_v37 = vpop.f32.mrf.mxu1  ;;  %v1674_v47 = vperm.slane %v12746_v21, 3 }
 0x1a8   : > { %v1688_v52 = vmul.f32 %v1672_v14, %v1600_v13  ;;  %v12734_v53 = vadd.f32 %v1683_v25, %v12536_v58  ;;  %v1702_v46 = vmul.f32 %v1670_v8, %v1574_v37  ;;  %v12750_v58 = vld [vmem:[%s11910_s30] sm:$0xff] }
 0x1a9   : > { %v1616_v23 = vpop.f32.mrf.mxu0  ;;  %v1976_v8 = vperm.slane %v12750_v58, 4 }
 0x1aa   : > { %v12737_v60 = vadd.f32 %v1688_v52, %v12539_v20  ;;  %v1705_v48 = vmul.f32 %v1673_v63, %v1616_v23  ;;  %v12740_v15 = vadd.f32 %v1702_v46, %v12542_v49 }
 0x1ac   : > { %v12743_v16 = vadd.f32 %v1705_v48, %v12545_v51  ;;  %v12756_v48 = vld [vmem:[%s16529_s4 + $0x30] sm:$0xff] }
 0x1ad   : > { %v1532_v13 = vpop.f32.mrf.mxu2 }
 0x1ae   : > { %v1699_v25 = vmul.f32 %v1667_v41, %v1532_v13 }
 0x1af   : > { %v1602_v20 = vpop.f32.mrf.mxu3 }
 0x1b0   : > { %v1704_v52 = vmul.f32 %v1672_v14, %v1602_v20  ;;  %v1628_v63 = vpop.f32.mrf.mxu1  ;;  %v12759_v49 = vadd.f32 %v1699_v25, %v12555_v57  ;;  %v12772_v14 = vld [vmem:[%s11910_s30 + $0x50] sm:$0xff] }
 0x1b1   : > { %v1690_v51 = vmul.f32 %v1674_v47, %v1628_v63  ;;  %v1761_v37 = vpop.f32.mrf.mxu0  ;;  %16758 = vst [vmem:[#allocation17_spill] sm:$0xff] %v12772_v14  ;;  %v1671_v57 = vperm.slane %v12772_v14, 3  ;;  %v16761_v25 = vld [vmem:[#allocation24_spill] sm:$0xff]  ;;  %v16763_v63 = vld [vmem:[#allocation26_spill] sm:$0xff] }
 0x1b2   : > { %v12762_v46 = vadd.f32 %v1704_v52, %v12558_v61  ;;  %v1992_v23 = vmul.f32 %v1976_v8, %v1761_v37  ;;  %10375 = vmatmul.msk.bf16.vlgmr.msrb.gmra.mxu2 %vm471_vm1, %v12552_v4  ;;  %v12783_v61 = vld [vmem:[%s11910_s30 + $0x78] sm:$0xff] }
 0x1b3   : > { %v12765_v41 = vadd.f32 %v1690_v51, %v12561_v11  ;;  %10378 = vmatmul.msk.bf16.vlgmr.msrb.gmra.mxu1 %vm471_vm1, %v12552_v4  ;;  %16760 = vst [vmem:[#allocation43_spill] sm:$0xff] %v12783_v61  ;;  %v1676_v11 = vperm.slane %v12783_v61, 3  ;;  %2417 = vmatpush.bf16.msrb.mxu2 %v16751_v26  ;;  %v16762_v52 = vld [vmem:[#allocation25_spill] sm:$0xff] }
 0x1b4   : > { %v12776_v13 = vadd.f32 %v1992_v23, %v12569_v56  ;;  %10380 = vmatmul.msk.bf16.vlgmr.msrb.gmra.mxu3 %vm471_vm1, %v12552_v4  ;;  %10387 = vmatmul.msk.bf16.vlgmr.msrb.gmra.mxu0 %vm471_vm1, %v12756_v48 }
 0x1b5   : > { %16757 = vst [vmem:[#allocation42_spill] sm:$0xff] %v12765_v41  ;;  %2459 = vmatpush.bf16.msrb.mxu1 %v16761_v25  ;;  %v1586_v20 = vpop.f32.mrf.mxu2  ;;  %2487 = vmatpush.bf16.msrb.mxu3 %v16762_v52 }
 0x1b6   : > { %16759 = vst [vmem:[#allocation36_spill] sm:$0xff] %v12776_v13  ;;  %2501 = vmatpush.bf16.msrb.mxu0 %v16763_v63  ;;  %v1687_v56 = vmul.f32 %v1671_v57, %v1586_v20  ;;  %v1977_v20 = vperm.slane %v12593_v7, 4  ;;  %v1980_v63 = vperm.slane %v12597_v32, 4 }
 0x1b7   : > { %v1656_v51 = vpop.f32.mrf.mxu3 }
 0x1b8   : > { %v1692_v37 = vmul.f32 %v1676_v11, %v1656_v51  ;;  %v1630_v23 = vpop.f32.mrf.mxu1  ;;  %v12791_v13 = vadd.f32 %v1687_v56, %v12581_v18 }
 0x1b9   : > { %v1706_v14 = vmul.f32 %v1674_v47, %v1630_v23  ;;  %v1763_v41 = vpop.f32.mrf.mxu0 }
 0x1ba   : > { %v12794_v61 = vadd.f32 %v1692_v37, %v12584_v19  ;;  %v2008_v26 = vmul.f32 %v1976_v8, %v1763_v41 }
 0x1bb   : > { %v12797_v25 = vadd.f32 %v1706_v14, %v12587_v30  ;;  %v12818_v14 = vld [vmem:[%s11910_s30 + $0x70] sm:$0xff] }
 0x1bc   : > { %v12800_v52 = vadd.f32 %v2008_v26, %v12590_v22 }
 0x1bd   : > { %v1588_v51 = vpop.f32.mrf.mxu2 }
 0x1be   : > { %v1703_v18 = vmul.f32 %v1671_v57, %v1588_v51 }
 0x1bf   : > { %v1658_v56 = vpop.f32.mrf.mxu3 }
 0x1c0   : > { %v1708_v47 = vmul.f32 %v1676_v11, %v1658_v56  ;;  %v1775_v23 = vpop.f32.mrf.mxu1  ;;  %v12805_v19 = vadd.f32 %v1703_v18, %v12601_v0  ;;  %v1675_v0 = vperm.slane %v12818_v14, 3  ;;  %v16765_v11 = vld [vmem:[#allocation30_spill] sm:$0xff] }
 0x1c1   : > { %v1993_v8 = vmul.f32 %v1977_v20, %v1775_v23  ;;  %v1817_v41 = vpop.f32.mrf.mxu0 }
 0x1c2   : > { %v12808_v30 = vadd.f32 %v1708_v47, %v12604_v2  ;;  %v1996_v22 = vmul.f32 %v1980_v63, %v1817_v41  ;;  %10379 = vmatmul.msk.bf16.vlgmr.msra.gmra.mxu2 %vm471_vm1, %v12552_v4  ;;  %v1979_v2 = vperm.slane %v12622_v36, 4 }
 0x1c3   : > { %v12811_v26 = vadd.f32 %v1993_v8, %v12607_v59  ;;  %10388 = vmatmul.msk.bf16.vlgmr.msra.gmra.mxu1 %vm471_vm1, %v12756_v48  ;;  %2473 = vmatpush.bf16.msra.mxu2 %v16735_v62  ;;  %v16764_v59 = vld [vmem:[#allocation29_spill] sm:$0xff] }
 0x1c4   : > { %v12822_v57 = vadd.f32 %v1996_v22, %v12615_v43  ;;  %10390 = vmatmul.msk.bf16.vlgmr.msra.gmra.mxu3 %vm471_vm1, %v12756_v48  ;;  %10391 = vmatmul.msk.bf16.vlgmr.msra.gmra.mxu0 %vm471_vm1, %v12756_v48 }
 0x1c5   : > { %2515 = vmatpush.bf16.msra.mxu1 %v16736_v42  ;;  %v1642_v4 = vpop.f32.mrf.mxu2  ;;  %2543 = vmatpush.bf16.msra.mxu3 %v16764_v59 }
 0x1c6   : > { %2557 = vmatpush.bf16.msra.mxu0 %v16765_v11  ;;  %v1691_v37 = vmul.f32 %v1675_v0, %v1642_v4  ;;  %v1981_v4 = vperm.slane %v12642_v3, 4 }
 0x1c7   : > { %v1803_v43 = vpop.f32.mrf.mxu3 }
 0x1c8   : > { %v1995_v51 = vmul.f32 %v1979_v2, %v1803_v43  ;;  %v1777_v18 = vpop.f32.mrf.mxu1  ;;  %v12834_v56 = vadd.f32 %v1691_v37, %v12630_v24  ;;  %v1984_v43 = vperm.slane %v12646_v10, 4 }
 0x1c9   : > { %v2009_v47 = vmul.f32 %v1977_v20, %v1777_v18  ;;  %v1819_v23 = vpop.f32.mrf.mxu0 }
 0x1ca   : > { %v12837_v8 = vadd.f32 %v1995_v51, %v12633_v27  ;;  %v2012_v41 = vmul.f32 %v1980_v63, %v1819_v23 }
 0x1cb   : > { %v12840_v22 = vadd.f32 %v2009_v47, %v12636_v38  ;;  %v16768_v47 = vld [vmem:[#allocation35_spill] sm:$0xff] }
 0x1cc   : > { %v12843_v59 = vadd.f32 %v2012_v41, %v12639_v35 }
 0x1cd   : > { %v1644_v11 = vpop.f32.mrf.mxu2 }
 0x1ce   : > { %v1707_v42 = vmul.f32 %v1675_v0, %v1644_v11  ;;  %v1978_v0 = vperm.slane %v12663_v31, 4 }
 0x1cf   : > { %v1805_v24 = vpop.f32.mrf.mxu3 }
 0x1d0   : > { %v2011_v37 = vmul.f32 %v1979_v2, %v1805_v24  ;;  %v1831_v20 = vpop.f32.mrf.mxu1  ;;  %v12848_v18 = vadd.f32 %v1707_v42, %v12650_v9  ;;  %v1983_v9 = vperm.slane %v12674_v6, 4  ;;  %v8939_v2 = vld [vmem:[%s16533_s8 + $0x10] sm:$0xff]  ;;  %v11736_v24 = vmov 0  }
 0x1d1   : > { %v1997_v27 = vmul.f32 %v1981_v4, %v1831_v20  ;;  %v1873_v63 = vpop.f32.mrf.mxu0  ;;  %11567 = vset.pattern.permute.xlu1 %v11736_v24  ;;  %11566 = vset.pattern.permute.xlu0 %v11736_v24 }
 0x1d2   : > { %v12851_v38 = vadd.f32 %v2011_v37, %v12653_v50  ;;  %v2000_v51 = vmul.f32 %v1984_v43, %v1873_v63  ;;  %10389 = vmatmul.msk.bf16.vlgmr.msrb.gmra.mxu2 %vm471_vm1, %v12756_v48  ;;  %v16766_v50 = vld [vmem:[#allocation33_spill] sm:$0xff]  ;;  %8953 = vperm.xlu1 %11567, %v8939_v2  }
 0x1d3   : > { %v12854_v35 = vadd.f32 %v1997_v27, %v12656_v39  ;;  %10392 = vmatmul.msk.bf16.vlgmr.msrb.gmra.mxu1 %vm471_vm1, %v12756_v48  ;;  %2529 = vmatpush.bf16.msrb.mxu2 %v16766_v50  ;;  %v16767_v39 = vld [vmem:[#allocation34_spill] sm:$0xff] }
 0x1d4   : > { %v12862_v42 = vadd.f32 %v2000_v51, %v12667_v1  ;;  %10394 = vmatmul.msk.bf16.vlgmr.msrb.gmra.mxu3 %vm471_vm1, %v12756_v48  ;;  %10395 = vmatmul.msk.bf16.vlgmr.msrb.gmra.mxu0 %vm471_vm1, %v12756_v48  ;;  %v16769_v1 = vld [vmem:[#allocation19_spill] sm:$0xff] }
 0x1d5   : > { %2571 = vmatpush.bf16.msrb.mxu1 %v16767_v39  ;;  %v1789_v11 = vpop.f32.mrf.mxu2  ;;  %2599 = vmatpush.bf16.msrb.mxu3 %v16768_v47 }
 0x1d6   : > { %2704 = vmatpush.bf16.msrb.mxu0 %v16769_v1  ;;  %v1994_v23 = vmul.f32 %v1978_v0, %v1789_v11  ;;  %11568 = vset.pattern.permute.xlu2 %v11736_v24  ;;  %v3001_v11 = vld [vmem:[%s16530_s5] sm:$0xff] }
 0x1d7   : > { %v1859_v41 = vpop.f32.mrf.mxu3  ;;  %3005 = vperm.xlu0 %11566, %v3001_v11   ;;  %v16772_v11 = vld [vmem:[#allocation20_spill] sm:$0xff] }
 0x1d8   : > { %v1999_v37 = vmul.f32 %v1983_v9, %v1859_v41  ;;  %v1833_v20 = vpop.f32.mrf.mxu1  ;;  %v12877_v27 = vadd.f32 %v1994_v23, %v12682_v29  ;;  %v1985_v29 = vperm.slane %v12694_v55, 4 }
 0x1d9   : > { %v2013_v63 = vmul.f32 %v1981_v4, %v1833_v20  ;;  %v1875_v51 = vpop.f32.mrf.mxu0  ;;  %v8940_v4 = vld [vmem:[%s16533_s8 + $0x18] sm:$0xff] }
 0x1da   : > { %v12880_v39 = vadd.f32 %v1999_v37, %v12685_v44  ;;  %v2016_v47 = vmul.f32 %v1984_v43, %v1875_v51  ;;  %v1988_v43 = vperm.slane %v12698_v28, 4  ;;  %8958 = vperm.xlu1 %11567, %v8940_v4  }
 0x1db   : > { %v12886_v1 = vadd.f32 %v2013_v63, %v12688_v54 }
 0x1dc   : > { %v12889_v2 = vadd.f32 %v2016_v47, %v12691_v40 }
 0x1dd   : > { %v1791_v44 = vpop.f32.mrf.mxu2 }
 0x1de   : > { %v2010_v23 = vmul.f32 %v1978_v0, %v1791_v44  ;;  %v1982_v0 = vperm.slane %v12715_v33, 4  ;;  %v16773_v44 = vld [vmem:[#allocation21_spill] sm:$0xff] }
 0x1df   : > { %v1861_v41 = vpop.f32.mrf.mxu3 }
 0x1e0   : > { %v2015_v24 = vmul.f32 %v1983_v9, %v1861_v41  ;;  %v1887_v37 = vpop.f32.mrf.mxu1  ;;  %v12897_v54 = vadd.f32 %v2010_v23, %v12702_v12  ;;  %v16771_v9 = vld [vmem:[#allocation37_spill] sm:$0xff]  ;;  %v16774_v23 = vld [vmem:[#allocation22_spill] sm:$0xff] }
 0x1e1   : > { %v2001_v20 = vmul.f32 %v1985_v29, %v1887_v37  ;;  %v1929_v40 = vpop.f32.mrf.mxu0 }
 0x1e2   : > { %v12900_v47 = vadd.f32 %v2015_v24, %v12705_v5  ;;  %v2004_v63 = vmul.f32 %v1988_v43, %v1929_v40  ;;  %10393 = vmatmul.msk.bf16.vlgmr.msra.gmra.mxu2 %vm471_vm1, %v12756_v48  ;;  %v1987_v5 = vperm.slane %v12726_v45, 4 }
 0x1e3   : > { %v12903_v51 = vadd.f32 %v2001_v20, %v12708_v34  ;;  %10396 = vmatmul.msk.bf16.vlgmr.msra.gmra.mxu1 %vm471_vm1, %v12756_v48  ;;  %v5699_v34 = vld [vmem:[%s16530_s5 + $0x10] sm:$0xff]  ;;  %2585 = vmatpush.bf16.msra.mxu2 %v16771_v9 }
 0x1e4   : > { %v12911_v12 = vadd.f32 %v2004_v63, %v12719_v17  ;;  %10398 = vmatmul.msk.bf16.vlgmr.msra.gmra.mxu3 %vm471_vm1, %v12756_v48  ;;  %10399 = vmatmul.msk.bf16.vlgmr.msra.gmra.mxu0 %vm471_vm1, %v12756_v48  ;;  %v5700_v17 = vld [vmem:[%s16530_s5 + $0x18] sm:$0xff] }
 0x1e5   : > { %2718 = vmatpush.bf16.msra.mxu1 %v16772_v11  ;;  %v1845_v4 = vpop.f32.mrf.mxu2  ;;  %2746 = vmatpush.bf16.msra.mxu3 %v16773_v44 }
 0x1e6   : > { %16770 = vst [vmem:[#allocation16_spill] sm:$0xff] %v12911_v12  ;;  %2760 = vmatpush.bf16.msra.mxu0 %v16774_v23  ;;  %v1998_v41 = vmul.f32 %v1982_v0, %v1845_v4  ;;  %5703 = vperm.xlu0 %11566, %v5699_v34   ;;  %v3002_v34 = vld [vmem:[%s16530_s5 + $0x8] sm:$0xff] }
 0x1e7   : > { %v1915_v24 = vpop.f32.mrf.mxu3  ;;  %5708 = vperm.xlu1 %11567, %v5700_v17   ;;  %v1989_v17 = vperm.slane %v12746_v21, 4 }
 0x1e8   : > { %v2003_v37 = vmul.f32 %v1987_v5, %v1915_v24  ;;  %v1889_v20 = vpop.f32.mrf.mxu1  ;;  %v12929_v40 = vadd.f32 %v1998_v41, %v12734_v53  ;;  %v3077_v53 = vld [vmem:[%s16534_s9] sm:$0xff] }
 0x1e9   : > { %v2017_v63 = vmul.f32 %v1985_v29, %v1889_v20  ;;  %v1931_v11 = vpop.f32.mrf.mxu0 }
 0x1ea   : > { %v12932_v9 = vadd.f32 %v2003_v37, %v12737_v60  ;;  %v2020_v45 = vmul.f32 %v1988_v43, %v1931_v11  ;;  %v2291_v60 = vperm.slane %v12750_v58, 5 }
 0x1eb   : > { %v12935_v12 = vadd.f32 %v2017_v63, %v12740_v15 }
 0x1ec   : > { %v12938_v23 = vadd.f32 %v2020_v45, %v12743_v16  ;;  %v12951_v16 = vld [vmem:[%s16529_s4 + $0x38] sm:$0xff] }
 0x1ed   : > { %v1847_v29 = vpop.f32.mrf.mxu2 }
 0x1ee   : > { %v2014_v43 = vmul.f32 %v1982_v0, %v1847_v29  ;;  %3010 = vperm.xlu0 %11566, %v3002_v34   ;;  %v16776_v0 = vld [vmem:[#allocation42_spill] sm:$0xff] }
 0x1ef   : > { %v1917_v11 = vpop.f32.mrf.mxu3  ;;  %3080 = vperm.xlu1 %11567, %v3077_v53   ;;  %v16779_v53 = vld [vmem:[#allocation36_spill] sm:$0xff] }
 0x1f0   : > { %v2019_v15 = vmul.f32 %v1987_v5, %v1917_v11  ;;  %v1943_v4 = vpop.f32.mrf.mxu1  ;;  %v12954_v45 = vadd.f32 %v2014_v43, %v12759_v49  ;;  %v16778_v5 = vld [vmem:[#allocation17_spill] sm:$0xff]  ;;  %v16782_v43 = vld [vmem:[#allocation23_spill] sm:$0xff]  ;;  %v16783_v11 = vld [vmem:[#allocation24_spill] sm:$0xff] }
 0x1f1   : > { %v2005_v41 = vmul.f32 %v1989_v17, %v1943_v4  ;;  %v2076_v24 = vpop.f32.mrf.mxu0  ;;  %v1986_v34 = vperm.slane %v16778_v5, 4  ;;  %v16784_v4 = vld [vmem:[#allocation25_spill] sm:$0xff] }
 0x1f2   : > { %v12957_v37 = vadd.f32 %v2019_v15, %v12762_v46  ;;  %v2307_v20 = vmul.f32 %v2291_v60, %v2076_v24  ;;  %10397 = vmatmul.msk.bf16.vlgmr.msrb.gmra.mxu2 %vm471_vm1, %v12756_v48  ;;  %v16781_v46 = vld [vmem:[#allocation43_spill] sm:$0xff] }
 0x1f3   : > { %v12960_v63 = vadd.f32 %v2005_v41, %v16776_v0  ;;  %10400 = vmatmul.msk.bf16.vlgmr.msrb.gmra.mxu1 %vm471_vm1, %v12756_v48  ;;  %v1991_v29 = vperm.slane %v16781_v46, 4  ;;  %2732 = vmatpush.bf16.msrb.mxu2 %v16782_v43  ;;  %v16785_v41 = vld [vmem:[#allocation26_spill] sm:$0xff] }
 0x1f4   : > { %16775 = vst [vmem:[#allocation44_spill] sm:$0xff] %v12957_v37  ;;  %v12968_v49 = vadd.f32 %v2307_v20, %v16779_v53  ;;  %10402 = vmatmul.msk.bf16.vlgmr.msrb.gmra.mxu3 %vm471_vm1, %v12756_v48  ;;  %10409 = vmatmul.msk.bf16.vlgmr.msrb.gmra.mxu0 %vm471_vm1, %v12951_v16 }
 0x1f5   : > { %16777 = vst [vmem:[#allocation18_spill] sm:$0xff] %v12960_v63  ;;  %2774 = vmatpush.bf16.msrb.mxu1 %v16783_v11  ;;  %v1901_v15 = vpop.f32.mrf.mxu2  ;;  %2802 = vmatpush.bf16.msrb.mxu3 %v16784_v4 }
 0x1f6   : > { %16780 = vst [vmem:[#allocation15_spill] sm:$0xff] %v12968_v49  ;;  %2816 = vmatpush.bf16.msrb.mxu0 %v16785_v41  ;;  %v2002_v24 = vmul.f32 %v1986_v34, %v1901_v15  ;;  %v2292_v15 = vperm.slane %v12593_v7, 5 }
 0x1f7   : > { %v1971_v20 = vpop.f32.mrf.mxu3 }
 0x1f8   : > { %v2007_v0 = vmul.f32 %v1991_v29, %v1971_v20  ;;  %v1945_v53 = vpop.f32.mrf.mxu1  ;;  %v12980_v49 = vadd.f32 %v2002_v24, %v12791_v13  ;;  %v2295_v20 = vperm.slane %v12597_v32, 5 }
 0x1f9   : > { %v2021_v5 = vmul.f32 %v1989_v17, %v1945_v53  ;;  %v2078_v63 = vpop.f32.mrf.mxu0 }
 0x1fa   : > { %v12983_v46 = vadd.f32 %v2007_v0, %v12794_v61  ;;  %v2323_v43 = vmul.f32 %v2291_v60, %v2078_v63 }
 0x1fb   : > { %v12986_v11 = vadd.f32 %v2021_v5, %v12797_v25  ;;  %v1990_v5 = vperm.slane %v12818_v14, 4 }
 0x1fc   : > { %v12989_v4 = vadd.f32 %v2323_v43, %v12800_v52 }
 0x1fd   : > { %v1903_v41 = vpop.f32.mrf.mxu2 }
 0x1fe   : > { %v2018_v37 = vmul.f32 %v1986_v34, %v1903_v41  ;;  %v16788_v34 = vld [vmem:[#allocation30_spill] sm:$0xff] }
 0x1ff   : > { %v1973_v13 = vpop.f32.mrf.mxu3 }
 0x200   : > { %v2023_v24 = vmul.f32 %v1991_v29, %v1973_v13  ;;  %v2090_v17 = vpop.f32.mrf.mxu1  ;;  %v12994_v53 = vadd.f32 %v2018_v37, %v12805_v19  ;;  %v16787_v37 = vld [vmem:[#allocation29_spill] sm:$0xff] }
 0x201   : > { %v2308_v61 = vmul.f32 %v2292_v15, %v2090_v17  ;;  %v2132_v60 = vpop.f32.mrf.mxu0 }
 0x202   : > { %v12997_v25 = vadd.f32 %v2023_v24, %v12808_v30  ;;  %v2311_v63 = vmul.f32 %v2295_v20, %v2132_v60  ;;  %10401 = vmatmul.msk.bf16.vlgmr.msra.gmra.mxu2 %vm471_vm1, %v12756_v48  ;;  %v2294_v30 = vperm.slane %v12622_v36, 5 }
 0x203   : > { %v13000_v52 = vadd.f32 %v2308_v61, %v12811_v26  ;;  %10410 = vmatmul.msk.bf16.vlgmr.msra.gmra.mxu1 %vm471_vm1, %v12951_v16  ;;  %2788 = vmatpush.bf16.msra.mxu2 %v16735_v62  ;;  %v16786_v26 = vld [vmem:[#allocation28_spill] sm:$0xff] }
 0x204   : > { %v13008_v19 = vadd.f32 %v2311_v63, %v12822_v57  ;;  %10412 = vmatmul.msk.bf16.vlgmr.msra.gmra.mxu3 %vm471_vm1, %v12951_v16  ;;  %10413 = vmatmul.msk.bf16.vlgmr.msra.gmra.mxu0 %vm471_vm1, %v12951_v16 }
 0x205   : > { %2830 = vmatpush.bf16.msra.mxu1 %v16786_v26  ;;  %v1957_v48 = vpop.f32.mrf.mxu2  ;;  %2858 = vmatpush.bf16.msra.mxu3 %v16787_v37 }
 0x206   : > { %2872 = vmatpush.bf16.msra.mxu0 %v16788_v34  ;;  %v2006_v29 = vmul.f32 %v1990_v5, %v1957_v48  ;;  %v2296_v48 = vperm.slane %v12642_v3, 5 }
 0x207   : > { %v2118_v57 = vpop.f32.mrf.mxu3 }
 0x208   : > { %v2310_v43 = vmul.f32 %v2294_v30, %v2118_v57  ;;  %v2092_v41 = vpop.f32.mrf.mxu1  ;;  %v13020_v0 = vadd.f32 %v2006_v29, %v12834_v56  ;;  %v2299_v57 = vperm.slane %v12646_v10, 5 }
 0x209   : > { %v2324_v13 = vmul.f32 %v2292_v15, %v2092_v41  ;;  %v2134_v24 = vpop.f32.mrf.mxu0 }
 0x20a   : > { %v13023_v17 = vadd.f32 %v2310_v43, %v12837_v8  ;;  %v2327_v61 = vmul.f32 %v2295_v20, %v2134_v24 }
 0x20b   : > { %v13026_v60 = vadd.f32 %v2324_v13, %v12840_v22 }
 0x20c   : > { %v13029_v63 = vadd.f32 %v2327_v61, %v12843_v59 }
 0x20d   : > { %v1959_v34 = vpop.f32.mrf.mxu2 }
 0x20e   : > { %v2022_v37 = vmul.f32 %v1990_v5, %v1959_v34  ;;  %v2293_v5 = vperm.slane %v12663_v31, 5  ;;  %v16791_v34 = vld [vmem:[#allocation19_spill] sm:$0xff] }
 0x20f   : > { %v2120_v56 = vpop.f32.mrf.mxu3 }
 0x210   : > { %v2326_v29 = vmul.f32 %v2294_v30, %v2120_v56  ;;  %v2146_v15 = vpop.f32.mrf.mxu1  ;;  %v13034_v41 = vadd.f32 %v2022_v37, %v12848_v18  ;;  %v16790_v37 = vld [vmem:[#allocation35_spill] sm:$0xff] }
 0x211   : > { %v2312_v8 = vmul.f32 %v2296_v48, %v2146_v15  ;;  %v2188_v20 = vpop.f32.mrf.mxu0 }
 0x212   : > { %v13037_v22 = vadd.f32 %v2326_v29, %v12851_v38  ;;  %v2315_v43 = vmul.f32 %v2299_v57, %v2188_v20  ;;  %10411 = vmatmul.msk.bf16.vlgmr.msrb.gmra.mxu2 %vm471_vm1, %v12951_v16  ;;  %v2298_v38 = vperm.slane %v12674_v6, 5 }
 0x213   : > { %v13040_v59 = vadd.f32 %v2312_v8, %v12854_v35  ;;  %10414 = vmatmul.msk.bf16.vlgmr.msrb.gmra.mxu1 %vm471_vm1, %v12951_v16  ;;  %2844 = vmatpush.bf16.msrb.mxu2 %v16766_v50  ;;  %v16789_v35 = vld [vmem:[#allocation34_spill] sm:$0xff] }
 0x214   : > { %v13048_v18 = vadd.f32 %v2315_v43, %v12862_v42  ;;  %10416 = vmatmul.msk.bf16.vlgmr.msrb.gmra.mxu3 %vm471_vm1, %v12951_v16  ;;  %10417 = vmatmul.msk.bf16.vlgmr.msrb.gmra.mxu0 %vm471_vm1, %v12951_v16 }
 0x215   : > { %2886 = vmatpush.bf16.msrb.mxu1 %v16789_v35  ;;  %v2104_v30 = vpop.f32.mrf.mxu2  ;;  %2914 = vmatpush.bf16.msrb.mxu3 %v16790_v37 }
 0x216   : > { %3229 = vmatpush.bf16.msrb.mxu0 %v16791_v34  ;;  %v2309_v13 = vmul.f32 %v2293_v5, %v2104_v30  ;;  %v2300_v30 = vperm.slane %v12694_v55, 5 }
 0x217   : > { %v2174_v42 = vpop.f32.mrf.mxu3 }
 0x218   : > { %v2314_v24 = vmul.f32 %v2298_v38, %v2174_v42  ;;  %v2148_v61 = vpop.f32.mrf.mxu1  ;;  %v13060_v56 = vadd.f32 %v2309_v13, %v12877_v27  ;;  %v2303_v42 = vperm.slane %v12698_v28, 5 }
 0x219   : > { %v2328_v29 = vmul.f32 %v2296_v48, %v2148_v61  ;;  %v2190_v15 = vpop.f32.mrf.mxu0 }
 0x21a   : > { %v13063_v8 = vadd.f32 %v2314_v24, %v12880_v39  ;;  %v2331_v20 = vmul.f32 %v2299_v57, %v2190_v15  ;;  %v16796_v15 = vld [vmem:[#allocation22_spill] sm:$0xff] }
 0x21b   : > { %v13066_v43 = vadd.f32 %v2328_v29, %v12886_v1 }
 0x21c   : > { %v13069_v37 = vadd.f32 %v2331_v20, %v12889_v2 }
 0x21d   : > { %v2106_v34 = vpop.f32.mrf.mxu2 }
 0x21e   : > { %v2325_v35 = vmul.f32 %v2293_v5, %v2106_v34  ;;  %v2297_v5 = vperm.slane %v12715_v33, 5  ;;  %v16795_v34 = vld [vmem:[#allocation20_spill] sm:$0xff] }
 0x21f   : > { %v2176_v27 = vpop.f32.mrf.mxu3 }
 0x220   : > { %v2330_v13 = vmul.f32 %v2298_v38, %v2176_v27  ;;  %v2202_v48 = vpop.f32.mrf.mxu1  ;;  %v13074_v61 = vadd.f32 %v2325_v35, %v12897_v54  ;;  %v16792_v38 = vld [vmem:[#allocation16_spill] sm:$0xff]  ;;  %v16794_v35 = vld [vmem:[#allocation37_spill] sm:$0xff] }
 0x221   : > { %v2316_v39 = vmul.f32 %v2300_v30, %v2202_v48  ;;  %v2244_v57 = vpop.f32.mrf.mxu0 }
 0x222   : > { %v13077_v1 = vadd.f32 %v2330_v13, %v12900_v47  ;;  %v2319_v24 = vmul.f32 %v2303_v42, %v2244_v57  ;;  %10415 = vmatmul.msk.bf16.vlgmr.msra.gmra.mxu2 %vm471_vm1, %v12951_v16  ;;  %v16793_v47 = vld [vmem:[#allocation41_spill] sm:$0xff] }
 0x223   : > { %v13080_v2 = vadd.f32 %v2316_v39, %v12903_v51  ;;  %10418 = vmatmul.msk.bf16.vlgmr.msra.gmra.mxu1 %vm471_vm1, %v12951_v16  ;;  %v2302_v51 = vperm.slane %v16793_v47, 5  ;;  %2900 = vmatpush.bf16.msra.mxu2 %v16794_v35 }
 0x224   : > { %v13088_v54 = vadd.f32 %v2319_v24, %v16792_v38  ;;  %10420 = vmatmul.msk.bf16.vlgmr.msra.gmra.mxu3 %vm471_vm1, %v12951_v16  ;;  %10421 = vmatmul.msk.bf16.vlgmr.msra.gmra.mxu0 %vm471_vm1, %v12951_v16 }
 0x225   : > { %3243 = vmatpush.bf16.msra.mxu1 %v16795_v34  ;;  %v2160_v29 = vpop.f32.mrf.mxu2  ;;  %3271 = vmatpush.bf16.msra.mxu3 %v16773_v44 }
 0x226   : > { %3285 = vmatpush.bf16.msra.mxu0 %v16796_v15  ;;  %v2313_v20 = vmul.f32 %v2297_v5, %v2160_v29  ;;  %v2304_v29 = vperm.slane %v12746_v21, 5 }
 0x227   : > { %v2230_v27 = vpop.f32.mrf.mxu3 }
 0x228   : > { %v2318_v13 = vmul.f32 %v2302_v51, %v2230_v27  ;;  %v2204_v48 = vpop.f32.mrf.mxu1  ;;  %v13100_v39 = vadd.f32 %v2313_v20, %v12929_v40  ;;  %v2606_v27 = vperm.slane %v12750_v58, 6 }
 0x229   : > { %v2332_v57 = vmul.f32 %v2300_v30, %v2204_v48  ;;  %v2246_v24 = vpop.f32.mrf.mxu0 }
 0x22a   : > { %v13103_v38 = vadd.f32 %v2318_v13, %v12932_v9  ;;  %v2335_v35 = vmul.f32 %v2303_v42, %v2246_v24  ;;  %v13116_v9 = vld [vmem:[%s16529_s4 + $0x40] sm:$0xff] }
 0x22b   : > { %v13106_v34 = vadd.f32 %v2332_v57, %v12935_v12  ;;  %v16800_v57 = vld [vmem:[#allocation18_spill] sm:$0xff] }
 0x22c   : > { %v13109_v44 = vadd.f32 %v2335_v35, %v12938_v23  ;;  %v16798_v35 = vld [vmem:[#allocation44_spill] sm:$0xff] }
 0x22d   : > { %v2162_v15 = vpop.f32.mrf.mxu2 }
 0x22e   : > { %v2329_v47 = vmul.f32 %v2297_v5, %v2162_v15  ;;  %v16802_v5 = vld [vmem:[#allocation17_spill] sm:$0xff]  ;;  %v16803_v15 = vld [vmem:[#allocation15_spill] sm:$0xff] }
 0x22f   : > { %v2232_v40 = vpop.f32.mrf.mxu3 }
 0x230   : > { %v2334_v20 = vmul.f32 %v2302_v51, %v2232_v40  ;;  %v2258_v30 = vpop.f32.mrf.mxu1  ;;  %v13119_v12 = vadd.f32 %v2329_v47, %v12954_v45  ;;  %v2301_v51 = vperm.slane %v16802_v5, 5  ;;  %v16805_v47 = vld [vmem:[#allocation43_spill] sm:$0xff] }
 0x231   : > { %v2320_v42 = vmul.f32 %v2304_v29, %v2258_v30  ;;  %v2391_v23 = vpop.f32.mrf.mxu0  ;;  %v2306_v40 = vperm.slane %v16805_v47, 5  ;;  %v16807_v30 = vld [vmem:[#allocation24_spill] sm:$0xff] }
 0x232   : > { %16797 = vst [vmem:[#allocation38_spill] sm:$0xff] %v13119_v12  ;;  %v13122_v13 = vadd.f32 %v2334_v20, %v16798_v35  ;;  %v2622_v48 = vmul.f32 %v2606_v27, %v2391_v23  ;;  %10419 = vmatmul.msk.bf16.vlgmr.msrb.gmra.mxu2 %vm471_vm1, %v12951_v16  ;;  %v16806_v20 = vld [vmem:[#allocation23_spill] sm:$0xff]  ;;  %v16808_v23 = vld [vmem:[#allocation25_spill] sm:$0xff]  ;;  %v16809_v35 = vld [vmem:[#allocation26_spill] sm:$0xff] }
 0x233   : > { %v13125_v24 = vadd.f32 %v2320_v42, %v16800_v57  ;;  %10422 = vmatmul.msk.bf16.vlgmr.msrb.gmra.mxu1 %vm471_vm1, %v12951_v16  ;;  %3257 = vmatpush.bf16.msrb.mxu2 %v16806_v20 }
 0x234   : > { %16799 = vst [vmem:[#allocation45_spill] sm:$0xff] %v13122_v13  ;;  %v13133_v45 = vadd.f32 %v2622_v48, %v16803_v15  ;;  %10424 = vmatmul.msk.bf16.vlgmr.msrb.gmra.mxu3 %vm471_vm1, %v12951_v16  ;;  %10431 = vmatmul.msk.bf16.vlgmr.msrb.gmra.mxu0 %vm471_vm1, %v13116_v9 }
 0x235   : > { %16801 = vst [vmem:[#allocation46_spill] sm:$0xff] %v13125_v24  ;;  %3299 = vmatpush.bf16.msrb.mxu1 %v16807_v30  ;;  %v2216_v42 = vpop.f32.mrf.mxu2  ;;  %3327 = vmatpush.bf16.msrb.mxu3 %v16808_v23 }
 0x236   : > { %16804 = vst [vmem:[#allocation31_spill] sm:$0xff] %v13133_v45  ;;  %3341 = vmatpush.bf16.msrb.mxu0 %v16809_v35  ;;  %v2317_v57 = vmul.f32 %v2301_v51, %v2216_v42  ;;  %v2607_v42 = vperm.slane %v12593_v7, 6 }
 0x237   : > { %v2286_v48 = vpop.f32.mrf.mxu3 }
 0x238   : > { %v2322_v15 = vmul.f32 %v2306_v40, %v2286_v48  ;;  %v2260_v45 = vpop.f32.mrf.mxu1  ;;  %v13145_v5 = vadd.f32 %v2317_v57, %v12980_v49  ;;  %v2610_v48 = vperm.slane %v12597_v32, 6  ;;  %v2305_v32 = vperm.slane %v12818_v14, 5 }
 0x239   : > { %v2336_v24 = vmul.f32 %v2304_v29, %v2260_v45  ;;  %v2393_v13 = vpop.f32.mrf.mxu0 }
 0x23a   : > { %v13148_v47 = vadd.f32 %v2322_v15, %v12983_v46  ;;  %v2638_v20 = vmul.f32 %v2606_v27, %v2393_v13 }
 0x23b   : > { %v13151_v30 = vadd.f32 %v2336_v24, %v12986_v11 }
 0x23c   : > { %v13154_v23 = vadd.f32 %v2638_v20, %v12989_v4 }
 0x23d   : > { %v2218_v35 = vpop.f32.mrf.mxu2 }
 0x23e   : > { %v2333_v12 = vmul.f32 %v2301_v51, %v2218_v35 }
 0x23f   : > { %v2288_v49 = vpop.f32.mrf.mxu3 }
 0x240   : > { %v2338_v57 = vmul.f32 %v2306_v40, %v2288_v49  ;;  %v2405_v29 = vpop.f32.mrf.mxu1  ;;  %v13159_v45 = vadd.f32 %v2333_v12, %v12994_v53  ;;  %v2609_v53 = vperm.slane %v12622_v36, 6 }
 0x241   : > { %v2623_v46 = vmul.f32 %v2607_v42, %v2405_v29  ;;  %v2447_v27 = vpop.f32.mrf.mxu0  ;;  %v2611_v29 = vperm.slane %v12642_v3, 6  ;;  %v2608_v3 = vperm.slane %v12663_v31, 6 }
 0x242   : > { %v13162_v11 = vadd.f32 %v2338_v57, %v12997_v25  ;;  %v2626_v13 = vmul.f32 %v2610_v48, %v2447_v27  ;;  %10423 = vmatmul.msk.bf16.vlgmr.msra.gmra.mxu2 %vm471_vm1, %v12951_v16  ;;  %v16810_v25 = vld [vmem:[#allocation29_spill] sm:$0xff]  ;;  %v2614_v27 = vperm.slane %v12646_v10, 6 }
 0x243   : > { %v13165_v4 = vadd.f32 %v2623_v46, %v13000_v52  ;;  %10432 = vmatmul.msk.bf16.vlgmr.msra.gmra.mxu1 %vm471_vm1, %v13116_v9  ;;  %3313 = vmatpush.bf16.msra.mxu2 %v16735_v62  ;;  %v16811_v52 = vld [vmem:[#allocation30_spill] sm:$0xff] }
 0x244   : > { %v13173_v7 = vadd.f32 %v2626_v13, %v13008_v19  ;;  %10434 = vmatmul.msk.bf16.vlgmr.msra.gmra.mxu3 %vm471_vm1, %v13116_v9  ;;  %10435 = vmatmul.msk.bf16.vlgmr.msra.gmra.mxu0 %vm471_vm1, %v13116_v9 }
 0x245   : > { %3355 = vmatpush.bf16.msra.mxu1 %v16786_v26  ;;  %v2272_v16 = vpop.f32.mrf.mxu2  ;;  %3383 = vmatpush.bf16.msra.mxu3 %v16810_v25 }
 0x246   : > { %3397 = vmatpush.bf16.msra.mxu0 %v16811_v52  ;;  %v2321_v12 = vmul.f32 %v2305_v32, %v2272_v16 }
 0x247   : > { %v2433_v19 = vpop.f32.mrf.mxu3 }
 0x248   : > { %v2625_v24 = vmul.f32 %v2609_v53, %v2433_v19  ;;  %v2407_v51 = vpop.f32.mrf.mxu1  ;;  %v13185_v40 = vadd.f32 %v2321_v12, %v13020_v0 }
 0x249   : > { %v2639_v20 = vmul.f32 %v2607_v42, %v2407_v51  ;;  %v2449_v35 = vpop.f32.mrf.mxu0 }
 0x24a   : > { %v13188_v36 = vadd.f32 %v2625_v24, %v13023_v17  ;;  %v2642_v15 = vmul.f32 %v2610_v48, %v2449_v35 }
 0x24b   : > { %v13191_v49 = vadd.f32 %v2639_v20, %v13026_v60 }
 0x24c   : > { %v13194_v57 = vadd.f32 %v2642_v15, %v13029_v63 }
 0x24d   : > { %v2274_v46 = vpop.f32.mrf.mxu2 }
 0x24e   : > { %v2337_v13 = vmul.f32 %v2305_v32, %v2274_v46  ;;  %v16813_v32 = vld [vmem:[#allocation35_spill] sm:$0xff] }
 0x24f   : > { %v2435_v0 = vpop.f32.mrf.mxu3 }
 0x250   : > { %v2641_v16 = vmul.f32 %v2609_v53, %v2435_v0  ;;  %v2461_v42 = vpop.f32.mrf.mxu1  ;;  %v13199_v12 = vadd.f32 %v2337_v13, %v13034_v41  ;;  %v2613_v41 = vperm.slane %v12674_v6, 6  ;;  %v16814_v53 = vld [vmem:[#allocation19_spill] sm:$0xff] }
 0x251   : > { %v2627_v17 = vmul.f32 %v2611_v29, %v2461_v42  ;;  %v2503_v48 = vpop.f32.mrf.mxu0 }
 0x252   : > { %v13202_v60 = vadd.f32 %v2641_v16, %v13037_v22  ;;  %v2630_v19 = vmul.f32 %v2614_v27, %v2503_v48  ;;  %10433 = vmatmul.msk.bf16.vlgmr.msrb.gmra.mxu2 %vm471_vm1, %v13116_v9  ;;  %v16812_v22 = vld [vmem:[#allocation34_spill] sm:$0xff]  ;;  %v2615_v16 = vperm.slane %v12694_v55, 6  ;;  %v2612_v55 = vperm.slane %v12715_v33, 6 }
 0x253   : > { %v13205_v63 = vadd.f32 %v2627_v17, %v13040_v59  ;;  %10436 = vmatmul.msk.bf16.vlgmr.msrb.gmra.mxu1 %vm471_vm1, %v13116_v9  ;;  %3369 = vmatpush.bf16.msrb.mxu2 %v16766_v50  ;;  %v2618_v17 = vperm.slane %v12698_v28, 6 }
 0x254   : > { %v13213_v10 = vadd.f32 %v2630_v19, %v13048_v18  ;;  %10438 = vmatmul.msk.bf16.vlgmr.msrb.gmra.mxu3 %vm471_vm1, %v13116_v9  ;;  %10439 = vmatmul.msk.bf16.vlgmr.msrb.gmra.mxu0 %vm471_vm1, %v13116_v9 }
 0x255   : > { %3411 = vmatpush.bf16.msrb.mxu1 %v16812_v22  ;;  %v2419_v59 = vpop.f32.mrf.mxu2  ;;  %3439 = vmatpush.bf16.msrb.mxu3 %v16813_v32 }
 0x256   : > { %3512 = vmatpush.bf16.msrb.mxu0 %v16814_v53  ;;  %v2624_v31 = vmul.f32 %v2608_v3, %v2419_v59 }
 0x257   : > { %v2489_v18 = vpop.f32.mrf.mxu3 }
 0x258   : > { %v2629_v24 = vmul.f32 %v2613_v41, %v2489_v18  ;;  %v2463_v51 = vpop.f32.mrf.mxu1  ;;  %v13225_v20 = vadd.f32 %v2624_v31, %v13060_v56  ;;  %v16818_v18 = vld [vmem:[#allocation21_spill] sm:$0xff] }
 0x259   : > { %v2643_v35 = vmul.f32 %v2611_v29, %v2463_v51  ;;  %v2505_v15 = vpop.f32.mrf.mxu0 }
 0x25a   : > { %v13228_v6 = vadd.f32 %v2629_v24, %v13063_v8  ;;  %v2646_v46 = vmul.f32 %v2614_v27, %v2505_v15  ;;  %v16819_v24 = vld [vmem:[#allocation22_spill] sm:$0xff] }
 0x25b   : > { %v13231_v13 = vadd.f32 %v2643_v35, %v13066_v43 }
 0x25c   : > { %v13234_v0 = vadd.f32 %v2646_v46, %v13069_v37 }
 0x25d   : > { %v2421_v42 = vpop.f32.mrf.mxu2 }
 0x25e   : > { %v2640_v48 = vmul.f32 %v2608_v3, %v2421_v42  ;;  %v16817_v3 = vld [vmem:[#allocation20_spill] sm:$0xff] }
 0x25f   : > { %v2491_v56 = vpop.f32.mrf.mxu3 }
 0x260   : > { %v2645_v19 = vmul.f32 %v2613_v41, %v2491_v56  ;;  %v2517_v29 = vpop.f32.mrf.mxu1  ;;  %v13239_v59 = vadd.f32 %v2640_v48, %v13074_v61  ;;  %v16815_v61 = vld [vmem:[#allocation41_spill] sm:$0xff] }
 0x261   : > { %v2631_v8 = vmul.f32 %v2615_v16, %v2517_v29  ;;  %v2559_v27 = vpop.f32.mrf.mxu0 }
 0x262   : > { %v13242_v43 = vadd.f32 %v2645_v19, %v13077_v1  ;;  %v2634_v31 = vmul.f32 %v2618_v17, %v2559_v27  ;;  %10437 = vmatmul.msk.bf16.vlgmr.msra.gmra.mxu2 %vm471_vm1, %v13116_v9  ;;  %v2617_v1 = vperm.slane %v16815_v61, 6 }
 0x263   : > { %v13245_v37 = vadd.f32 %v2631_v8, %v13080_v2  ;;  %10440 = vmatmul.msk.bf16.vlgmr.msra.gmra.mxu1 %vm471_vm1, %v13116_v9  ;;  %v16816_v2 = vld [vmem:[#allocation37_spill] sm:$0xff]  ;;  %v2619_v8 = vperm.slane %v12746_v21, 6 }
 0x264   : > { %v13253_v28 = vadd.f32 %v2634_v31, %v13088_v54  ;;  %10442 = vmatmul.msk.bf16.vlgmr.msra.gmra.mxu3 %vm471_vm1, %v13116_v9  ;;  %10443 = vmatmul.msk.bf16.vlgmr.msra.gmra.mxu0 %vm471_vm1, %v13116_v9  ;;  %v2921_v31 = vperm.slane %v12750_v58, 7 }
 0x265   : > { %3425 = vmatpush.bf16.msra.mxu2 %v16816_v2  ;;  %3526 = vmatpush.bf16.msra.mxu1 %v16817_v3  ;;  %v2475_v41 = vpop.f32.mrf.mxu2 }
 0x266   : > { %3554 = vmatpush.bf16.msra.mxu3 %v16818_v18  ;;  %3568 = vmatpush.bf16.msra.mxu0 %v16819_v24  ;;  %v2628_v33 = vmul.f32 %v2612_v55, %v2475_v41 }
 0x267   : > { %v2545_v54 = vpop.f32.mrf.mxu3 }
 0x268   : > { %v2633_v51 = vmul.f32 %v2617_v1, %v2545_v54  ;;  %v2519_v35 = vpop.f32.mrf.mxu1  ;;  %v13265_v15 = vadd.f32 %v2628_v33, %v13100_v39  ;;  %v16822_v54 = vld [vmem:[#allocation45_spill] sm:$0xff] }
 0x269   : > { %v2647_v46 = vmul.f32 %v2615_v16, %v2519_v35  ;;  %v2561_v42 = vpop.f32.mrf.mxu0  ;;  %v16824_v35 = vld [vmem:[#allocation46_spill] sm:$0xff] }
 0x26a   : > { %v13268_v48 = vadd.f32 %v2633_v51, %v13103_v38  ;;  %v2650_v56 = vmul.f32 %v2618_v17, %v2561_v42  ;;  %v13281_v38 = vld [vmem:[%s16529_s4 + $0x48] sm:$0xff]  ;;  %v16820_v17 = vld [vmem:[#allocation38_spill] sm:$0xff] }
 0x26b   : > { %v13271_v19 = vadd.f32 %v2647_v46, %v13106_v34  ;;  %v16827_v46 = vld [vmem:[#allocation31_spill] sm:$0xff] }
 0x26c   : > { %v13274_v29 = vadd.f32 %v2650_v56, %v13109_v44  ;;  %v16828_v56 = vld [vmem:[#allocation43_spill] sm:$0xff] }
 0x26d   : > { %v2477_v27 = vpop.f32.mrf.mxu2 }
 0x26e   : > { %v2644_v61 = vmul.f32 %v2612_v55, %v2477_v27  ;;  %v16826_v55 = vld [vmem:[#allocation17_spill] sm:$0xff]  ;;  %v2621_v27 = vperm.slane %v16828_v56, 6 }
 0x26f   : > { %v2547_v39 = vpop.f32.mrf.mxu3 }
 0x270   : > { %v2649_v41 = vmul.f32 %v2617_v1, %v2547_v39  ;;  %v2573_v16 = vpop.f32.mrf.mxu1  ;;  %v13284_v34 = vadd.f32 %v2644_v61, %v16820_v17  ;;  %v2616_v1 = vperm.slane %v16826_v55, 6  ;;  %v16829_v61 = vld [vmem:[#allocation23_spill] sm:$0xff]  ;;  %v16830_v39 = vld [vmem:[#allocation24_spill] sm:$0xff]  ;;  %v16832_v17 = vld [vmem:[#allocation26_spill] sm:$0xff] }
 0x271   : > { %v2635_v33 = vmul.f32 %v2619_v8, %v2573_v16  ;;  %v2706_v44 = vpop.f32.mrf.mxu0  ;;  %v16831_v16 = vld [vmem:[#allocation25_spill] sm:$0xff] }
 0x272   : > { %16821 = vst [vmem:[#allocation39_spill] sm:$0xff] %v13284_v34  ;;  %v13287_v51 = vadd.f32 %v2649_v41, %v16822_v54  ;;  %v2937_v21 = vmul.f32 %v2921_v31, %v2706_v44  ;;  %10441 = vmatmul.msk.bf16.vlgmr.msrb.gmra.mxu2 %vm471_vm1, %v13116_v9 }
 0x273   : > { %v13290_v58 = vadd.f32 %v2635_v33, %v16824_v35  ;;  %10444 = vmatmul.msk.bf16.vlgmr.msrb.gmra.mxu1 %vm471_vm1, %v13116_v9  ;;  %3540 = vmatpush.bf16.msrb.mxu2 %v16829_v61 }
 0x274   : > { %16823 = vst [vmem:[#allocation32_spill] sm:$0xff] %v13287_v51  ;;  %v13298_v42 = vadd.f32 %v2937_v21, %v16827_v46  ;;  %10446 = vmatmul.msk.bf16.vlgmr.msrb.gmra.mxu3 %vm471_vm1, %v13116_v9  ;;  %10453 = vmatmul.msk.bf16.vlgmr.msrb.gmra.mxu0 %vm471_vm1, %v13281_v38 }
 0x275   : > { %16825 = vst [vmem:[#allocation40_spill] sm:$0xff] %v13290_v58  ;;  %3582 = vmatpush.bf16.msrb.mxu1 %v16830_v39  ;;  %v2531_v41 = vpop.f32.mrf.mxu2  ;;  %3610 = vmatpush.bf16.msrb.mxu3 %v16831_v16 }
 0x276   : > { %3624 = vmatpush.bf16.msrb.mxu0 %v16832_v17  ;;  %v2632_v33 = vmul.f32 %v2616_v1, %v2531_v41  ;;  %v11585_v17 = vld [vmem:[%s11910_s30 + $0x8] sm:$0xff] }
 0x277   : > { %v2601_v44 = vpop.f32.mrf.mxu3  ;;  %v2922_v41 = vperm.slane %v11585_v17, 7 }
 0x278   : > { %v2637_v54 = vmul.f32 %v2621_v27, %v2601_v44  ;;  %v2575_v21 = vpop.f32.mrf.mxu1  ;;  %v13310_v35 = vadd.f32 %v2632_v33, %v13145_v5  ;;  %v11586_v44 = vld [vmem:[%s11910_s30 + $0x20] sm:$0xff] }
 0x279   : > { %v2651_v55 = vmul.f32 %v2619_v8, %v2575_v21  ;;  %v2708_v46 = vpop.f32.mrf.mxu0  ;;  %v2925_v51 = vperm.slane %v11586_v44, 7 }
 0x27a   : > { %v13313_v56 = vadd.f32 %v2637_v54, %v13148_v47  ;;  %v2953_v61 = vmul.f32 %v2921_v31, %v2708_v46 }
 0x27b   : > { %v13316_v39 = vadd.f32 %v2651_v55, %v13151_v30 }
 0x27c   : > { %v13319_v16 = vadd.f32 %v2953_v61, %v13154_v23 }
 0x27d   : > { %v2533_v58 = vpop.f32.mrf.mxu2 }
 0x27e   : > { %16833 = vst [vmem:[#allocation42_spill] sm:$0xff] %v13319_v16  ;;  %v2648_v34 = vmul.f32 %v2616_v1, %v2533_v58  ;;  %v2620_v58 = vperm.slane %v12818_v14, 6 }
 0x27f   : > { %v2603_v5 = vpop.f32.mrf.mxu3 }
 0x280   : > { %v2653_v8 = vmul.f32 %v2621_v27, %v2603_v5  ;;  %v2720_v33 = vpop.f32.mrf.mxu1  ;;  %v13324_v47 = vadd.f32 %v2648_v34, %v13159_v45 }
 0x281   : > { %v2938_v31 = vmul.f32 %v2922_v41, %v2720_v33  ;;  %v2762_v54 = vpop.f32.mrf.mxu0 }
 0x282   : > { %v13327_v30 = vadd.f32 %v2653_v8, %v13162_v11  ;;  %v2941_v23 = vmul.f32 %v2925_v51, %v2762_v54  ;;  %10445 = vmatmul.msk.bf16.vlgmr.msra.gmra.mxu2 %vm471_vm1, %v13116_v9  ;;  %v11587_v11 = vld [vmem:[%s11910_s30 + $0x18] sm:$0xff]  ;;  %v11588_v8 = vld [vmem:[%s11910_s30 + $0x28] sm:$0xff]  ;;  %v11589_v54 = vld [vmem:[%s11910_s30 + $0x40] sm:$0xff] }
 0x283   : > { %v13330_v61 = vadd.f32 %v2938_v31, %v13165_v4  ;;  %10454 = vmatmul.msk.bf16.vlgmr.msra.gmra.mxu1 %vm471_vm1, %v13281_v38  ;;  %v2924_v4 = vperm.slane %v11587_v11, 7  ;;  %3596 = vmatpush.bf16.msra.mxu2 %v16735_v62  ;;  %v2926_v33 = vperm.slane %v11588_v8, 7 }
 0x284   : > { %v13338_v45 = vadd.f32 %v2941_v23, %v13173_v7  ;;  %10456 = vmatmul.msk.bf16.vlgmr.msra.gmra.mxu3 %vm471_vm1, %v13281_v38  ;;  %10457 = vmatmul.msk.bf16.vlgmr.msra.gmra.mxu0 %vm471_vm1, %v13281_v38  ;;  %v2929_v23 = vperm.slane %v11589_v54, 7 }
 0x285   : > { %3638 = vmatpush.bf16.msra.mxu1 %v16786_v26  ;;  %v2587_v9 = vpop.f32.mrf.mxu2  ;;  %3666 = vmatpush.bf16.msra.mxu3 %v16810_v25 }
 0x286   : > { %3680 = vmatpush.bf16.msra.mxu0 %v16811_v52  ;;  %v2636_v14 = vmul.f32 %v2620_v58, %v2587_v9 }
 0x287   : > { %v2748_v7 = vpop.f32.mrf.mxu3 }
 0x288   : > { %v2940_v34 = vmul.f32 %v2924_v4, %v2748_v7  ;;  %v2722_v1 = vpop.f32.mrf.mxu1  ;;  %v13350_v27 = vadd.f32 %v2636_v14, %v13185_v40 }
 0x289   : > { %v2954_v17 = vmul.f32 %v2922_v41, %v2722_v1  ;;  %v2764_v21 = vpop.f32.mrf.mxu0 }
 0x28a   : > { %v13353_v55 = vadd.f32 %v2940_v34, %v13188_v36  ;;  %v2957_v46 = vmul.f32 %v2925_v51, %v2764_v21 }
 0x28b   : > { %v13356_v44 = vadd.f32 %v2954_v17, %v13191_v49 }
 0x28c   : > { %v13359_v5 = vadd.f32 %v2957_v46, %v13194_v57 }
 0x28d   : > { %16834 = vst [vmem:[#allocation36_spill] sm:$0xff] %v13356_v44  ;;  %v2589_v31 = vpop.f32.mrf.mxu2 }
 0x28e   : > { %16835 = vst [vmem:[#allocation16_spill] sm:$0xff] %v13359_v5  ;;  %v2652_v40 = vmul.f32 %v2620_v58, %v2589_v31  ;;  %v11590_v58 = vld [vmem:[%s11910_s30 + $0x10] sm:$0xff] }
 0x28f   : > { %v2750_v11 = vpop.f32.mrf.mxu3 }
 0x290   : > { %v2956_v41 = vmul.f32 %v2924_v4, %v2750_v11  ;;  %v2776_v9 = vpop.f32.mrf.mxu1  ;;  %v13364_v36 = vadd.f32 %v2652_v40, %v13199_v12  ;;  %v2923_v4 = vperm.slane %v11590_v58, 7 }
 0x291   : > { %v2942_v51 = vmul.f32 %v2926_v33, %v2776_v9  ;;  %v2818_v49 = vpop.f32.mrf.mxu0  ;;  %v11592_v9 = vld [vmem:[%s11910_s30 + $0x48] sm:$0xff] }
 0x292   : > { %v13367_v14 = vadd.f32 %v2956_v41, %v13202_v60  ;;  %v2945_v57 = vmul.f32 %v2929_v23, %v2818_v49  ;;  %10455 = vmatmul.msk.bf16.vlgmr.msrb.gmra.mxu2 %vm471_vm1, %v13281_v38  ;;  %v11591_v60 = vld [vmem:[%s11910_s30 + $0x38] sm:$0xff] }
 0x293   : > { %v13370_v7 = vadd.f32 %v2942_v51, %v13205_v63  ;;  %10458 = vmatmul.msk.bf16.vlgmr.msrb.gmra.mxu1 %vm471_vm1, %v13281_v38  ;;  %v2928_v63 = vperm.slane %v11591_v60, 7  ;;  %3652 = vmatpush.bf16.msrb.mxu2 %v16766_v50  ;;  %v2930_v51 = vperm.slane %v11592_v9, 7 }
 0x294   : > { %16836 = vst [vmem:[#allocation44_spill] sm:$0xff] %v13367_v14  ;;  %v13378_v12 = vadd.f32 %v2945_v57, %v13213_v10  ;;  %10460 = vmatmul.msk.bf16.vlgmr.msrb.gmra.mxu3 %vm471_vm1, %v13281_v38  ;;  %10461 = vmatmul.msk.bf16.vlgmr.msrb.gmra.mxu0 %vm471_vm1, %v13281_v38  ;;  %v11593_v57 = vld [vmem:[%s11910_s30 + $0x60] sm:$0xff] }
 0x295   : > { %3694 = vmatpush.bf16.msrb.mxu1 %v16812_v22  ;;  %v2734_v34 = vpop.f32.mrf.mxu2  ;;  %3722 = vmatpush.bf16.msrb.mxu3 %v16813_v32  ;;  %v2933_v58 = vperm.slane %v11593_v57, 7 }
 0x296   : > { %3827 = vmatpush.bf16.msrb.mxu0 %v16814_v53  ;;  %v2939_v10 = vmul.f32 %v2923_v4, %v2734_v34 }
 0x297   : > { %v2804_v1 = vpop.f32.mrf.mxu3 }
 0x298   : > { %v2944_v17 = vmul.f32 %v2928_v63, %v2804_v1  ;;  %v2778_v21 = vpop.f32.mrf.mxu1  ;;  %v13390_v46 = vadd.f32 %v2939_v10, %v13225_v20 }
 0x299   : > { %v2958_v8 = vmul.f32 %v2926_v33, %v2778_v21  ;;  %v2820_v31 = vpop.f32.mrf.mxu0 }
 0x29a   : > { %v13393_v54 = vadd.f32 %v2944_v17, %v13228_v6  ;;  %v2961_v40 = vmul.f32 %v2929_v23, %v2820_v31 }
 0x29b   : > { %v13396_v11 = vadd.f32 %v2958_v8, %v13231_v13 }
 0x29c   : > { %v13399_v41 = vadd.f32 %v2961_v40, %v13234_v0 }
 0x29d   : > { %16837 = vst [vmem:[#allocation18_spill] sm:$0xff] %v13396_v11  ;;  %v2736_v49 = vpop.f32.mrf.mxu2 }
 0x29e   : > { %16838 = vst [vmem:[#allocation15_spill] sm:$0xff] %v13399_v41  ;;  %v2955_v20 = vmul.f32 %v2923_v4, %v2736_v49  ;;  %v11594_v4 = vld [vmem:[%s11910_s30 + $0x30] sm:$0xff] }
 0x29f   : > { %v2806_v60 = vpop.f32.mrf.mxu3 }
 0x2a0   : > { %v2960_v33 = vmul.f32 %v2928_v63, %v2806_v60  ;;  %v2832_v34 = vpop.f32.mrf.mxu1  ;;  %v13404_v6 = vadd.f32 %v2955_v20, %v13239_v59  ;;  %v2927_v63 = vperm.slane %v11594_v4, 7 }
 0x2a1   : > { %v2946_v23 = vmul.f32 %v2930_v51, %v2832_v34  ;;  %v2874_v13 = vpop.f32.mrf.mxu0 }
 0x2a2   : > { %16839 = vst [vmem:[#allocation41_spill] sm:$0xff] %v13404_v6  ;;  %v13407_v10 = vadd.f32 %v2960_v33, %v13242_v43  ;;  %v2949_v0 = vmul.f32 %v2933_v58, %v2874_v13  ;;  %10459 = vmatmul.msk.bf16.vlgmr.msra.gmra.mxu2 %vm471_vm1, %v13281_v38  ;;  %v11595_v43 = vld [vmem:[%s11910_s30 + $0x58] sm:$0xff] }
 0x2a3   : > { %v13410_v1 = vadd.f32 %v2946_v23, %v13245_v37  ;;  %10462 = vmatmul.msk.bf16.vlgmr.msra.gmra.mxu1 %vm471_vm1, %v13281_v38  ;;  %v2932_v37 = vperm.slane %v11595_v43, 7  ;;  %3708 = vmatpush.bf16.msra.mxu2 %v16816_v2 }
 0x2a4   : > { %16840 = vst [vmem:[#allocation38_spill] sm:$0xff] %v13407_v10  ;;  %v13418_v59 = vadd.f32 %v2949_v0, %v13253_v28  ;;  %10464 = vmatmul.msk.bf16.vlgmr.msra.gmra.mxu3 %vm471_vm1, %v13281_v38  ;;  %10465 = vmatmul.msk.bf16.vlgmr.msra.gmra.mxu0 %vm471_vm1, %v13281_v38  ;;  %v13429_v28 = vpop.permute.xlu0 %3005 }
 0x2a5   : > { %3841 = vmatpush.bf16.msra.mxu1 %v16817_v3  ;;  %v2790_v17 = vpop.f32.mrf.mxu2  ;;  %3869 = vmatpush.bf16.msra.mxu3 %v16818_v18  ;;  %v3013_v31 = vadd.f32 %v13429_v28, %v13298_v42  ;;  %v11596_v42 = vld [vmem:[%s11910_s30 + $0x68] sm:$0xff] }
 0x2a6   : > { %3883 = vmatpush.bf16.msra.mxu0 %v16819_v24  ;;  %v2943_v21 = vmul.f32 %v2927_v63, %v2790_v17  ;;  %v2934_v0 = vperm.slane %v11596_v42, 7 }
 0x2a7   : > { %v2860_v8 = vpop.f32.mrf.mxu3  ;;  %v13442_v23 = vmax.f32 %v3013_v31, 0.0  ;;  %v16846_v31 = vld [vmem:[#allocation32_spill] sm:$0xff] }
 0x2a8   : > { %v2948_v40 = vmul.f32 %v2932_v37, %v2860_v8  ;;  %v2834_v9 = vpop.f32.mrf.mxu1  ;;  %v13434_v49 = vadd.f32 %v2943_v21, %v13265_v15 }
 0x2a9   : > { %v2962_v57 = vmul.f32 %v2930_v51, %v2834_v9  ;;  %v2876_v20 = vpop.f32.mrf.mxu0  ;;  %16842 = vst [vmem:[#allocation46_spill] sm:$0xff] %v13442_v23 }
 0x2aa   : > { %v13437_v60 = vadd.f32 %v2948_v40, %v13268_v48  ;;  %v2965_v33 = vmul.f32 %v2933_v58, %v2876_v20  ;;  %v3446_v48 = vperm.slane %v13442_v23, 0  ;;  %v16844_v58 = vld [vmem:[#allocation39_spill] sm:$0xff] }
 0x2ab   : > { %v13440_v34 = vadd.f32 %v2962_v57, %v13271_v19  ;;  %v13452_v19 = vld [vmem:[%s16529_s4 + $0x50] sm:$0xff] }
 0x2ac   : > { %v13445_v13 = vadd.f32 %v2965_v33, %v13274_v29  ;;  %v11597_v57 = vld [vmem:[%s11910_s30 + $0x50] sm:$0xff]  ;;  %v11598_v33 = vld [vmem:[%s11910_s30 + $0x78] sm:$0xff] }
 0x2ad   : > { %16841 = vst [vmem:[#allocation45_spill] sm:$0xff] %v13440_v34  ;;  %v2792_v4 = vpop.f32.mrf.mxu2  ;;  %v2931_v20 = vperm.slane %v11597_v57, 7  ;;  %v2936_v42 = vperm.slane %v11598_v33, 7 }
 0x2ae   : > { %16843 = vst [vmem:[#allocation17_spill] sm:$0xff] %v13445_v13  ;;  %v2959_v15 = vmul.f32 %v2927_v63, %v2792_v4  ;;  %v16849_v4 = vld [vmem:[#allocation23_spill] sm:$0xff] }
 0x2af   : > { %v2862_v43 = vpop.f32.mrf.mxu3 }
 0x2b0   : > { %v2964_v51 = vmul.f32 %v2932_v37, %v2862_v43  ;;  %v2888_v17 = vpop.f32.mrf.mxu1  ;;  %v13455_v21 = vadd.f32 %v2959_v15, %v16844_v58  ;;  %v16848_v37 = vld [vmem:[#allocation40_spill] sm:$0xff]  ;;  %v3014_v58 = vadd.f32 %v13429_v28, %v13330_v61 }
 0x2b1   : > { %v2950_v29 = vmul.f32 %v2934_v0, %v2888_v17  ;;  %v3231_v8 = vpop.f32.mrf.mxu0  ;;  %v16850_v15 = vld [vmem:[#allocation24_spill] sm:$0xff]  ;;  %v16852_v17 = vld [vmem:[#allocation26_spill] sm:$0xff] }
 0x2b2   : > { %16845 = vst [vmem:[#allocation31_spill] sm:$0xff] %v13455_v21  ;;  %v13458_v40 = vadd.f32 %v2964_v51, %v16846_v31  ;;  %v13460_v63 = vmul.f32 %v3446_v48, %v3231_v8  ;;  %10463 = vmatmul.msk.bf16.vlgmr.msrb.gmra.mxu2 %vm471_vm1, %v13281_v38  ;;  %v16851_v51 = vld [vmem:[#allocation25_spill] sm:$0xff]  ;;  %v3017_v31 = vadd.f32 %v13429_v28, %v13338_v45  ;;  %v13491_v34 = vmax.f32 %v3014_v58, 0.0 }
 0x2b3   : > { %v13463_v9 = vadd.f32 %v2950_v29, %v16848_v37  ;;  %10466 = vmatmul.msk.bf16.vlgmr.msrb.gmra.mxu1 %vm471_vm1, %v13281_v38  ;;  %3855 = vmatpush.bf16.msrb.mxu2 %v16849_v4  ;;  %v3016_v45 = vadd.f32 %v13429_v28, %v13353_v55 }
 0x2b4   : > { %16847 = vst [vmem:[#allocation43_spill] sm:$0xff] %v13458_v40  ;;  %10468 = vmatmul.msk.bf16.vlgmr.msrb.gmra.mxu3 %vm471_vm1, %v13281_v38  ;;  %10475 = vmatmul.msk.bf16.vlgmr.msrb.gmra.mxu0 %vm471_vm1, %v13452_v19 }
 0x2b5   : > { %3897 = vmatpush.bf16.msrb.mxu1 %v16850_v15  ;;  %v2846_v43 = vpop.f32.mrf.mxu2  ;;  %3925 = vmatpush.bf16.msrb.mxu3 %v16851_v51  ;;  %v13507_v58 = vmax.f32 %v3016_v45, 0.0 }
 0x2b6   : > { %3939 = vmatpush.bf16.msrb.mxu0 %v16852_v17  ;;  %v2947_v29 = vmul.f32 %v2931_v20, %v2846_v43  ;;  %v13496_v43 = vmax.f32 %v3017_v31, 0.0 }
 0x2b7   : > { %v2916_v8 = vpop.f32.mrf.mxu3  ;;  %16855 = vst [vmem:[#allocation40_spill] sm:$0xff] %v13507_v58 }
 0x2b8   : > { %v2952_v37 = vmul.f32 %v2936_v42, %v2916_v8  ;;  %v2890_v57 = vpop.f32.mrf.mxu1  ;;  %v13484_v33 = vadd.f32 %v2947_v29, %v13310_v35  ;;  %v3447_v8 = vperm.slane %v13491_v34, 0 }
 0x2b9   : > { %v2966_v40 = vmul.f32 %v2934_v0, %v2890_v57  ;;  %v3233_v21 = vpop.f32.mrf.mxu0 }
 0x2ba   : > { %v13487_v16 = vadd.f32 %v2952_v37, %v13313_v56  ;;  %v13489_v13 = vmul.f32 %v3446_v48, %v3233_v21  ;;  %v3450_v48 = vperm.slane %v13496_v43, 0 }
 0x2bb   : > { %v13494_v61 = vadd.f32 %v2966_v40, %v13316_v39 }
 0x2bd   : > { %16853 = vst [vmem:[#allocation39_spill] sm:$0xff] %v13494_v61  ;;  %v2848_v35 = vpop.f32.mrf.mxu2 }
 0x2be   : > { %v2963_v29 = vmul.f32 %v2931_v20, %v2848_v35  ;;  %v11599_v20 = vld [vmem:[%s11910_s30 + $0x70] sm:$0xff]  ;;  %v3021_v35 = vadd.f32 %v13429_v28, %v13378_v12  ;;  %v3020_v12 = vadd.f32 %v13429_v28, %v13393_v54  ;;  %s10141_s30 = sshll.u32 %s421_s16, 4  ;;  %s10142_s30 = int_to_ptr.vmem [resolvable:$true] %s10141_s30 }
 0x2bf   : > { %v2918_v0 = vpop.f32.mrf.mxu3 }
 0x2c0   : > { %v2968_v56 = vmul.f32 %v2936_v42, %v2918_v0  ;;  %v3245_v37 = vpop.f32.mrf.mxu1  ;;  %v13503_v21 = vadd.f32 %v2963_v29, %v13324_v47  ;;  %v2935_v42 = vperm.slane %v11599_v20, 7 }
 0x2c1   : > { %v13505_v39 = vmul.f32 %v3447_v8, %v3245_v37  ;;  %v3287_v40 = vpop.f32.mrf.mxu0 }
 0x2c2   : > { %16854 = vst [vmem:[#allocation32_spill] sm:$0xff] %v13503_v21  ;;  %v13510_v55 = vadd.f32 %v2968_v56, %v13327_v30  ;;  %v13512_v31 = vmul.f32 %v3450_v48, %v3287_v40  ;;  %10467 = vmatmul.msk.bf16.vlgmr.msra.gmra.mxu2 %vm471_vm1, %v13281_v38  ;;  %v3449_v30 = vperm.slane %v13507_v58, 0  ;;  %v3018_v38 = vadd.f32 %v13429_v28, %v13370_v7 }
 0x2c3   : > { %10476 = vmatmul.msk.bf16.vlgmr.msra.gmra.mxu1 %vm471_vm1, %v13452_v19  ;;  %3911 = vmatpush.bf16.msra.mxu2 %v16735_v62  ;;  %v13543_v21 = vmax.f32 %v3021_v35, 0.0  ;;  %v3015_v7 = vadd.f32 %v13429_v28, %v13390_v46 }
 0x2c4   : > { %16856 = vst [vmem:[#allocation47_spill] sm:$0xff] %v13510_v55  ;;  %10478 = vmatmul.msk.bf16.vlgmr.msra.gmra.mxu3 %vm471_vm1, %v13452_v19  ;;  %10479 = vmatmul.msk.bf16.vlgmr.msra.gmra.mxu0 %vm471_vm1, %v13452_v19  ;;  %v13541_v55 = vmax.f32 %v3018_v38, 0.0 }
 0x2c5   : > { %3953 = vmatpush.bf16.msra.mxu1 %v16786_v26  ;;  %v2902_v47 = vpop.f32.mrf.mxu2  ;;  %3981 = vmatpush.bf16.msra.mxu3 %v16810_v25  ;;  %v13553_v38 = vmax.f32 %v3015_v7, 0.0 }
 0x2c6   : > { %3995 = vmatpush.bf16.msra.mxu0 %v16811_v52  ;;  %v2951_v57 = vmul.f32 %v2935_v42, %v2902_v47 }
 0x2c7   : > { %v3273_v45 = vpop.f32.mrf.mxu3 }
 0x2c8   : > { %v13532_v29 = vmul.f32 %v3449_v30, %v3273_v45  ;;  %v3247_v0 = vpop.f32.mrf.mxu1  ;;  %v13535_v56 = vadd.f32 %v2951_v57, %v13350_v27  ;;  %v3451_v27 = vperm.slane %v13541_v55, 0 }
 0x2c9   : > { %v13537_v37 = vmul.f32 %v3447_v8, %v3247_v0  ;;  %v3289_v40 = vpop.f32.mrf.mxu0 }
 0x2ca   : > { %v13539_v20 = vmul.f32 %v3450_v48, %v3289_v40  ;;  %v3454_v48 = vperm.slane %v13543_v21, 0  ;;  %v13560_v40 = vmax.f32 %v3020_v12, 0.0 }
 0x2cd   : > { %v2904_v47 = vpop.f32.mrf.mxu2 }
 0x2ce   : > { %v2967_v45 = vmul.f32 %v2935_v42, %v2904_v47  ;;  %v3453_v42 = vperm.slane %v13560_v40, 0  ;;  %v3025_v47 = vadd.f32 %v13429_v28, %v13418_v59 }
 0x2cf   : > { %v3275_v61 = vpop.f32.mrf.mxu3 }
 0x2d0   : > { %v13550_v8 = vmul.f32 %v3449_v30, %v3275_v61  ;;  %v3301_v57 = vpop.f32.mrf.mxu1  ;;  %v13556_v35 = vadd.f32 %v2967_v45, %v13364_v36  ;;  %v3448_v36 = vperm.slane %v13553_v38, 0  ;;  %v3022_v30 = vadd.f32 %v13429_v28, %v13410_v1 }
 0x2d1   : > { %v13558_v0 = vmul.f32 %v3451_v27, %v3301_v57  ;;  %v3343_v46 = vpop.f32.mrf.mxu0  ;;  %v13592_v41 = vmax.f32 %v3025_v47, 0.0  ;;  %v3019_v1 = vadd.f32 %v13429_v28, %v13434_v49 }
 0x2d2   : > { %16857 = vst [vmem:[#allocation48_spill] sm:$0xff] %v13556_v35  ;;  %v13562_v54 = vmul.f32 %v3454_v48, %v3343_v46  ;;  %10477 = vmatmul.msk.bf16.vlgmr.msrb.gmra.mxu2 %vm471_vm1, %v13452_v19  ;;  %v13590_v6 = vmax.f32 %v3022_v30, 0.0 }
 0x2d3   : > { %10480 = vmatmul.msk.bf16.vlgmr.msrb.gmra.mxu1 %vm471_vm1, %v13452_v19  ;;  %3967 = vmatpush.bf16.msrb.mxu2 %v16766_v50  ;;  %v13604_v30 = vmax.f32 %v3019_v1, 0.0 }
 0x2d4   : > { %10482 = vmatmul.msk.bf16.vlgmr.msrb.gmra.mxu3 %vm471_vm1, %v13452_v19  ;;  %10483 = vmatmul.msk.bf16.vlgmr.msrb.gmra.mxu0 %vm471_vm1, %v13452_v19 }
 0x2d5   : > { %4009 = vmatpush.bf16.msrb.mxu1 %v16812_v22  ;;  %v3259_v61 = vpop.f32.mrf.mxu2  ;;  %4037 = vmatpush.bf16.msrb.mxu3 %v16813_v32  ;;  %16858 = vst [vmem:[#allocation49_spill] sm:$0xff] %v13604_v30 }
 0x2d6   : > { %4142 = vmatpush.bf16.msrb.mxu0 %v16814_v53  ;;  %v13580_v7 = vmul.f32 %v3448_v36, %v3259_v61  ;;  %v3024_v61 = vadd.f32 %v13429_v28, %v13437_v60 }
 0x2d7   : > { %v3329_v12 = vpop.f32.mrf.mxu3 }
 0x2d8   : > { %v13584_v45 = vmul.f32 %v3453_v42, %v3329_v12  ;;  %v3303_v57 = vpop.f32.mrf.mxu1  ;;  %v13608_v49 = vmax.f32 %v3024_v61, 0.0 }
 0x2d9   : > { %v13586_v46 = vmul.f32 %v3451_v27, %v3303_v57  ;;  %v3345_v35 = vpop.f32.mrf.mxu0  ;;  %v3455_v27 = vperm.slane %v13590_v6, 0 }
 0x2da   : > { %v13588_v10 = vmul.f32 %v3454_v48, %v3345_v35  ;;  %v3458_v35 = vperm.slane %v13592_v41, 0  ;;  %16859 = vst [vmem:[#allocation50_spill] sm:$0xff] %v13608_v49  ;;  %v3457_v60 = vperm.slane %v13608_v49, 0 }
 0x2dd   : > { %v3261_v11 = vpop.f32.mrf.mxu2 }
 0x2de   : > { %v13598_v59 = vmul.f32 %v3448_v36, %v3261_v11  ;;  %v3452_v11 = vperm.slane %v13604_v30, 0  ;;  %v3026_v36 = vadd.f32 %v13429_v28, %v13463_v9 }
 0x2df   : > { %v3331_v12 = vpop.f32.mrf.mxu3 }
 0x2e0   : > { %v13601_v57 = vmul.f32 %v3453_v42, %v3331_v12  ;;  %v3357_v48 = vpop.f32.mrf.mxu1 }
 0x2e1   : > { %v13606_v47 = vmul.f32 %v3455_v27, %v3357_v48  ;;  %v3399_v14 = vpop.f32.mrf.mxu0 }
 0x2e2   : > { %v13610_v5 = vmul.f32 %v3458_v35, %v3399_v14  ;;  %10481 = vmatmul.msk.bf16.vlgmr.msra.gmra.mxu2 %vm471_vm1, %v13452_v19 }
 0x2e3   : > { %10484 = vmatmul.msk.bf16.vlgmr.msra.gmra.mxu1 %vm471_vm1, %v13452_v19  ;;  %4023 = vmatpush.bf16.msra.mxu2 %v16816_v2  ;;  %v13636_v2 = vmax.f32 %v3026_v36, 0.0 }
 0x2e4   : > { %10486 = vmatmul.msk.bf16.vlgmr.msra.gmra.mxu3 %vm471_vm1, %v13452_v19  ;;  %10487 = vmatmul.msk.bf16.vlgmr.msra.gmra.mxu0 %vm471_vm1, %v13452_v19 }
 0x2e5   : > { %4156 = vmatpush.bf16.msra.mxu1 %v16817_v3  ;;  %v3315_v14 = vpop.f32.mrf.mxu2  ;;  %4184 = vmatpush.bf16.msra.mxu3 %v16818_v18  ;;  %16862 = vst [vmem:[#allocation53_spill] sm:$0xff] %v13636_v2  ;;  %v3023_v18 = vadd.f32 %v13429_v28, %v13484_v33 }
 0x2e6   : > { %4198 = vmatpush.bf16.msra.mxu0 %v16819_v24  ;;  %v13628_v42 = vmul.f32 %v3452_v11, %v3315_v14  ;;  %v3028_v24 = vadd.f32 %v13429_v28, %v13487_v16 }
 0x2e7   : > { %v3385_v1 = vpop.f32.mrf.mxu3  ;;  %v13653_v33 = vmax.f32 %v3023_v18, 0.0 }
 0x2e8   : > { %16860 = vst [vmem:[#allocation51_spill] sm:$0xff] %v13628_v42  ;;  %v13630_v61 = vmul.f32 %v3457_v60, %v3385_v1  ;;  %v3359_v12 = vpop.f32.mrf.mxu1  ;;  %v3459_v1 = vperm.slane %v13636_v2, 0 }
 0x2e9   : > { %v13632_v48 = vmul.f32 %v3455_v27, %v3359_v12  ;;  %v3401_v44 = vpop.f32.mrf.mxu0  ;;  %16863 = vst [vmem:[#allocation54_spill] sm:$0xff] %v13653_v33  ;;  %v3456_v18 = vperm.slane %v13653_v33, 0 }
 0x2ea   : > { %16861 = vst [vmem:[#allocation52_spill] sm:$0xff] %v13630_v61  ;;  %v13634_v3 = vmul.f32 %v3458_v35, %v3401_v44  ;;  %v3729_v44 = vperm.slane %v13442_v23, 1  ;;  %v13651_v35 = vld [vmem:[%s16529_s4 + $0x58] sm:$0xff] }
 0x2ed   : > { %v3317_v9 = vpop.f32.mrf.mxu2 }
 0x2ee   : > { %v13642_v14 = vmul.f32 %v3452_v11, %v3317_v9  ;;  %v13657_v11 = vmax.f32 %v3028_v24, 0.0 }
 0x2ef   : > { %v3387_v42 = vpop.f32.mrf.mxu3 }
 0x2f0   : > { %v13645_v61 = vmul.f32 %v3457_v60, %v3387_v42  ;;  %v3413_v27 = vpop.f32.mrf.mxu1  ;;  %16864 = vst [vmem:[#allocation55_spill] sm:$0xff] %v13657_v11  ;;  %v3461_v42 = vperm.slane %v13657_v11, 0  ;;  %v3027_v11 = vadd.f32 %v13429_v28, %v13535_v56 }
 0x2f1   : > { %v13655_v36 = vmul.f32 %v3459_v1, %v3413_v27  ;;  %v3514_v16 = vpop.f32.mrf.mxu0 }
 0x2f2   : > { %v3745_v12 = vmul.f32 %v3729_v44, %v3514_v16  ;;  %10485 = vmatmul.msk.bf16.vlgmr.msrb.gmra.mxu2 %vm471_vm1, %v13452_v19 }
 0x2f3   : > { %10488 = vmatmul.msk.bf16.vlgmr.msrb.gmra.mxu1 %vm471_vm1, %v13452_v19  ;;  %4170 = vmatpush.bf16.msrb.mxu2 %v16849_v4 }
 0x2f4   : > { %v13664_v60 = vadd.f32 %v3745_v12, %v13460_v63  ;;  %10490 = vmatmul.msk.bf16.vlgmr.msrb.gmra.mxu3 %vm471_vm1, %v13452_v19  ;;  %10497 = vmatmul.msk.bf16.vlgmr.msrb.gmra.mxu0 %vm471_vm1, %v13651_v35 }
 0x2f5   : > { %4212 = vmatpush.bf16.msrb.mxu1 %v16850_v15  ;;  %v3371_v24 = vpop.f32.mrf.mxu2  ;;  %4240 = vmatpush.bf16.msrb.mxu3 %v16851_v51 }
 0x2f6   : > { %16865 = vst [vmem:[#allocation56_spill] sm:$0xff] %v13664_v60  ;;  %4254 = vmatpush.bf16.msrb.mxu0 %v16852_v17  ;;  %v13676_v63 = vmul.f32 %v3456_v18, %v3371_v24  ;;  %v3730_v24 = vperm.slane %v13491_v34, 1 }
 0x2f7   : > { %v3441_v9 = vpop.f32.mrf.mxu3 }
 0x2f8   : > { %16866 = vst [vmem:[#allocation57_spill] sm:$0xff] %v13676_v63  ;;  %v13678_v27 = vmul.f32 %v3461_v42, %v3441_v9  ;;  %v3415_v16 = vpop.f32.mrf.mxu1 }
 0x2f9   : > { %v13680_v12 = vmul.f32 %v3459_v1, %v3415_v16  ;;  %v3516_v33 = vpop.f32.mrf.mxu0  ;;  %v3733_v1 = vperm.slane %v13496_v43, 1  ;;  %v13693_v16 = vmax.f32 %v3027_v11, 0.0 }
 0x2fa   : > { %v3761_v60 = vmul.f32 %v3729_v44, %v3516_v33 }
 0x2fc   : > { %v13683_v4 = vadd.f32 %v3761_v60, %v13489_v13 }
 0x2fd   : > { %v3373_v15 = vpop.f32.mrf.mxu2 }
 0x2fe   : > { %v13687_v51 = vmul.f32 %v3456_v18, %v3373_v15  ;;  %v3460_v15 = vperm.slane %v13693_v16, 0 }
 0x2ff   : > { %v3443_v17 = vpop.f32.mrf.mxu3 }
 0x300   : > { %v13690_v63 = vmul.f32 %v3461_v42, %v3443_v17  ;;  %v3528_v9 = vpop.f32.mrf.mxu1 }
 0x301   : > { %v3746_v44 = vmul.f32 %v3730_v24, %v3528_v9  ;;  %v3570_v33 = vpop.f32.mrf.mxu0 }
 0x302   : > { %v3749_v13 = vmul.f32 %v3733_v1, %v3570_v33  ;;  %10489 = vmatmul.msk.bf16.vlgmr.msra.gmra.mxu2 %vm471_vm1, %v13452_v19  ;;  %v3732_v19 = vperm.slane %v13507_v58, 1 }
 0x303   : > { %v13696_v60 = vadd.f32 %v3746_v44, %v13505_v39  ;;  %10498 = vmatmul.msk.bf16.vlgmr.msra.gmra.mxu1 %vm471_vm1, %v13651_v35  ;;  %4226 = vmatpush.bf16.msra.mxu2 %v16735_v62 }
 0x304   : > { %v13703_v28 = vadd.f32 %v3749_v13, %v13512_v31  ;;  %10500 = vmatmul.msk.bf16.vlgmr.msra.gmra.mxu3 %vm471_vm1, %v13651_v35  ;;  %10501 = vmatmul.msk.bf16.vlgmr.msra.gmra.mxu0 %vm471_vm1, %v13651_v35 }
 0x305   : > { %4268 = vmatpush.bf16.msra.mxu1 %v16786_v26  ;;  %v3427_v17 = vpop.f32.mrf.mxu2  ;;  %4296 = vmatpush.bf16.msra.mxu3 %v16810_v25 }
 0x306   : > { %4310 = vmatpush.bf16.msra.mxu0 %v16811_v52  ;;  %v13715_v39 = vmul.f32 %v3460_v15, %v3427_v17 }
 0x307   : > { %v3556_v31 = vpop.f32.mrf.mxu3 }
 0x308   : > { %16867 = vst [vmem:[#allocation58_spill] sm:$0xff] %v13715_v39  ;;  %v3748_v56 = vmul.f32 %v3732_v19, %v3556_v31  ;;  %v3530_v11 = vpop.f32.mrf.mxu1  ;;  %v3734_v39 = vperm.slane %v13541_v55, 1 }
 0x309   : > { %v3762_v18 = vmul.f32 %v3730_v24, %v3530_v11  ;;  %v3572_v42 = vpop.f32.mrf.mxu0  ;;  %v3737_v24 = vperm.slane %v13543_v21, 1 }
 0x30a   : > { %v13718_v9 = vadd.f32 %v3748_v56, %v13532_v29  ;;  %v3765_v44 = vmul.f32 %v3733_v1, %v3572_v42 }
 0x30b   : > { %v13721_v33 = vadd.f32 %v3762_v18, %v13537_v37 }
 0x30c   : > { %v13724_v13 = vadd.f32 %v3765_v44, %v13539_v20 }
 0x30d   : > { %v3429_v25 = vpop.f32.mrf.mxu2 }
 0x30e   : > { %v13726_v58 = vmul.f32 %v3460_v15, %v3429_v25 }
 0x30f   : > { %v3558_v17 = vpop.f32.mrf.mxu3 }
 0x310   : > { %v3764_v31 = vmul.f32 %v3732_v19, %v3558_v17  ;;  %v3584_v52 = vpop.f32.mrf.mxu1 }
 0x311   : > { %v3750_v11 = vmul.f32 %v3734_v39, %v3584_v52  ;;  %v3626_v29 = vpop.f32.mrf.mxu0  ;;  %v3731_v52 = vperm.slane %v13553_v38, 1 }
 0x312   : > { %v13731_v1 = vadd.f32 %v3764_v31, %v13550_v8  ;;  %v3753_v37 = vmul.f32 %v3737_v24, %v3626_v29  ;;  %10499 = vmatmul.msk.bf16.vlgmr.msrb.gmra.mxu2 %vm471_vm1, %v13651_v35  ;;  %v3736_v8 = vperm.slane %v13560_v40, 1 }
 0x313   : > { %v13734_v56 = vadd.f32 %v3750_v11, %v13558_v0  ;;  %10502 = vmatmul.msk.bf16.vlgmr.msrb.gmra.mxu1 %vm471_vm1, %v13651_v35  ;;  %4282 = vmatpush.bf16.msrb.mxu2 %v16766_v50 }
 0x314   : > { %v13741_v25 = vadd.f32 %v3753_v37, %v13562_v54  ;;  %10504 = vmatmul.msk.bf16.vlgmr.msrb.gmra.mxu3 %vm471_vm1, %v13651_v35  ;;  %10505 = vmatmul.msk.bf16.vlgmr.msrb.gmra.mxu0 %vm471_vm1, %v13651_v35 }
 0x315   : > { %4324 = vmatpush.bf16.msrb.mxu1 %v16812_v22  ;;  %v3542_v20 = vpop.f32.mrf.mxu2  ;;  %4352 = vmatpush.bf16.msrb.mxu3 %v16813_v32 }
 0x316   : > { %4457 = vmatpush.bf16.msrb.mxu0 %v16814_v53  ;;  %v3747_v0 = vmul.f32 %v3731_v52, %v3542_v20 }
 0x317   : > { %v3612_v54 = vpop.f32.mrf.mxu3 }
 0x318   : > { %v3752_v15 = vmul.f32 %v3736_v8, %v3612_v54  ;;  %v3586_v19 = vpop.f32.mrf.mxu1  ;;  %v13754_v18 = vadd.f32 %v3747_v0, %v13580_v7  ;;  %v3738_v54 = vperm.slane %v13590_v6, 1 }
 0x319   : > { %v3766_v42 = vmul.f32 %v3734_v39, %v3586_v19  ;;  %v3628_v44 = vpop.f32.mrf.mxu0  ;;  %v3741_v39 = vperm.slane %v13592_v41, 1  ;;  %v16871_v19 = vld [vmem:[#allocation22_spill] sm:$0xff] }
 0x31a   : > { %v13757_v17 = vadd.f32 %v3752_v15, %v13584_v45  ;;  %v3769_v31 = vmul.f32 %v3737_v24, %v3628_v44 }
 0x31b   : > { %v13760_v11 = vadd.f32 %v3766_v42, %v13586_v46 }
 0x31c   : > { %v13763_v29 = vadd.f32 %v3769_v31, %v13588_v10 }
 0x31d   : > { %v3544_v37 = vpop.f32.mrf.mxu2 }
 0x31e   : > { %v3763_v20 = vmul.f32 %v3731_v52, %v3544_v37  ;;  %v3740_v52 = vperm.slane %v13608_v49, 1  ;;  %v16872_v37 = vld [vmem:[#allocation51_spill] sm:$0xff] }
 0x31f   : > { %v3614_v53 = vpop.f32.mrf.mxu3 }
 0x320   : > { %v3768_v32 = vmul.f32 %v3736_v8, %v3614_v53  ;;  %v3640_v7 = vpop.f32.mrf.mxu1  ;;  %v13768_v0 = vadd.f32 %v3763_v20, %v13598_v59  ;;  %v16868_v59 = vld [vmem:[#allocation37_spill] sm:$0xff] }
 0x321   : > { %v3754_v45 = vmul.f32 %v3738_v54, %v3640_v7  ;;  %v3682_v24 = vpop.f32.mrf.mxu0  ;;  %v16870_v8 = vld [vmem:[#allocation21_spill] sm:$0xff] }
 0x322   : > { %v13771_v46 = vadd.f32 %v3768_v32, %v13601_v57  ;;  %v3757_v15 = vmul.f32 %v3741_v39, %v3682_v24  ;;  %10503 = vmatmul.msk.bf16.vlgmr.msra.gmra.mxu2 %vm471_vm1, %v13651_v35  ;;  %v3735_v32 = vperm.slane %v13604_v30, 1  ;;  %v16869_v57 = vld [vmem:[#allocation20_spill] sm:$0xff] }
 0x323   : > { %v13774_v10 = vadd.f32 %v3754_v45, %v13606_v47  ;;  %10506 = vmatmul.msk.bf16.vlgmr.msra.gmra.mxu1 %vm471_vm1, %v13651_v35  ;;  %4338 = vmatpush.bf16.msra.mxu2 %v16868_v59  ;;  %v16873_v24 = vld [vmem:[#allocation52_spill] sm:$0xff] }
 0x324   : > { %v13781_v53 = vadd.f32 %v3757_v15, %v13610_v5  ;;  %10508 = vmatmul.msk.bf16.vlgmr.msra.gmra.mxu3 %vm471_vm1, %v13651_v35  ;;  %10509 = vmatmul.msk.bf16.vlgmr.msra.gmra.mxu0 %vm471_vm1, %v13651_v35 }
 0x325   : > { %4471 = vmatpush.bf16.msra.mxu1 %v16869_v57  ;;  %v3598_v47 = vpop.f32.mrf.mxu2  ;;  %4499 = vmatpush.bf16.msra.mxu3 %v16870_v8 }
 0x326   : > { %4513 = vmatpush.bf16.msra.mxu0 %v16871_v19  ;;  %v3751_v5 = vmul.f32 %v3735_v32, %v3598_v47 }
 0x327   : > { %v3668_v42 = vpop.f32.mrf.mxu3 }
 0x328   : > { %v3756_v44 = vmul.f32 %v3740_v52, %v3668_v42  ;;  %v3642_v31 = vpop.f32.mrf.mxu1  ;;  %v13794_v20 = vadd.f32 %v3751_v5, %v16872_v37  ;;  %v3742_v42 = vperm.slane %v13636_v2, 1  ;;  %v16881_v37 = vld [vmem:[#allocation55_spill] sm:$0xff] }
 0x329   : > { %v3770_v7 = vmul.f32 %v3738_v54, %v3642_v31  ;;  %v3684_v45 = vpop.f32.mrf.mxu0  ;;  %v4044_v54 = vperm.slane %v13442_v23, 2 }
 0x32a   : > { %v13797_v15 = vadd.f32 %v3756_v44, %v16873_v24  ;;  %v3773_v57 = vmul.f32 %v3741_v39, %v3684_v45  ;;  %v13810_v44 = vld [vmem:[%s16529_s4 + $0x60] sm:$0xff]  ;;  %v16882_v45 = vld [vmem:[#allocation25_spill] sm:$0xff] }
 0x32b   : > { %v13800_v59 = vadd.f32 %v3770_v7, %v13632_v48  ;;  %v3744_v7 = vperm.slane %v16881_v37, 1  ;;  %v16883_v24 = vld [vmem:[#allocation26_spill] sm:$0xff] }
 0x32c   : > { %v13803_v8 = vadd.f32 %v3773_v57, %v13634_v3 }
 0x32d   : > { %v3600_v19 = vpop.f32.mrf.mxu2 }
 0x32e   : > { %v3767_v47 = vmul.f32 %v3735_v32, %v3600_v19 }
 0x32f   : > { %v3670_v49 = vpop.f32.mrf.mxu3 }
 0x330   : > { %v3772_v30 = vmul.f32 %v3740_v52, %v3670_v49  ;;  %v3696_v5 = vpop.f32.mrf.mxu1  ;;  %v13813_v48 = vadd.f32 %v3767_v47, %v13642_v14  ;;  %v16876_v49 = vld [vmem:[#allocation56_spill] sm:$0xff]  ;;  %v16879_v14 = vld [vmem:[#allocation23_spill] sm:$0xff] }
 0x331   : > { %v3758_v39 = vmul.f32 %v3742_v42, %v3696_v5  ;;  %v3829_v3 = vpop.f32.mrf.mxu0 }
 0x332   : > { %v13816_v57 = vadd.f32 %v3772_v30, %v13645_v61  ;;  %v4060_v32 = vmul.f32 %v4044_v54, %v3829_v3  ;;  %10507 = vmatmul.msk.bf16.vlgmr.msrb.gmra.mxu2 %vm471_vm1, %v13651_v35  ;;  %v16878_v30 = vld [vmem:[#allocation54_spill] sm:$0xff] }
 0x333   : > { %v13819_v19 = vadd.f32 %v3758_v39, %v13655_v36  ;;  %10510 = vmatmul.msk.bf16.vlgmr.msrb.gmra.mxu1 %vm471_vm1, %v13651_v35  ;;  %v3739_v61 = vperm.slane %v16878_v30, 1  ;;  %4485 = vmatpush.bf16.msrb.mxu2 %v16879_v14  ;;  %v16880_v36 = vld [vmem:[#allocation24_spill] sm:$0xff] }
 0x334   : > { %16874 = vst [vmem:[#allocation51_spill] sm:$0xff] %v13816_v57  ;;  %v13826_v52 = vadd.f32 %v4060_v32, %v16876_v49  ;;  %10512 = vmatmul.msk.bf16.vlgmr.msrb.gmra.mxu3 %vm471_vm1, %v13651_v35  ;;  %10519 = vmatmul.msk.bf16.vlgmr.msrb.gmra.mxu0 %vm471_vm1, %v13810_v44  ;;  %v16884_v32 = vld [vmem:[#allocation57_spill] sm:$0xff] }
 0x335   : > { %16875 = vst [vmem:[#allocation52_spill] sm:$0xff] %v13819_v19  ;;  %4527 = vmatpush.bf16.msrb.mxu1 %v16880_v36  ;;  %v3654_v31 = vpop.f32.mrf.mxu2  ;;  %4555 = vmatpush.bf16.msrb.mxu3 %v16882_v45 }
 0x336   : > { %16877 = vst [vmem:[#allocation56_spill] sm:$0xff] %v13826_v52  ;;  %4569 = vmatpush.bf16.msrb.mxu0 %v16883_v24  ;;  %v3755_v47 = vmul.f32 %v3739_v61, %v3654_v31 }
 0x337   : > { %v3724_v5 = vpop.f32.mrf.mxu3 }
 0x338   : > { %v3760_v39 = vmul.f32 %v3744_v7, %v3724_v5  ;;  %v3698_v3 = vpop.f32.mrf.mxu1  ;;  %v13839_v49 = vadd.f32 %v3755_v47, %v16884_v32  ;;  %v4045_v5 = vperm.slane %v13491_v34, 2 }
 0x339   : > { %v3774_v52 = vmul.f32 %v3742_v42, %v3698_v3  ;;  %v3831_v30 = vpop.f32.mrf.mxu0  ;;  %v4048_v42 = vperm.slane %v13496_v43, 2 }
 0x33a   : > { %v13842_v14 = vadd.f32 %v3760_v39, %v13678_v27  ;;  %v4076_v36 = vmul.f32 %v4044_v54, %v3831_v30 }
 0x33b   : > { %v13845_v19 = vadd.f32 %v3774_v52, %v13680_v12 }
 0x33c   : > { %v13848_v45 = vadd.f32 %v4076_v36, %v13683_v4 }
 0x33d   : > { %v3656_v24 = vpop.f32.mrf.mxu2 }
 0x33e   : > { %v3771_v31 = vmul.f32 %v3739_v61, %v3656_v24  ;;  %v16887_v61 = vld [vmem:[#allocation30_spill] sm:$0xff] }
 0x33f   : > { %v3726_v37 = vpop.f32.mrf.mxu3  ;;  %v16888_v24 = vld [vmem:[#allocation58_spill] sm:$0xff] }
 0x340   : > { %v3776_v57 = vmul.f32 %v3744_v7, %v3726_v37  ;;  %v3843_v47 = vpop.f32.mrf.mxu1  ;;  %v13853_v3 = vadd.f32 %v3771_v31, %v13687_v51  ;;  %v3743_v51 = vperm.slane %v13693_v16, 1 }
 0x341   : > { %v4061_v27 = vmul.f32 %v4045_v5, %v3843_v47  ;;  %v3885_v54 = vpop.f32.mrf.mxu0 }
 0x342   : > { %v13856_v12 = vadd.f32 %v3776_v57, %v13690_v63  ;;  %v4064_v52 = vmul.f32 %v4048_v42, %v3885_v54  ;;  %10511 = vmatmul.msk.bf16.vlgmr.msra.gmra.mxu2 %vm471_vm1, %v13651_v35  ;;  %v16885_v35 = vld [vmem:[#allocation40_spill] sm:$0xff]  ;;  %v16886_v57 = vld [vmem:[#allocation29_spill] sm:$0xff] }
 0x343   : > { %v13859_v4 = vadd.f32 %v4061_v27, %v13696_v60  ;;  %10520 = vmatmul.msk.bf16.vlgmr.msra.gmra.mxu1 %vm471_vm1, %v13810_v44  ;;  %4541 = vmatpush.bf16.msra.mxu2 %v16735_v62  ;;  %v4047_v60 = vperm.slane %v16885_v35, 2 }
 0x344   : > { %v13866_v30 = vadd.f32 %v4064_v52, %v13703_v28  ;;  %10522 = vmatmul.msk.bf16.vlgmr.msra.gmra.mxu3 %vm471_vm1, %v13810_v44  ;;  %10523 = vmatmul.msk.bf16.vlgmr.msra.gmra.mxu0 %vm471_vm1, %v13810_v44 }
 0x345   : > { %4583 = vmatpush.bf16.msra.mxu1 %v16786_v26  ;;  %v3710_v63 = vpop.f32.mrf.mxu2  ;;  %4611 = vmatpush.bf16.msra.mxu3 %v16886_v57 }
 0x346   : > { %4625 = vmatpush.bf16.msra.mxu0 %v16887_v61  ;;  %v3759_v28 = vmul.f32 %v3743_v51, %v3710_v63 }
 0x347   : > { %v3871_v36 = vpop.f32.mrf.mxu3 }
 0x348   : > { %v4063_v37 = vmul.f32 %v4047_v60, %v3871_v36  ;;  %v3845_v7 = vpop.f32.mrf.mxu1  ;;  %v13879_v39 = vadd.f32 %v3759_v28, %v16888_v24  ;;  %v4049_v36 = vperm.slane %v13541_v55, 2 }
 0x349   : > { %v4077_v32 = vmul.f32 %v4045_v5, %v3845_v7  ;;  %v3887_v31 = vpop.f32.mrf.mxu0  ;;  %v4052_v5 = vperm.slane %v13543_v21, 2 }
 0x34a   : > { %v13882_v47 = vadd.f32 %v4063_v37, %v13718_v9  ;;  %v4080_v27 = vmul.f32 %v4048_v42, %v3887_v31 }
 0x34b   : > { %v13885_v54 = vadd.f32 %v4077_v32, %v13721_v33 }
 0x34c   : > { %v13888_v52 = vadd.f32 %v4080_v27, %v13724_v13 }
 0x34d   : > { %v3712_v61 = vpop.f32.mrf.mxu2 }
 0x34e   : > { %v3775_v63 = vmul.f32 %v3743_v51, %v3712_v61 }
 0x34f   : > { %v3873_v57 = vpop.f32.mrf.mxu3 }
 0x350   : > { %v4079_v35 = vmul.f32 %v4047_v60, %v3873_v57  ;;  %v3899_v28 = vpop.f32.mrf.mxu1  ;;  %v13893_v7 = vadd.f32 %v3775_v63, %v13726_v58  ;;  %v4046_v58 = vperm.slane %v13553_v38, 2  ;;  %v16890_v60 = vld [vmem:[#allocation19_spill] sm:$0xff] }
 0x351   : > { %v4065_v9 = vmul.f32 %v4049_v36, %v3899_v28  ;;  %v3941_v42 = vpop.f32.mrf.mxu0 }
 0x352   : > { %v13896_v33 = vadd.f32 %v4079_v35, %v13731_v1  ;;  %v4068_v37 = vmul.f32 %v4052_v5, %v3941_v42  ;;  %10521 = vmatmul.msk.bf16.vlgmr.msrb.gmra.mxu2 %vm471_vm1, %v13810_v44  ;;  %v16889_v35 = vld [vmem:[#allocation35_spill] sm:$0xff] }
 0x353   : > { %v13899_v13 = vadd.f32 %v4065_v9, %v13734_v56  ;;  %10524 = vmatmul.msk.bf16.vlgmr.msrb.gmra.mxu1 %vm471_vm1, %v13810_v44  ;;  %4597 = vmatpush.bf16.msrb.mxu2 %v16766_v50  ;;  %v4051_v56 = vperm.slane %v13560_v40, 2 }
 0x354   : > { %v13906_v51 = vadd.f32 %v4068_v37, %v13741_v25  ;;  %10526 = vmatmul.msk.bf16.vlgmr.msrb.gmra.mxu3 %vm471_vm1, %v13810_v44  ;;  %10527 = vmatmul.msk.bf16.vlgmr.msrb.gmra.mxu0 %vm471_vm1, %v13810_v44 }
 0x355   : > { %4639 = vmatpush.bf16.msrb.mxu1 %v16812_v22  ;;  %v3857_v1 = vpop.f32.mrf.mxu2  ;;  %4667 = vmatpush.bf16.msrb.mxu3 %v16889_v35 }
 0x356   : > { %4772 = vmatpush.bf16.msrb.mxu0 %v16890_v60  ;;  %v4062_v25 = vmul.f32 %v4046_v58, %v3857_v1 }
 0x357   : > { %v3927_v57 = vpop.f32.mrf.mxu3 }
 0x358   : > { %v4067_v61 = vmul.f32 %v4051_v56, %v3927_v57  ;;  %v3901_v24 = vpop.f32.mrf.mxu1  ;;  %v13919_v32 = vadd.f32 %v4062_v25, %v13754_v18  ;;  %v4053_v57 = vperm.slane %v13590_v6, 2 }
 0x359   : > { %v4081_v31 = vmul.f32 %v4049_v36, %v3901_v24  ;;  %v3943_v27 = vpop.f32.mrf.mxu0  ;;  %v4056_v36 = vperm.slane %v13592_v41, 2 }
 0x35a   : > { %v13922_v63 = vadd.f32 %v4067_v61, %v13757_v17  ;;  %v4084_v28 = vmul.f32 %v4052_v5, %v3943_v27  ;;  %v16896_v27 = vld [vmem:[#allocation22_spill] sm:$0xff] }
 0x35b   : > { %v13925_v9 = vadd.f32 %v4081_v31, %v13760_v11  ;;  %v16895_v31 = vld [vmem:[#allocation21_spill] sm:$0xff] }
 0x35c   : > { %v13928_v42 = vadd.f32 %v4084_v28, %v13763_v29 }
 0x35d   : > { %v3859_v37 = vpop.f32.mrf.mxu2 }
 0x35e   : > { %v4078_v1 = vmul.f32 %v4046_v58, %v3859_v37 }
 0x35f   : > { %v3929_v60 = vpop.f32.mrf.mxu3 }
 0x360   : > { %v4083_v35 = vmul.f32 %v4051_v56, %v3929_v60  ;;  %v3955_v18 = vpop.f32.mrf.mxu1  ;;  %v13933_v25 = vadd.f32 %v4078_v1, %v13768_v0  ;;  %v16891_v0 = vld [vmem:[#allocation49_spill] sm:$0xff]  ;;  %v16894_v60 = vld [vmem:[#allocation50_spill] sm:$0xff] }
 0x361   : > { %v4069_v17 = vmul.f32 %v4053_v57, %v3955_v18  ;;  %v3997_v5 = vpop.f32.mrf.mxu0  ;;  %v16892_v56 = vld [vmem:[#allocation37_spill] sm:$0xff]  ;;  %v4055_v24 = vperm.slane %v16894_v60, 2 }
 0x362   : > { %v13936_v11 = vadd.f32 %v4083_v35, %v13771_v46  ;;  %v4072_v61 = vmul.f32 %v4056_v36, %v3997_v5  ;;  %10525 = vmatmul.msk.bf16.vlgmr.msra.gmra.mxu2 %vm471_vm1, %v13810_v44  ;;  %v4050_v46 = vperm.slane %v16891_v0, 2 }
 0x363   : > { %v13939_v29 = vadd.f32 %v4069_v17, %v13774_v10  ;;  %10528 = vmatmul.msk.bf16.vlgmr.msra.gmra.mxu1 %vm471_vm1, %v13810_v44  ;;  %4653 = vmatpush.bf16.msra.mxu2 %v16892_v56  ;;  %v16893_v10 = vld [vmem:[#allocation20_spill] sm:$0xff] }
 0x364   : > { %v13946_v58 = vadd.f32 %v4072_v61, %v13781_v53  ;;  %10530 = vmatmul.msk.bf16.vlgmr.msra.gmra.mxu3 %vm471_vm1, %v13810_v44  ;;  %10531 = vmatmul.msk.bf16.vlgmr.msra.gmra.mxu0 %vm471_vm1, %v13810_v44 }
 0x365   : > { %4786 = vmatpush.bf16.msra.mxu1 %v16893_v10  ;;  %v3913_v35 = vpop.f32.mrf.mxu2  ;;  %4814 = vmatpush.bf16.msra.mxu3 %v16895_v31 }
 0x366   : > { %4828 = vmatpush.bf16.msra.mxu0 %v16896_v27  ;;  %v4066_v53 = vmul.f32 %v4050_v46, %v3913_v35 }
 0x367   : > { %v3983_v28 = vpop.f32.mrf.mxu3 }
 0x368   : > { %v4071_v37 = vmul.f32 %v4055_v24, %v3983_v28  ;;  %v3957_v1 = vpop.f32.mrf.mxu1  ;;  %v13959_v18 = vadd.f32 %v4066_v53, %v13794_v20  ;;  %v4057_v28 = vperm.slane %v13636_v2, 2 }
 0x369   : > { %v4085_v17 = vmul.f32 %v4053_v57, %v3957_v1  ;;  %v3999_v5 = vpop.f32.mrf.mxu0  ;;  %v4359_v57 = vperm.slane %v13442_v23, 3  ;;  %v16905_v1 = vld [vmem:[#allocation23_spill] sm:$0xff] }
 0x36a   : > { %v13962_v61 = vadd.f32 %v4071_v37, %v13797_v15  ;;  %v4088_v10 = vmul.f32 %v4056_v36, %v3999_v5  ;;  %v13975_v15 = vld [vmem:[%s16529_s4 + $0x68] sm:$0xff] }
 0x36b   : > { %v13965_v56 = vadd.f32 %v4085_v17, %v13800_v59  ;;  %v16906_v17 = vld [vmem:[#allocation24_spill] sm:$0xff] }
 0x36c   : > { %v13968_v31 = vadd.f32 %v4088_v10, %v13803_v8  ;;  %v16898_v10 = vld [vmem:[#allocation51_spill] sm:$0xff] }
 0x36d   : > { %v3915_v27 = vpop.f32.mrf.mxu2 }
 0x36e   : > { %v4082_v35 = vmul.f32 %v4050_v46, %v3915_v27  ;;  %v16900_v27 = vld [vmem:[#allocation52_spill] sm:$0xff] }
 0x36f   : > { %v3985_v60 = vpop.f32.mrf.mxu3 }
 0x370   : > { %v4087_v0 = vmul.f32 %v4055_v24, %v3985_v60  ;;  %v4011_v20 = vpop.f32.mrf.mxu1  ;;  %v13978_v59 = vadd.f32 %v4082_v35, %v13813_v48  ;;  %v16902_v60 = vld [vmem:[#allocation56_spill] sm:$0xff]  ;;  %v16904_v48 = vld [vmem:[#allocation54_spill] sm:$0xff]  ;;  %v16907_v35 = vld [vmem:[#allocation55_spill] sm:$0xff] }
 0x371   : > { %v4073_v36 = vmul.f32 %v4057_v28, %v4011_v20  ;;  %v4144_v8 = vpop.f32.mrf.mxu0  ;;  %v4059_v20 = vperm.slane %v16907_v35, 2 }
 0x372   : > { %16897 = vst [vmem:[#allocation57_spill] sm:$0xff] %v13978_v59  ;;  %v13981_v53 = vadd.f32 %v4087_v0, %v16898_v10  ;;  %v4375_v46 = vmul.f32 %v4359_v57, %v4144_v8  ;;  %10529 = vmatmul.msk.bf16.vlgmr.msrb.gmra.mxu2 %vm471_vm1, %v13810_v44  ;;  %v4054_v0 = vperm.slane %v16904_v48, 2  ;;  %v16909_v8 = vld [vmem:[#allocation26_spill] sm:$0xff] }
 0x373   : > { %v13984_v37 = vadd.f32 %v4073_v36, %v16900_v27  ;;  %10532 = vmatmul.msk.bf16.vlgmr.msrb.gmra.mxu1 %vm471_vm1, %v13810_v44  ;;  %4800 = vmatpush.bf16.msrb.mxu2 %v16905_v1  ;;  %v16908_v36 = vld [vmem:[#allocation25_spill] sm:$0xff] }
 0x374   : > { %16899 = vst [vmem:[#allocation58_spill] sm:$0xff] %v13981_v53  ;;  %v13991_v24 = vadd.f32 %v4375_v46, %v16902_v60  ;;  %10534 = vmatmul.msk.bf16.vlgmr.msrb.gmra.mxu3 %vm471_vm1, %v13810_v44  ;;  %10541 = vmatmul.msk.bf16.vlgmr.msrb.gmra.mxu0 %vm471_vm1, %v13975_v15 }
 0x375   : > { %16901 = vst [vmem:[#allocation51_spill] sm:$0xff] %v13984_v37  ;;  %4842 = vmatpush.bf16.msrb.mxu1 %v16906_v17  ;;  %v3969_v5 = vpop.f32.mrf.mxu2  ;;  %4870 = vmatpush.bf16.msrb.mxu3 %v16908_v36 }
 0x376   : > { %16903 = vst [vmem:[#allocation52_spill] sm:$0xff] %v13991_v24  ;;  %4884 = vmatpush.bf16.msrb.mxu0 %v16909_v8  ;;  %v4070_v10 = vmul.f32 %v4054_v0, %v3969_v5 }
 0x377   : > { %v4039_v46 = vpop.f32.mrf.mxu3 }
 0x378   : > { %v4075_v27 = vmul.f32 %v4059_v20, %v4039_v46  ;;  %v4013_v60 = vpop.f32.mrf.mxu1  ;;  %v14004_v24 = vadd.f32 %v4070_v10, %v13839_v49  ;;  %v4360_v46 = vperm.slane %v13491_v34, 3 }
 0x379   : > { %v4089_v37 = vmul.f32 %v4057_v28, %v4013_v60  ;;  %v4146_v48 = vpop.f32.mrf.mxu0  ;;  %v4363_v28 = vperm.slane %v13496_v43, 3 }
 0x37a   : > { %v14007_v1 = vadd.f32 %v4075_v27, %v13842_v14  ;;  %v4391_v17 = vmul.f32 %v4359_v57, %v4146_v48 }
 0x37b   : > { %v14010_v53 = vadd.f32 %v4089_v37, %v13845_v19 }
 0x37c   : > { %v14013_v36 = vadd.f32 %v4391_v17, %v13848_v45 }
 0x37d   : > { %v3971_v8 = vpop.f32.mrf.mxu2 }
 0x37e   : > { %v4086_v5 = vmul.f32 %v4054_v0, %v3971_v8  ;;  %v16912_v0 = vld [vmem:[#allocation30_spill] sm:$0xff] }
 0x37f   : > { %v4041_v35 = vpop.f32.mrf.mxu3 }
 0x380   : > { %v4091_v59 = vmul.f32 %v4059_v20, %v4041_v35  ;;  %v4158_v49 = vpop.f32.mrf.mxu1  ;;  %v14018_v10 = vadd.f32 %v4086_v5, %v13853_v3  ;;  %v4058_v3 = vperm.slane %v13693_v16, 2 }
 0x381   : > { %v4376_v14 = vmul.f32 %v4360_v46, %v4158_v49  ;;  %v4200_v57 = vpop.f32.mrf.mxu0 }
 0x382   : > { %v14021_v19 = vadd.f32 %v4091_v59, %v13856_v12  ;;  %v4379_v37 = vmul.f32 %v4363_v28, %v4200_v57  ;;  %10533 = vmatmul.msk.bf16.vlgmr.msra.gmra.mxu2 %vm471_vm1, %v13810_v44  ;;  %v16910_v44 = vld [vmem:[#allocation40_spill] sm:$0xff]  ;;  %v16911_v59 = vld [vmem:[#allocation29_spill] sm:$0xff] }
 0x383   : > { %v14024_v45 = vadd.f32 %v4376_v14, %v13859_v4  ;;  %10542 = vmatmul.msk.bf16.vlgmr.msra.gmra.mxu1 %vm471_vm1, %v13975_v15  ;;  %4856 = vmatpush.bf16.msra.mxu2 %v16735_v62  ;;  %v4362_v4 = vperm.slane %v16910_v44, 3 }
 0x384   : > { %v14031_v48 = vadd.f32 %v4379_v37, %v13866_v30  ;;  %10544 = vmatmul.msk.bf16.vlgmr.msra.gmra.mxu3 %vm471_vm1, %v13975_v15  ;;  %10545 = vmatmul.msk.bf16.vlgmr.msra.gmra.mxu0 %vm471_vm1, %v13975_v15 }
 0x385   : > { %4898 = vmatpush.bf16.msra.mxu1 %v16786_v26  ;;  %v4025_v12 = vpop.f32.mrf.mxu2  ;;  %4926 = vmatpush.bf16.msra.mxu3 %v16911_v59 }
 0x386   : > { %4940 = vmatpush.bf16.msra.mxu0 %v16912_v0  ;;  %v4074_v30 = vmul.f32 %v4058_v3, %v4025_v12 }
 0x387   : > { %v4186_v17 = vpop.f32.mrf.mxu3 }
 0x388   : > { %v4378_v35 = vmul.f32 %v4362_v4, %v4186_v17  ;;  %v4160_v20 = vpop.f32.mrf.mxu1  ;;  %v14044_v8 = vadd.f32 %v4074_v30, %v13879_v39  ;;  %v4364_v17 = vperm.slane %v13541_v55, 3 }
 0x389   : > { %v4392_v27 = vmul.f32 %v4360_v46, %v4160_v20  ;;  %v4202_v60 = vpop.f32.mrf.mxu0  ;;  %v4367_v46 = vperm.slane %v13543_v21, 3 }
 0x38a   : > { %v14047_v5 = vadd.f32 %v4378_v35, %v13882_v47  ;;  %v4395_v49 = vmul.f32 %v4363_v28, %v4202_v60 }
 0x38b   : > { %v14050_v14 = vadd.f32 %v4392_v27, %v13885_v54 }
 0x38c   : > { %v14053_v57 = vadd.f32 %v4395_v49, %v13888_v52 }
 0x38d   : > { %v4027_v37 = vpop.f32.mrf.mxu2 }
 0x38e   : > { %v4090_v12 = vmul.f32 %v4058_v3, %v4027_v37 }
 0x38f   : > { %v4188_v0 = vpop.f32.mrf.mxu3 }
 0x390   : > { %v4394_v59 = vmul.f32 %v4362_v4, %v4188_v0  ;;  %v4214_v39 = vpop.f32.mrf.mxu1  ;;  %v14058_v30 = vadd.f32 %v4090_v12, %v13893_v7  ;;  %v4361_v7 = vperm.slane %v13553_v38, 3  ;;  %v16913_v4 = vld [vmem:[#allocation35_spill] sm:$0xff] }
 0x391   : > { %v4380_v47 = vmul.f32 %v4364_v17, %v4214_v39  ;;  %v4256_v28 = vpop.f32.mrf.mxu0 }
 0x392   : > { %v14061_v54 = vadd.f32 %v4394_v59, %v13896_v33  ;;  %v4383_v35 = vmul.f32 %v4367_v46, %v4256_v28  ;;  %10543 = vmatmul.msk.bf16.vlgmr.msrb.gmra.mxu2 %vm471_vm1, %v13975_v15  ;;  %v16914_v59 = vld [vmem:[#allocation19_spill] sm:$0xff] }
 0x393   : > { %v14064_v52 = vadd.f32 %v4380_v47, %v13899_v13  ;;  %10546 = vmatmul.msk.bf16.vlgmr.msrb.gmra.mxu1 %vm471_vm1, %v13975_v15  ;;  %4912 = vmatpush.bf16.msrb.mxu2 %v16766_v50  ;;  %v4366_v13 = vperm.slane %v13560_v40, 3 }
 0x394   : > { %v14071_v3 = vadd.f32 %v4383_v35, %v13906_v51  ;;  %10548 = vmatmul.msk.bf16.vlgmr.msrb.gmra.mxu3 %vm471_vm1, %v13975_v15  ;;  %10549 = vmatmul.msk.bf16.vlgmr.msrb.gmra.mxu0 %vm471_vm1, %v13975_v15 }
 0x395   : > { %4954 = vmatpush.bf16.msrb.mxu1 %v16812_v22  ;;  %v4172_v33 = vpop.f32.mrf.mxu2  ;;  %4982 = vmatpush.bf16.msrb.mxu3 %v16913_v4 }
 0x396   : > { %5087 = vmatpush.bf16.msrb.mxu0 %v16914_v59  ;;  %v4377_v51 = vmul.f32 %v4361_v7, %v4172_v33 }
 0x397   : > { %v4242_v0 = vpop.f32.mrf.mxu3 }
 0x398   : > { %v4382_v20 = vmul.f32 %v4366_v13, %v4242_v0  ;;  %v4216_v27 = vpop.f32.mrf.mxu1  ;;  %v14084_v60 = vadd.f32 %v4377_v51, %v13919_v32  ;;  %v4368_v0 = vperm.slane %v13590_v6, 3 }
 0x399   : > { %v4396_v49 = vmul.f32 %v4364_v17, %v4216_v27  ;;  %v4258_v37 = vpop.f32.mrf.mxu0  ;;  %v4371_v17 = vperm.slane %v13592_v41, 3 }
 0x39a   : > { %v14087_v12 = vadd.f32 %v4382_v20, %v13922_v63  ;;  %v4399_v39 = vmul.f32 %v4367_v46, %v4258_v37  ;;  %v16920_v37 = vld [vmem:[#allocation22_spill] sm:$0xff] }
 0x39b   : > { %v14090_v47 = vadd.f32 %v4396_v49, %v13925_v9  ;;  %v16919_v49 = vld [vmem:[#allocation21_spill] sm:$0xff] }
 0x39c   : > { %v14093_v28 = vadd.f32 %v4399_v39, %v13928_v42 }
 0x39d   : > { %v4174_v35 = vpop.f32.mrf.mxu2 }
 0x39e   : > { %v4393_v33 = vmul.f32 %v4361_v7, %v4174_v35 }
 0x39f   : > { %v4244_v59 = vpop.f32.mrf.mxu3 }
 0x3a0   : > { %v4398_v4 = vmul.f32 %v4366_v13, %v4244_v59  ;;  %v4270_v32 = vpop.f32.mrf.mxu1  ;;  %v14098_v51 = vadd.f32 %v4393_v33, %v13933_v25  ;;  %v16915_v25 = vld [vmem:[#allocation49_spill] sm:$0xff]  ;;  %v16918_v59 = vld [vmem:[#allocation50_spill] sm:$0xff] }
 0x3a1   : > { %v4384_v63 = vmul.f32 %v4368_v0, %v4270_v32  ;;  %v4312_v46 = vpop.f32.mrf.mxu0  ;;  %v16916_v13 = vld [vmem:[#allocation37_spill] sm:$0xff]  ;;  %v4370_v27 = vperm.slane %v16918_v59, 3 }
 0x3a2   : > { %v14101_v9 = vadd.f32 %v4398_v4, %v13936_v11  ;;  %v4387_v20 = vmul.f32 %v4371_v17, %v4312_v46  ;;  %10547 = vmatmul.msk.bf16.vlgmr.msra.gmra.mxu2 %vm471_vm1, %v13975_v15  ;;  %v4365_v11 = vperm.slane %v16915_v25, 3 }
 0x3a3   : > { %v14104_v42 = vadd.f32 %v4384_v63, %v13939_v29  ;;  %10550 = vmatmul.msk.bf16.vlgmr.msra.gmra.mxu1 %vm471_vm1, %v13975_v15  ;;  %4968 = vmatpush.bf16.msra.mxu2 %v16916_v13  ;;  %v16917_v29 = vld [vmem:[#allocation20_spill] sm:$0xff] }
 0x3a4   : > { %v14111_v7 = vadd.f32 %v4387_v20, %v13946_v58  ;;  %10552 = vmatmul.msk.bf16.vlgmr.msra.gmra.mxu3 %vm471_vm1, %v13975_v15  ;;  %10553 = vmatmul.msk.bf16.vlgmr.msra.gmra.mxu0 %vm471_vm1, %v13975_v15 }
 0x3a5   : > { %5101 = vmatpush.bf16.msra.mxu1 %v16917_v29  ;;  %v4228_v4 = vpop.f32.mrf.mxu2  ;;  %5129 = vmatpush.bf16.msra.mxu3 %v16919_v49 }
 0x3a6   : > { %5143 = vmatpush.bf16.msra.mxu0 %v16920_v37  ;;  %v4381_v58 = vmul.f32 %v4365_v11, %v4228_v4 }
 0x3a7   : > { %v4298_v39 = vpop.f32.mrf.mxu3 }
 0x3a8   : > { %v4386_v35 = vmul.f32 %v4370_v27, %v4298_v39  ;;  %v4272_v33 = vpop.f32.mrf.mxu1  ;;  %v14124_v32 = vadd.f32 %v4381_v58, %v13959_v18  ;;  %v4372_v39 = vperm.slane %v13636_v2, 3 }
 0x3a9   : > { %v4400_v63 = vmul.f32 %v4368_v0, %v4272_v33  ;;  %v4314_v46 = vpop.f32.mrf.mxu0  ;;  %v4674_v0 = vperm.slane %v13442_v23, 4 }
 0x3aa   : > { %v14127_v20 = vadd.f32 %v4386_v35, %v13962_v61  ;;  %v4403_v29 = vmul.f32 %v4371_v17, %v4314_v46  ;;  %v14140_v61 = vld [vmem:[%s16529_s4 + $0x70] sm:$0xff]  ;;  %v16930_v46 = vld [vmem:[#allocation23_spill] sm:$0xff] }
 0x3ab   : > { %v14130_v13 = vadd.f32 %v4400_v63, %v13965_v56  ;;  %v16921_v17 = vld [vmem:[#allocation57_spill] sm:$0xff] }
 0x3ac   : > { %v14133_v49 = vadd.f32 %v4403_v29, %v13968_v31  ;;  %v16923_v29 = vld [vmem:[#allocation58_spill] sm:$0xff] }
 0x3ad   : > { %v4230_v37 = vpop.f32.mrf.mxu2 }
 0x3ae   : > { %v4397_v4 = vmul.f32 %v4365_v11, %v4230_v37  ;;  %v16925_v37 = vld [vmem:[#allocation51_spill] sm:$0xff] }
 0x3af   : > { %v4300_v59 = vpop.f32.mrf.mxu3 }
 0x3b0   : > { %v4402_v25 = vmul.f32 %v4370_v27, %v4300_v59  ;;  %v4326_v18 = vpop.f32.mrf.mxu1  ;;  %v14143_v56 = vadd.f32 %v4397_v4, %v16921_v17  ;;  %v16927_v59 = vld [vmem:[#allocation52_spill] sm:$0xff]  ;;  %v16932_v17 = vld [vmem:[#allocation55_spill] sm:$0xff] }
 0x3b1   : > { %v4388_v58 = vmul.f32 %v4372_v39, %v4326_v18  ;;  %v4459_v31 = vpop.f32.mrf.mxu0  ;;  %v16931_v4 = vld [vmem:[#allocation24_spill] sm:$0xff] }
 0x3b2   : > { %16922 = vst [vmem:[#allocation56_spill] sm:$0xff] %v14143_v56  ;;  %v14146_v35 = vadd.f32 %v4402_v25, %v16923_v29  ;;  %v4690_v11 = vmul.f32 %v4674_v0, %v4459_v31  ;;  %10551 = vmatmul.msk.bf16.vlgmr.msrb.gmra.mxu2 %vm471_vm1, %v13975_v15  ;;  %v16929_v25 = vld [vmem:[#allocation54_spill] sm:$0xff]  ;;  %v16933_v31 = vld [vmem:[#allocation25_spill] sm:$0xff] }
 0x3b3   : > { %v14149_v33 = vadd.f32 %v4388_v58, %v16925_v37  ;;  %10554 = vmatmul.msk.bf16.vlgmr.msrb.gmra.mxu1 %vm471_vm1, %v13975_v15  ;;  %v4369_v63 = vperm.slane %v16929_v25, 3  ;;  %5115 = vmatpush.bf16.msrb.mxu2 %v16930_v46  ;;  %v4374_v58 = vperm.slane %v16932_v17, 3  ;;  %v16934_v29 = vld [vmem:[#allocation26_spill] sm:$0xff] }
 0x3b4   : > { %16924 = vst [vmem:[#allocation40_spill] sm:$0xff] %v14146_v35  ;;  %v14156_v27 = vadd.f32 %v4690_v11, %v16927_v59  ;;  %10556 = vmatmul.msk.bf16.vlgmr.msrb.gmra.mxu3 %vm471_vm1, %v13975_v15  ;;  %10563 = vmatmul.msk.bf16.vlgmr.msrb.gmra.mxu0 %vm471_vm1, %v14140_v61 }
 0x3b5   : > { %16926 = vst [vmem:[#allocation57_spill] sm:$0xff] %v14149_v33  ;;  %5157 = vmatpush.bf16.msrb.mxu1 %v16931_v4  ;;  %v4284_v18 = vpop.f32.mrf.mxu2  ;;  %5185 = vmatpush.bf16.msrb.mxu3 %v16933_v31 }
 0x3b6   : > { %16928 = vst [vmem:[#allocation58_spill] sm:$0xff] %v14156_v27  ;;  %5199 = vmatpush.bf16.msrb.mxu0 %v16934_v29  ;;  %v4385_v11 = vmul.f32 %v4369_v63, %v4284_v18 }
 0x3b7   : > { %v4354_v37 = vpop.f32.mrf.mxu3 }
 0x3b8   : > { %v4390_v59 = vmul.f32 %v4374_v58, %v4354_v37  ;;  %v4328_v27 = vpop.f32.mrf.mxu1  ;;  %v14169_v33 = vadd.f32 %v4385_v11, %v14004_v24  ;;  %v4675_v37 = vperm.slane %v13491_v34, 4 }
 0x3b9   : > { %v4404_v35 = vmul.f32 %v4372_v39, %v4328_v27  ;;  %v4461_v25 = vpop.f32.mrf.mxu0  ;;  %v4678_v39 = vperm.slane %v13496_v43, 4 }
 0x3ba   : > { %v14172_v46 = vadd.f32 %v4390_v59, %v14007_v1  ;;  %v4706_v4 = vmul.f32 %v4674_v0, %v4461_v25 }
 0x3bb   : > { %v14175_v56 = vadd.f32 %v4404_v35, %v14010_v53 }
 0x3bc   : > { %v14178_v31 = vadd.f32 %v4706_v4, %v14013_v36 }
 0x3bd   : > { %v4286_v29 = vpop.f32.mrf.mxu2 }
 0x3be   : > { %v4401_v18 = vmul.f32 %v4369_v63, %v4286_v29 }
 0x3bf   : > { %v4356_v17 = vpop.f32.mrf.mxu3 }
 0x3c0   : > { %v4406_v23 = vmul.f32 %v4374_v58, %v4356_v17  ;;  %v4473_v24 = vpop.f32.mrf.mxu1  ;;  %v14183_v27 = vadd.f32 %v4401_v18, %v14018_v10 }
 0x3c1   : > { %v4691_v1 = vmul.f32 %v4675_v37, %v4473_v24  ;;  %v4515_v0 = vpop.f32.mrf.mxu0 }
 0x3c2   : > { %v14186_v53 = vadd.f32 %v4406_v23, %v14021_v19  ;;  %v4694_v35 = vmul.f32 %v4678_v39, %v4515_v0  ;;  %10555 = vmatmul.msk.bf16.vlgmr.msra.gmra.mxu2 %vm471_vm1, %v13975_v15  ;;  %v4373_v23 = vperm.slane %v13693_v16, 3  ;;  %v4677_v15 = vperm.slane %v16910_v44, 4  ;;  %v16935_v19 = vld [vmem:[#allocation29_spill] sm:$0xff] }
 0x3c3   : > { %v14189_v36 = vadd.f32 %v4691_v1, %v14024_v45  ;;  %10564 = vmatmul.msk.bf16.vlgmr.msra.gmra.mxu1 %vm471_vm1, %v14140_v61  ;;  %5171 = vmatpush.bf16.msra.mxu2 %v16735_v62  ;;  %v16936_v45 = vld [vmem:[#allocation30_spill] sm:$0xff] }
 0x3c4   : > { %v14196_v25 = vadd.f32 %v4694_v35, %v14031_v48  ;;  %10566 = vmatmul.msk.bf16.vlgmr.msra.gmra.mxu3 %vm471_vm1, %v14140_v61  ;;  %10567 = vmatmul.msk.bf16.vlgmr.msra.gmra.mxu0 %vm471_vm1, %v14140_v61 }
 0x3c5   : > { %5213 = vmatpush.bf16.msra.mxu1 %v16786_v26  ;;  %v4340_v10 = vpop.f32.mrf.mxu2  ;;  %5241 = vmatpush.bf16.msra.mxu3 %v16935_v19 }
 0x3c6   : > { %5255 = vmatpush.bf16.msra.mxu0 %v16936_v45  ;;  %v4389_v48 = vmul.f32 %v4373_v23, %v4340_v10 }
 0x3c7   : > { %v4501_v63 = vpop.f32.mrf.mxu3 }
 0x3c8   : > { %v4693_v4 = vmul.f32 %v4677_v15, %v4501_v63  ;;  %v4475_v17 = vpop.f32.mrf.mxu1  ;;  %v14209_v58 = vadd.f32 %v4389_v48, %v14044_v8  ;;  %v4679_v63 = vperm.slane %v13541_v55, 4 }
 0x3c9   : > { %v4707_v29 = vmul.f32 %v4675_v37, %v4475_v17  ;;  %v4517_v11 = vpop.f32.mrf.mxu0  ;;  %v4682_v37 = vperm.slane %v13543_v21, 4 }
 0x3ca   : > { %v14212_v59 = vadd.f32 %v4693_v4, %v14047_v5  ;;  %v4710_v18 = vmul.f32 %v4678_v39, %v4517_v11 }
 0x3cb   : > { %v14215_v24 = vadd.f32 %v4707_v29, %v14050_v14 }
 0x3cc   : > { %v14218_v1 = vadd.f32 %v4710_v18, %v14053_v57 }
 0x3cd   : > { %v4342_v0 = vpop.f32.mrf.mxu2 }
 0x3ce   : > { %v4405_v35 = vmul.f32 %v4373_v23, %v4342_v0 }
 0x3cf   : > { %v4503_v10 = vpop.f32.mrf.mxu3 }
 0x3d0   : > { %v4709_v45 = vmul.f32 %v4677_v15, %v4503_v10  ;;  %v4529_v8 = vpop.f32.mrf.mxu1  ;;  %v14223_v48 = vadd.f32 %v4405_v35, %v14058_v30  ;;  %v4676_v30 = vperm.slane %v13553_v38, 4  ;;  %v16937_v15 = vld [vmem:[#allocation35_spill] sm:$0xff] }
 0x3d1   : > { %v4695_v5 = vmul.f32 %v4679_v63, %v4529_v8  ;;  %v4571_v39 = vpop.f32.mrf.mxu0 }
 0x3d2   : > { %v14226_v14 = vadd.f32 %v4709_v45, %v14061_v54  ;;  %v4698_v4 = vmul.f32 %v4682_v37, %v4571_v39  ;;  %10565 = vmatmul.msk.bf16.vlgmr.msrb.gmra.mxu2 %vm471_vm1, %v14140_v61  ;;  %v16938_v45 = vld [vmem:[#allocation19_spill] sm:$0xff] }
 0x3d3   : > { %v14229_v57 = vadd.f32 %v4695_v5, %v14064_v52  ;;  %10568 = vmatmul.msk.bf16.vlgmr.msrb.gmra.mxu1 %vm471_vm1, %v14140_v61  ;;  %5227 = vmatpush.bf16.msrb.mxu2 %v16766_v50  ;;  %v4681_v52 = vperm.slane %v13560_v40, 4 }
 0x3d4   : > { %v14236_v23 = vadd.f32 %v4698_v4, %v14071_v3  ;;  %10570 = vmatmul.msk.bf16.vlgmr.msrb.gmra.mxu3 %vm471_vm1, %v14140_v61  ;;  %10571 = vmatmul.msk.bf16.vlgmr.msrb.gmra.mxu0 %vm471_vm1, %v14140_v61 }
 0x3d5   : > { %5269 = vmatpush.bf16.msrb.mxu1 %v16812_v22  ;;  %v4487_v54 = vpop.f32.mrf.mxu2  ;;  %5297 = vmatpush.bf16.msrb.mxu3 %v16937_v15 }
 0x3d6   : > { %5402 = vmatpush.bf16.msrb.mxu0 %v16938_v45  ;;  %v4692_v3 = vmul.f32 %v4676_v30, %v4487_v54 }
 0x3d7   : > { %v4557_v17 = vpop.f32.mrf.mxu3 }
 0x3d8   : > { %v4697_v29 = vmul.f32 %v4681_v52, %v4557_v17  ;;  %v4531_v11 = vpop.f32.mrf.mxu1  ;;  %v14249_v18 = vadd.f32 %v4692_v3, %v14084_v60  ;;  %v4683_v17 = vperm.slane %v13590_v6, 4 }
 0x3d9   : > { %v4711_v0 = vmul.f32 %v4679_v63, %v4531_v11  ;;  %v4573_v35 = vpop.f32.mrf.mxu0  ;;  %v4686_v63 = vperm.slane %v13592_v41, 4 }
 0x3da   : > { %v14252_v10 = vadd.f32 %v4697_v29, %v14087_v12  ;;  %v4714_v8 = vmul.f32 %v4682_v37, %v4573_v35  ;;  %v16944_v35 = vld [vmem:[#allocation22_spill] sm:$0xff] }
 0x3db   : > { %v14255_v5 = vadd.f32 %v4711_v0, %v14090_v47  ;;  %v16943_v0 = vld [vmem:[#allocation21_spill] sm:$0xff] }
 0x3dc   : > { %v14258_v39 = vadd.f32 %v4714_v8, %v14093_v28 }
 0x3dd   : > { %v4489_v4 = vpop.f32.mrf.mxu2 }
 0x3de   : > { %v4708_v54 = vmul.f32 %v4676_v30, %v4489_v4 }
 0x3df   : > { %v4559_v45 = vpop.f32.mrf.mxu3 }
 0x3e0   : > { %v4713_v15 = vmul.f32 %v4681_v52, %v4559_v45  ;;  %v4585_v60 = vpop.f32.mrf.mxu1  ;;  %v14263_v3 = vadd.f32 %v4708_v54, %v14098_v51  ;;  %v16939_v51 = vld [vmem:[#allocation49_spill] sm:$0xff]  ;;  %v16942_v45 = vld [vmem:[#allocation50_spill] sm:$0xff] }
 0x3e1   : > { %v4699_v12 = vmul.f32 %v4683_v17, %v4585_v60  ;;  %v4627_v37 = vpop.f32.mrf.mxu0  ;;  %v16940_v52 = vld [vmem:[#allocation37_spill] sm:$0xff]  ;;  %v4685_v11 = vperm.slane %v16942_v45, 4 }
 0x3e2   : > { %v14266_v47 = vadd.f32 %v4713_v15, %v14101_v9  ;;  %v4702_v29 = vmul.f32 %v4686_v63, %v4627_v37  ;;  %10569 = vmatmul.msk.bf16.vlgmr.msra.gmra.mxu2 %vm471_vm1, %v14140_v61  ;;  %v4680_v9 = vperm.slane %v16939_v51, 4 }
 0x3e3   : > { %v14269_v28 = vadd.f32 %v4699_v12, %v14104_v42  ;;  %10572 = vmatmul.msk.bf16.vlgmr.msra.gmra.mxu1 %vm471_vm1, %v14140_v61  ;;  %5283 = vmatpush.bf16.msra.mxu2 %v16940_v52  ;;  %v16941_v42 = vld [vmem:[#allocation20_spill] sm:$0xff] }
 0x3e4   : > { %v14276_v30 = vadd.f32 %v4702_v29, %v14111_v7  ;;  %10574 = vmatmul.msk.bf16.vlgmr.msra.gmra.mxu3 %vm471_vm1, %v14140_v61  ;;  %10575 = vmatmul.msk.bf16.vlgmr.msra.gmra.mxu0 %vm471_vm1, %v14140_v61 }
 0x3e5   : > { %5416 = vmatpush.bf16.msra.mxu1 %v16941_v42  ;;  %v4543_v15 = vpop.f32.mrf.mxu2  ;;  %5444 = vmatpush.bf16.msra.mxu3 %v16943_v0 }
 0x3e6   : > { %5458 = vmatpush.bf16.msra.mxu0 %v16944_v35  ;;  %v4696_v7 = vmul.f32 %v4680_v9, %v4543_v15  ;;  %v8937_v15 = vld [vmem:[%s16533_s8] sm:$0xff] }
 0x3e7   : > { %v4613_v8 = vpop.f32.mrf.mxu3  ;;  %8943 = vperm.xlu2 %11568, %v8937_v15   ;;  %v16950_v15 = vld [vmem:[#allocation40_spill] sm:$0xff] }
 0x3e8   : > { %v4701_v4 = vmul.f32 %v4685_v11, %v4613_v8  ;;  %v4587_v54 = vpop.f32.mrf.mxu1  ;;  %v14289_v60 = vadd.f32 %v4696_v7, %v14124_v32 }
 0x3e9   : > { %v4715_v12 = vmul.f32 %v4683_v17, %v4587_v54  ;;  %v4629_v37 = vpop.f32.mrf.mxu0  ;;  %v4687_v17 = vperm.slane %v13636_v2, 4 }
 0x3ea   : > { %v14292_v29 = vadd.f32 %v4701_v4, %v14127_v20  ;;  %v4718_v42 = vmul.f32 %v4686_v63, %v4629_v37  ;;  %v16947_v4 = vld [vmem:[#allocation46_spill] sm:$0xff] }
 0x3eb   : > { %v14295_v52 = vadd.f32 %v4715_v12, %v14130_v13  ;;  %v4989_v63 = vperm.slane %v16947_v4, 5  ;;  %v14308_v13 = vld [vmem:[%s16529_s4 + $0x78] sm:$0xff] }
 0x3ec   : > { %v14298_v0 = vadd.f32 %v4718_v42, %v14133_v49  ;;  %v16948_v49 = vld [vmem:[#allocation56_spill] sm:$0xff] }
 0x3ed   : > { %16945 = vst [vmem:[#allocation51_spill] sm:$0xff] %v14295_v52  ;;  %v4545_v8 = vpop.f32.mrf.mxu2 }
 0x3ee   : > { %16946 = vst [vmem:[#allocation52_spill] sm:$0xff] %v14298_v0  ;;  %v4712_v32 = vmul.f32 %v4680_v9, %v4545_v8  ;;  %v16952_v8 = vld [vmem:[#allocation57_spill] sm:$0xff] }
 0x3ef   : > { %v4615_v7 = vpop.f32.mrf.mxu3 }
 0x3f0   : > { %v4717_v54 = vmul.f32 %v4685_v11, %v4615_v7  ;;  %v4641_v20 = vpop.f32.mrf.mxu1  ;;  %v14311_v42 = vadd.f32 %v4712_v32, %v16948_v49  ;;  %v16954_v11 = vld [vmem:[#allocation58_spill] sm:$0xff]  ;;  %v8938_v32 = vld [vmem:[%s16533_s8 + $0x8] sm:$0xff] }
 0x3f1   : > { %v4703_v12 = vmul.f32 %v4687_v17, %v4641_v20  ;;  %v4774_v37 = vpop.f32.mrf.mxu0  ;;  %v16957_v49 = vld [vmem:[#allocation23_spill] sm:$0xff]  ;;  %8948 = vperm.xlu2 %11568, %v8938_v32  }
 0x3f2   : > { %16949 = vst [vmem:[#allocation56_spill] sm:$0xff] %v14311_v42  ;;  %v14314_v0 = vadd.f32 %v4717_v54, %v16950_v15  ;;  %v5005_v9 = vmul.f32 %v4989_v63, %v4774_v37  ;;  %10573 = vmatmul.msk.bf16.vlgmr.msrb.gmra.mxu2 %vm471_vm1, %v14140_v61  ;;  %v16956_v54 = vld [vmem:[#allocation54_spill] sm:$0xff]  ;;  %v16959_v15 = vld [vmem:[#allocation55_spill] sm:$0xff] }
 0x3f3   : > { %v14317_v2 = vadd.f32 %v4703_v12, %v16952_v8  ;;  %10576 = vmatmul.msk.bf16.vlgmr.msrb.gmra.mxu1 %vm471_vm1, %v14140_v61  ;;  %v4684_v20 = vperm.slane %v16956_v54, 4  ;;  %5430 = vmatpush.bf16.msrb.mxu2 %v16957_v49  ;;  %v16958_v12 = vld [vmem:[#allocation24_spill] sm:$0xff]  ;;  %v16960_v8 = vld [vmem:[#allocation25_spill] sm:$0xff] }
 0x3f4   : > { %16951 = vst [vmem:[#allocation40_spill] sm:$0xff] %v14314_v0  ;;  %v14324_v7 = vadd.f32 %v5005_v9, %v16954_v11  ;;  %10578 = vmatmul.msk.bf16.vlgmr.msrb.gmra.mxu3 %vm471_vm1, %v14140_v61  ;;  %10585 = vmatmul.msk.bf16.vlgmr.msrb.gmra.mxu0 %vm471_vm1, %v14308_v13  ;;  %v4689_v9 = vperm.slane %v16959_v15, 4  ;;  %v16961_v11 = vld [vmem:[#allocation26_spill] sm:$0xff] }
 0x3f5   : > { %16953 = vst [vmem:[#allocation57_spill] sm:$0xff] %v14317_v2  ;;  %5472 = vmatpush.bf16.msrb.mxu1 %v16958_v12  ;;  %v4599_v37 = vpop.f32.mrf.mxu2  ;;  %5500 = vmatpush.bf16.msrb.mxu3 %v16960_v8 }
 0x3f6   : > { %16955 = vst [vmem:[#allocation58_spill] sm:$0xff] %v14324_v7  ;;  %5514 = vmatpush.bf16.msrb.mxu0 %v16961_v11  ;;  %v4700_v7 = vmul.f32 %v4684_v20, %v4599_v37 }
 0x3f7   : > { %v4669_v2 = vpop.f32.mrf.mxu3 }
 0x3f8   : > { %v4705_v0 = vmul.f32 %v4689_v9, %v4669_v2  ;;  %v4643_v42 = vpop.f32.mrf.mxu1  ;;  %v14340_v4 = vadd.f32 %v4700_v7, %v14169_v33  ;;  %v8397_v2 = vld [vmem:[%s16530_s5 + $0x20] sm:$0xff] }
 0x3f9   : > { %v4719_v54 = vmul.f32 %v4687_v17, %v4643_v42  ;;  %v4776_v52 = vpop.f32.mrf.mxu0  ;;  %v4990_v17 = vperm.slane %v13491_v34, 5  ;;  %8401 = vperm.xlu2 %11568, %v8397_v2  }
 0x3fa   : > { %v14343_v49 = vadd.f32 %v4705_v0, %v14172_v46  ;;  %v5021_v12 = vmul.f32 %v4989_v63, %v4776_v52  ;;  %v4993_v52 = vperm.slane %v13496_v43, 5 }
 0x3fb   : > { %v14346_v15 = vadd.f32 %v4719_v54, %v14175_v56 }
 0x3fc   : > { %v14349_v8 = vadd.f32 %v5021_v12, %v14178_v31 }
 0x3fd   : > { %v4601_v32 = vpop.f32.mrf.mxu2 }
 0x3fe   : > { %v4716_v37 = vmul.f32 %v4684_v20, %v4601_v32 }
 0x3ff   : > { %v4671_v33 = vpop.f32.mrf.mxu3 }
 0x400   : > { %v4721_v42 = vmul.f32 %v4689_v9, %v4671_v33  ;;  %v4788_v46 = vpop.f32.mrf.mxu1  ;;  %v14357_v56 = vadd.f32 %v4716_v37, %v14183_v27  ;;  %v5775_v27 = vld [vmem:[%s16534_s9 + $0x8] sm:$0xff] }
 0x401   : > { %v5006_v0 = vmul.f32 %v4990_v17, %v4788_v46  ;;  %v4830_v31 = vpop.f32.mrf.mxu0  ;;  %5778 = vperm.xlu2 %11568, %v5775_v27  }
 0x402   : > { %v14360_v63 = vadd.f32 %v4721_v42, %v14186_v53  ;;  %v5009_v7 = vmul.f32 %v4993_v52, %v4830_v31  ;;  %10577 = vmatmul.msk.bf16.vlgmr.msra.gmra.mxu2 %vm471_vm1, %v14140_v61  ;;  %v4688_v53 = vperm.slane %v13693_v16, 4 }
 0x403   : > { %v14363_v54 = vadd.f32 %v5006_v0, %v14189_v36  ;;  %10586 = vmatmul.msk.bf16.vlgmr.msra.gmra.mxu1 %vm471_vm1, %v14308_v13  ;;  %5486 = vmatpush.bf16.msra.mxu2 %v16735_v62  ;;  %v4992_v36 = vperm.slane %v16910_v44, 5 }
 0x404   : > { %v14370_v20 = vadd.f32 %v5009_v7, %v14196_v25  ;;  %10588 = vmatmul.msk.bf16.vlgmr.msra.gmra.mxu3 %vm471_vm1, %v14308_v13  ;;  %10589 = vmatmul.msk.bf16.vlgmr.msra.gmra.mxu0 %vm471_vm1, %v14308_v13  ;;  %v16962_v25 = vld [vmem:[#allocation30_spill] sm:$0xff] }
 0x405   : > { %5528 = vmatpush.bf16.msra.mxu1 %v16786_v26  ;;  %v4655_v61 = vpop.f32.mrf.mxu2  ;;  %5556 = vmatpush.bf16.msra.mxu3 %v16935_v19 }
 0x406   : > { %5570 = vmatpush.bf16.msra.mxu0 %v16962_v25  ;;  %v4704_v12 = vmul.f32 %v4688_v53, %v4655_v61 }
 0x407   : > { %v4816_v9 = vpop.f32.mrf.mxu3 }
 0x408   : > { %v5008_v2 = vmul.f32 %v4992_v36, %v4816_v9  ;;  %v4790_v32 = vpop.f32.mrf.mxu1  ;;  %v14386_v37 = vadd.f32 %v4704_v12, %v14209_v58  ;;  %v4994_v9 = vperm.slane %v13541_v55, 5 }
 0x409   : > { %v5022_v33 = vmul.f32 %v4990_v17, %v4790_v32  ;;  %v4832_v42 = vpop.f32.mrf.mxu0  ;;  %v4997_v17 = vperm.slane %v13543_v21, 5 }
 0x40a   : > { %v14389_v46 = vadd.f32 %v5008_v2, %v14212_v59  ;;  %v5025_v0 = vmul.f32 %v4993_v52, %v4832_v42 }
 0x40b   : > { %v14392_v31 = vadd.f32 %v5022_v33, %v14215_v24 }
 0x40c   : > { %v14395_v7 = vadd.f32 %v5025_v0, %v14218_v1 }
 0x40d   : > { %v4657_v61 = vpop.f32.mrf.mxu2 }
 0x40e   : > { %v4720_v25 = vmul.f32 %v4688_v53, %v4657_v61 }
 0x40f   : > { %v4818_v27 = vpop.f32.mrf.mxu3 }
 0x410   : > { %v5024_v19 = vmul.f32 %v4992_v36, %v4818_v27  ;;  %v4844_v58 = vpop.f32.mrf.mxu1  ;;  %v14400_v12 = vadd.f32 %v4720_v25, %v14223_v48  ;;  %v16964_v36 = vld [vmem:[#allocation19_spill] sm:$0xff] }
 0x411   : > { %v5010_v59 = vmul.f32 %v4994_v9, %v4844_v58  ;;  %v4886_v52 = vpop.f32.mrf.mxu0 }
 0x412   : > { %v14403_v24 = vadd.f32 %v5024_v19, %v14226_v14  ;;  %v5013_v2 = vmul.f32 %v4997_v17, %v4886_v52  ;;  %10587 = vmatmul.msk.bf16.vlgmr.msrb.gmra.mxu2 %vm471_vm1, %v14308_v13  ;;  %v4991_v19 = vperm.slane %v13553_v38, 5  ;;  %v4996_v14 = vperm.slane %v13560_v40, 5 }
 0x413   : > { %v14406_v1 = vadd.f32 %v5010_v59, %v14229_v57  ;;  %10590 = vmatmul.msk.bf16.vlgmr.msrb.gmra.mxu1 %vm471_vm1, %v14308_v13  ;;  %5542 = vmatpush.bf16.msrb.mxu2 %v16766_v50  ;;  %v16963_v57 = vld [vmem:[#allocation35_spill] sm:$0xff] }
 0x414   : > { %v14413_v53 = vadd.f32 %v5013_v2, %v14236_v23  ;;  %10592 = vmatmul.msk.bf16.vlgmr.msrb.gmra.mxu3 %vm471_vm1, %v14308_v13  ;;  %10593 = vmatmul.msk.bf16.vlgmr.msrb.gmra.mxu0 %vm471_vm1, %v14308_v13 }
 0x415   : > { %5584 = vmatpush.bf16.msrb.mxu1 %v16812_v22  ;;  %v4802_v48 = vpop.f32.mrf.mxu2  ;;  %5612 = vmatpush.bf16.msrb.mxu3 %v16963_v57 }
 0x416   : > { %5927 = vmatpush.bf16.msrb.mxu0 %v16964_v36  ;;  %v5007_v23 = vmul.f32 %v4991_v19, %v4802_v48 }
 0x417   : > { %v4872_v25 = vpop.f32.mrf.mxu3 }
 0x418   : > { %v5012_v32 = vmul.f32 %v4996_v14, %v4872_v25  ;;  %v4846_v33 = vpop.f32.mrf.mxu1  ;;  %v14426_v42 = vadd.f32 %v5007_v23, %v14249_v18  ;;  %v4998_v25 = vperm.slane %v13590_v6, 5 }
 0x419   : > { %v5026_v0 = vmul.f32 %v4994_v9, %v4846_v33  ;;  %v4888_v61 = vpop.f32.mrf.mxu0  ;;  %v5001_v9 = vperm.slane %v13592_v41, 5 }
 0x41a   : > { %v14429_v27 = vadd.f32 %v5012_v32, %v14252_v10  ;;  %v5029_v58 = vmul.f32 %v4997_v17, %v4888_v61 }
 0x41b   : > { %v14432_v59 = vadd.f32 %v5026_v0, %v14255_v5 }
 0x41c   : > { %v14435_v52 = vadd.f32 %v5029_v58, %v14258_v39 }
 0x41d   : > { %v4804_v2 = vpop.f32.mrf.mxu2 }
 0x41e   : > { %v5023_v48 = vmul.f32 %v4991_v19, %v4804_v2 }
 0x41f   : > { %v4874_v36 = vpop.f32.mrf.mxu3 }
 0x420   : > { %v5028_v57 = vmul.f32 %v4996_v14, %v4874_v36  ;;  %v4900_v18 = vpop.f32.mrf.mxu1  ;;  %v14440_v23 = vadd.f32 %v5023_v48, %v14263_v3  ;;  %v4995_v3 = vperm.slane %v16939_v51, 5  ;;  %v16967_v36 = vld [vmem:[#allocation21_spill] sm:$0xff] }
 0x421   : > { %v5014_v10 = vmul.f32 %v4998_v25, %v4900_v18  ;;  %v4942_v17 = vpop.f32.mrf.mxu0 }
 0x422   : > { %v14443_v5 = vadd.f32 %v5028_v57, %v14266_v47  ;;  %v5017_v32 = vmul.f32 %v5001_v9, %v4942_v17  ;;  %10591 = vmatmul.msk.bf16.vlgmr.msra.gmra.mxu2 %vm471_vm1, %v14308_v13  ;;  %v16965_v47 = vld [vmem:[#allocation37_spill] sm:$0xff]  ;;  %v5000_v57 = vperm.slane %v16942_v45, 5  ;;  %v16968_v17 = vld [vmem:[#allocation51_spill] sm:$0xff]  ;;  %v16969_v45 = vld [vmem:[#allocation52_spill] sm:$0xff] }
 0x423   : > { %v14446_v39 = vadd.f32 %v5014_v10, %v14269_v28  ;;  %10594 = vmatmul.msk.bf16.vlgmr.msra.gmra.mxu1 %vm471_vm1, %v14308_v13  ;;  %5598 = vmatpush.bf16.msra.mxu2 %v16965_v47  ;;  %v16966_v28 = vld [vmem:[#allocation20_spill] sm:$0xff] }
 0x424   : > { %v14453_v19 = vadd.f32 %v5017_v32, %v14276_v30  ;;  %10596 = vmatmul.msk.bf16.vlgmr.msra.gmra.mxu3 %vm471_vm1, %v14308_v13  ;;  %10597 = vmatmul.msk.bf16.vlgmr.msra.gmra.mxu0 %vm471_vm1, %v14308_v13 }
 0x425   : > { %5941 = vmatpush.bf16.msra.mxu1 %v16966_v28  ;;  %v4858_v14 = vpop.f32.mrf.mxu2  ;;  %5969 = vmatpush.bf16.msra.mxu3 %v16967_v36 }
 0x426   : > { %5983 = vmatpush.bf16.msra.mxu0 %v16944_v35  ;;  %v5011_v30 = vmul.f32 %v4995_v3, %v4858_v14 }
 0x427   : > { %v4928_v33 = vpop.f32.mrf.mxu3 }
 0x428   : > { %v5016_v0 = vmul.f32 %v5000_v57, %v4928_v33  ;;  %v4902_v61 = vpop.f32.mrf.mxu1  ;;  %v14466_v58 = vadd.f32 %v5011_v30, %v14289_v60  ;;  %v16970_v33 = vld [vmem:[#allocation53_spill] sm:$0xff]  ;;  %v16971_v30 = vld [vmem:[#allocation46_spill] sm:$0xff] }
 0x429   : > { %v5030_v2 = vmul.f32 %v4998_v25, %v4902_v61  ;;  %v4944_v48 = vpop.f32.mrf.mxu0  ;;  %v5002_v47 = vperm.slane %v16970_v33, 5  ;;  %v5304_v25 = vperm.slane %v16971_v30, 6 }
 0x42a   : > { %v14469_v18 = vadd.f32 %v5016_v0, %v14292_v29  ;;  %v5033_v10 = vmul.f32 %v5001_v9, %v4944_v48  ;;  %v14482_v29 = vld [vmem:[%s16529_s4 + $0x80] sm:$0xff]  ;;  %v16972_v9 = vld [vmem:[#allocation56_spill] sm:$0xff] }
 0x42b   : > { %v14472_v32 = vadd.f32 %v5030_v2, %v16968_v17  ;;  %v16974_v2 = vld [vmem:[#allocation40_spill] sm:$0xff] }
 0x42c   : > { %v14475_v36 = vadd.f32 %v5033_v10, %v16969_v45 }
 0x42d   : > { %v4860_v35 = vpop.f32.mrf.mxu2 }
 0x42e   : > { %v5027_v14 = vmul.f32 %v4995_v3, %v4860_v35  ;;  %v16976_v3 = vld [vmem:[#allocation57_spill] sm:$0xff] }
 0x42f   : > { %v4930_v28 = vpop.f32.mrf.mxu3 }
 0x430   : > { %v5032_v51 = vmul.f32 %v5000_v57, %v4930_v28  ;;  %v4956_v60 = vpop.f32.mrf.mxu1  ;;  %v14485_v0 = vadd.f32 %v5027_v14, %v16972_v9  ;;  %v16978_v28 = vld [vmem:[#allocation58_spill] sm:$0xff]  ;;  %v16981_v14 = vld [vmem:[#allocation23_spill] sm:$0xff] }
 0x431   : > { %v5018_v61 = vmul.f32 %v5002_v47, %v4956_v60  ;;  %v5089_v45 = vpop.f32.mrf.mxu0  ;;  %v16982_v60 = vld [vmem:[#allocation24_spill] sm:$0xff] }
 0x432   : > { %16973 = vst [vmem:[#allocation51_spill] sm:$0xff] %v14485_v0  ;;  %v14488_v48 = vadd.f32 %v5032_v51, %v16974_v2  ;;  %v5320_v35 = vmul.f32 %v5304_v25, %v5089_v45  ;;  %10595 = vmatmul.msk.bf16.vlgmr.msrb.gmra.mxu2 %vm471_vm1, %v14308_v13  ;;  %v16980_v51 = vld [vmem:[#allocation54_spill] sm:$0xff]  ;;  %v16984_v2 = vld [vmem:[#allocation25_spill] sm:$0xff] }
 0x433   : > { %v14491_v10 = vadd.f32 %v5018_v61, %v16976_v3  ;;  %10598 = vmatmul.msk.bf16.vlgmr.msrb.gmra.mxu1 %vm471_vm1, %v14308_v13  ;;  %v4999_v17 = vperm.slane %v16980_v51, 5  ;;  %5955 = vmatpush.bf16.msrb.mxu2 %v16981_v14  ;;  %v16983_v61 = vld [vmem:[#allocation55_spill] sm:$0xff] }
 0x434   : > { %16975 = vst [vmem:[#allocation52_spill] sm:$0xff] %v14488_v48  ;;  %v14498_v57 = vadd.f32 %v5320_v35, %v16978_v28  ;;  %10600 = vmatmul.msk.bf16.vlgmr.msrb.gmra.mxu3 %vm471_vm1, %v14308_v13  ;;  %10607 = vmatmul.msk.bf16.vlgmr.msrb.gmra.mxu0 %vm471_vm1, %v14482_v29  ;;  %v5004_v45 = vperm.slane %v16983_v61, 5 }
 0x435   : > { %16977 = vst [vmem:[#allocation56_spill] sm:$0xff] %v14491_v10  ;;  %5997 = vmatpush.bf16.msrb.mxu1 %v16982_v60  ;;  %v4914_v9 = vpop.f32.mrf.mxu2  ;;  %6025 = vmatpush.bf16.msrb.mxu3 %v16984_v2 }
 0x436   : > { %16979 = vst [vmem:[#allocation40_spill] sm:$0xff] %v14498_v57  ;;  %6039 = vmatpush.bf16.msrb.mxu0 %v16961_v11  ;;  %v5015_v35 = vmul.f32 %v4999_v17, %v4914_v9 }
 0x437   : > { %v4984_v3 = vpop.f32.mrf.mxu3 }
 0x438   : > { %v5020_v28 = vmul.f32 %v5004_v45, %v4984_v3  ;;  %v4958_v57 = vpop.f32.mrf.mxu1  ;;  %v14511_v10 = vadd.f32 %v5015_v35, %v14340_v4  ;;  %v5305_v3 = vperm.slane %v13491_v34, 6 }
 0x439   : > { %v5034_v48 = vmul.f32 %v5002_v47, %v4958_v57  ;;  %v5091_v51 = vpop.f32.mrf.mxu0  ;;  %v5308_v47 = vperm.slane %v13496_v43, 6 }
 0x43a   : > { %v14514_v14 = vadd.f32 %v5020_v28, %v14343_v49  ;;  %v5336_v60 = vmul.f32 %v5304_v25, %v5091_v51 }
 0x43b   : > { %v14517_v0 = vadd.f32 %v5034_v48, %v14346_v15 }
 0x43c   : > { %v14520_v2 = vadd.f32 %v5336_v60, %v14349_v8 }
 0x43d   : > { %v4916_v11 = vpop.f32.mrf.mxu2 }
 0x43e   : > { %v5031_v9 = vmul.f32 %v4999_v17, %v4916_v11 }
 0x43f   : > { %v4986_v61 = vpop.f32.mrf.mxu3 }
 0x440   : > { %v5036_v30 = vmul.f32 %v5004_v45, %v4986_v61  ;;  %v5103_v4 = vpop.f32.mrf.mxu1  ;;  %v14525_v57 = vadd.f32 %v5031_v9, %v14357_v56  ;;  %v5003_v56 = vperm.slane %v13693_v16, 5 }
 0x441   : > { %v5321_v49 = vmul.f32 %v5305_v3, %v5103_v4  ;;  %v5145_v25 = vpop.f32.mrf.mxu0 }
 0x442   : > { %v14528_v15 = vadd.f32 %v5036_v30, %v14360_v63  ;;  %v5324_v48 = vmul.f32 %v5308_v47, %v5145_v25  ;;  %10599 = vmatmul.msk.bf16.vlgmr.msra.gmra.mxu2 %vm471_vm1, %v14308_v13  ;;  %v5307_v13 = vperm.slane %v16910_v44, 6  ;;  %v16986_v30 = vld [vmem:[#allocation30_spill] sm:$0xff] }
 0x443   : > { %v14531_v8 = vadd.f32 %v5321_v49, %v14363_v54  ;;  %10608 = vmatmul.msk.bf16.vlgmr.msra.gmra.mxu1 %vm471_vm1, %v14482_v29  ;;  %6011 = vmatpush.bf16.msra.mxu2 %v16735_v62  ;;  %v16985_v54 = vld [vmem:[#allocation29_spill] sm:$0xff] }
 0x444   : > { %v14538_v11 = vadd.f32 %v5324_v48, %v14370_v20  ;;  %10610 = vmatmul.msk.bf16.vlgmr.msra.gmra.mxu3 %vm471_vm1, %v14482_v29  ;;  %10611 = vmatmul.msk.bf16.vlgmr.msra.gmra.mxu0 %vm471_vm1, %v14482_v29 }
 0x445   : > { %6053 = vmatpush.bf16.msra.mxu1 %v16786_v26  ;;  %v4970_v63 = vpop.f32.mrf.mxu2  ;;  %6081 = vmatpush.bf16.msra.mxu3 %v16985_v54 }
 0x446   : > { %6095 = vmatpush.bf16.msra.mxu0 %v16986_v30  ;;  %v5019_v20 = vmul.f32 %v5003_v56, %v4970_v63 }
 0x447   : > { %v5131_v51 = vpop.f32.mrf.mxu3 }
 0x448   : > { %v5323_v17 = vmul.f32 %v5307_v13, %v5131_v51  ;;  %v5105_v60 = vpop.f32.mrf.mxu1  ;;  %v14551_v61 = vadd.f32 %v5019_v20, %v14386_v37  ;;  %v5309_v51 = vperm.slane %v13541_v55, 6 }
 0x449   : > { %v5337_v45 = vmul.f32 %v5305_v3, %v5105_v60  ;;  %v5147_v35 = vpop.f32.mrf.mxu0  ;;  %v5312_v3 = vperm.slane %v13543_v21, 6 }
 0x44a   : > { %v14554_v28 = vadd.f32 %v5323_v17, %v14389_v46  ;;  %v5340_v9 = vmul.f32 %v5308_v47, %v5147_v35 }
 0x44b   : > { %v14557_v4 = vadd.f32 %v5337_v45, %v14392_v31 }
 0x44c   : > { %v14560_v49 = vadd.f32 %v5340_v9, %v14395_v7 }
 0x44d   : > { %v4972_v25 = vpop.f32.mrf.mxu2 }
 0x44e   : > { %v5035_v48 = vmul.f32 %v5003_v56, %v4972_v25 }
 0x44f   : > { %v5133_v63 = vpop.f32.mrf.mxu3 }
 0x450   : > { %v5339_v30 = vmul.f32 %v5307_v13, %v5133_v63  ;;  %v5159_v37 = vpop.f32.mrf.mxu1  ;;  %v14565_v20 = vadd.f32 %v5035_v48, %v14400_v12  ;;  %v5306_v12 = vperm.slane %v13553_v38, 6  ;;  %v16987_v13 = vld [vmem:[#allocation35_spill] sm:$0xff] }
 0x451   : > { %v5325_v46 = vmul.f32 %v5309_v51, %v5159_v37  ;;  %v5201_v47 = vpop.f32.mrf.mxu0 }
 0x452   : > { %v14568_v31 = vadd.f32 %v5339_v30, %v14403_v24  ;;  %v5328_v17 = vmul.f32 %v5312_v3, %v5201_v47  ;;  %10609 = vmatmul.msk.bf16.vlgmr.msrb.gmra.mxu2 %vm471_vm1, %v14482_v29  ;;  %v16988_v30 = vld [vmem:[#allocation19_spill] sm:$0xff] }
 0x453   : > { %v14571_v7 = vadd.f32 %v5325_v46, %v14406_v1  ;;  %10612 = vmatmul.msk.bf16.vlgmr.msrb.gmra.mxu1 %vm471_vm1, %v14482_v29  ;;  %6067 = vmatpush.bf16.msrb.mxu2 %v16766_v50  ;;  %v5311_v1 = vperm.slane %v13560_v40, 6 }
 0x454   : > { %v14578_v56 = vadd.f32 %v5328_v17, %v14413_v53  ;;  %10614 = vmatmul.msk.bf16.vlgmr.msrb.gmra.mxu3 %vm471_vm1, %v14482_v29  ;;  %10615 = vmatmul.msk.bf16.vlgmr.msrb.gmra.mxu0 %vm471_vm1, %v14482_v29 }
 0x455   : > { %6109 = vmatpush.bf16.msrb.mxu1 %v16812_v22  ;;  %v5117_v24 = vpop.f32.mrf.mxu2  ;;  %6137 = vmatpush.bf16.msrb.mxu3 %v16987_v13 }
 0x456   : > { %6210 = vmatpush.bf16.msrb.mxu0 %v16988_v30  ;;  %v5322_v53 = vmul.f32 %v5306_v12, %v5117_v24 }
 0x457   : > { %v5187_v60 = vpop.f32.mrf.mxu3 }
 0x458   : > { %v5327_v45 = vmul.f32 %v5311_v1, %v5187_v60  ;;  %v5161_v35 = vpop.f32.mrf.mxu1  ;;  %v14591_v9 = vadd.f32 %v5322_v53, %v14426_v42  ;;  %v5313_v60 = vperm.slane %v13590_v6, 6 }
 0x459   : > { %v5341_v25 = vmul.f32 %v5309_v51, %v5161_v35  ;;  %v5203_v48 = vpop.f32.mrf.mxu0  ;;  %v5316_v51 = vperm.slane %v13592_v41, 6 }
 0x45a   : > { %v14594_v63 = vadd.f32 %v5327_v45, %v14429_v27  ;;  %v5344_v37 = vmul.f32 %v5312_v3, %v5203_v48  ;;  %v16994_v48 = vld [vmem:[#allocation22_spill] sm:$0xff] }
 0x45b   : > { %v14597_v46 = vadd.f32 %v5341_v25, %v14432_v59  ;;  %v16993_v25 = vld [vmem:[#allocation21_spill] sm:$0xff] }
 0x45c   : > { %v14600_v47 = vadd.f32 %v5344_v37, %v14435_v52 }
 0x45d   : > { %v5119_v17 = vpop.f32.mrf.mxu2 }
 0x45e   : > { %v5338_v24 = vmul.f32 %v5306_v12, %v5119_v17 }
 0x45f   : > { %v5189_v30 = vpop.f32.mrf.mxu3 }
 0x460   : > { %v5343_v13 = vmul.f32 %v5311_v1, %v5189_v30  ;;  %v5215_v42 = vpop.f32.mrf.mxu1  ;;  %v14605_v53 = vadd.f32 %v5338_v24, %v14440_v23  ;;  %v16989_v23 = vld [vmem:[#allocation49_spill] sm:$0xff]  ;;  %v16992_v30 = vld [vmem:[#allocation50_spill] sm:$0xff] }
 0x461   : > { %v5329_v27 = vmul.f32 %v5313_v60, %v5215_v42  ;;  %v5257_v3 = vpop.f32.mrf.mxu0  ;;  %v16990_v1 = vld [vmem:[#allocation37_spill] sm:$0xff]  ;;  %v5315_v35 = vperm.slane %v16992_v30, 6 }
 0x462   : > { %v14608_v59 = vadd.f32 %v5343_v13, %v14443_v5  ;;  %v5332_v45 = vmul.f32 %v5316_v51, %v5257_v3  ;;  %10613 = vmatmul.msk.bf16.vlgmr.msra.gmra.mxu2 %vm471_vm1, %v14482_v29  ;;  %v5310_v5 = vperm.slane %v16989_v23, 6 }
 0x463   : > { %v14611_v52 = vadd.f32 %v5329_v27, %v14446_v39  ;;  %10616 = vmatmul.msk.bf16.vlgmr.msra.gmra.mxu1 %vm471_vm1, %v14482_v29  ;;  %6123 = vmatpush.bf16.msra.mxu2 %v16990_v1  ;;  %v16991_v39 = vld [vmem:[#allocation20_spill] sm:$0xff] }
 0x464   : > { %v14618_v12 = vadd.f32 %v5332_v45, %v14453_v19  ;;  %10618 = vmatmul.msk.bf16.vlgmr.msra.gmra.mxu3 %vm471_vm1, %v14482_v29  ;;  %10619 = vmatmul.msk.bf16.vlgmr.msra.gmra.mxu0 %vm471_vm1, %v14482_v29 }
 0x465   : > { %6224 = vmatpush.bf16.msra.mxu1 %v16991_v39  ;;  %v5173_v13 = vpop.f32.mrf.mxu2  ;;  %6252 = vmatpush.bf16.msra.mxu3 %v16993_v25 }
 0x466   : > { %6266 = vmatpush.bf16.msra.mxu0 %v16994_v48  ;;  %v5326_v19 = vmul.f32 %v5310_v5, %v5173_v13 }
 0x467   : > { %v5243_v37 = vpop.f32.mrf.mxu3 }
 0x468   : > { %v5331_v17 = vmul.f32 %v5315_v35, %v5243_v37  ;;  %v5217_v24 = vpop.f32.mrf.mxu1  ;;  %v14631_v42 = vadd.f32 %v5326_v19, %v14466_v58  ;;  %v5317_v37 = vperm.slane %v16970_v33, 6  ;;  %v16996_v19 = vld [vmem:[#allocation46_spill] sm:$0xff] }
 0x469   : > { %v5345_v27 = vmul.f32 %v5313_v60, %v5217_v24  ;;  %v5259_v3 = vpop.f32.mrf.mxu0  ;;  %v5619_v60 = vperm.slane %v16996_v19, 7 }
 0x46a   : > { %v14634_v45 = vadd.f32 %v5331_v17, %v14469_v18  ;;  %v5348_v39 = vmul.f32 %v5316_v51, %v5259_v3  ;;  %v14647_v18 = vld [vmem:[%s16529_s4 + $0x88] sm:$0xff] }
 0x46b   : > { %v14637_v1 = vadd.f32 %v5345_v27, %v14472_v32  ;;  %v16997_v51 = vld [vmem:[#allocation51_spill] sm:$0xff] }
 0x46c   : > { %v14640_v25 = vadd.f32 %v5348_v39, %v14475_v36  ;;  %v16999_v39 = vld [vmem:[#allocation52_spill] sm:$0xff] }
 0x46d   : > { %v5175_v48 = vpop.f32.mrf.mxu2 }
 0x46e   : > { %16995 = vst [vmem:[#allocation57_spill] sm:$0xff] %v14640_v25  ;;  %v5342_v13 = vmul.f32 %v5310_v5, %v5175_v48  ;;  %v17001_v48 = vld [vmem:[#allocation56_spill] sm:$0xff]  ;;  %v14688_v25 = vpop.permute.xlu1 %8953 }
 0x46f   : > { %v5245_v30 = vpop.f32.mrf.mxu3  ;;  %17010 = vst [vmem:[#allocation52_spill] sm:$0xff] %v14688_v25 }
 0x470   : > { %v5347_v23 = vmul.f32 %v5315_v35, %v5245_v30  ;;  %v5271_v58 = vpop.f32.mrf.mxu1  ;;  %v14650_v32 = vadd.f32 %v5342_v13, %v16997_v51  ;;  %v17003_v30 = vld [vmem:[#allocation40_spill] sm:$0xff]  ;;  %v17005_v13 = vld [vmem:[#allocation23_spill] sm:$0xff] }
 0x471   : > { %v5333_v17 = vmul.f32 %v5317_v37, %v5271_v58  ;;  %v5404_v36 = vpop.f32.mrf.mxu0  ;;  %v17006_v58 = vld [vmem:[#allocation24_spill] sm:$0xff]  ;;  %v17007_v51 = vld [vmem:[#allocation55_spill] sm:$0xff] }
 0x472   : > { %16998 = vst [vmem:[#allocation58_spill] sm:$0xff] %v14650_v32  ;;  %v14653_v24 = vadd.f32 %v5347_v23, %v16999_v39  ;;  %v5635_v5 = vmul.f32 %v5619_v60, %v5404_v36  ;;  %10617 = vmatmul.msk.bf16.vlgmr.msrb.gmra.mxu2 %vm471_vm1, %v14482_v29  ;;  %v17004_v23 = vld [vmem:[#allocation54_spill] sm:$0xff]  ;;  %v17008_v36 = vld [vmem:[#allocation25_spill] sm:$0xff] }
 0x473   : > { %v14656_v27 = vadd.f32 %v5333_v17, %v17001_v48  ;;  %10620 = vmatmul.msk.bf16.vlgmr.msrb.gmra.mxu1 %vm471_vm1, %v14482_v29  ;;  %v5314_v3 = vperm.slane %v17004_v23, 6  ;;  %6238 = vmatpush.bf16.msrb.mxu2 %v17005_v13  ;;  %v5319_v17 = vperm.slane %v17007_v51, 6  ;;  %v17009_v39 = vld [vmem:[#allocation26_spill] sm:$0xff] }
 0x474   : > { %17000 = vst [vmem:[#allocation46_spill] sm:$0xff] %v14653_v24  ;;  %v14663_v35 = vadd.f32 %v5635_v5, %v17003_v30  ;;  %10622 = vmatmul.msk.bf16.vlgmr.msrb.gmra.mxu3 %vm471_vm1, %v14482_v29  ;;  %10629 = vmatmul.msk.bf16.vlgmr.msrb.gmra.mxu0 %vm471_vm1, %v14647_v18 }
 0x475   : > { %17002 = vst [vmem:[#allocation51_spill] sm:$0xff] %v14656_v27  ;;  %6280 = vmatpush.bf16.msrb.mxu1 %v17006_v58  ;;  %v5229_v19 = vpop.f32.mrf.mxu2  ;;  %6308 = vmatpush.bf16.msrb.mxu3 %v17008_v36 }
 0x476   : > { %6322 = vmatpush.bf16.msrb.mxu0 %v17009_v39  ;;  %v5330_v5 = vmul.f32 %v5314_v3, %v5229_v19 }
 0x477   : > { %v5299_v48 = vpop.f32.mrf.mxu3 }
 0x478   : > { %v5335_v30 = vmul.f32 %v5319_v17, %v5299_v48  ;;  %v5273_v27 = vpop.f32.mrf.mxu1  ;;  %v14676_v24 = vadd.f32 %v5330_v5, %v14511_v10  ;;  %v5620_v48 = vperm.slane %v13491_v34, 7  ;;  %v14720_v5 = vpop.permute.xlu1 %8958 }
 0x479   : > { %v5349_v32 = vmul.f32 %v5317_v37, %v5273_v27  ;;  %v5406_v23 = vpop.f32.mrf.mxu0  ;;  %v5623_v27 = vperm.slane %v13496_v43, 7  ;;  %v5318_v43 = vperm.slane %v13693_v16, 6  ;;  %17012 = vst [vmem:[#allocation56_spill] sm:$0xff] %v14720_v5 }
 0x47a   : > { %v14679_v13 = vadd.f32 %v5335_v30, %v14514_v14  ;;  %v5651_v58 = vmul.f32 %v5619_v60, %v5406_v23 }
 0x47b   : > { %v14682_v33 = vadd.f32 %v5349_v32, %v14517_v0 }
 0x47c   : > { %v14685_v36 = vadd.f32 %v5651_v58, %v14520_v2 }
 0x47d   : > { %v5231_v39 = vpop.f32.mrf.mxu2 }
 0x47e   : > { %v5346_v19 = vmul.f32 %v5314_v3, %v5231_v39 }
 0x47f   : > { %v5301_v51 = vpop.f32.mrf.mxu3 }
 0x480   : > { %v5351_v10 = vmul.f32 %v5319_v17, %v5301_v51  ;;  %v5418_v37 = vpop.f32.mrf.mxu1  ;;  %v14692_v14 = vadd.f32 %v5346_v19, %v14525_v57 }
 0x481   : > { %v5636_v60 = vmul.f32 %v5620_v48, %v5418_v37  ;;  %v5460_v0 = vpop.f32.mrf.mxu0 }
 0x482   : > { %v14695_v32 = vadd.f32 %v5351_v10, %v14528_v15  ;;  %v5639_v2 = vmul.f32 %v5623_v27, %v5460_v0  ;;  %10621 = vmatmul.msk.bf16.vlgmr.msra.gmra.mxu2 %vm471_vm1, %v14482_v29  ;;  %v5622_v29 = vperm.slane %v16910_v44, 7  ;;  %v17011_v15 = vld [vmem:[#allocation30_spill] sm:$0xff]  ;;  %v14728_v10 = vpop.permute.xlu0 %5703 }
 0x483   : > { %v14698_v23 = vadd.f32 %v5636_v60, %v14531_v8  ;;  %10630 = vmatmul.msk.bf16.vlgmr.msra.gmra.mxu1 %vm471_vm1, %v14647_v18  ;;  %6294 = vmatpush.bf16.msra.mxu2 %v16735_v62 }
 0x484   : > { %v14705_v34 = vadd.f32 %v5639_v2, %v14538_v11  ;;  %10632 = vmatmul.msk.bf16.vlgmr.msra.gmra.mxu3 %vm471_vm1, %v14647_v18  ;;  %10633 = vmatmul.msk.bf16.vlgmr.msra.gmra.mxu0 %vm471_vm1, %v14647_v18 }
 0x485   : > { %6336 = vmatpush.bf16.msra.mxu1 %v16786_v26  ;;  %v5285_v57 = vpop.f32.mrf.mxu2  ;;  %6364 = vmatpush.bf16.msra.mxu3 %v16985_v54 }
 0x486   : > { %6378 = vmatpush.bf16.msra.mxu0 %v17011_v15  ;;  %v5334_v8 = vmul.f32 %v5318_v43, %v5285_v57 }
 0x487   : > { %v5446_v11 = vpop.f32.mrf.mxu3 }
 0x488   : > { %v5638_v3 = vmul.f32 %v5622_v29, %v5446_v11  ;;  %v5420_v58 = vpop.f32.mrf.mxu1  ;;  %v14718_v51 = vadd.f32 %v5334_v8, %v14551_v61  ;;  %v5627_v8 = vperm.slane %v13543_v21, 7 }
 0x489   : > { %v5652_v17 = vmul.f32 %v5620_v48, %v5420_v58  ;;  %v5462_v39 = vpop.f32.mrf.mxu0  ;;  %v5624_v48 = vperm.slane %v13541_v55, 7  ;;  %v14748_v55 = vpop.permute.xlu1 %5708  ;;  %v17016_v58 = vld [vmem:[#allocation36_spill] sm:$0xff] }
 0x48a   : > { %v14723_v30 = vadd.f32 %v5638_v3, %v14554_v28  ;;  %v5655_v19 = vmul.f32 %v5623_v27, %v5462_v39 }
 0x48b   : > { %v14726_v44 = vadd.f32 %v5652_v17, %v14557_v4 }
 0x48c   : > { %v14731_v37 = vadd.f32 %v5655_v19, %v14560_v49 }
 0x48d   : > { %v5287_v60 = vpop.f32.mrf.mxu2 }
 0x48e   : > { %v5350_v0 = vmul.f32 %v5318_v43, %v5287_v60  ;;  %v5626_v43 = vperm.slane %v13560_v40, 7 }
 0x48f   : > { %v5448_v61 = vpop.f32.mrf.mxu3 }
 0x490   : > { %v5654_v2 = vmul.f32 %v5622_v29, %v5448_v61  ;;  %v5474_v57 = vpop.f32.mrf.mxu1  ;;  %v14736_v28 = vadd.f32 %v5350_v0, %v14565_v20  ;;  %v5621_v20 = vperm.slane %v13553_v38, 7  ;;  %v17014_v29 = vld [vmem:[#allocation35_spill] sm:$0xff]  ;;  %v17017_v0 = vld [vmem:[#allocation16_spill] sm:$0xff] }
 0x491   : > { %v5640_v27 = vmul.f32 %v5624_v48, %v5474_v57  ;;  %v5516_v4 = vpop.f32.mrf.mxu0 }
 0x492   : > { %17013 = vst [vmem:[#allocation40_spill] sm:$0xff] %v14736_v28  ;;  %v14739_v11 = vadd.f32 %v5654_v2, %v14568_v31  ;;  %v5643_v3 = vmul.f32 %v5627_v8, %v5516_v4  ;;  %10631 = vmatmul.msk.bf16.vlgmr.msrb.gmra.mxu2 %vm471_vm1, %v14647_v18  ;;  %v14760_v31 = vpop.permute.xlu0 %3010 }
 0x493   : > { %v14742_v49 = vadd.f32 %v5640_v27, %v14571_v7  ;;  %10634 = vmatmul.msk.bf16.vlgmr.msrb.gmra.mxu1 %vm471_vm1, %v14647_v18  ;;  %6350 = vmatpush.bf16.msrb.mxu2 %v16766_v50  ;;  %v3030_v17 = vadd.f32 %v14760_v31, %v17016_v58  ;;  %v3033_v61 = vadd.f32 %v14760_v31, %v17017_v0 }
 0x494   : > { %v14751_v21 = vadd.f32 %v5643_v3, %v14578_v56  ;;  %10636 = vmatmul.msk.bf16.vlgmr.msrb.gmra.mxu3 %vm471_vm1, %v14647_v18  ;;  %10637 = vmatmul.msk.bf16.vlgmr.msrb.gmra.mxu0 %vm471_vm1, %v14647_v18  ;;  %v17015_v56 = vld [vmem:[#allocation19_spill] sm:$0xff] }
 0x495   : > { %6392 = vmatpush.bf16.msrb.mxu1 %v16812_v22  ;;  %v5432_v7 = vpop.f32.mrf.mxu2  ;;  %6420 = vmatpush.bf16.msrb.mxu3 %v17014_v29  ;;  %v3062_v3 = vmax.f32 %v3030_v17, 0.0  ;;  %v3065_v58 = vmax.f32 %v3033_v61, 0.0  ;;  %v17019_v17 = vld [vmem:[#allocation18_spill] sm:$0xff] }
 0x496   : > { %6525 = vmatpush.bf16.msrb.mxu0 %v17015_v56  ;;  %v5637_v39 = vmul.f32 %v5621_v20, %v5432_v7 }
 0x497   : > { %v5502_v19 = vpop.f32.mrf.mxu3 }
 0x498   : > { %v5642_v60 = vmul.f32 %v5626_v43, %v5502_v19  ;;  %v5476_v38 = vpop.f32.mrf.mxu1  ;;  %v14770_v2 = vadd.f32 %v5637_v39, %v14591_v9  ;;  %v14781_v19 = vpop.permute.xlu1 %3080 }
 0x499   : > { %v5656_v57 = vmul.f32 %v5624_v48, %v5476_v38  ;;  %v5518_v27 = vpop.f32.mrf.mxu0  ;;  %v3084_v9 = vmul.f32 %v14781_v19, %v3062_v3  ;;  %v5628_v38 = vperm.slane %v13590_v6, 7  ;;  %v3087_v61 = vmul.f32 %v14781_v19, %v3065_v58 }
 0x49a   : > { %v14773_v40 = vadd.f32 %v5642_v60, %v14594_v63  ;;  %v5659_v4 = vmul.f32 %v5627_v8, %v5518_v27  ;;  %v17018_v63 = vld [vmem:[#allocation44_spill] sm:$0xff]  ;;  %v17020_v27 = vld [vmem:[#allocation15_spill] sm:$0xff] }
 0x49b   : > { %v14776_v5 = vadd.f32 %v5656_v57, %v14597_v46  ;;  %v3032_v8 = vadd.f32 %v14760_v31, %v17018_v63  ;;  %v3034_v46 = vadd.f32 %v14760_v31, %v17019_v17  ;;  %v3105_v25 = vrot.slane %v3084_v9, 4 }
 0x49c   : > { %v14779_v7 = vadd.f32 %v5659_v4, %v14600_v47  ;;  %v5631_v47 = vperm.slane %v13592_v41, 7  ;;  %v3037_v4 = vadd.f32 %v14760_v31, %v17020_v27 }
 0x49d   : > { %v5434_v0 = vpop.f32.mrf.mxu2  ;;  %v3064_v41 = vmax.f32 %v3032_v8, 0.0  ;;  %v3066_v58 = vmax.f32 %v3034_v46, 0.0  ;;  %v17029_v8 = vld [vmem:[#allocation41_spill] sm:$0xff]  ;;  %v17030_v46 = vld [vmem:[#allocation38_spill] sm:$0xff] }
 0x49e   : > { %v5653_v39 = vmul.f32 %v5621_v20, %v5434_v0  ;;  %v3036_v27 = vadd.f32 %v14760_v31, %v17030_v46 }
 0x49f   : > { %v5504_v48 = vpop.f32.mrf.mxu3 }
 0x4a0   : > { %v5658_v60 = vmul.f32 %v5626_v43, %v5504_v48  ;;  %v5530_v57 = vpop.f32.mrf.mxu1  ;;  %v14794_v20 = vadd.f32 %v5653_v39, %v14605_v53  ;;  %v14813_v39 = vpop.permute.xlu2 %8943  ;;  %v17026_v48 = vld [vmem:[#allocation49_spill] sm:$0xff] }
 0x4a1   : > { %v5644_v3 = vmul.f32 %v5628_v38, %v5530_v57  ;;  %v5572_v6 = vpop.f32.mrf.mxu0  ;;  %17025 = vst [vmem:[#allocation15_spill] sm:$0xff] %v14813_v39  ;;  %v5625_v17 = vperm.slane %v17026_v48, 7  ;;  %v17028_v57 = vld [vmem:[#allocation20_spill] sm:$0xff]  ;;  %v3106_v39 = vadd.f32 %v3105_v25, %v3084_v9  ;;  %v3068_v9 = vmax.f32 %v3036_v27, 0.0 }
 0x4a2   : > { %17021 = vst [vmem:[#allocation36_spill] sm:$0xff] %v14794_v20  ;;  %v14797_v0 = vadd.f32 %v5658_v60, %v14608_v59  ;;  %v5647_v63 = vmul.f32 %v5631_v47, %v5572_v6  ;;  %10635 = vmatmul.msk.bf16.vlgmr.msra.gmra.mxu2 %vm471_vm1, %v14647_v18  ;;  %v3123_v59 = vrot.slane %v3087_v61, 4  ;;  %v17027_v60 = vld [vmem:[#allocation37_spill] sm:$0xff]  ;;  %v17031_v6 = vld [vmem:[#allocation50_spill] sm:$0xff] }
 0x4a3   : > { %v14800_v43 = vadd.f32 %v5644_v3, %v14611_v52  ;;  %10638 = vmatmul.msk.bf16.vlgmr.msra.gmra.mxu1 %vm471_vm1, %v14647_v18  ;;  %v3069_v52 = vmax.f32 %v3037_v4, 0.0  ;;  %6406 = vmatpush.bf16.msra.mxu2 %v17027_v60  ;;  %v17033_v4 = vld [vmem:[#allocation22_spill] sm:$0xff]  ;;  %v3086_v60 = vmul.f32 %v14781_v19, %v3064_v41 }
 0x4a4   : > { %17022 = vst [vmem:[#allocation16_spill] sm:$0xff] %v14797_v0  ;;  %v14807_v53 = vadd.f32 %v5647_v63, %v14618_v12  ;;  %10640 = vmatmul.msk.bf16.vlgmr.msra.gmra.mxu3 %vm471_vm1, %v14647_v18  ;;  %10641 = vmatmul.msk.bf16.vlgmr.msra.gmra.mxu0 %vm471_vm1, %v14647_v18  ;;  %v3031_v12 = vadd.f32 %v14760_v31, %v17029_v8  ;;  %v5630_v63 = vperm.slane %v17031_v6, 7 }
 0x4a5   : > { %17023 = vst [vmem:[#allocation44_spill] sm:$0xff] %v14800_v43  ;;  %6539 = vmatpush.bf16.msra.mxu1 %v17028_v57  ;;  %v5488_v3 = vpop.f32.mrf.mxu2  ;;  %6581 = vmatpush.bf16.msra.mxu0 %v17033_v4  ;;  %v3088_v57 = vmul.f32 %v14781_v19, %v3066_v58  ;;  %v5711_v8 = vadd.f32 %v14728_v10, %v14663_v35  ;;  %v3107_v58 = vrot.slane %v3106_v39, 2  ;;  %v3117_v35 = vrot.slane %v3086_v60, 4 }
 0x4a6   : > { %17024 = vst [vmem:[#allocation18_spill] sm:$0xff] %v14807_v53  ;;  %v17032_v53 = vld [vmem:[#allocation21_spill] sm:$0xff]  ;;  %v5641_v43 = vmul.f32 %v5625_v17, %v5488_v3  ;;  %v3124_v46 = vadd.f32 %v3123_v59, %v3087_v61  ;;  %v3091_v22 = vmul.f32 %v14781_v19, %v3069_v52  ;;  %v3063_v25 = vmax.f32 %v3031_v12, 0.0 }
 0x4a7   : > { %6567 = vmatpush.bf16.msra.mxu3 %v17032_v53  ;;  %v5558_v48 = vpop.f32.mrf.mxu3  ;;  %v14839_v61 = vmax.f32 %v5711_v8, 0.0  ;;  %v17038_v59 = vld [vmem:[#allocation57_spill] sm:$0xff] }
 0x4a8   : > { %v5646_v56 = vmul.f32 %v5630_v63, %v5558_v48  ;;  %v5532_v29 = vpop.f32.mrf.mxu1  ;;  %v14831_v6 = vadd.f32 %v5641_v43, %v14631_v42  ;;  %v3129_v48 = vrot.slane %v3088_v57, 4  ;;  %v3125_v42 = vrot.slane %v3124_v46, 2  ;;  %v17041_v12 = vld [vmem:[#allocation53_spill] sm:$0xff] }
 0x4a9   : > { %v5660_v53 = vmul.f32 %v5628_v38, %v5532_v29  ;;  %v5574_v4 = vpop.f32.mrf.mxu0  ;;  %17037 = vst [vmem:[#allocation50_spill] sm:$0xff] %v14839_v61  ;;  %v3147_v29 = vrot.slane %v3091_v22, 4  ;;  %v3085_v38 = vmul.f32 %v14781_v19, %v3063_v25  ;;  %v3090_v43 = vmul.f32 %v14781_v19, %v3068_v9  ;;  %v14855_v25 = vld [vmem:[%s16529_s4 + $0x90] sm:$0xff] }
 0x4aa   : > { %17034 = vst [vmem:[#allocation49_spill] sm:$0xff] %v14831_v6  ;;  %v14834_v3 = vadd.f32 %v5646_v56, %v14634_v45  ;;  %v5663_v41 = vmul.f32 %v5631_v47, %v5574_v4  ;;  %v14846_v56 = vadd.f32 %v3107_v58, %v3106_v39  ;;  %v14848_v47 = vpop.permute.xlu2 %8948  ;;  %v5632_v27 = vperm.slane %v17041_v12, 7  ;;  %v17042_v58 = vld [vmem:[#allocation58_spill] sm:$0xff] }
 0x4ab   : > { %v14837_v50 = vadd.f32 %v5660_v53, %v14637_v1  ;;  %17040 = vst [vmem:[#allocation59_spill] sm:$0xff] %v14848_v47  ;;  %v3118_v4 = vadd.f32 %v3117_v35, %v3086_v60  ;;  %v3130_v8 = vadd.f32 %v3129_v48, %v3088_v57  ;;  %v3126_v9 = vadd.f32 %v3125_v42, %v3124_v46  ;;  %v17044_v60 = vld [vmem:[#allocation46_spill] sm:$0xff]  ;;  %v17047_v35 = vld [vmem:[#allocation45_spill] sm:$0xff] }
 0x4ac   : > { %17035 = vst [vmem:[#allocation41_spill] sm:$0xff] %v14834_v3  ;;  %v14842_v52 = vadd.f32 %v5663_v41, %v17038_v59  ;;  %v6144_v59 = vperm.slane %v14839_v61, 0  ;;  %v3148_v39 = vadd.f32 %v3147_v29, %v3091_v22  ;;  %v3111_v47 = vrot.slane %v3085_v38, 4  ;;  %v17050_v29 = vld [vmem:[#allocation54_spill] sm:$0xff]  ;;  %v17056_v3 = vld [vmem:[#allocation17_spill] sm:$0xff] }
 0x4ad   : > { %17036 = vst [vmem:[#allocation38_spill] sm:$0xff] %v14837_v50  ;;  %v5490_v45 = vpop.f32.mrf.mxu2  ;;  %v3141_v12 = vrot.slane %v3090_v43, 4  ;;  %v3038_v48 = vadd.f32 %v14760_v31, %v17047_v35  ;;  %v3119_v22 = vrot.slane %v3118_v4, 2  ;;  %v3131_v46 = vrot.slane %v3130_v8, 2 }
 0x4ae   : > { %17039 = vst [vmem:[#allocation57_spill] sm:$0xff] %v14842_v52  ;;  %v5657_v1 = vmul.f32 %v5625_v17, %v5490_v45  ;;  %v3149_v42 = vrot.slane %v3148_v39, 2  ;;  %v3041_v6 = vadd.f32 %v14760_v31, %v17056_v3 }
 0x4af   : > { %v5560_v53 = vpop.f32.mrf.mxu3  ;;  %v3132_v28 = vadd.f32 %v3131_v46, %v3130_v8 }
 0x4b0   : > { %v5662_v50 = vmul.f32 %v5630_v63, %v5560_v53  ;;  %v5586_v41 = vpop.f32.mrf.mxu1  ;;  %v14858_v52 = vadd.f32 %v5657_v1, %v17042_v58  ;;  %v17048_v53 = vld [vmem:[#allocation51_spill] sm:$0xff]  ;;  %v5629_v1 = vperm.slane %v17050_v29, 7  ;;  %v17052_v58 = vld [vmem:[#allocation24_spill] sm:$0xff]  ;;  %v5712_v29 = vadd.f32 %v14728_v10, %v14698_v23 }
 0x4b1   : > { %v5648_v17 = vmul.f32 %v5632_v27, %v5586_v41  ;;  %v5929_v45 = vpop.f32.mrf.mxu0  ;;  %v17051_v41 = vld [vmem:[#allocation23_spill] sm:$0xff]  ;;  %v3133_v46 = vrot.slane %v3132_v28, 1 }
 0x4b2   : > { %17043 = vst [vmem:[#allocation53_spill] sm:$0xff] %v14858_v52  ;;  %v14861_v57 = vadd.f32 %v5662_v50, %v17044_v60  ;;  %v14863_v63 = vmul.f32 %v6144_v59, %v5929_v45  ;;  %10639 = vmatmul.msk.bf16.vlgmr.msrb.gmra.mxu2 %vm471_vm1, %v14647_v18  ;;  %v3109_v50 = vrot.slane %v14846_v56, 1  ;;  %v3112_v45 = vadd.f32 %v3111_v47, %v3085_v38 }
 0x4b3   : > { %v14868_v61 = vadd.f32 %v5648_v17, %v17048_v53  ;;  %10642 = vmatmul.msk.bf16.vlgmr.msrb.gmra.mxu1 %vm471_vm1, %v14647_v18  ;;  %6553 = vmatpush.bf16.msrb.mxu2 %v17051_v41  ;;  %v3127_v17 = vrot.slane %v3126_v9, 1  ;;  %v3142_v60 = vadd.f32 %v3141_v12, %v3090_v43  ;;  %v17053_v53 = vld [vmem:[#allocation55_spill] sm:$0xff]  ;;  %v3070_v52 = vmax.f32 %v3038_v48, 0.0 }
 0x4b4   : > { %17045 = vst [vmem:[#allocation58_spill] sm:$0xff] %v14861_v57  ;;  %10644 = vmatmul.msk.bf16.vlgmr.msrb.gmra.mxu3 %vm471_vm1, %v14647_v18  ;;  %10651 = vmatmul.msk.bf16.vlgmr.msrb.gmra.mxu0 %vm471_vm1, %v14855_v25  ;;  %v17055_v57 = vld [vmem:[#allocation26_spill] sm:$0xff]  ;;  %v5715_v38 = vadd.f32 %v14728_v10, %v14705_v34  ;;  %v3150_v12 = vadd.f32 %v3149_v42, %v3148_v39  ;;  %v14904_v39 = vmax.f32 %v5712_v29, 0.0 }
 0x4b5   : > { %17046 = vst [vmem:[#allocation46_spill] sm:$0xff] %v14863_v63  ;;  %6595 = vmatpush.bf16.msrb.mxu1 %v17052_v58  ;;  %v5544_v35 = vpop.f32.mrf.mxu2  ;;  %v5634_v63 = vperm.slane %v17053_v53, 7  ;;  %6637 = vmatpush.bf16.msrb.mxu0 %v17055_v57  ;;  %v3120_v58 = vadd.f32 %v3119_v22, %v3118_v4  ;;  %v14891_v53 = vpop.permute.xlu2 %8401  ;;  %v3143_v20 = vrot.slane %v3142_v60, 2  ;;  %v3092_v34 = vmul.f32 %v14781_v19, %v3070_v52 }
 0x4b6   : > { %17049 = vst [vmem:[#allocation45_spill] sm:$0xff] %v14868_v61  ;;  %v17054_v61 = vld [vmem:[#allocation25_spill] sm:$0xff]  ;;  %v5645_v41 = vmul.f32 %v5629_v1, %v5544_v35  ;;  %v3113_v35 = vrot.slane %v3112_v45, 2  ;;  %v14912_v22 = vadd.f32 %v3127_v17, %v3126_v9  ;;  %v3151_v42 = vrot.slane %v3150_v12, 1 }
 0x4b7   : > { %6623 = vmatpush.bf16.msrb.mxu3 %v17054_v61  ;;  %v5614_v0 = vpop.f32.mrf.mxu3  ;;  %17057 = vst [vmem:[#allocation51_spill] sm:$0xff] %v14891_v53  ;;  %v17058_v61 = vld [vmem:[#allocation42_spill] sm:$0xff]  ;;  %v6145_v29 = vperm.slane %v14904_v39, 0 }
 0x4b8   : > { %v5650_v43 = vmul.f32 %v5634_v63, %v5614_v0  ;;  %v5588_v47 = vpop.f32.mrf.mxu1  ;;  %v14894_v48 = vadd.f32 %v5645_v41, %v14676_v24  ;;  %v3029_v23 = vadd.f32 %v14760_v31, %v17058_v61  ;;  %v3073_v0 = vmax.f32 %v3041_v6, 0.0  ;;  %17059 = vst [vmem:[#allocation54_spill] sm:$0xff] %v14904_v39 }
 0x4b9   : > { %v5664_v57 = vmul.f32 %v5632_v27, %v5588_v47  ;;  %v5931_v3 = vpop.f32.mrf.mxu0  ;;  %v14910_v27 = vadd.f32 %v3109_v50, %v14846_v56  ;;  %v14914_v61 = vmax.f32 %v5715_v38, 0.0  ;;  %v14918_v6 = vadd.f32 %v3113_v35, %v3112_v45 }
 0x4ba   : > { %v14899_v4 = vadd.f32 %v5650_v43, %v14679_v13  ;;  %v14901_v8 = vmul.f32 %v6144_v59, %v5931_v3  ;;  %v5728_v13 = vadd.f32 %v14748_v55, %v14726_v44  ;;  %v3121_v59 = vrot.slane %v3120_v58, 1 }
 0x4bb   : > { %v14907_v24 = vadd.f32 %v5664_v57, %v14682_v33  ;;  %v3061_v52 = vmax.f32 %v3029_v23, 0.0  ;;  %v14920_v41 = vadd.f32 %v3143_v20, %v3142_v60  ;;  %v5714_v33 = vadd.f32 %v14728_v10, %v14723_v30  ;;  %v17060_v30 = vld [vmem:[#allocation31_spill] sm:$0xff] }
 0x4bc   : > { %v5731_v56 = vadd.f32 %v14748_v55, %v14731_v37  ;;  %v3153_v57 = vrot.slane %v3092_v34, 4  ;;  %v3095_v50 = vmul.f32 %v14781_v19, %v3073_v0  ;;  %v5760_v38 = vmax.f32 %v5728_v13, 0.0 }
 0x4bd   : > { %v5546_v9 = vpop.f32.mrf.mxu2  ;;  %v5730_v45 = vadd.f32 %v14748_v55, %v14739_v11  ;;  %v6148_v43 = vperm.slane %v14914_v61, 0  ;;  %v3035_v47 = vadd.f32 %v14760_v31, %v17060_v30  ;;  %v3083_v23 = vmul.f32 %v14781_v19, %v3061_v52 }
 0x4be   : > { %v5661_v17 = vmul.f32 %v5629_v1, %v5546_v9  ;;  %v14939_v35 = vmax.f32 %v5714_v33, 0.0  ;;  %v5763_v0 = vmax.f32 %v5731_v56, 0.0  ;;  %v14946_v13 = vadd.f32 %v3121_v59, %v3120_v58 }
 0x4bf   : > { %v5616_v44 = vpop.f32.mrf.mxu3  ;;  %v14948_v9 = vadd.f32 %v3133_v46, %v3132_v28  ;;  %v3115_v52 = vrot.slane %v14918_v6, 1  ;;  %v5762_v28 = vmax.f32 %v5730_v45, 0.0  ;;  %v3154_v46 = vadd.f32 %v3153_v57, %v3092_v34 }
 0x4c0   : > { %v5666_v20 = vmul.f32 %v5634_v63, %v5616_v44  ;;  %v5943_v60 = vpop.f32.mrf.mxu1  ;;  %v14934_v37 = vadd.f32 %v5661_v17, %v14692_v14  ;;  %17062 = vst [vmem:[#allocation17_spill] sm:$0xff] %v14939_v35  ;;  %v3171_v44 = vrot.slane %v3095_v50, 4  ;;  %v17064_v14 = vld [vmem:[#allocation43_spill] sm:$0xff]  ;;  %v3099_v34 = vrot.slane %v3083_v23, 4 }
 0x4c1   : > { %v14936_v3 = vmul.f32 %v6145_v29, %v5943_v60  ;;  %v5985_v1 = vpop.f32.mrf.mxu0  ;;  %v3040_v17 = vadd.f32 %v14760_v31, %v17064_v14  ;;  %v14952_v60 = vpop.permute.xlu2 %5778  ;;  %v3155_v59 = vrot.slane %v3154_v46, 2 }
 0x4c2   : > { %v14942_v11 = vadd.f32 %v5666_v20, %v14695_v32  ;;  %v14944_v63 = vmul.f32 %v6148_v43, %v5985_v1  ;;  %10643 = vmatmul.msk.bf16.vlgmr.msra.gmra.mxu2 %vm471_vm1, %v14647_v18  ;;  %v14958_v32 = vadd.f32 %v3151_v42, %v3150_v12  ;;  %v5782_v58 = vmul.f32 %v14952_v60, %v5760_v38 }
 0x4c3   : > { %17061 = vst [vmem:[#allocation55_spill] sm:$0xff] %v14936_v3  ;;  %10652 = vmatmul.msk.bf16.vlgmr.msra.gmra.mxu1 %vm471_vm1, %v14855_v25  ;;  %v5727_v18 = vadd.f32 %v14748_v55, %v14685_v36  ;;  %v5633_v12 = vperm.slane %v13693_v16, 7  ;;  %6609 = vmatpush.bf16.msra.mxu2 %v16735_v62  ;;  %v3067_v42 = vmax.f32 %v3035_v47, 0.0  ;;  %v5785_v33 = vmul.f32 %v14952_v60, %v5763_v0 }
 0x4c4   : > { %17063 = vst [vmem:[#allocation42_spill] sm:$0xff] %v14944_v63  ;;  %10654 = vmatmul.msk.bf16.vlgmr.msra.gmra.mxu3 %vm471_vm1, %v14855_v25  ;;  %10655 = vmatmul.msk.bf16.vlgmr.msra.gmra.mxu0 %vm471_vm1, %v14855_v25  ;;  %v6147_v38 = vperm.slane %v14939_v35, 0  ;;  %v3172_v57 = vadd.f32 %v3171_v44, %v3095_v50  ;;  %v3072_v45 = vmax.f32 %v3040_v17, 0.0  ;;  %v5716_v16 = vadd.f32 %v14728_v10, %v14742_v49 }
 0x4c5   : > { %6651 = vmatpush.bf16.msra.mxu1 %v16786_v26  ;;  %v5600_v56 = vpop.f32.mrf.mxu2  ;;  %6679 = vmatpush.bf16.msra.mxu3 %v16985_v54  ;;  %v5803_v30 = vrot.slane %v5782_v58, 4  ;;  %v5784_v47 = vmul.f32 %v14952_v60, %v5762_v28  ;;  %v5719_v1 = vadd.f32 %v14728_v10, %v14751_v21  ;;  %v5759_v53 = vmax.f32 %v5727_v18, 0.0  ;;  %v17082_v54 = vld [vmem:[#allocation19_spill] sm:$0xff] }
 0x4c6   : > { %6693 = vmatpush.bf16.msra.mxu0 %v17011_v15  ;;  %v5649_v36 = vmul.f32 %v5633_v12, %v5600_v56  ;;  %v5821_v49 = vrot.slane %v5785_v33, 4  ;;  %v5732_v17 = vadd.f32 %v14748_v55, %v14776_v5  ;;  %v3100_v28 = vadd.f32 %v3099_v34, %v3083_v23 }
 0x4c7   : > { %v5971_v20 = vpop.f32.mrf.mxu3  ;;  %v14993_v21 = vadd.f32 %v3115_v52, %v14918_v6  ;;  %v14998_v18 = vmax.f32 %v5716_v16, 0.0  ;;  %v15004_v5 = vadd.f32 %v3155_v59, %v3154_v46  ;;  %v5713_v6 = vadd.f32 %v14728_v10, %v14770_v2 }
 0x4c8   : > { %v14981_v0 = vmul.f32 %v6147_v38, %v5971_v20  ;;  %v5945_v14 = vpop.f32.mrf.mxu1  ;;  %v14984_v15 = vadd.f32 %v5649_v36, %v14718_v51  ;;  %v14996_v20 = vmul.f32 %v14781_v19, %v3067_v42  ;;  %v5735_v51 = vadd.f32 %v14748_v55, %v14779_v7 }
 0x4c9   : > { %v14986_v50 = vmul.f32 %v6145_v29, %v5945_v14  ;;  %v5987_v44 = vpop.f32.mrf.mxu0  ;;  %17068 = vst [vmem:[#allocation61_spill] sm:$0xff] %v14998_v18  ;;  %v3173_v29 = vrot.slane %v3172_v57, 2  ;;  %v5804_v36 = vadd.f32 %v5803_v30, %v5782_v58  ;;  %v5815_v14 = vrot.slane %v5784_v47, 4  ;;  %v17070_v30 = vld [vmem:[#allocation36_spill] sm:$0xff] }
 0x4ca   : > { %17065 = vst [vmem:[#allocation31_spill] sm:$0xff] %v14981_v0  ;;  %v14990_v56 = vmul.f32 %v6148_v43, %v5987_v44  ;;  %v15007_v43 = vmul.f32 %v14781_v19, %v3072_v45  ;;  %v5781_v23 = vmul.f32 %v14952_v60, %v5759_v53  ;;  %v5822_v52 = vadd.f32 %v5821_v49, %v5785_v33 }
 0x4cb   : > { %17066 = vst [vmem:[#allocation43_spill] sm:$0xff] %v14986_v50  ;;  %v15002_v50 = vmax.f32 %v5719_v1, 0.0  ;;  %v5718_v42 = vadd.f32 %v14728_v10, %v14773_v40  ;;  %v5764_v7 = vmax.f32 %v5732_v17, 0.0  ;;  %v3101_v58 = vrot.slane %v3100_v28, 2  ;;  %v17073_v40 = vld [vmem:[#allocation40_spill] sm:$0xff] }
 0x4cc   : > { %17067 = vst [vmem:[#allocation60_spill] sm:$0xff] %v14990_v56  ;;  %v5767_v16 = vmax.f32 %v5735_v51, 0.0  ;;  %v5729_v59 = vadd.f32 %v14748_v55, %v17070_v30  ;;  %v6149_v45 = vperm.slane %v14998_v18, 0  ;;  %v5805_v44 = vrot.slane %v5804_v36, 2  ;;  %v17076_v18 = vld [vmem:[#allocation16_spill] sm:$0xff] }
 0x4cd   : > { %17069 = vst [vmem:[#allocation62_spill] sm:$0xff] %v15002_v50  ;;  %v5602_v34 = vpop.f32.mrf.mxu2  ;;  %v5816_v56 = vadd.f32 %v5815_v14, %v5784_v47  ;;  %v6152_v33 = vperm.slane %v15002_v50, 0  ;;  %v15020_v49 = vmax.f32 %v5713_v6, 0.0  ;;  %v5797_v30 = vrot.slane %v5781_v23, 4  ;;  %v17081_v50 = vld [vmem:[#allocation35_spill] sm:$0xff] }
 0x4ce   : > { %v5665_v46 = vmul.f32 %v5633_v12, %v5602_v34  ;;  %v15027_v12 = vmax.f32 %v5718_v42, 0.0  ;;  %v5786_v34 = vmul.f32 %v14952_v60, %v5764_v7  ;;  %v17078_v14 = vrot.slane %v14920_v41, 1 }
 0x4cf   : > { %v5973_v1 = vpop.f32.mrf.mxu3  ;;  %17072 = vst [vmem:[#allocation63_spill] sm:$0xff] %v15020_v49  ;;  %v3165_v42 = vrot.slane %v15007_v43, 4  ;;  %v5806_v7 = vadd.f32 %v5805_v44, %v5804_v36 }
 0x4d0   : > { %v15017_v2 = vmul.f32 %v6147_v38, %v5973_v1  ;;  %v5999_v53 = vpop.f32.mrf.mxu1  ;;  %v15023_v17 = vadd.f32 %v5665_v46, %v17073_v40  ;;  %17075 = vst [vmem:[#allocation64_spill] sm:$0xff] %v15027_v12  ;;  %v5734_v38 = vadd.f32 %v14748_v55, %v17076_v18  ;;  %v15037_v6 = vadd.f32 %v17078_v14, %v14920_v41  ;;  %v17079_v40 = vld [vmem:[#allocation33_spill] sm:$0xff]  ;;  %v17080_v14 = vld [vmem:[#allocation34_spill] sm:$0xff] }
 0x4d1   : > { %v15025_v51 = vmul.f32 %v6149_v45, %v5999_v53  ;;  %v6041_v0 = vpop.f32.mrf.mxu0  ;;  %v3135_v46 = vrot.slane %v14996_v20, 4  ;;  %v5789_v1 = vmul.f32 %v14952_v60, %v5767_v16  ;;  %v5761_v53 = vmax.f32 %v5729_v59, 0.0 }
 0x4d2   : > { %17071 = vst [vmem:[#allocation36_spill] sm:$0xff] %v15017_v2  ;;  %v15032_v47 = vmul.f32 %v6152_v33, %v6041_v0  ;;  %10653 = vmatmul.msk.bf16.vlgmr.msrb.gmra.mxu2 %vm471_vm1, %v14855_v25  ;;  %v15046_v0 = vadd.f32 %v3173_v29, %v3172_v57  ;;  %v3102_v41 = vadd.f32 %v3101_v58, %v3100_v28  ;;  %v5823_v16 = vrot.slane %v5822_v52, 2  ;;  %v17083_v58 = vld [vmem:[#allocation44_spill] sm:$0xff] }
 0x4d3   : > { %17074 = vst [vmem:[#allocation40_spill] sm:$0xff] %v15025_v51  ;;  %10656 = vmatmul.msk.bf16.vlgmr.msrb.gmra.mxu1 %vm471_vm1, %v14855_v25  ;;  %v6146_v59 = vperm.slane %v15020_v49, 0  ;;  %6665 = vmatpush.bf16.msrb.mxu2 %v17079_v40  ;;  %v5798_v18 = vadd.f32 %v5797_v30, %v5781_v23  ;;  %v5817_v57 = vrot.slane %v5816_v56, 2  ;;  %v5827_v29 = vrot.slane %v5786_v34, 4  ;;  %v17085_v30 = vld [vmem:[#allocation18_spill] sm:$0xff] }
 0x4d4   : > { %17077 = vst [vmem:[#allocation16_spill] sm:$0xff] %v15032_v47  ;;  %10658 = vmatmul.msk.bf16.vlgmr.msrb.gmra.mxu3 %vm471_vm1, %v14855_v25  ;;  %10659 = vmatmul.msk.bf16.vlgmr.msrb.gmra.mxu0 %vm471_vm1, %v14855_v25  ;;  %v5766_v47 = vmax.f32 %v5734_v38, 0.0  ;;  %v6151_v2 = vperm.slane %v15027_v12, 0  ;;  %v5845_v28 = vrot.slane %v5789_v1, 4  ;;  %v5783_v36 = vmul.f32 %v14952_v60, %v5761_v53 }
 0x4d5   : > { %6707 = vmatpush.bf16.msrb.mxu1 %v17080_v14  ;;  %v5957_v51 = vpop.f32.mrf.mxu2  ;;  %6735 = vmatpush.bf16.msrb.mxu3 %v17081_v50  ;;  %v5720_v44 = vadd.f32 %v14728_v10, %v17083_v58  ;;  %v15065_v23 = vadd.f32 %v3135_v46, %v14996_v20  ;;  %v5723_v38 = vadd.f32 %v14728_v10, %v17085_v30  ;;  %v3103_v49 = vrot.slane %v3102_v41, 1 }
 0x4d6   : > { %6840 = vmatpush.bf16.msrb.mxu0 %v17082_v54  ;;  %v15062_v40 = vmul.f32 %v6146_v59, %v5957_v51  ;;  %v5807_v54 = vrot.slane %v5806_v7, 1  ;;  %v5824_v35 = vadd.f32 %v5823_v16, %v5822_v52  ;;  %v5799_v62 = vrot.slane %v5798_v18, 2  ;;  %v17090_v52 = vld [vmem:[#allocation39_spill] sm:$0xff] }
 0x4d7   : > { %v6027_v14 = vpop.f32.mrf.mxu3  ;;  %v5818_v58 = vadd.f32 %v5817_v57, %v5816_v56  ;;  %v5828_v51 = vadd.f32 %v5827_v29, %v5786_v34  ;;  %v15077_v20 = vadd.f32 %v3165_v42, %v15007_v43  ;;  %v5846_v46 = vadd.f32 %v5845_v28, %v5789_v1  ;;  %v17092_v29 = vld [vmem:[#allocation41_spill] sm:$0xff] }
 0x4d8   : > { %17084 = vst [vmem:[#allocation44_spill] sm:$0xff] %v15062_v40  ;;  %v15069_v12 = vmul.f32 %v6151_v2, %v6027_v14  ;;  %v6001_v50 = vpop.f32.mrf.mxu1  ;;  %v5788_v40 = vmul.f32 %v14952_v60, %v5766_v47  ;;  %v5809_v14 = vrot.slane %v5783_v36, 4  ;;  %v15079_v30 = vmax.f32 %v5720_v44, 0.0 }
 0x4d9   : > { %v15071_v26 = vmul.f32 %v6149_v45, %v6001_v50  ;;  %v6043_v53 = vpop.f32.mrf.mxu0  ;;  %v15084_v50 = vadd.f32 %v14760_v31, %v17090_v52  ;;  %v15086_v45 = vmax.f32 %v5723_v38, 0.0  ;;  %v3104_v56 = vadd.f32 %v3103_v49, %v3102_v41 }
 0x4da   : > { %17086 = vst [vmem:[#allocation18_spill] sm:$0xff] %v15069_v12  ;;  %v15074_v63 = vmul.f32 %v6152_v33, %v6043_v53  ;;  %v5808_v34 = vadd.f32 %v5807_v54, %v5806_v7  ;;  %v5825_v47 = vrot.slane %v5824_v35, 1  ;;  %v17091_v33 = vld [vmem:[#allocation49_spill] sm:$0xff]  ;;  %v5800_v43 = vadd.f32 %v5799_v62, %v5798_v18  ;;  %v17094_v54 = vld [vmem:[#allocation38_spill] sm:$0xff] }
 0x4db   : > { %17087 = vst [vmem:[#allocation65_spill] sm:$0xff] %v15071_v26  ;;  %v5717_v16 = vadd.f32 %v14728_v10, %v17091_v33  ;;  %v5819_v42 = vrot.slane %v5818_v58, 1  ;;  %v5829_v1 = vrot.slane %v5828_v51, 2  ;;  %v5839_v57 = vrot.slane %v5788_v40, 4  ;;  %v17095_v7 = vld [vmem:[#allocation57_spill] sm:$0xff] }
 0x4dc   : > { %17088 = vst [vmem:[#allocation66_spill] sm:$0xff] %v15074_v63  ;;  %v5722_v28 = vadd.f32 %v14728_v10, %v17092_v29  ;;  %v5847_v53 = vrot.slane %v5846_v46, 2  ;;  %v5810_v12 = vadd.f32 %v5809_v14, %v5783_v36  ;;  %v6153_v49 = vperm.slane %v15079_v30, 0  ;;  %v17098_v26 = vld [vmem:[#allocation53_spill] sm:$0xff] }
 0x4dd   : > { %17089 = vst [vmem:[#allocation67_spill] sm:$0xff] %v15079_v30  ;;  %v5959_v44 = vpop.f32.mrf.mxu2  ;;  %v5736_v41 = vadd.f32 %v14748_v55, %v17094_v54  ;;  %v5739_v62 = vadd.f32 %v14748_v55, %v17095_v7  ;;  %v6156_v63 = vperm.slane %v15086_v45, 0  ;;  %v15102_v29 = vmax.f32 %v5717_v16, 0.0 }
 0x4de   : > { %v15092_v52 = vmul.f32 %v6146_v59, %v5959_v44  ;;  %v5733_v59 = vadd.f32 %v14748_v55, %v17098_v26  ;;  %v5801_v44 = vrot.slane %v5800_v43, 1  ;;  %v5840_v30 = vadd.f32 %v5839_v57, %v5788_v40 }
 0x4df   : > { %v6029_v38 = vpop.f32.mrf.mxu3  ;;  %17097 = vst [vmem:[#allocation41_spill] sm:$0xff] %v15102_v29  ;;  %v15108_v54 = vmax.f32 %v5722_v28, 0.0  ;;  %v5830_v7 = vadd.f32 %v5829_v1, %v5828_v51  ;;  %v5848_v26 = vadd.f32 %v5847_v53, %v5846_v46  ;;  %v5768_v40 = vmax.f32 %v5736_v41, 0.0  ;;  %v17102_v1 = vld [vmem:[#allocation20_spill] sm:$0xff]  ;;  %v17104_v53 = vld [vmem:[#allocation45_spill] sm:$0xff] }
 0x4e0   : > { %17093 = vst [vmem:[#allocation39_spill] sm:$0xff] %v15092_v52  ;;  %v15099_v18 = vmul.f32 %v6151_v2, %v6029_v38  ;;  %v6055_v33 = vpop.f32.mrf.mxu1  ;;  %v5826_v52 = vadd.f32 %v5825_v47, %v5824_v35  ;;  %v3167_v2 = vrot.slane %v15077_v20, 2  ;;  %v5820_v38 = vadd.f32 %v5819_v42, %v5818_v58  ;;  %v17101_v42 = vld [vmem:[#allocation37_spill] sm:$0xff] }
 0x4e1   : > { %v15106_v36 = vmul.f32 %v6153_v49, %v6055_v33  ;;  %v6097_v14 = vpop.f32.mrf.mxu0  ;;  %17099 = vst [vmem:[#allocation38_spill] sm:$0xff] %v15108_v54  ;;  %v5811_v35 = vrot.slane %v5810_v12, 2  ;;  %v5771_v47 = vmax.f32 %v5739_v62, 0.0  ;;  %v5765_v58 = vmax.f32 %v5733_v59, 0.0  ;;  %v17105_v33 = vld [vmem:[#allocation21_spill] sm:$0xff]  ;;  %v17106_v59 = vld [vmem:[#allocation22_spill] sm:$0xff] }
 0x4e2   : > { %17096 = vst [vmem:[#allocation49_spill] sm:$0xff] %v15099_v18  ;;  %v15110_v3 = vmul.f32 %v6156_v63, %v6097_v14  ;;  %v17100_v18 = vld [vmem:[#allocation58_spill] sm:$0xff]  ;;  %10657 = vmatmul.msk.bf16.vlgmr.msra.gmra.mxu2 %vm471_vm1, %v14855_v25  ;;  %v6150_v51 = vperm.slane %v15102_v29, 0  ;;  %v5802_v57 = vadd.f32 %v5801_v44, %v5800_v43  ;;  %v15127_v28 = vadd.f32 %v5808_v34, %v14910_v27 }
 0x4e3   : > { %v5738_v16 = vadd.f32 %v14748_v55, %v17100_v18  ;;  %10660 = vmatmul.msk.bf16.vlgmr.msra.gmra.mxu1 %vm471_vm1, %v14855_v25  ;;  %6721 = vmatpush.bf16.msra.mxu2 %v17101_v42  ;;  %v5841_v46 = vrot.slane %v5840_v30, 2  ;;  %v5724_v41 = vadd.f32 %v14728_v10, %v17104_v53  ;;  %v6155_v18 = vperm.slane %v15108_v54, 0 }
 0x4e4   : > { %10662 = vmatmul.msk.bf16.vlgmr.msra.gmra.mxu3 %vm471_vm1, %v14855_v25  ;;  %10663 = vmatmul.msk.bf16.vlgmr.msra.gmra.mxu0 %vm471_vm1, %v14855_v25  ;;  %17103 = vst [vmem:[#allocation57_spill] sm:$0xff] %v15127_v28  ;;  %v15135_v14 = vadd.f32 %v5826_v52, %v14912_v22  ;;  %v15139_v27 = vadd.f32 %v5802_v57, %v3104_v56  ;;  %v3074_v44 = vmax.f32 %v15084_v50, 0.0  ;;  %v17111_v52 = vrot.slane %v15065_v23, 2 }
 0x4e5   : > { %6854 = vmatpush.bf16.msra.mxu1 %v17102_v1  ;;  %v6013_v62 = vpop.f32.mrf.mxu2  ;;  %6882 = vmatpush.bf16.msra.mxu3 %v17105_v33  ;;  %v5770_v42 = vmax.f32 %v5738_v16, 0.0  ;;  %v15142_v34 = vadd.f32 %v5820_v38, %v14946_v13  ;;  %v5790_v53 = vmul.f32 %v14952_v60, %v5768_v40  ;;  %v5793_v28 = vmul.f32 %v14952_v60, %v5771_v47 }
 0x4e6   : > { %6896 = vmatpush.bf16.msra.mxu0 %v17106_v59  ;;  %17107 = vst [vmem:[#allocation53_spill] sm:$0xff] %v15135_v14  ;;  %v15137_v1 = vmul.f32 %v6150_v51, %v6013_v62  ;;  %v15153_v16 = vadd.f32 %v17111_v52, %v15065_v23  ;;  %v5787_v56 = vmul.f32 %v14952_v60, %v5765_v58  ;;  %v5831_v50 = vrot.slane %v5830_v7, 1  ;;  %v17115_v58 = vld [vmem:[#allocation32_spill] sm:$0xff] }
 0x4e7   : > { %v6083_v43 = vpop.f32.mrf.mxu3  ;;  %17108 = vst [vmem:[#allocation58_spill] sm:$0xff] %v15139_v27  ;;  %v5849_v57 = vrot.slane %v5848_v26, 1  ;;  %v5812_v40 = vadd.f32 %v5811_v35, %v5810_v12  ;;  %v15161_v47 = vadd.f32 %v3167_v2, %v15077_v20  ;;  %v5792_v22 = vmul.f32 %v14952_v60, %v5770_v42  ;;  %v17116_v12 = vld [vmem:[#allocation47_spill] sm:$0xff] }
 0x4e8   : > { %17109 = vst [vmem:[#allocation45_spill] sm:$0xff] %v15142_v34  ;;  %v15147_v33 = vmul.f32 %v6155_v18, %v6083_v43  ;;  %v6057_v59 = vpop.f32.mrf.mxu1  ;;  %v5842_v43 = vadd.f32 %v5841_v46, %v5840_v30  ;;  %v15164_v34 = vmax.f32 %v5724_v41, 0.0  ;;  %v15167_v23 = vmul.f32 %v14781_v19, %v3074_v44 }
 0x4e9   : > { %v15156_v13 = vmul.f32 %v6153_v49, %v6057_v59  ;;  %v6099_v38 = vpop.f32.mrf.mxu0  ;;  %v15171_v49 = vadd.f32 %v14760_v31, %v17115_v58  ;;  %v5851_v59 = vrot.slane %v5790_v53, 4  ;;  %v5869_v52 = vrot.slane %v5793_v28, 4 }
 0x4ea   : > { %17110 = vst [vmem:[#allocation68_spill] sm:$0xff] %v15147_v33  ;;  %v15158_v62 = vmul.f32 %v6156_v63, %v6099_v38  ;;  %v15175_v63 = vadd.f32 %v14760_v31, %v17116_v12  ;;  %v5833_v20 = vrot.slane %v5787_v56, 4  ;;  %v5721_v30 = vadd.f32 %v14728_v10, %v14894_v48 }
 0x4eb   : > { %17112 = vst [vmem:[#allocation69_spill] sm:$0xff] %v15156_v13  ;;  %v5726_v2 = vadd.f32 %v14728_v10, %v14899_v4  ;;  %v5832_v35 = vadd.f32 %v5831_v50, %v5830_v7  ;;  %v5850_v42 = vadd.f32 %v5849_v57, %v5848_v26  ;;  %v5813_v46 = vrot.slane %v5812_v40, 1  ;;  %v17118_v4 = vld [vmem:[#allocation50_spill] sm:$0xff] }
 0x4ec   : > { %17113 = vst [vmem:[#allocation70_spill] sm:$0xff] %v15158_v62  ;;  %v5740_v41 = vadd.f32 %v14748_v55, %v14907_v24  ;;  %v5843_v38 = vrot.slane %v5842_v43, 1  ;;  %v5863_v58 = vrot.slane %v5792_v22, 4  ;;  %v6157_v27 = vperm.slane %v15164_v34, 0  ;;  %v15192_v26 = vld [vmem:[%s16529_s4 + $0x98] sm:$0xff] }
 0x4ed   : > { %17114 = vst [vmem:[#allocation71_spill] sm:$0xff] %v15164_v34  ;;  %v6015_v44 = vpop.f32.mrf.mxu2  ;;  %v5852_v62 = vadd.f32 %v5851_v59, %v5790_v53  ;;  %v5870_v13 = vadd.f32 %v5869_v52, %v5793_v28  ;;  %v6427_v7 = vperm.slane %v17118_v4, 1  ;;  %v5834_v24 = vadd.f32 %v5833_v20, %v5787_v56 }
 0x4ee   : > { %v15183_v14 = vmul.f32 %v6150_v51, %v6015_v44  ;;  %v15194_v50 = vmax.f32 %v5721_v30, 0.0  ;;  %v15196_v51 = vmax.f32 %v5726_v2, 0.0  ;;  %v5772_v53 = vmax.f32 %v5740_v41, 0.0 }
 0x4ef   : > { %v6085_v12 = vpop.f32.mrf.mxu3  ;;  %v5737_v28 = vadd.f32 %v14748_v55, %v14934_v37  ;;  %v3139_v52 = vrot.slane %v15153_v16, 1  ;;  %v5864_v56 = vadd.f32 %v5863_v58, %v5792_v22  ;;  %v5853_v20 = vrot.slane %v5852_v62, 2  ;;  %v17121_v37 = vld [vmem:[#allocation46_spill] sm:$0xff] }
 0x4f0   : > { %v15186_v48 = vmul.f32 %v6155_v18, %v6085_v12  ;;  %v6111_v33 = vpop.f32.mrf.mxu1  ;;  %17119 = vst [vmem:[#allocation47_spill] sm:$0xff] %v15194_v50  ;;  %v5742_v18 = vadd.f32 %v14748_v55, %v14942_v11  ;;  %v5814_v12 = vadd.f32 %v5813_v46, %v5812_v40  ;;  %v5871_v30 = vrot.slane %v5870_v13, 2  ;;  %v17123_v40 = vld [vmem:[#allocation23_spill] sm:$0xff] }
 0x4f1   : > { %17120 = vst [vmem:[#allocation72_spill] sm:$0xff] %v15196_v51  ;;  %v15198_v57 = vmul.f32 %v6157_v27, %v6111_v33  ;;  %v6212_v44 = vpop.f32.mrf.mxu0  ;;  %v3071_v33 = vmax.f32 %v15171_v49, 0.0  ;;  %v5835_v11 = vrot.slane %v5834_v24, 2  ;;  %v6154_v22 = vperm.slane %v15194_v50, 0  ;;  %v17128_v50 = vld [vmem:[#allocation26_spill] sm:$0xff] }
 0x4f2   : > { %17117 = vst [vmem:[#allocation32_spill] sm:$0xff] %v15186_v48  ;;  %v6443_v59 = vmul.f32 %v6427_v7, %v6212_v44  ;;  %v5844_v48 = vadd.f32 %v5843_v38, %v5842_v43  ;;  %10661 = vmatmul.msk.bf16.vlgmr.msrb.gmra.mxu2 %vm471_vm1, %v14855_v25  ;;  %v17124_v43 = vld [vmem:[#allocation24_spill] sm:$0xff]  ;;  %v15221_v49 = vadd.f32 %v5832_v35, %v14948_v9  ;;  %v5769_v38 = vmax.f32 %v5737_v28, 0.0 }
 0x4f3   : > { %10664 = vmatmul.msk.bf16.vlgmr.msrb.gmra.mxu1 %vm471_vm1, %v14855_v25  ;;  %6868 = vmatpush.bf16.msrb.mxu2 %v17123_v40  ;;  %v15224_v46 = vadd.f32 %v5850_v42, %v14958_v32  ;;  %v5794_v41 = vmul.f32 %v14952_v60, %v5772_v53  ;;  %v5774_v58 = vmax.f32 %v5742_v18, 0.0  ;;  %v5865_v40 = vrot.slane %v5864_v56, 2 }
 0x4f4   : > { %v15211_v2 = vadd.f32 %v6443_v59, %v17121_v37  ;;  %10666 = vmatmul.msk.bf16.vlgmr.msrb.gmra.mxu3 %vm471_vm1, %v14855_v25  ;;  %10673 = vmatmul.msk.bf16.vlgmr.msrb.gmra.mxu0 %vm471_vm1, %v15192_v26  ;;  %17125 = vst [vmem:[#allocation73_spill] sm:$0xff] %v15221_v49  ;;  %v6159_v59 = vperm.slane %v15196_v51, 0  ;;  %v17127_v37 = vld [vmem:[#allocation25_spill] sm:$0xff]  ;;  %v15233_v9 = vadd.f32 %v5844_v48, %v15037_v6  ;;  %v3169_v35 = vrot.slane %v15161_v47, 1 }
 0x4f5   : > { %6910 = vmatpush.bf16.msrb.mxu1 %v17124_v43  ;;  %17126 = vst [vmem:[#allocation74_spill] sm:$0xff] %v15224_v46  ;;  %v6069_v44 = vpop.f32.mrf.mxu2  ;;  %6938 = vmatpush.bf16.msrb.mxu3 %v17127_v37  ;;  %v15236_v32 = vadd.f32 %v5814_v12, %v14993_v21  ;;  %v3076_v42 = vmax.f32 %v15175_v63, 0.0  ;;  %v5854_v53 = vadd.f32 %v5853_v20, %v5852_v62  ;;  %v3177_v46 = vrot.slane %v15167_v23, 4 }
 0x4f6   : > { %17122 = vst [vmem:[#allocation46_spill] sm:$0xff] %v15211_v2  ;;  %6952 = vmatpush.bf16.msrb.mxu0 %v17128_v50  ;;  %v15230_v2 = vmul.f32 %v6154_v22, %v6069_v44  ;;  %v5872_v49 = vadd.f32 %v5871_v30, %v5870_v13  ;;  %v5836_v44 = vadd.f32 %v5835_v11, %v5834_v24  ;;  %v5875_v6 = vrot.slane %v5794_v41, 4 }
 0x4f7   : > { %v6139_v43 = vpop.f32.mrf.mxu3  ;;  %17130 = vst [vmem:[#allocation76_spill] sm:$0xff] %v15233_v9  ;;  %v5791_v48 = vmul.f32 %v14952_v60, %v5769_v38  ;;  %v5796_v21 = vmul.f32 %v14952_v60, %v5774_v58  ;;  %v17132_v63 = vrot.slane %v15004_v5, 1  ;;  %v17133_v20 = vrot.slane %v15046_v0, 1 }
 0x4f8   : > { %17129 = vst [vmem:[#allocation75_spill] sm:$0xff] %v15230_v2  ;;  %v15240_v28 = vmul.f32 %v6159_v59, %v6139_v43  ;;  %v6113_v18 = vpop.f32.mrf.mxu1  ;;  %v3093_v13 = vmul.f32 %v14781_v19, %v3071_v33  ;;  %v5866_v24 = vadd.f32 %v5865_v40, %v5864_v56  ;;  %v3098_v30 = vmul.f32 %v14781_v19, %v3076_v42 }
 0x4f9   : > { %17131 = vst [vmem:[#allocation77_spill] sm:$0xff] %v15236_v32  ;;  %v15243_v2 = vmul.f32 %v6157_v27, %v6113_v18  ;;  %v6214_v50 = vpop.f32.mrf.mxu0  ;;  %v3158_v62 = vadd.f32 %v17132_v63, %v15004_v5  ;;  %v3176_v43 = vadd.f32 %v17133_v20, %v15046_v0  ;;  %v3140_v27 = vadd.f32 %v3139_v52, %v15153_v16 }
 0x4fa   : > { %v6459_v12 = vmul.f32 %v6427_v7, %v6214_v50  ;;  %v5855_v11 = vrot.slane %v5854_v53, 1  ;;  %v3170_v7 = vadd.f32 %v3169_v35, %v15161_v47  ;;  %v5873_v50 = vrot.slane %v5872_v49, 1 }
 0x4fb   : > { %v5837_v58 = vrot.slane %v5836_v44, 1  ;;  %v5725_v5 = vadd.f32 %v14728_v10, %v14984_v15  ;;  %v3178_v0 = vadd.f32 %v3177_v46, %v15167_v23  ;;  %v5876_v18 = vadd.f32 %v5875_v6, %v5794_v41 }
 0x4fc   : > { %v15257_v38 = vadd.f32 %v6459_v12, %v14901_v8  ;;  %v5857_v33 = vrot.slane %v5791_v48, 4  ;;  %v5887_v56 = vrot.slane %v5796_v21, 4  ;;  %v3159_v16 = vrot.slane %v3093_v13, 4 }
 0x4fd   : > { %v6071_v40 = vpop.f32.mrf.mxu2  ;;  %v5867_v52 = vrot.slane %v5866_v24, 1  ;;  %v6428_v8 = vperm.slane %v14904_v39, 1  ;;  %v3189_v12 = vrot.slane %v3098_v30, 4  ;;  %v5856_v47 = vadd.f32 %v5855_v11, %v5854_v53  ;;  %v17136_v53 = vld [vmem:[#allocation55_spill] sm:$0xff] }
 0x4fe   : > { %v15263_v42 = vmul.f32 %v6154_v22, %v6071_v40  ;;  %v6431_v15 = vperm.slane %v14914_v61, 1  ;;  %v5874_v10 = vadd.f32 %v5873_v50, %v5872_v49  ;;  %v5838_v23 = vadd.f32 %v5837_v58, %v5836_v44  ;;  %v17137_v50 = vld [vmem:[#allocation42_spill] sm:$0xff] }
 0x4ff   : > { %v6141_v63 = vpop.f32.mrf.mxu3  ;;  %v15269_v46 = vmax.f32 %v5725_v5, 0.0  ;;  %v5877_v32 = vrot.slane %v5876_v18, 2  ;;  %v5858_v9 = vadd.f32 %v5857_v33, %v5791_v48  ;;  %v5888_v22 = vadd.f32 %v5887_v56, %v5796_v21  ;;  %v17139_v21 = vld [vmem:[#allocation27_spill] sm:$0xff] }
 0x500   : > { %17134 = vst [vmem:[#allocation78_spill] sm:$0xff] %v15263_v42  ;;  %v15266_v35 = vmul.f32 %v6159_v59, %v6141_v63  ;;  %v6226_v20 = vpop.f32.mrf.mxu1  ;;  %v5868_v42 = vadd.f32 %v5867_v52, %v5866_v24  ;;  %v5741_v39 = vadd.f32 %v14748_v55, %v15023_v17  ;;  %v3179_v49 = vrot.slane %v3178_v0, 2  ;;  %v17138_v55 = vld [vmem:[#allocation48_spill] sm:$0xff]  ;;  %v17144_v63 = vld [vmem:[#allocation29_spill] sm:$0xff] }
 0x501   : > { %17135 = vst [vmem:[#allocation79_spill] sm:$0xff] %v15269_v46  ;;  %v6444_v41 = vmul.f32 %v6428_v8, %v6226_v20  ;;  %v6268_v6 = vpop.f32.mrf.mxu0  ;;  %v3160_v44 = vadd.f32 %v3159_v16, %v3093_v13  ;;  %v3190_v11 = vadd.f32 %v3189_v12, %v3098_v30  ;;  %v3043_v17 = vadd.f32 %v14760_v31, %v17138_v55  ;;  %v17140_v24 = vld [vmem:[#allocation28_spill] sm:$0xff]  ;;  %v17143_v16 = vld [vmem:[#allocation17_spill] sm:$0xff]  ;;  %v17145_v12 = vld [vmem:[#allocation30_spill] sm:$0xff] }
 0x502   : > { %v6447_v40 = vmul.f32 %v6431_v15, %v6268_v6  ;;  %10665 = vmatmul.msk.bf16.vlgmr.msra.gmra.mxu2 %vm471_vm1, %v14855_v25  ;;  %v6158_v25 = vperm.slane %v15269_v46, 0  ;;  %v15292_v13 = vadd.f32 %v5856_v47, %v3158_v62  ;;  %v15294_v30 = vadd.f32 %v5874_v10, %v3176_v43 }
 0x503   : > { %v15274_v59 = vadd.f32 %v6444_v41, %v17136_v53  ;;  %10674 = vmatmul.msk.bf16.vlgmr.msra.gmra.mxu1 %vm471_vm1, %v15192_v26  ;;  %6924 = vmatpush.bf16.msra.mxu2 %v17139_v21  ;;  %v5878_v58 = vadd.f32 %v5877_v32, %v5876_v18  ;;  %v5859_v5 = vrot.slane %v5858_v9, 2  ;;  %v5889_v33 = vrot.slane %v5888_v22, 2 }
 0x504   : > { %v15281_v48 = vadd.f32 %v6447_v40, %v17137_v50  ;;  %10676 = vmatmul.msk.bf16.vlgmr.msra.gmra.mxu3 %vm471_vm1, %v15192_v26  ;;  %10677 = vmatmul.msk.bf16.vlgmr.msra.gmra.mxu0 %vm471_vm1, %v15192_v26  ;;  %17141 = vst [vmem:[#allocation55_spill] sm:$0xff] %v15292_v13  ;;  %v6430_v52 = vperm.slane %v17143_v16, 1  ;;  %v5773_v31 = vmax.f32 %v5741_v39, 0.0  ;;  %v15301_v6 = vadd.f32 %v5868_v42, %v3170_v7  ;;  %v17148_v13 = vld [vmem:[#allocation31_spill] sm:$0xff] }
 0x505   : > { %6966 = vmatpush.bf16.msra.mxu1 %v17140_v24  ;;  %17142 = vst [vmem:[#allocation42_spill] sm:$0xff] %v15294_v30  ;;  %v6125_v56 = vpop.f32.mrf.mxu2  ;;  %6994 = vmatpush.bf16.msra.mxu3 %v17144_v63  ;;  %v15303_v62 = vadd.f32 %v5838_v23, %v3140_v27  ;;  %v3180_v43 = vadd.f32 %v3179_v49, %v3178_v0  ;;  %v3161_v18 = vrot.slane %v3160_v44, 2  ;;  %v3191_v10 = vrot.slane %v3190_v11, 2  ;;  %v17149_v42 = vld [vmem:[#allocation43_spill] sm:$0xff]  ;;  %v17150_v23 = vld [vmem:[#allocation60_spill] sm:$0xff] }
 0x506   : > { %7008 = vmatpush.bf16.msra.mxu0 %v17145_v12  ;;  %v15299_v20 = vmul.f32 %v6158_v25, %v6125_v56  ;;  %17146 = vst [vmem:[#allocation48_spill] sm:$0xff] %v15301_v6  ;;  %v3075_v40 = vmax.f32 %v3043_v17, 0.0  ;;  %v5860_v55 = vadd.f32 %v5859_v5, %v5858_v9  ;;  %v5890_v30 = vadd.f32 %v5889_v33, %v5888_v22 }
 0x507   : > { %v6254_v41 = vpop.f32.mrf.mxu3  ;;  %17147 = vst [vmem:[#allocation27_spill] sm:$0xff] %v15303_v62  ;;  %v5879_v56 = vrot.slane %v5878_v58, 1  ;;  %v5795_v7 = vmul.f32 %v14952_v60, %v5773_v31  ;;  %v3181_v0 = vrot.slane %v3180_v43, 1  ;;  %v3192_v17 = vadd.f32 %v3191_v10, %v3190_v11  ;;  %v17151_v60 = vld [vmem:[#allocation61_spill] sm:$0xff]  ;;  %v17153_v62 = vld [vmem:[#allocation36_spill] sm:$0xff] }
 0x508   : > { %v6446_v47 = vmul.f32 %v6430_v52, %v6254_v41  ;;  %v6228_v32 = vpop.f32.mrf.mxu1  ;;  %v3162_v41 = vadd.f32 %v3161_v18, %v3160_v44  ;;  %v5861_v9 = vrot.slane %v5860_v55, 1  ;;  %v5891_v22 = vrot.slane %v5890_v30, 1 }
 0x509   : > { %v6460_v53 = vmul.f32 %v6428_v8, %v6228_v32  ;;  %v6270_v50 = vpop.f32.mrf.mxu0  ;;  %v3097_v8 = vmul.f32 %v14781_v19, %v3075_v40  ;;  %v5881_v33 = vrot.slane %v5795_v7, 4  ;;  %v6432_v31 = vperm.slane %v17151_v60, 1 }
 0x50a   : > { %v15306_v12 = vadd.f32 %v6446_v47, %v17148_v13  ;;  %v6463_v39 = vmul.f32 %v6431_v15, %v6270_v50  ;;  %v5880_v13 = vadd.f32 %v5879_v56, %v5878_v58  ;;  %v3182_v32 = vadd.f32 %v3181_v0, %v3180_v43  ;;  %v17156_v43 = vld [vmem:[#allocation16_spill] sm:$0xff] }
 0x50b   : > { %v15310_v27 = vadd.f32 %v6460_v53, %v17149_v42  ;;  %v17152_v42 = vld [vmem:[#allocation62_spill] sm:$0xff]  ;;  %v3193_v44 = vrot.slane %v3192_v17, 1  ;;  %v3183_v11 = vrot.slane %v3097_v8, 4  ;;  %v5862_v10 = vadd.f32 %v5861_v9, %v5860_v55 }
 0x50c   : > { %v15313_v49 = vadd.f32 %v6463_v39, %v17150_v23  ;;  %v6435_v39 = vperm.slane %v17152_v42, 1  ;;  %v3163_v23 = vrot.slane %v3162_v41, 1  ;;  %v5892_v40 = vadd.f32 %v5891_v22, %v5890_v30  ;;  %v17158_v22 = vld [vmem:[#allocation33_spill] sm:$0xff] }
 0x50d   : > { %v6127_v5 = vpop.f32.mrf.mxu2  ;;  %v5882_v56 = vadd.f32 %v5881_v33, %v5795_v7  ;;  %v3184_v55 = vadd.f32 %v3183_v11, %v3097_v8  ;;  %v17157_v7 = vld [vmem:[#allocation63_spill] sm:$0xff]  ;;  %v17159_v33 = vld [vmem:[#allocation34_spill] sm:$0xff] }
 0x50e   : > { %v15316_v15 = vmul.f32 %v6158_v25, %v6127_v5  ;;  %v17154_v5 = vld [vmem:[#allocation40_spill] sm:$0xff]  ;;  %v3164_v30 = vadd.f32 %v3163_v23, %v3162_v41  ;;  %v6429_v9 = vperm.slane %v17157_v7, 1 }
 0x50f   : > { %v6256_v47 = vpop.f32.mrf.mxu3  ;;  %v3185_v23 = vrot.slane %v3184_v55, 2 }
 0x510   : > { %v6462_v53 = vmul.f32 %v6430_v52, %v6256_v47  ;;  %v6282_v50 = vpop.f32.mrf.mxu1  ;;  %v15330_v52 = vadd.f32 %v5880_v13, %v3182_v32  ;;  %v17160_v47 = vld [vmem:[#allocation64_spill] sm:$0xff]  ;;  %v15347_v41 = vadd.f32 %v5862_v10, %v3164_v30 }
 0x511   : > { %v6448_v18 = vmul.f32 %v6432_v31, %v6282_v50  ;;  %v6324_v19 = vpop.f32.mrf.mxu0  ;;  %v6434_v32 = vperm.slane %v17160_v47, 1  ;;  %v17162_v50 = vld [vmem:[#allocation19_spill] sm:$0xff]  ;;  %v17166_v47 = vld [vmem:[#allocation18_spill] sm:$0xff]  ;;  %v3186_v10 = vadd.f32 %v3185_v23, %v3184_v55 }
 0x512   : > { %v15321_v58 = vadd.f32 %v6462_v53, %v17153_v62  ;;  %v6451_v25 = vmul.f32 %v6435_v39, %v6324_v19  ;;  %10675 = vmatmul.msk.bf16.vlgmr.msrb.gmra.mxu2 %vm471_vm1, %v15192_v26  ;;  %17155 = vst [vmem:[#allocation28_spill] sm:$0xff] %v15330_v52  ;;  %v3194_v62 = vadd.f32 %v3193_v44, %v3192_v17  ;;  %v17161_v53 = vld [vmem:[#allocation35_spill] sm:$0xff]  ;;  %v17165_v44 = vld [vmem:[#allocation44_spill] sm:$0xff] }
 0x513   : > { %v15324_v6 = vadd.f32 %v6448_v18, %v17154_v5  ;;  %10678 = vmatmul.msk.bf16.vlgmr.msrb.gmra.mxu1 %vm471_vm1, %v15192_v26  ;;  %6980 = vmatpush.bf16.msrb.mxu2 %v17158_v22  ;;  %v5883_v18 = vrot.slane %v5882_v56, 2  ;;  %17164 = vst [vmem:[#allocation31_spill] sm:$0xff] %v15347_v41  ;;  %v17167_v22 = vld [vmem:[#allocation65_spill] sm:$0xff] }
 0x514   : > { %v15333_v0 = vadd.f32 %v6451_v25, %v17156_v43  ;;  %10680 = vmatmul.msk.bf16.vlgmr.msrb.gmra.mxu3 %vm471_vm1, %v15192_v26  ;;  %10681 = vmatmul.msk.bf16.vlgmr.msrb.gmra.mxu0 %vm471_vm1, %v15192_v26  ;;  %v15345_v5 = vadd.f32 %v5892_v40, %v3194_v62  ;;  %v17168_v40 = vld [vmem:[#allocation66_spill] sm:$0xff] }
 0x515   : > { %7022 = vmatpush.bf16.msrb.mxu1 %v17159_v33  ;;  %v6240_v13 = vpop.f32.mrf.mxu2  ;;  %7050 = vmatpush.bf16.msrb.mxu3 %v17161_v53 }
 0x516   : > { %7155 = vmatpush.bf16.msrb.mxu0 %v17162_v50  ;;  %v6445_v19 = vmul.f32 %v6429_v9, %v6240_v13  ;;  %17163 = vst [vmem:[#allocation29_spill] sm:$0xff] %v15345_v5  ;;  %v5884_v50 = vadd.f32 %v5883_v18, %v5882_v56  ;;  %v17171_v18 = vld [vmem:[#allocation49_spill] sm:$0xff] }
 0x517   : > { %v6310_v25 = vpop.f32.mrf.mxu3 }
 0x518   : > { %v6450_v17 = vmul.f32 %v6434_v32, %v6310_v25  ;;  %v6284_v8 = vpop.f32.mrf.mxu1  ;;  %v15350_v11 = vadd.f32 %v6445_v19, %v17165_v44  ;;  %v5885_v25 = vrot.slane %v5884_v50, 1  ;;  %v17169_v19 = vld [vmem:[#allocation67_spill] sm:$0xff] }
 0x519   : > { %v6464_v43 = vmul.f32 %v6432_v31, %v6284_v8  ;;  %v6326_v52 = vpop.f32.mrf.mxu0  ;;  %v6436_v44 = vperm.slane %v17169_v19, 1 }
 0x51a   : > { %v15353_v33 = vadd.f32 %v6450_v17, %v17166_v47  ;;  %v6467_v53 = vmul.f32 %v6435_v39, %v6326_v52  ;;  %v6439_v47 = vperm.slane %v15086_v45, 1  ;;  %v3187_v17 = vrot.slane %v3186_v10, 1  ;;  %v17170_v39 = vld [vmem:[#allocation39_spill] sm:$0xff] }
 0x51b   : > { %v15356_v13 = vadd.f32 %v6464_v43, %v17167_v22  ;;  %v5886_v23 = vadd.f32 %v5885_v25, %v5884_v50  ;;  %v6433_v50 = vperm.slane %v15102_v29, 1 }
 0x51c   : > { %v15359_v62 = vadd.f32 %v6467_v53, %v17168_v40  ;;  %v6438_v40 = vperm.slane %v15108_v54, 1  ;;  %v17178_v54 = vld [vmem:[#allocation69_spill] sm:$0xff] }
 0x51d   : > { %v6242_v30 = vpop.f32.mrf.mxu2 }
 0x51e   : > { %v6461_v41 = vmul.f32 %v6429_v9, %v6242_v30  ;;  %v17174_v30 = vld [vmem:[#allocation21_spill] sm:$0xff] }
 0x51f   : > { %v6312_v5 = vpop.f32.mrf.mxu3 }
 0x520   : > { %v6466_v31 = vmul.f32 %v6434_v32, %v6312_v5  ;;  %v6338_v8 = vpop.f32.mrf.mxu1  ;;  %v15364_v56 = vadd.f32 %v6461_v41, %v17170_v39  ;;  %v3188_v5 = vadd.f32 %v3187_v17, %v3186_v10  ;;  %v17173_v41 = vld [vmem:[#allocation20_spill] sm:$0xff] }
 0x521   : > { %v6452_v52 = vmul.f32 %v6436_v44, %v6338_v8  ;;  %v6380_v22 = vpop.f32.mrf.mxu0 }
 0x522   : > { %v15367_v53 = vadd.f32 %v6466_v31, %v17171_v18  ;;  %v6455_v55 = vmul.f32 %v6439_v47, %v6380_v22  ;;  %10679 = vmatmul.msk.bf16.vlgmr.msra.gmra.mxu2 %vm471_vm1, %v15192_v26  ;;  %v15389_v8 = vadd.f32 %v5886_v23, %v3188_v5  ;;  %v17177_v18 = vld [vmem:[#allocation68_spill] sm:$0xff] }
 0x523   : > { %v15370_v9 = vadd.f32 %v6452_v52, %v15106_v36  ;;  %10682 = vmatmul.msk.bf16.vlgmr.msra.gmra.mxu1 %vm471_vm1, %v15192_v26  ;;  %v17172_v36 = vld [vmem:[#allocation37_spill] sm:$0xff] }
 0x524   : > { %v15377_v32 = vadd.f32 %v6455_v55, %v15110_v3  ;;  %10684 = vmatmul.msk.bf16.vlgmr.msra.gmra.mxu3 %vm471_vm1, %v15192_v26  ;;  %10685 = vmatmul.msk.bf16.vlgmr.msra.gmra.mxu0 %vm471_vm1, %v15192_v26  ;;  %v17175_v3 = vld [vmem:[#allocation22_spill] sm:$0xff]  ;;  %17176 = vst [vmem:[#allocation43_spill] sm:$0xff] %v15389_v8 }
 0x525   : > { %7036 = vmatpush.bf16.msra.mxu2 %v17172_v36  ;;  %7169 = vmatpush.bf16.msra.mxu1 %v17173_v41  ;;  %v6296_v43 = vpop.f32.mrf.mxu2 }
 0x526   : > { %7197 = vmatpush.bf16.msra.mxu3 %v17174_v30  ;;  %7211 = vmatpush.bf16.msra.mxu0 %v17175_v3  ;;  %v6449_v25 = vmul.f32 %v6433_v50, %v6296_v43  ;;  %v17179_v30 = vld [vmem:[#allocation70_spill] sm:$0xff] }
 0x527   : > { %v6366_v31 = vpop.f32.mrf.mxu3 }
 0x528   : > { %v6454_v39 = vmul.f32 %v6438_v40, %v6366_v31  ;;  %v6340_v52 = vpop.f32.mrf.mxu1  ;;  %v15392_v10 = vadd.f32 %v6449_v25, %v15137_v1  ;;  %v6440_v31 = vperm.slane %v15164_v34, 1  ;;  %v15408_v25 = vld [vmem:[%s16529_s4 + $0xa0] sm:$0xff] }
 0x529   : > { %v6468_v17 = vmul.f32 %v6436_v44, %v6340_v52  ;;  %v6382_v22 = vpop.f32.mrf.mxu0  ;;  %v6742_v44 = vperm.slane %v17118_v4, 2 }
 0x52a   : > { %v15395_v55 = vadd.f32 %v6454_v39, %v17177_v18  ;;  %v6471_v41 = vmul.f32 %v6439_v47, %v6382_v22  ;;  %v17186_v22 = vld [vmem:[#allocation23_spill] sm:$0xff] }
 0x52b   : > { %v15398_v36 = vadd.f32 %v6468_v17, %v17178_v54 }
 0x52c   : > { %v15401_v3 = vadd.f32 %v6471_v41, %v17179_v30  ;;  %v17180_v30 = vld [vmem:[#allocation32_spill] sm:$0xff] }
 0x52d   : > { %v6298_v43 = vpop.f32.mrf.mxu2 }
 0x52e   : > { %v6465_v23 = vmul.f32 %v6433_v50, %v6298_v43  ;;  %v6442_v43 = vperm.slane %v15196_v51, 1 }
 0x52f   : > { %v6368_v5 = vpop.f32.mrf.mxu3 }
 0x530   : > { %v6470_v8 = vmul.f32 %v6438_v40, %v6368_v5  ;;  %v6394_v1 = vpop.f32.mrf.mxu1  ;;  %v15411_v54 = vadd.f32 %v6465_v23, %v15183_v14  ;;  %v17183_v40 = vld [vmem:[#allocation46_spill] sm:$0xff]  ;;  %v17185_v14 = vld [vmem:[#allocation47_spill] sm:$0xff] }
 0x531   : > { %v6456_v47 = vmul.f32 %v6440_v31, %v6394_v1  ;;  %v6527_v41 = vpop.f32.mrf.mxu0  ;;  %v17188_v23 = vld [vmem:[#allocation26_spill] sm:$0xff] }
 0x532   : > { %v15414_v39 = vadd.f32 %v6470_v8, %v17180_v30  ;;  %v6758_v50 = vmul.f32 %v6742_v44, %v6527_v41  ;;  %10683 = vmatmul.msk.bf16.vlgmr.msrb.gmra.mxu2 %vm471_vm1, %v15192_v26  ;;  %v6437_v8 = vperm.slane %v17185_v14, 1  ;;  %v17189_v30 = vld [vmem:[#allocation75_spill] sm:$0xff] }
 0x533   : > { %v15417_v52 = vadd.f32 %v6456_v47, %v15198_v57  ;;  %10686 = vmatmul.msk.bf16.vlgmr.msrb.gmra.mxu1 %vm471_vm1, %v15192_v26  ;;  %7183 = vmatpush.bf16.msrb.mxu2 %v17186_v22  ;;  %v17187_v57 = vld [vmem:[#allocation24_spill] sm:$0xff] }
 0x534   : > { %17181 = vst [vmem:[#allocation60_spill] sm:$0xff] %v15414_v39  ;;  %v15424_v17 = vadd.f32 %v6758_v50, %v17183_v40  ;;  %10688 = vmatmul.msk.bf16.vlgmr.msrb.gmra.mxu3 %vm471_vm1, %v15192_v26  ;;  %10695 = vmatmul.msk.bf16.vlgmr.msrb.gmra.mxu0 %vm471_vm1, %v15408_v25 }
 0x535   : > { %17182 = vst [vmem:[#allocation61_spill] sm:$0xff] %v15417_v52  ;;  %7225 = vmatpush.bf16.msrb.mxu1 %v17187_v57  ;;  %v6352_v18 = vpop.f32.mrf.mxu2  ;;  %7253 = vmatpush.bf16.msrb.mxu3 %v17127_v37 }
 0x536   : > { %17184 = vst [vmem:[#allocation62_spill] sm:$0xff] %v15424_v17  ;;  %7267 = vmatpush.bf16.msrb.mxu0 %v17188_v23  ;;  %v6453_v5 = vmul.f32 %v6437_v8, %v6352_v18 }
 0x537   : > { %v6422_v1 = vpop.f32.mrf.mxu3 }
 0x538   : > { %v6458_v47 = vmul.f32 %v6442_v43, %v6422_v1  ;;  %v6396_v41 = vpop.f32.mrf.mxu1  ;;  %v15437_v50 = vadd.f32 %v6453_v5, %v17189_v30  ;;  %v17190_v1 = vld [vmem:[#allocation54_spill] sm:$0xff] }
 0x539   : > { %v6472_v40 = vmul.f32 %v6440_v31, %v6396_v41  ;;  %v6529_v14 = vpop.f32.mrf.mxu0  ;;  %v6743_v52 = vperm.slane %v17190_v1, 2  ;;  %v6746_v31 = vperm.slane %v14914_v61, 2  ;;  %v17191_v41 = vld [vmem:[#allocation78_spill] sm:$0xff] }
 0x53a   : > { %v15440_v22 = vadd.f32 %v6458_v47, %v15240_v28  ;;  %v6774_v57 = vmul.f32 %v6742_v44, %v6529_v14 }
 0x53b   : > { %v15443_v17 = vadd.f32 %v6472_v40, %v15243_v2 }
 0x53c   : > { %v15446_v37 = vadd.f32 %v6774_v57, %v15257_v38 }
 0x53d   : > { %v6354_v23 = vpop.f32.mrf.mxu2 }
 0x53e   : > { %v6469_v18 = vmul.f32 %v6437_v8, %v6354_v23 }
 0x53f   : > { %v6424_v51 = vpop.f32.mrf.mxu3 }
 0x540   : > { %v6474_v39 = vmul.f32 %v6442_v43, %v6424_v51  ;;  %v6541_v5 = vpop.f32.mrf.mxu1  ;;  %v15451_v30 = vadd.f32 %v6469_v18, %v17191_v41 }
 0x541   : > { %v6759_v28 = vmul.f32 %v6743_v52, %v6541_v5  ;;  %v6583_v44 = vpop.f32.mrf.mxu0 }
 0x542   : > { %v15454_v2 = vadd.f32 %v6474_v39, %v15266_v35  ;;  %v6762_v14 = vmul.f32 %v6746_v31, %v6583_v44  ;;  %10687 = vmatmul.msk.bf16.vlgmr.msra.gmra.mxu2 %vm471_vm1, %v15192_v26  ;;  %v6441_v35 = vperm.slane %v15269_v46, 1  ;;  %v6745_v26 = vperm.slane %v17143_v16, 2  ;;  %v17192_v39 = vld [vmem:[#allocation30_spill] sm:$0xff] }
 0x543   : > { %v15457_v38 = vadd.f32 %v6759_v28, %v15274_v59  ;;  %10696 = vmatmul.msk.bf16.vlgmr.msra.gmra.mxu1 %vm471_vm1, %v15408_v25  ;;  %7239 = vmatpush.bf16.msra.mxu2 %v17139_v21 }
 0x544   : > { %v15464_v51 = vadd.f32 %v6762_v14, %v15281_v48  ;;  %10698 = vmatmul.msk.bf16.vlgmr.msra.gmra.mxu3 %vm471_vm1, %v15408_v25  ;;  %10699 = vmatmul.msk.bf16.vlgmr.msra.gmra.mxu0 %vm471_vm1, %v15408_v25 }
 0x545   : > { %7281 = vmatpush.bf16.msra.mxu1 %v17140_v24  ;;  %v6408_v59 = vpop.f32.mrf.mxu2  ;;  %7309 = vmatpush.bf16.msra.mxu3 %v17144_v63 }
 0x546   : > { %7323 = vmatpush.bf16.msra.mxu0 %v17192_v39  ;;  %v6457_v48 = vmul.f32 %v6441_v35, %v6408_v59 }
 0x547   : > { %v6569_v8 = vpop.f32.mrf.mxu3 }
 0x548   : > { %v6761_v57 = vmul.f32 %v6745_v26, %v6569_v8  ;;  %v6543_v43 = vpop.f32.mrf.mxu1  ;;  %v15477_v23 = vadd.f32 %v6457_v48, %v15299_v20  ;;  %v6747_v8 = vperm.slane %v17151_v60, 2 }
 0x549   : > { %v6775_v47 = vmul.f32 %v6743_v52, %v6543_v43  ;;  %v6585_v40 = vpop.f32.mrf.mxu0  ;;  %v6750_v52 = vperm.slane %v17152_v42, 2 }
 0x54a   : > { %v15480_v18 = vadd.f32 %v6761_v57, %v15306_v12  ;;  %v6778_v5 = vmul.f32 %v6746_v31, %v6585_v40  ;;  %v17197_v40 = vld [vmem:[#allocation19_spill] sm:$0xff] }
 0x54b   : > { %v15483_v41 = vadd.f32 %v6775_v47, %v15310_v27  ;;  %v17196_v47 = vld [vmem:[#allocation35_spill] sm:$0xff] }
 0x54c   : > { %v15486_v28 = vadd.f32 %v6778_v5, %v15313_v49 }
 0x54d   : > { %v6410_v44 = vpop.f32.mrf.mxu2 }
 0x54e   : > { %v6473_v14 = vmul.f32 %v6441_v35, %v6410_v44 }
 0x54f   : > { %v6571_v59 = vpop.f32.mrf.mxu3 }
 0x550   : > { %v6777_v39 = vmul.f32 %v6745_v26, %v6571_v59  ;;  %v6597_v20 = vpop.f32.mrf.mxu1  ;;  %v15491_v48 = vadd.f32 %v6473_v14, %v15316_v15  ;;  %v6744_v15 = vperm.slane %v17157_v7, 2 }
 0x551   : > { %v6763_v12 = vmul.f32 %v6747_v8, %v6597_v20  ;;  %v6639_v31 = vpop.f32.mrf.mxu0 }
 0x552   : > { %v15494_v27 = vadd.f32 %v6777_v39, %v15321_v58  ;;  %v6766_v57 = vmul.f32 %v6750_v52, %v6639_v31  ;;  %10697 = vmatmul.msk.bf16.vlgmr.msrb.gmra.mxu2 %vm471_vm1, %v15408_v25  ;;  %v17193_v58 = vld [vmem:[#allocation33_spill] sm:$0xff]  ;;  %v17195_v39 = vld [vmem:[#allocation64_spill] sm:$0xff] }
 0x553   : > { %v15497_v49 = vadd.f32 %v6763_v12, %v15324_v6  ;;  %10700 = vmatmul.msk.bf16.vlgmr.msrb.gmra.mxu1 %vm471_vm1, %v15408_v25  ;;  %7295 = vmatpush.bf16.msrb.mxu2 %v17193_v58  ;;  %v17194_v6 = vld [vmem:[#allocation34_spill] sm:$0xff]  ;;  %v6749_v43 = vperm.slane %v17195_v39, 2 }
 0x554   : > { %v15504_v35 = vadd.f32 %v6766_v57, %v15333_v0  ;;  %10702 = vmatmul.msk.bf16.vlgmr.msrb.gmra.mxu3 %vm471_vm1, %v15408_v25  ;;  %10703 = vmatmul.msk.bf16.vlgmr.msrb.gmra.mxu0 %vm471_vm1, %v15408_v25 }
 0x555   : > { %7337 = vmatpush.bf16.msrb.mxu1 %v17194_v6  ;;  %v6555_v26 = vpop.f32.mrf.mxu2  ;;  %7365 = vmatpush.bf16.msrb.mxu3 %v17196_v47 }
 0x556   : > { %7470 = vmatpush.bf16.msrb.mxu0 %v17197_v40  ;;  %v6760_v0 = vmul.f32 %v6744_v15, %v6555_v26 }
 0x557   : > { %v6625_v5 = vpop.f32.mrf.mxu3 }
 0x558   : > { %v6765_v44 = vmul.f32 %v6749_v43, %v6625_v5  ;;  %v6599_v14 = vpop.f32.mrf.mxu1  ;;  %v15517_v59 = vadd.f32 %v6760_v0, %v15350_v11  ;;  %v6751_v5 = vperm.slane %v17169_v19, 2 }
 0x559   : > { %v6779_v20 = vmul.f32 %v6747_v8, %v6599_v14  ;;  %v6641_v12 = vpop.f32.mrf.mxu0  ;;  %v6754_v8 = vperm.slane %v15086_v45, 2  ;;  %v17202_v14 = vld [vmem:[#allocation22_spill] sm:$0xff] }
 0x55a   : > { %v15520_v31 = vadd.f32 %v6765_v44, %v15353_v33  ;;  %v6782_v57 = vmul.f32 %v6750_v52, %v6641_v12 }
 0x55b   : > { %v15523_v6 = vadd.f32 %v6779_v20, %v15356_v13 }
 0x55c   : > { %v15526_v47 = vadd.f32 %v6782_v57, %v15359_v62 }
 0x55d   : > { %v6557_v40 = vpop.f32.mrf.mxu2 }
 0x55e   : > { %v6776_v26 = vmul.f32 %v6744_v15, %v6557_v40  ;;  %v17201_v40 = vld [vmem:[#allocation21_spill] sm:$0xff] }
 0x55f   : > { %v6627_v39 = vpop.f32.mrf.mxu3 }
 0x560   : > { %v6781_v58 = vmul.f32 %v6749_v43, %v6627_v39  ;;  %v6653_v11 = vpop.f32.mrf.mxu1  ;;  %v15531_v0 = vadd.f32 %v6776_v26, %v15364_v56  ;;  %v6748_v56 = vperm.slane %v15102_v29, 2  ;;  %v17200_v39 = vld [vmem:[#allocation38_spill] sm:$0xff] }
 0x561   : > { %v6767_v33 = vmul.f32 %v6751_v5, %v6653_v11  ;;  %v6695_v52 = vpop.f32.mrf.mxu0  ;;  %v6753_v43 = vperm.slane %v17200_v39, 2 }
 0x562   : > { %v15534_v13 = vadd.f32 %v6781_v58, %v15367_v53  ;;  %v6770_v44 = vmul.f32 %v6754_v8, %v6695_v52  ;;  %10701 = vmatmul.msk.bf16.vlgmr.msra.gmra.mxu2 %vm471_vm1, %v15408_v25  ;;  %v17198_v53 = vld [vmem:[#allocation37_spill] sm:$0xff] }
 0x563   : > { %v15537_v62 = vadd.f32 %v6767_v33, %v15370_v9  ;;  %10704 = vmatmul.msk.bf16.vlgmr.msra.gmra.mxu1 %vm471_vm1, %v15408_v25  ;;  %7351 = vmatpush.bf16.msra.mxu2 %v17198_v53  ;;  %v17199_v9 = vld [vmem:[#allocation20_spill] sm:$0xff] }
 0x564   : > { %v15544_v15 = vadd.f32 %v6770_v44, %v15377_v32  ;;  %10706 = vmatmul.msk.bf16.vlgmr.msra.gmra.mxu3 %vm471_vm1, %v15408_v25  ;;  %10707 = vmatmul.msk.bf16.vlgmr.msra.gmra.mxu0 %vm471_vm1, %v15408_v25 }
 0x565   : > { %7484 = vmatpush.bf16.msra.mxu1 %v17199_v9  ;;  %v6611_v58 = vpop.f32.mrf.mxu2  ;;  %7512 = vmatpush.bf16.msra.mxu3 %v17201_v40 }
 0x566   : > { %7526 = vmatpush.bf16.msra.mxu0 %v17202_v14  ;;  %v6764_v32 = vmul.f32 %v6748_v56, %v6611_v58 }
 0x567   : > { %v6681_v20 = vpop.f32.mrf.mxu3 }
 0x568   : > { %v6769_v12 = vmul.f32 %v6753_v43, %v6681_v20  ;;  %v6655_v57 = vpop.f32.mrf.mxu1  ;;  %v15557_v26 = vadd.f32 %v6764_v32, %v15392_v10  ;;  %v6755_v20 = vperm.slane %v15164_v34, 2  ;;  %v17204_v32 = vld [vmem:[#allocation60_spill] sm:$0xff] }
 0x569   : > { %v6783_v11 = vmul.f32 %v6751_v5, %v6655_v57  ;;  %v6697_v33 = vpop.f32.mrf.mxu0  ;;  %v7057_v5 = vperm.slane %v17118_v4, 3 }
 0x56a   : > { %v15560_v52 = vadd.f32 %v6769_v12, %v15395_v55  ;;  %v6786_v44 = vmul.f32 %v6754_v8, %v6697_v33  ;;  %v15573_v55 = vld [vmem:[%s16529_s4 + $0xa8] sm:$0xff] }
 0x56b   : > { %v15563_v9 = vadd.f32 %v6783_v11, %v15398_v36  ;;  %v17211_v11 = vld [vmem:[#allocation23_spill] sm:$0xff]  ;;  %v17212_v33 = vld [vmem:[#allocation24_spill] sm:$0xff] }
 0x56c   : > { %v15566_v40 = vadd.f32 %v6786_v44, %v15401_v3 }
 0x56d   : > { %v6613_v14 = vpop.f32.mrf.mxu2 }
 0x56e   : > { %v6780_v58 = vmul.f32 %v6748_v56, %v6613_v14  ;;  %v17206_v14 = vld [vmem:[#allocation61_spill] sm:$0xff] }
 0x56f   : > { %v6683_v39 = vpop.f32.mrf.mxu3 }
 0x570   : > { %v6785_v53 = vmul.f32 %v6753_v43, %v6683_v39  ;;  %v6709_v10 = vpop.f32.mrf.mxu1  ;;  %v15576_v36 = vadd.f32 %v6780_v58, %v15411_v54  ;;  %v17208_v39 = vld [vmem:[#allocation62_spill] sm:$0xff]  ;;  %v17210_v54 = vld [vmem:[#allocation47_spill] sm:$0xff]  ;;  %v17213_v58 = vld [vmem:[#allocation72_spill] sm:$0xff] }
 0x571   : > { %v6771_v8 = vmul.f32 %v6755_v20, %v6709_v10  ;;  %v6842_v3 = vpop.f32.mrf.mxu0  ;;  %v6757_v10 = vperm.slane %v17213_v58, 2 }
 0x572   : > { %17203 = vst [vmem:[#allocation36_spill] sm:$0xff] %v15576_v36  ;;  %v15579_v12 = vadd.f32 %v6785_v53, %v17204_v32  ;;  %v7073_v56 = vmul.f32 %v7057_v5, %v6842_v3  ;;  %10705 = vmatmul.msk.bf16.vlgmr.msrb.gmra.mxu2 %vm471_vm1, %v15408_v25  ;;  %v6752_v53 = vperm.slane %v17210_v54, 2  ;;  %v17215_v3 = vld [vmem:[#allocation26_spill] sm:$0xff] }
 0x573   : > { %v15582_v57 = vadd.f32 %v6771_v8, %v17206_v14  ;;  %10708 = vmatmul.msk.bf16.vlgmr.msrb.gmra.mxu1 %vm471_vm1, %v15408_v25  ;;  %7498 = vmatpush.bf16.msrb.mxu2 %v17211_v11  ;;  %v17214_v8 = vld [vmem:[#allocation25_spill] sm:$0xff] }
 0x574   : > { %17205 = vst [vmem:[#allocation40_spill] sm:$0xff] %v15579_v12  ;;  %v15589_v43 = vadd.f32 %v7073_v56, %v17208_v39  ;;  %10710 = vmatmul.msk.bf16.vlgmr.msrb.gmra.mxu3 %vm471_vm1, %v15408_v25  ;;  %10717 = vmatmul.msk.bf16.vlgmr.msrb.gmra.mxu0 %vm471_vm1, %v15573_v55 }
 0x575   : > { %17207 = vst [vmem:[#allocation16_spill] sm:$0xff] %v15582_v57  ;;  %7540 = vmatpush.bf16.msrb.mxu1 %v17212_v33  ;;  %v6667_v44 = vpop.f32.mrf.mxu2  ;;  %7568 = vmatpush.bf16.msrb.mxu3 %v17214_v8 }
 0x576   : > { %17209 = vst [vmem:[#allocation44_spill] sm:$0xff] %v15589_v43  ;;  %7582 = vmatpush.bf16.msrb.mxu0 %v17215_v3  ;;  %v6768_v32 = vmul.f32 %v6752_v53, %v6667_v44 }
 0x577   : > { %v6737_v56 = vpop.f32.mrf.mxu3 }
 0x578   : > { %v6773_v14 = vmul.f32 %v6757_v10, %v6737_v56  ;;  %v6711_v39 = vpop.f32.mrf.mxu1  ;;  %v15602_v43 = vadd.f32 %v6768_v32, %v15437_v50  ;;  %v7058_v56 = vperm.slane %v17190_v1, 3 }
 0x579   : > { %v6787_v57 = vmul.f32 %v6755_v20, %v6711_v39  ;;  %v6844_v54 = vpop.f32.mrf.mxu0  ;;  %v7061_v20 = vperm.slane %v14914_v61, 3 }
 0x57a   : > { %v15605_v11 = vadd.f32 %v6773_v14, %v15440_v22  ;;  %v7089_v33 = vmul.f32 %v7057_v5, %v6844_v54 }
 0x57b   : > { %v15608_v12 = vadd.f32 %v6787_v57, %v15443_v17 }
 0x57c   : > { %v15611_v8 = vadd.f32 %v7089_v33, %v15446_v37 }
 0x57d   : > { %v6669_v3 = vpop.f32.mrf.mxu2 }
 0x57e   : > { %v6784_v44 = vmul.f32 %v6752_v53, %v6669_v3 }
 0x57f   : > { %v6739_v58 = vpop.f32.mrf.mxu3 }
 0x580   : > { %v6789_v36 = vmul.f32 %v6757_v10, %v6739_v58  ;;  %v6856_v50 = vpop.f32.mrf.mxu1  ;;  %v15616_v32 = vadd.f32 %v6784_v44, %v15451_v30  ;;  %v6756_v30 = vperm.slane %v15269_v46, 2 }
 0x581   : > { %v7074_v22 = vmul.f32 %v7058_v56, %v6856_v50  ;;  %v6898_v5 = vpop.f32.mrf.mxu0 }
 0x582   : > { %v15619_v17 = vadd.f32 %v6789_v36, %v15454_v2  ;;  %v7077_v57 = vmul.f32 %v7061_v20, %v6898_v5  ;;  %10709 = vmatmul.msk.bf16.vlgmr.msra.gmra.mxu2 %vm471_vm1, %v15408_v25  ;;  %v7060_v25 = vperm.slane %v17143_v16, 3 }
 0x583   : > { %v15622_v37 = vadd.f32 %v7074_v22, %v15457_v38  ;;  %10718 = vmatmul.msk.bf16.vlgmr.msra.gmra.mxu1 %vm471_vm1, %v15573_v55  ;;  %7554 = vmatpush.bf16.msra.mxu2 %v17139_v21  ;;  %v17216_v38 = vld [vmem:[#allocation30_spill] sm:$0xff] }
 0x584   : > { %v15629_v54 = vadd.f32 %v7077_v57, %v15464_v51  ;;  %10720 = vmatmul.msk.bf16.vlgmr.msra.gmra.mxu3 %vm471_vm1, %v15573_v55  ;;  %10721 = vmatmul.msk.bf16.vlgmr.msra.gmra.mxu0 %vm471_vm1, %v15573_v55 }
 0x585   : > { %7596 = vmatpush.bf16.msra.mxu1 %v17140_v24  ;;  %v6723_v2 = vpop.f32.mrf.mxu2  ;;  %7624 = vmatpush.bf16.msra.mxu3 %v17144_v63 }
 0x586   : > { %7638 = vmatpush.bf16.msra.mxu0 %v17216_v38  ;;  %v6772_v51 = vmul.f32 %v6756_v30, %v6723_v2  ;;  %v7062_v2 = vperm.slane %v17151_v60, 3 }
 0x587   : > { %v6884_v36 = vpop.f32.mrf.mxu3 }
 0x588   : > { %v7076_v53 = vmul.f32 %v7060_v25, %v6884_v36  ;;  %v6858_v33 = vpop.f32.mrf.mxu1  ;;  %v15642_v58 = vadd.f32 %v6772_v51, %v15477_v23 }
 0x589   : > { %v7090_v10 = vmul.f32 %v7058_v56, %v6858_v33  ;;  %v6900_v3 = vpop.f32.mrf.mxu0  ;;  %v7065_v56 = vperm.slane %v17152_v42, 3  ;;  %v17219_v33 = vld [vmem:[#allocation64_spill] sm:$0xff] }
 0x58a   : > { %v15645_v14 = vadd.f32 %v7076_v53, %v15480_v18  ;;  %v7093_v39 = vmul.f32 %v7061_v20, %v6900_v3  ;;  %v17220_v3 = vld [vmem:[#allocation35_spill] sm:$0xff] }
 0x58b   : > { %v15648_v44 = vadd.f32 %v7090_v10, %v15483_v41  ;;  %v7064_v10 = vperm.slane %v17219_v33, 3 }
 0x58c   : > { %v15651_v50 = vadd.f32 %v7093_v39, %v15486_v28  ;;  %v17221_v39 = vld [vmem:[#allocation19_spill] sm:$0xff] }
 0x58d   : > { %v6725_v22 = vpop.f32.mrf.mxu2 }
 0x58e   : > { %v6788_v5 = vmul.f32 %v6756_v30, %v6725_v22 }
 0x58f   : > { %v6886_v57 = vpop.f32.mrf.mxu3 }
 0x590   : > { %v7092_v36 = vmul.f32 %v7060_v25, %v6886_v57  ;;  %v6912_v23 = vpop.f32.mrf.mxu1  ;;  %v15656_v51 = vadd.f32 %v6788_v5, %v15491_v48  ;;  %v7059_v48 = vperm.slane %v17157_v7, 3 }
 0x591   : > { %v7078_v18 = vmul.f32 %v7062_v2, %v6912_v23  ;;  %v6954_v20 = vpop.f32.mrf.mxu0 }
 0x592   : > { %v15659_v41 = vadd.f32 %v7092_v36, %v15494_v27  ;;  %v7081_v53 = vmul.f32 %v7065_v56, %v6954_v20  ;;  %10719 = vmatmul.msk.bf16.vlgmr.msrb.gmra.mxu2 %vm471_vm1, %v15573_v55  ;;  %v17217_v27 = vld [vmem:[#allocation33_spill] sm:$0xff] }
 0x593   : > { %v15662_v28 = vadd.f32 %v7078_v18, %v15497_v49  ;;  %10722 = vmatmul.msk.bf16.vlgmr.msrb.gmra.mxu1 %vm471_vm1, %v15573_v55  ;;  %7610 = vmatpush.bf16.msrb.mxu2 %v17217_v27  ;;  %v17218_v49 = vld [vmem:[#allocation34_spill] sm:$0xff] }
 0x594   : > { %v15669_v30 = vadd.f32 %v7081_v53, %v15504_v35  ;;  %10724 = vmatmul.msk.bf16.vlgmr.msrb.gmra.mxu3 %vm471_vm1, %v15573_v55  ;;  %10725 = vmatmul.msk.bf16.vlgmr.msrb.gmra.mxu0 %vm471_vm1, %v15573_v55 }
 0x595   : > { %7652 = vmatpush.bf16.msrb.mxu1 %v17218_v49  ;;  %v6870_v25 = vpop.f32.mrf.mxu2  ;;  %7680 = vmatpush.bf16.msrb.mxu3 %v17220_v3 }
 0x596   : > { %7785 = vmatpush.bf16.msrb.mxu0 %v17221_v39  ;;  %v7075_v35 = vmul.f32 %v7059_v48, %v6870_v25 }
 0x597   : > { %v6940_v22 = vpop.f32.mrf.mxu3 }
 0x598   : > { %v7080_v5 = vmul.f32 %v7064_v10, %v6940_v22  ;;  %v6914_v57 = vpop.f32.mrf.mxu1  ;;  %v15682_v36 = vadd.f32 %v7075_v35, %v15517_v59  ;;  %v7066_v22 = vperm.slane %v17169_v19, 3 }
 0x599   : > { %v7094_v23 = vmul.f32 %v7062_v2, %v6914_v57  ;;  %v6956_v18 = vpop.f32.mrf.mxu0  ;;  %v7069_v2 = vperm.slane %v15086_v45, 3  ;;  %v17226_v57 = vld [vmem:[#allocation22_spill] sm:$0xff] }
 0x59a   : > { %v15685_v20 = vadd.f32 %v7080_v5, %v15520_v31  ;;  %v7097_v53 = vmul.f32 %v7065_v56, %v6956_v18 }
 0x59b   : > { %v15688_v49 = vadd.f32 %v7094_v23, %v15523_v6 }
 0x59c   : > { %v15691_v3 = vadd.f32 %v7097_v53, %v15526_v47 }
 0x59d   : > { %v6872_v39 = vpop.f32.mrf.mxu2 }
 0x59e   : > { %v7091_v25 = vmul.f32 %v7059_v48, %v6872_v39  ;;  %v17225_v39 = vld [vmem:[#allocation21_spill] sm:$0xff] }
 0x59f   : > { %v6942_v33 = vpop.f32.mrf.mxu3 }
 0x5a0   : > { %v7096_v27 = vmul.f32 %v7064_v10, %v6942_v33  ;;  %v6968_v59 = vpop.f32.mrf.mxu1  ;;  %v15696_v35 = vadd.f32 %v7091_v25, %v15531_v0  ;;  %v7063_v0 = vperm.slane %v15102_v29, 3  ;;  %v17224_v33 = vld [vmem:[#allocation38_spill] sm:$0xff] }
 0x5a1   : > { %v7082_v31 = vmul.f32 %v7066_v22, %v6968_v59  ;;  %v7010_v56 = vpop.f32.mrf.mxu0  ;;  %v7068_v10 = vperm.slane %v17224_v33, 3 }
 0x5a2   : > { %v15699_v6 = vadd.f32 %v7096_v27, %v15534_v13  ;;  %v7085_v5 = vmul.f32 %v7069_v2, %v7010_v56  ;;  %10723 = vmatmul.msk.bf16.vlgmr.msra.gmra.mxu2 %vm471_vm1, %v15573_v55  ;;  %v17222_v13 = vld [vmem:[#allocation37_spill] sm:$0xff] }
 0x5a3   : > { %v15702_v47 = vadd.f32 %v7082_v31, %v15537_v62  ;;  %10726 = vmatmul.msk.bf16.vlgmr.msra.gmra.mxu1 %vm471_vm1, %v15573_v55  ;;  %7666 = vmatpush.bf16.msra.mxu2 %v17222_v13  ;;  %v17223_v62 = vld [vmem:[#allocation20_spill] sm:$0xff] }
 0x5a4   : > { %v15709_v48 = vadd.f32 %v7085_v5, %v15544_v15  ;;  %10728 = vmatmul.msk.bf16.vlgmr.msra.gmra.mxu3 %vm471_vm1, %v15573_v55  ;;  %10729 = vmatmul.msk.bf16.vlgmr.msra.gmra.mxu0 %vm471_vm1, %v15573_v55 }
 0x5a5   : > { %7799 = vmatpush.bf16.msra.mxu1 %v17223_v62  ;;  %v6926_v27 = vpop.f32.mrf.mxu2  ;;  %7827 = vmatpush.bf16.msra.mxu3 %v17225_v39 }
 0x5a6   : > { %7841 = vmatpush.bf16.msra.mxu0 %v17226_v57  ;;  %v7079_v15 = vmul.f32 %v7063_v0, %v6926_v27 }
 0x5a7   : > { %v6996_v23 = vpop.f32.mrf.mxu3 }
 0x5a8   : > { %v7084_v18 = vmul.f32 %v7068_v10, %v6996_v23  ;;  %v6970_v53 = vpop.f32.mrf.mxu1  ;;  %v15722_v25 = vadd.f32 %v7079_v15, %v15557_v26  ;;  %v7070_v23 = vperm.slane %v15164_v34, 3 }
 0x5a9   : > { %v7098_v59 = vmul.f32 %v7066_v22, %v6970_v53  ;;  %v7012_v31 = vpop.f32.mrf.mxu0  ;;  %v7372_v22 = vperm.slane %v17118_v4, 4 }
 0x5aa   : > { %v15725_v56 = vadd.f32 %v7084_v18, %v15560_v52  ;;  %v7101_v5 = vmul.f32 %v7069_v2, %v7012_v31  ;;  %v15738_v52 = vld [vmem:[%s16529_s4 + $0xb0] sm:$0xff] }
 0x5ab   : > { %v15728_v62 = vadd.f32 %v7098_v59, %v15563_v9  ;;  %v17227_v2 = vld [vmem:[#allocation36_spill] sm:$0xff] }
 0x5ac   : > { %v15731_v39 = vadd.f32 %v7101_v5, %v15566_v40  ;;  %v17229_v18 = vld [vmem:[#allocation40_spill] sm:$0xff]  ;;  %v17236_v5 = vld [vmem:[#allocation23_spill] sm:$0xff] }
 0x5ad   : > { %v6928_v57 = vpop.f32.mrf.mxu2 }
 0x5ae   : > { %v7095_v27 = vmul.f32 %v7063_v0, %v6928_v57  ;;  %v17231_v57 = vld [vmem:[#allocation16_spill] sm:$0xff] }
 0x5af   : > { %v6998_v33 = vpop.f32.mrf.mxu3 }
 0x5b0   : > { %v7100_v13 = vmul.f32 %v7068_v10, %v6998_v33  ;;  %v7024_v26 = vpop.f32.mrf.mxu1  ;;  %v15741_v9 = vadd.f32 %v7095_v27, %v17227_v2  ;;  %v17233_v33 = vld [vmem:[#allocation44_spill] sm:$0xff] }
 0x5b1   : > { %v7086_v15 = vmul.f32 %v7070_v23, %v7024_v26  ;;  %v7157_v40 = vpop.f32.mrf.mxu0  ;;  %v17237_v27 = vld [vmem:[#allocation24_spill] sm:$0xff] }
 0x5b2   : > { %17228 = vst [vmem:[#allocation18_spill] sm:$0xff] %v15741_v9  ;;  %v15744_v53 = vadd.f32 %v7100_v13, %v17229_v18  ;;  %v7388_v0 = vmul.f32 %v7372_v22, %v7157_v40  ;;  %10727 = vmatmul.msk.bf16.vlgmr.msrb.gmra.mxu2 %vm471_vm1, %v15573_v55  ;;  %v17235_v13 = vld [vmem:[#allocation47_spill] sm:$0xff]  ;;  %v17238_v2 = vld [vmem:[#allocation72_spill] sm:$0xff]  ;;  %v17239_v40 = vld [vmem:[#allocation25_spill] sm:$0xff] }
 0x5b3   : > { %v15747_v59 = vadd.f32 %v7086_v15, %v17231_v57  ;;  %10730 = vmatmul.msk.bf16.vlgmr.msrb.gmra.mxu1 %vm471_vm1, %v15573_v55  ;;  %v7067_v31 = vperm.slane %v17235_v13, 3  ;;  %7813 = vmatpush.bf16.msrb.mxu2 %v17236_v5  ;;  %v7072_v15 = vperm.slane %v17238_v2, 3  ;;  %v17240_v18 = vld [vmem:[#allocation26_spill] sm:$0xff] }
 0x5b4   : > { %17230 = vst [vmem:[#allocation65_spill] sm:$0xff] %v15744_v53  ;;  %v15754_v10 = vadd.f32 %v7388_v0, %v17233_v33  ;;  %10732 = vmatmul.msk.bf16.vlgmr.msrb.gmra.mxu3 %vm471_vm1, %v15573_v55  ;;  %10739 = vmatmul.msk.bf16.vlgmr.msrb.gmra.mxu0 %vm471_vm1, %v15738_v52 }
 0x5b5   : > { %17232 = vst [vmem:[#allocation66_spill] sm:$0xff] %v15747_v59  ;;  %7855 = vmatpush.bf16.msrb.mxu1 %v17237_v27  ;;  %v6982_v26 = vpop.f32.mrf.mxu2  ;;  %7883 = vmatpush.bf16.msrb.mxu3 %v17239_v40 }
 0x5b6   : > { %17234 = vst [vmem:[#allocation67_spill] sm:$0xff] %v15754_v10  ;;  %7897 = vmatpush.bf16.msrb.mxu0 %v17240_v18  ;;  %v7083_v0 = vmul.f32 %v7067_v31, %v6982_v26 }
 0x5b7   : > { %v7052_v57 = vpop.f32.mrf.mxu3 }
 0x5b8   : > { %v7088_v33 = vmul.f32 %v7072_v15, %v7052_v57  ;;  %v7026_v10 = vpop.f32.mrf.mxu1  ;;  %v15767_v59 = vadd.f32 %v7083_v0, %v15602_v43  ;;  %v7373_v57 = vperm.slane %v17190_v1, 4 }
 0x5b9   : > { %v7102_v53 = vmul.f32 %v7070_v23, %v7026_v10  ;;  %v7159_v13 = vpop.f32.mrf.mxu0  ;;  %v7376_v23 = vperm.slane %v14914_v61, 4 }
 0x5ba   : > { %v15770_v5 = vadd.f32 %v7088_v33, %v15605_v11  ;;  %v7404_v27 = vmul.f32 %v7372_v22, %v7159_v13 }
 0x5bb   : > { %v15773_v9 = vadd.f32 %v7102_v53, %v15608_v12 }
 0x5bc   : > { %v15776_v40 = vadd.f32 %v7404_v27, %v15611_v8 }
 0x5bd   : > { %v6984_v18 = vpop.f32.mrf.mxu2 }
 0x5be   : > { %v7099_v26 = vmul.f32 %v7067_v31, %v6984_v18 }
 0x5bf   : > { %v7054_v2 = vpop.f32.mrf.mxu3 }
 0x5c0   : > { %v7104_v4 = vmul.f32 %v7072_v15, %v7054_v2  ;;  %v7171_v43 = vpop.f32.mrf.mxu1  ;;  %v15781_v10 = vadd.f32 %v7099_v26, %v15616_v32 }
 0x5c1   : > { %v7389_v11 = vmul.f32 %v7373_v57, %v7171_v43  ;;  %v7213_v22 = vpop.f32.mrf.mxu0 }
 0x5c2   : > { %v15784_v12 = vadd.f32 %v7104_v4, %v15619_v17  ;;  %v7392_v53 = vmul.f32 %v7376_v23, %v7213_v22  ;;  %10731 = vmatmul.msk.bf16.vlgmr.msra.gmra.mxu2 %vm471_vm1, %v15573_v55  ;;  %v7071_v4 = vperm.slane %v15269_v46, 3  ;;  %v7375_v55 = vperm.slane %v17143_v16, 4 }
 0x5c3   : > { %v15787_v8 = vadd.f32 %v7389_v11, %v15622_v37  ;;  %10740 = vmatmul.msk.bf16.vlgmr.msra.gmra.mxu1 %vm471_vm1, %v15738_v52  ;;  %7869 = vmatpush.bf16.msra.mxu2 %v17139_v21 }
 0x5c4   : > { %v15794_v13 = vadd.f32 %v7392_v53, %v15629_v54  ;;  %10742 = vmatmul.msk.bf16.vlgmr.msra.gmra.mxu3 %vm471_vm1, %v15738_v52  ;;  %10743 = vmatmul.msk.bf16.vlgmr.msra.gmra.mxu0 %vm471_vm1, %v15738_v52  ;;  %v7377_v53 = vperm.slane %v17151_v60, 4 }
 0x5c5   : > { %7911 = vmatpush.bf16.msra.mxu1 %v17140_v24  ;;  %v7038_v32 = vpop.f32.mrf.mxu2  ;;  %7939 = vmatpush.bf16.msra.mxu3 %v17144_v63 }
 0x5c6   : > { %7953 = vmatpush.bf16.msra.mxu0 %v17216_v38  ;;  %v7087_v17 = vmul.f32 %v7071_v4, %v7038_v32 }
 0x5c7   : > { %v7199_v37 = vpop.f32.mrf.mxu3 }
 0x5c8   : > { %v7391_v54 = vmul.f32 %v7375_v55, %v7199_v37  ;;  %v7173_v31 = vpop.f32.mrf.mxu1  ;;  %v15807_v27 = vadd.f32 %v7087_v17, %v15642_v58 }
 0x5c9   : > { %v7405_v2 = vmul.f32 %v7373_v57, %v7173_v31  ;;  %v7215_v15 = vpop.f32.mrf.mxu0  ;;  %v7380_v57 = vperm.slane %v17152_v42, 4 }
 0x5ca   : > { %v15810_v18 = vadd.f32 %v7391_v54, %v15645_v14  ;;  %v7408_v0 = vmul.f32 %v7376_v23, %v7215_v15  ;;  %v17243_v54 = vld [vmem:[#allocation64_spill] sm:$0xff]  ;;  %v17245_v15 = vld [vmem:[#allocation19_spill] sm:$0xff] }
 0x5cb   : > { %v15813_v33 = vadd.f32 %v7405_v2, %v15648_v44  ;;  %v7379_v31 = vperm.slane %v17243_v54, 4  ;;  %v17244_v2 = vld [vmem:[#allocation35_spill] sm:$0xff] }
 0x5cc   : > { %v15816_v26 = vadd.f32 %v7408_v0, %v15651_v50 }
 0x5cd   : > { %v7040_v43 = vpop.f32.mrf.mxu2 }
 0x5ce   : > { %v7103_v11 = vmul.f32 %v7071_v4, %v7040_v43 }
 0x5cf   : > { %v7201_v22 = vpop.f32.mrf.mxu3 }
 0x5d0   : > { %v7407_v32 = vmul.f32 %v7375_v55, %v7201_v22  ;;  %v7227_v58 = vpop.f32.mrf.mxu1  ;;  %v15821_v17 = vadd.f32 %v7103_v11, %v15656_v51  ;;  %v7374_v51 = vperm.slane %v17157_v7, 4 }
 0x5d1   : > { %v7393_v14 = vmul.f32 %v7377_v53, %v7227_v58  ;;  %v7269_v23 = vpop.f32.mrf.mxu0 }
 0x5d2   : > { %v15824_v44 = vadd.f32 %v7407_v32, %v15659_v41  ;;  %v7396_v37 = vmul.f32 %v7380_v57, %v7269_v23  ;;  %10741 = vmatmul.msk.bf16.vlgmr.msrb.gmra.mxu2 %vm471_vm1, %v15738_v52  ;;  %v17241_v41 = vld [vmem:[#allocation33_spill] sm:$0xff] }
 0x5d3   : > { %v15827_v50 = vadd.f32 %v7393_v14, %v15662_v28  ;;  %10744 = vmatmul.msk.bf16.vlgmr.msrb.gmra.mxu1 %vm471_vm1, %v15738_v52  ;;  %7925 = vmatpush.bf16.msrb.mxu2 %v17241_v41  ;;  %v17242_v28 = vld [vmem:[#allocation34_spill] sm:$0xff] }
 0x5d4   : > { %v15834_v4 = vadd.f32 %v7396_v37, %v15669_v30  ;;  %10746 = vmatmul.msk.bf16.vlgmr.msrb.gmra.mxu3 %vm471_vm1, %v15738_v52  ;;  %10747 = vmatmul.msk.bf16.vlgmr.msrb.gmra.mxu0 %vm471_vm1, %v15738_v52 }
 0x5d5   : > { %7967 = vmatpush.bf16.msrb.mxu1 %v17242_v28  ;;  %v7185_v55 = vpop.f32.mrf.mxu2  ;;  %7995 = vmatpush.bf16.msrb.mxu3 %v17244_v2 }
 0x5d6   : > { %8100 = vmatpush.bf16.msrb.mxu0 %v17245_v15  ;;  %v7390_v30 = vmul.f32 %v7374_v51, %v7185_v55  ;;  %v8398_v55 = vld [vmem:[%s16530_s5 + $0x28] sm:$0xff] }
 0x5d7   : > { %v7255_v0 = vpop.f32.mrf.mxu3  ;;  %8406 = vperm.xlu0 %11566, %v8398_v55   ;;  %v17248_v55 = vld [vmem:[#allocation38_spill] sm:$0xff] }
 0x5d8   : > { %v7395_v43 = vmul.f32 %v7379_v31, %v7255_v0  ;;  %v7229_v11 = vpop.f32.mrf.mxu1  ;;  %v15847_v22 = vadd.f32 %v7390_v30, %v15682_v36 }
 0x5d9   : > { %v7409_v32 = vmul.f32 %v7377_v53, %v7229_v11  ;;  %v7271_v58 = vpop.f32.mrf.mxu0  ;;  %v7381_v53 = vperm.slane %v17169_v19, 4 }
 0x5da   : > { %v15850_v14 = vadd.f32 %v7395_v43, %v15685_v20  ;;  %v7412_v23 = vmul.f32 %v7380_v57, %v7271_v58  ;;  %v7384_v57 = vperm.slane %v15086_v45, 4 }
 0x5db   : > { %v15853_v37 = vadd.f32 %v7409_v32, %v15688_v49 }
 0x5dc   : > { %v15856_v2 = vadd.f32 %v7412_v23, %v15691_v3 }
 0x5dd   : > { %v7187_v15 = vpop.f32.mrf.mxu2 }
 0x5de   : > { %v7406_v36 = vmul.f32 %v7374_v51, %v7187_v15  ;;  %v17249_v15 = vld [vmem:[#allocation21_spill] sm:$0xff] }
 0x5df   : > { %v7257_v30 = vpop.f32.mrf.mxu3 }
 0x5e0   : > { %v7411_v0 = vmul.f32 %v7379_v31, %v7257_v30  ;;  %v7283_v20 = vpop.f32.mrf.mxu1  ;;  %v15864_v49 = vadd.f32 %v7406_v36, %v15696_v35  ;;  %v8473_v35 = vld [vmem:[%s16534_s9 + $0x10] sm:$0xff]  ;;  %v17250_v36 = vld [vmem:[#allocation22_spill] sm:$0xff] }
 0x5e1   : > { %v7397_v43 = vmul.f32 %v7381_v53, %v7283_v20  ;;  %v7325_v3 = vpop.f32.mrf.mxu0  ;;  %v17247_v31 = vld [vmem:[#allocation20_spill] sm:$0xff]  ;;  %8477 = vperm.xlu0 %11566, %v8473_v35   ;;  %v8474_v35 = vld [vmem:[%s16534_s9 + $0x18] sm:$0xff] }
 0x5e2   : > { %v15867_v11 = vadd.f32 %v7411_v0, %v15699_v6  ;;  %v7400_v32 = vmul.f32 %v7384_v57, %v7325_v3  ;;  %10745 = vmatmul.msk.bf16.vlgmr.msra.gmra.mxu2 %vm471_vm1, %v15738_v52  ;;  %v7378_v6 = vperm.slane %v15102_v29, 4  ;;  %8482 = vperm.xlu1 %11567, %v8474_v35   ;;  %v17257_v35 = vld [vmem:[#allocation66_spill] sm:$0xff] }
 0x5e3   : > { %v15870_v58 = vadd.f32 %v7397_v43, %v15702_v47  ;;  %10748 = vmatmul.msk.bf16.vlgmr.msra.gmra.mxu1 %vm471_vm1, %v15738_v52  ;;  %v17246_v47 = vld [vmem:[#allocation37_spill] sm:$0xff] }
 0x5e4   : > { %v15877_v51 = vadd.f32 %v7400_v32, %v15709_v48  ;;  %10750 = vmatmul.msk.bf16.vlgmr.msra.gmra.mxu3 %vm471_vm1, %v15738_v52  ;;  %10751 = vmatmul.msk.bf16.vlgmr.msra.gmra.mxu0 %vm471_vm1, %v15738_v52  ;;  %v7383_v48 = vperm.slane %v17248_v55, 4 }
 0x5e5   : > { %7981 = vmatpush.bf16.msra.mxu2 %v17246_v47  ;;  %8114 = vmatpush.bf16.msra.mxu1 %v17247_v31  ;;  %v7241_v23 = vpop.f32.mrf.mxu2 }
 0x5e6   : > { %8142 = vmatpush.bf16.msra.mxu3 %v17249_v15  ;;  %8156 = vmatpush.bf16.msra.mxu0 %v17250_v36  ;;  %v7394_v30 = vmul.f32 %v7378_v6, %v7241_v23 }
 0x5e7   : > { %v7311_v0 = vpop.f32.mrf.mxu3 }
 0x5e8   : > { %v7399_v20 = vmul.f32 %v7383_v48, %v7311_v0  ;;  %v7285_v43 = vpop.f32.mrf.mxu1  ;;  %v15893_v3 = vadd.f32 %v7394_v30, %v15722_v25  ;;  %v17252_v0 = vld [vmem:[#allocation50_spill] sm:$0xff] }
 0x5e9   : > { %v7413_v32 = vmul.f32 %v7381_v53, %v7285_v43  ;;  %v7327_v29 = vpop.f32.mrf.mxu0  ;;  %v7385_v53 = vperm.slane %v15164_v34, 4 }
 0x5ea   : > { %v15896_v47 = vadd.f32 %v7399_v20, %v15725_v56  ;;  %v7416_v31 = vmul.f32 %v7384_v57, %v7327_v29  ;;  %v7687_v29 = vperm.slane %v17252_v0, 5 }
 0x5eb   : > { %v15899_v55 = vadd.f32 %v7413_v32, %v15728_v62  ;;  %v15912_v62 = vld [vmem:[%s16529_s4 + $0xb8] sm:$0xff] }
 0x5ec   : > { %v15902_v15 = vadd.f32 %v7416_v31, %v15731_v39  ;;  %v17253_v39 = vld [vmem:[#allocation18_spill] sm:$0xff]  ;;  %v17255_v32 = vld [vmem:[#allocation65_spill] sm:$0xff] }
 0x5ed   : > { %v7243_v23 = vpop.f32.mrf.mxu2 }
 0x5ee   : > { %17251 = vst [vmem:[#allocation39_spill] sm:$0xff] %v15902_v15  ;;  %v7410_v25 = vmul.f32 %v7378_v6, %v7243_v23 }
 0x5ef   : > { %v7313_v36 = vpop.f32.mrf.mxu3 }
 0x5f0   : > { %v7415_v30 = vmul.f32 %v7383_v48, %v7313_v36  ;;  %v7339_v56 = vpop.f32.mrf.mxu1  ;;  %v15915_v57 = vadd.f32 %v7410_v25, %v17253_v39  ;;  %v17259_v48 = vld [vmem:[#allocation67_spill] sm:$0xff]  ;;  %v17263_v39 = vld [vmem:[#allocation24_spill] sm:$0xff] }
 0x5f1   : > { %v7401_v20 = vmul.f32 %v7385_v53, %v7339_v56  ;;  %v7472_v43 = vpop.f32.mrf.mxu0  ;;  %v17261_v25 = vld [vmem:[#allocation47_spill] sm:$0xff] }
 0x5f2   : > { %17254 = vst [vmem:[#allocation49_spill] sm:$0xff] %v15915_v57  ;;  %v15918_v31 = vadd.f32 %v7415_v30, %v17255_v32  ;;  %v7703_v6 = vmul.f32 %v7687_v29, %v7472_v43  ;;  %10749 = vmatmul.msk.bf16.vlgmr.msrb.gmra.mxu2 %vm471_vm1, %v15738_v52  ;;  %v7382_v30 = vperm.slane %v17261_v25, 4  ;;  %v17262_v56 = vld [vmem:[#allocation23_spill] sm:$0xff]  ;;  %v17264_v43 = vld [vmem:[#allocation72_spill] sm:$0xff] }
 0x5f3   : > { %v15921_v23 = vadd.f32 %v7401_v20, %v17257_v35  ;;  %10752 = vmatmul.msk.bf16.vlgmr.msrb.gmra.mxu1 %vm471_vm1, %v15738_v52  ;;  %8128 = vmatpush.bf16.msrb.mxu2 %v17262_v56  ;;  %v7387_v32 = vperm.slane %v17264_v43, 4  ;;  %v17265_v35 = vld [vmem:[#allocation25_spill] sm:$0xff] }
 0x5f4   : > { %17256 = vst [vmem:[#allocation68_spill] sm:$0xff] %v15918_v31  ;;  %v15928_v36 = vadd.f32 %v7703_v6, %v17259_v48  ;;  %10754 = vmatmul.msk.bf16.vlgmr.msrb.gmra.mxu3 %vm471_vm1, %v15738_v52  ;;  %10761 = vmatmul.msk.bf16.vlgmr.msrb.gmra.mxu0 %vm471_vm1, %v15912_v62 }
 0x5f5   : > { %17258 = vst [vmem:[#allocation69_spill] sm:$0xff] %v15921_v23  ;;  %8170 = vmatpush.bf16.msrb.mxu1 %v17263_v39  ;;  %v7297_v20 = vpop.f32.mrf.mxu2  ;;  %8198 = vmatpush.bf16.msrb.mxu3 %v17265_v35  ;;  %v17266_v23 = vld [vmem:[#allocation26_spill] sm:$0xff] }
 0x5f6   : > { %17260 = vst [vmem:[#allocation70_spill] sm:$0xff] %v15928_v36  ;;  %8212 = vmatpush.bf16.msrb.mxu0 %v17266_v23  ;;  %v7398_v6 = vmul.f32 %v7382_v30, %v7297_v20 }
 0x5f7   : > { %v7367_v48 = vpop.f32.mrf.mxu3 }
 0x5f8   : > { %v7403_v36 = vmul.f32 %v7387_v32, %v7367_v48  ;;  %v7341_v31 = vpop.f32.mrf.mxu1  ;;  %v15941_v57 = vadd.f32 %v7398_v6, %v15767_v59  ;;  %v7688_v48 = vperm.slane %v17190_v1, 5 }
 0x5f9   : > { %v7417_v0 = vmul.f32 %v7385_v53, %v7341_v31  ;;  %v7474_v25 = vpop.f32.mrf.mxu0  ;;  %v7691_v53 = vperm.slane %v14914_v61, 5 }
 0x5fa   : > { %v15944_v56 = vadd.f32 %v7403_v36, %v15770_v5  ;;  %v7719_v39 = vmul.f32 %v7687_v29, %v7474_v25 }
 0x5fb   : > { %v15947_v34 = vadd.f32 %v7417_v0, %v15773_v9 }
 0x5fc   : > { %v15950_v35 = vadd.f32 %v7719_v39, %v15776_v40 }
 0x5fd   : > { %v7299_v23 = vpop.f32.mrf.mxu2 }
 0x5fe   : > { %v7414_v20 = vmul.f32 %v7382_v30, %v7299_v23 }
 0x5ff   : > { %v7369_v43 = vpop.f32.mrf.mxu3 }
 0x600   : > { %v7419_v15 = vmul.f32 %v7387_v32, %v7369_v43  ;;  %v7486_v59 = vpop.f32.mrf.mxu1  ;;  %v15955_v31 = vadd.f32 %v7414_v20, %v15781_v10  ;;  %v7386_v10 = vperm.slane %v15269_v46, 4  ;;  %v7692_v20 = vperm.slane %v17151_v60, 5 }
 0x601   : > { %v7704_v5 = vmul.f32 %v7688_v48, %v7486_v59  ;;  %v7528_v29 = vpop.f32.mrf.mxu0 }
 0x602   : > { %v15958_v9 = vadd.f32 %v7419_v15, %v15784_v12  ;;  %v7707_v0 = vmul.f32 %v7691_v53, %v7528_v29  ;;  %10753 = vmatmul.msk.bf16.vlgmr.msra.gmra.mxu2 %vm471_vm1, %v15738_v52  ;;  %v7690_v52 = vperm.slane %v17143_v16, 5 }
 0x603   : > { %v15961_v40 = vadd.f32 %v7704_v5, %v15787_v8  ;;  %10762 = vmatmul.msk.bf16.vlgmr.msra.gmra.mxu1 %vm471_vm1, %v15912_v62  ;;  %8184 = vmatpush.bf16.msra.mxu2 %v17139_v21 }
 0x604   : > { %v15968_v36 = vadd.f32 %v7707_v0, %v15794_v13  ;;  %10764 = vmatmul.msk.bf16.vlgmr.msra.gmra.mxu3 %vm471_vm1, %v15912_v62  ;;  %10765 = vmatmul.msk.bf16.vlgmr.msra.gmra.mxu0 %vm471_vm1, %v15912_v62 }
 0x605   : > { %8268 = vmatpush.bf16.msra.mxu0 %v17216_v38  ;;  %v7353_v12 = vpop.f32.mrf.mxu2  ;;  %8226 = vmatpush.bf16.msra.mxu1 %v17140_v24 }
 0x606   : > { %8254 = vmatpush.bf16.msra.mxu3 %v17144_v63  ;;  %v7402_v8 = vmul.f32 %v7386_v10, %v7353_v12  ;;  %v7694_v12 = vperm.slane %v17243_v54, 5 }
 0x607   : > { %v7514_v13 = vpop.f32.mrf.mxu3 }
 0x608   : > { %v7706_v15 = vmul.f32 %v7690_v52, %v7514_v13  ;;  %v7488_v25 = vpop.f32.mrf.mxu1  ;;  %v15981_v30 = vadd.f32 %v7402_v8, %v15807_v27 }
 0x609   : > { %v7720_v43 = vmul.f32 %v7688_v48, %v7488_v25  ;;  %v7530_v32 = vpop.f32.mrf.mxu0  ;;  %v7695_v48 = vperm.slane %v17152_v42, 5 }
 0x60a   : > { %v15984_v38 = vadd.f32 %v7706_v15, %v15810_v18  ;;  %v7723_v21 = vmul.f32 %v7691_v53, %v7530_v32 }
 0x60b   : > { %v15987_v6 = vadd.f32 %v7720_v43, %v15813_v33  ;;  %v11500_v33 = vld [vmem:[%s11896_s22 + $0x38] sm:$0xff] }
 0x60c   : > { %v15990_v24 = vadd.f32 %v7723_v21, %v15816_v26  ;;  %v11498_v21 = vld [vmem:[%s11896_s22 + $0x28] sm:$0xff] }
 0x60d   : > { %v7355_v63 = vpop.f32.mrf.mxu2 }
 0x60e   : > { %v7418_v39 = vmul.f32 %v7386_v10, %v7355_v63 }
 0x60f   : > { %v7516_v23 = vpop.f32.mrf.mxu3 }
 0x610   : > { %v7722_v27 = vmul.f32 %v7690_v52, %v7516_v23  ;;  %v7542_v59 = vpop.f32.mrf.mxu1  ;;  %v15995_v18 = vadd.f32 %v7418_v39, %v15821_v17  ;;  %v7689_v17 = vperm.slane %v17157_v7, 5  ;;  %v11497_v23 = vld [vmem:[%s11896_s22 + $0x20] sm:$0xff] }
 0x611   : > { %v7708_v53 = vmul.f32 %v7692_v20, %v7542_v59  ;;  %v7584_v5 = vpop.f32.mrf.mxu0 }
 0x612   : > { %v15999_v29 = vadd.f32 %v7722_v27, %v15824_v44  ;;  %v7711_v26 = vmul.f32 %v7695_v48, %v7584_v5  ;;  %10763 = vmatmul.msk.bf16.vlgmr.msrb.gmra.mxu2 %vm471_vm1, %v15912_v62  ;;  %v11499_v44 = vld [vmem:[%s11896_s22 + $0x30] sm:$0xff] }
 0x613   : > { %v16002_v0 = vadd.f32 %v7708_v53, %v15827_v50  ;;  %10766 = vmatmul.msk.bf16.vlgmr.msrb.gmra.mxu1 %vm471_vm1, %v15912_v62  ;;  %8240 = vmatpush.bf16.msrb.mxu2 %v17241_v41 }
 0x614   : > { %v16009_v10 = vadd.f32 %v7711_v26, %v15834_v4  ;;  %10768 = vmatmul.msk.bf16.vlgmr.msrb.gmra.mxu3 %vm471_vm1, %v15912_v62  ;;  %10769 = vmatmul.msk.bf16.vlgmr.msrb.gmra.mxu0 %vm471_vm1, %v15912_v62  ;;  %v17267_v4 = vld [vmem:[#allocation35_spill] sm:$0xff]  ;;  %v11496_v26 = vld [vmem:[%s11896_s22 + $0x18] sm:$0xff] }
 0x615   : > { %9021 = vmatpush.bf16.msrb.mxu0 %v11500_v33  ;;  %v7500_v50 = vpop.f32.mrf.mxu2  ;;  %8282 = vmatpush.bf16.msrb.mxu1 %v17242_v28 }
 0x616   : > { %8310 = vmatpush.bf16.msrb.mxu3 %v17267_v4  ;;  %v7705_v52 = vmul.f32 %v7689_v17, %v7500_v50 }
 0x617   : > { %v7570_v8 = vpop.f32.mrf.mxu3 }
 0x618   : > { %v7710_v13 = vmul.f32 %v7694_v12, %v7570_v8  ;;  %v7544_v15 = vpop.f32.mrf.mxu1  ;;  %v16022_v25 = vadd.f32 %v7705_v52, %v15847_v22  ;;  %v9051_v22 = vld [vmem:[%s16533_s8 + $0x28] sm:$0xff]  ;;  %v17269_v52 = vld [vmem:[#allocation37_spill] sm:$0xff] }
 0x619   : > { %v7724_v43 = vmul.f32 %v7692_v20, %v7544_v15  ;;  %v7586_v32 = vpop.f32.mrf.mxu0  ;;  %9022 = vmatpush.bf16.msrb.mxu0 %v11499_v44  ;;  %9061 = vperm.xlu0 %11566, %v9051_v22  }
 0x61a   : > { %v16026_v41 = vadd.f32 %v7710_v13, %v15850_v14  ;;  %v7727_v63 = vmul.f32 %v7695_v48, %v7586_v32  ;;  %v7696_v14 = vperm.slane %v17169_v19, 5  ;;  %v17270_v13 = vld [vmem:[#allocation38_spill] sm:$0xff] }
 0x61b   : > { %v16029_v28 = vadd.f32 %v7724_v43, %v15853_v37  ;;  %v7699_v37 = vperm.slane %v15086_v45, 5  ;;  %v7698_v15 = vperm.slane %v17270_v13, 5 }
 0x61c   : > { %v16032_v39 = vadd.f32 %v7727_v63, %v15856_v2 }
 0x61d   : > { %9023 = vmatpush.bf16.msrb.mxu0 %v11498_v21  ;;  %v7502_v20 = vpop.f32.mrf.mxu2 }
 0x61e   : > { %v7721_v27 = vmul.f32 %v7689_v17, %v7502_v20 }
 0x61f   : > { %v7572_v59 = vpop.f32.mrf.mxu3 }
 0x620   : > { %v7726_v48 = vmul.f32 %v7694_v12, %v7572_v59  ;;  %v7598_v53 = vpop.f32.mrf.mxu1  ;;  %v16041_v2 = vadd.f32 %v7721_v27, %v15864_v49  ;;  %v17268_v12 = vld [vmem:[#allocation41_spill] sm:$0xff]  ;;  %v11494_v27 = vld [vmem:[%s11896_s22 + $0x8] sm:$0xff] }
 0x621   : > { %v7712_v5 = vmul.f32 %v7696_v14, %v7598_v53  ;;  %v7640_v33 = vpop.f32.mrf.mxu0  ;;  %9024 = vmatpush.bf16.msrb.mxu0 %v11497_v23  ;;  %v7693_v4 = vperm.slane %v17268_v12, 5 }
 0x622   : > { %v16045_v44 = vadd.f32 %v7726_v48, %v15867_v11  ;;  %v7715_v50 = vmul.f32 %v7699_v37, %v7640_v33  ;;  %10767 = vmatmul.msk.bf16.vlgmr.msra.gmra.mxu2 %vm471_vm1, %v15912_v62  ;;  %v9114_v11 = vld [vmem:[%s16534_s9 + $0x20] sm:$0xff] }
 0x623   : > { %v16048_v17 = vadd.f32 %v7712_v5, %v15870_v58  ;;  %10770 = vmatmul.msk.bf16.vlgmr.msra.gmra.mxu1 %vm471_vm1, %v15912_v62  ;;  %v9052_v58 = vld [vmem:[%s16533_s8 + $0x30] sm:$0xff]  ;;  %8296 = vmatpush.bf16.msra.mxu2 %v17269_v52  ;;  %v17271_v5 = vld [vmem:[#allocation39_spill] sm:$0xff]  ;;  %v17273_v52 = vld [vmem:[#allocation50_spill] sm:$0xff] }
 0x624   : > { %v16055_v49 = vadd.f32 %v7715_v50, %v15877_v51  ;;  %10772 = vmatmul.msk.bf16.vlgmr.msra.gmra.mxu3 %vm471_vm1, %v15912_v62  ;;  %10773 = vmatmul.msk.bf16.vlgmr.msra.gmra.mxu0 %vm471_vm1, %v15912_v62  ;;  %v11495_v51 = vld [vmem:[%s11896_s22 + $0x10] sm:$0xff] }
 0x625   : > { %9025 = vmatpush.bf16.msrb.mxu0 %v11496_v26  ;;  %v7556_v8 = vpop.f32.mrf.mxu2  ;;  %9120 = vperm.xlu0 %11566, %v9114_v11   ;;  %v9117_v26 = vld [vmem:[%s16534_s9 + $0x38] sm:$0xff] }
 0x626   : > { %9066 = vperm.xlu1 %11567, %v9052_v58   ;;  %v7709_v43 = vmul.f32 %v7693_v4, %v7556_v8  ;;  %v8002_v8 = vperm.slane %v17273_v52, 6 }
 0x627   : > { %v7626_v32 = vpop.f32.mrf.mxu3 }
 0x628   : > { %v7714_v21 = vmul.f32 %v7698_v15, %v7626_v32  ;;  %v7600_v63 = vpop.f32.mrf.mxu1  ;;  %v16072_v22 = vadd.f32 %v7709_v43, %v15893_v3  ;;  %v9115_v3 = vld [vmem:[%s16534_s9 + $0x28] sm:$0xff]  ;;  %v11501_v43 = vld [vmem:[%s16531_s6] sm:$0xff]  ;;  %v17274_v32 = vld [vmem:[#allocation49_spill] sm:$0xff] }
 0x629   : > { %v7728_v23 = vmul.f32 %v7696_v14, %v7600_v63  ;;  %v7642_v20 = vpop.f32.mrf.mxu0  ;;  %9026 = vmatpush.bf16.msrb.mxu0 %v11495_v51  ;;  %v11493_v14 = vld [vmem:[%s11896_s22] sm:$0xff]  ;;  %s430_s22 = scalar_lea.vmem %s16527_s2, %s429_s25 }
 0x62a   : > { %v16076_v59 = vadd.f32 %v7714_v21, %v15896_v47  ;;  %v7731_v48 = vmul.f32 %v7699_v37, %v7642_v20  ;;  %v17275_v20 = vld [vmem:[#allocation68_spill] sm:$0xff] }
 0x62b   : > { %v16079_v53 = vadd.f32 %v7728_v23, %v15899_v55  ;;  %v17272_v55 = vld [vmem:[#allocation71_spill] sm:$0xff] }
 0x62c   : > { %v16082_v33 = vadd.f32 %v7731_v48, %v17271_v5  ;;  %v7700_v11 = vperm.slane %v17272_v55, 5  ;;  %v17276_v48 = vld [vmem:[#allocation69_spill] sm:$0xff] }
 0x62d   : > { %9027 = vmatpush.bf16.msrb.mxu0 %v11494_v27  ;;  %v7558_v50 = vpop.f32.mrf.mxu2  ;;  %9135 = vperm.xlu0 %11566, %v9117_v26  }
 0x62e   : > { %9125 = vperm.xlu1 %11567, %v9115_v3   ;;  %v7725_v47 = vmul.f32 %v7693_v4, %v7558_v50  ;;  %v17278_v3 = vld [vmem:[#allocation47_spill] sm:$0xff] }
 0x62f   : > { %v7628_v37 = vpop.f32.mrf.mxu3 }
 0x630   : > { %v7730_v58 = vmul.f32 %v7698_v15, %v7628_v37  ;;  %v7654_v51 = vpop.f32.mrf.mxu1  ;;  %v16097_v21 = vadd.f32 %v7725_v47, %v17274_v32  ;;  %v17277_v15 = vld [vmem:[#allocation70_spill] sm:$0xff]  ;;  %v17279_v47 = vld [vmem:[#allocation72_spill] sm:$0xff] }
 0x631   : > { %v7716_v63 = vmul.f32 %v7700_v11, %v7654_v51  ;;  %v7787_v23 = vpop.f32.mrf.mxu0  ;;  %9028 = vmatpush.bf16.msrb.mxu0 %v11493_v14  ;;  %v7697_v14 = vperm.slane %v17278_v3, 5  ;;  %v7702_v37 = vperm.slane %v17279_v47, 5 }
 0x632   : > { %v16100_v27 = vadd.f32 %v7730_v58, %v17275_v20  ;;  %v8018_v4 = vmul.f32 %v8002_v8, %v7787_v23  ;;  %10771 = vmatmul.msk.bf16.vlgmr.msrb.gmra.mxu2 %vm471_vm1, %v15912_v62 }
 0x633   : > { %v16103_v5 = vadd.f32 %v7716_v63, %v17276_v48  ;;  %10774 = vmatmul.msk.bf16.vlgmr.msrb.gmra.mxu1 %vm471_vm1, %v15912_v62 }
 0x634   : > { %v16110_v26 = vadd.f32 %v8018_v4, %v17277_v15  ;;  %10776 = vmatmul.msk.bf16.vlgmr.msrb.gmra.mxu3 %vm471_vm1, %v15912_v62  ;;  %9029 = vmatmul.bf16.vlgmr.msrb.gmra.mxu0 %v11501_v43 }
 0x635   : > { %v7612_v50 = vpop.f32.mrf.mxu2 }
 0x636   : > { %v7713_v58 = vmul.f32 %v7697_v14, %v7612_v50  ;;  %v9050_v50 = vld [vmem:[%s16533_s8 + $0x20] sm:$0xff] }
 0x637   : > { %v7682_v51 = vpop.f32.mrf.mxu3  ;;  %9056 = vperm.xlu2 %11568, %v9050_v50   ;;  %v11371_v50 = vld [vmem:[#allocation5 + $0x30] sm:$0xff] }
 0x638   : > { %v7718_v32 = vmul.f32 %v7702_v37, %v7682_v51  ;;  %v7656_v63 = vpop.f32.mrf.mxu1  ;;  %v16117_v23 = vadd.f32 %v7713_v58, %v15941_v57  ;;  %v11372_v51 = vld [vmem:[#allocation5 + $0x38] sm:$0xff] }
 0x639   : > { %v7732_v20 = vmul.f32 %v7700_v11, %v7656_v63  ;;  %v7789_v48 = vpop.f32.mrf.mxu0  ;;  %9919 = vmatpush.bf16.msrb.mxu2 %v11372_v51 }
 0x63a   : > { %v16120_v4 = vadd.f32 %v7718_v32, %v15944_v56  ;;  %v8034_v15 = vmul.f32 %v8002_v8, %v7789_v48  ;;  %v8003_v56 = vperm.slane %v17190_v1, 6 }
 0x63b   : > { %v16123_v43 = vadd.f32 %v7732_v20, %v15947_v34  ;;  %v8006_v34 = vperm.slane %v14914_v61, 6 }
 0x63c   : > { %v16126_v3 = vadd.f32 %v8034_v15, %v15950_v35  ;;  %v11502_v35 = vld [vmem:[%s16531_s6 + $0x8] sm:$0xff] }
 0x63d   : > { %v7614_v57 = vpop.f32.mrf.mxu2  ;;  %9920 = vmatpush.bf16.msrb.mxu2 %v11371_v50  ;;  %v11369_v50 = vld [vmem:[#allocation5 + $0x20] sm:$0xff] }
 0x63e   : > { %v7729_v11 = vmul.f32 %v7697_v14, %v7614_v57  ;;  %v11370_v57 = vld [vmem:[#allocation5 + $0x28] sm:$0xff] }
 0x63f   : > { %v7684_v58 = vpop.f32.mrf.mxu3 }
 0x640   : > { %v7734_v32 = vmul.f32 %v7702_v37, %v7684_v58  ;;  %v7801_v8 = vpop.f32.mrf.mxu1  ;;  %v16137_v63 = vadd.f32 %v7729_v11, %v15955_v31  ;;  %v9053_v31 = vld [vmem:[%s16533_s8 + $0x38] sm:$0xff] }
 0x641   : > { %v8019_v20 = vmul.f32 %v8003_v56, %v7801_v8  ;;  %v7843_v48 = vpop.f32.mrf.mxu0  ;;  %9071 = vperm.xlu2 %11568, %v9053_v31   ;;  %9921 = vmatpush.bf16.msrb.mxu2 %v11370_v57  ;;  %v9116_v57 = vld [vmem:[%s16534_s9 + $0x30] sm:$0xff] }
 0x642   : > { %v16140_v15 = vadd.f32 %v7734_v32, %v15958_v9  ;;  %v8022_v14 = vmul.f32 %v8006_v34, %v7843_v48  ;;  %10775 = vmatmul.msk.bf16.vlgmr.msra.gmra.mxu2 %vm471_vm1, %v15912_v62  ;;  %v7701_v9 = vperm.slane %v15269_v46, 5 }
 0x643   : > { %v16143_v51 = vadd.f32 %v8019_v20, %v15961_v40  ;;  %v8005_v40 = vperm.slane %v17143_v16, 6 }
 0x644   : > { %v16148_v37 = vadd.f32 %v8022_v14, %v15968_v36  ;;  %9034 = vmatmul.bf16.gmra.mxu0 %v11502_v35 }
 0x645   : > { %v7668_v11 = vpop.f32.mrf.mxu2  ;;  %9922 = vmatpush.bf16.msrb.mxu2 %v11369_v50  ;;  %v11367_v50 = vld [vmem:[#allocation5 + $0x10] sm:$0xff] }
 0x646   : > { %v7717_v58 = vmul.f32 %v7701_v9, %v7668_v11  ;;  %v11380_v11 = vld [vmem:[#allocation5 + $0x78] sm:$0xff] }
 0x647   : > { %v7829_v32 = vpop.f32.mrf.mxu3  ;;  %9932 = vmatpush.bf16.msra.mxu3 %v11380_v11  ;;  %v8009_v11 = vperm.slane %v17243_v54, 6  ;;  %v11365_v54 = vld [vmem:[#allocation5] sm:$0xff] }
 0x648   : > { %v8021_v8 = vmul.f32 %v8005_v40, %v7829_v32  ;;  %v7803_v62 = vpop.f32.mrf.mxu1  ;;  %v16156_v36 = vadd.f32 %v7717_v58, %v15981_v30  ;;  %v11368_v30 = vld [vmem:[#allocation5 + $0x18] sm:$0xff] }
 0x649   : > { %v8035_v35 = vmul.f32 %v8003_v56, %v7803_v62  ;;  %v7845_v20 = vpop.f32.mrf.mxu0  ;;  %9130 = vperm.xlu2 %11568, %v9116_v57   ;;  %9923 = vmatpush.bf16.msrb.mxu2 %v11368_v30  ;;  %v11379_v57 = vld [vmem:[#allocation5 + $0x70] sm:$0xff]  ;;  %v8004_v30 = vperm.slane %v17157_v7, 6 }
 0x64a   : > { %v16159_v48 = vadd.f32 %v8021_v8, %v15984_v38  ;;  %v8038_v14 = vmul.f32 %v8006_v34, %v7845_v20  ;;  %v8007_v34 = vperm.slane %v17151_v60, 6  ;;  %v8010_v8 = vperm.slane %v17152_v42, 6 }
 0x64b   : > { %v16162_v31 = vadd.f32 %v8035_v35, %v15987_v6  ;;  %9933 = vmatpush.bf16.msra.mxu3 %v11379_v57  ;;  %v11395_v57 = vld [vmem:[#allocation5 + $0xf0] sm:$0xff] }
 0x64c   : > { %v16165_v16 = vadd.f32 %v8038_v14, %v15990_v24 }
 0x64d   : > { %v7670_v56 = vpop.f32.mrf.mxu2  ;;  %9924 = vmatpush.bf16.msrb.mxu2 %v11367_v50 }
 0x64e   : > { %v7733_v38 = vmul.f32 %v7701_v9, %v7670_v56 }
 0x64f   : > { %v7831_v58 = vpop.f32.mrf.mxu3 }
 0x650   : > { %v8037_v32 = vmul.f32 %v8005_v40, %v7831_v58  ;;  %v7857_v6 = vpop.f32.mrf.mxu1  ;;  %v16173_v24 = vadd.f32 %v7733_v38, %v15995_v18 }
 0x651   : > { %v8023_v62 = vmul.f32 %v8007_v34, %v7857_v6  ;;  %v7899_v35 = vpop.f32.mrf.mxu0  ;;  %v11366_v6 = vld [vmem:[#allocation5 + $0x8] sm:$0xff] }
 0x652   : > { %v16176_v20 = vadd.f32 %v8037_v32, %v15999_v29  ;;  %v8026_v14 = vmul.f32 %v8010_v8, %v7899_v35  ;;  %v11396_v32 = vld [vmem:[#allocation5 + $0xf8] sm:$0xff]  ;;  %v11378_v35 = vld [vmem:[#allocation5 + $0x68] sm:$0xff]  ;;  %9925 = vmatpush.bf16.msrb.mxu2 %v11366_v6 }
 0x653   : > { %v16179_v9 = vadd.f32 %v8023_v62, %v16002_v0  ;;  %9958 = vmatpush.bf16.msra.mxu0 %v11396_v32  ;;  %9934 = vmatpush.bf16.msra.mxu3 %v11378_v35  ;;  %v11404_v32 = vld [vmem:[#allocation5 + $0x138] sm:$0xff] }
 0x654   : > { %v16182_v40 = vadd.f32 %v8026_v14, %v16009_v10  ;;  %v11376_v6 = vld [vmem:[#allocation5 + $0x58] sm:$0xff] }
 0x655   : > { %v7815_v18 = vpop.f32.mrf.mxu2 }
 0x656   : > { %v8020_v56 = vmul.f32 %v8004_v30, %v7815_v18  ;;  %9926 = vmatpush.bf16.msrb.mxu2 %v11365_v54 }
 0x657   : > { %v7885_v38 = vpop.f32.mrf.mxu3  ;;  %9959 = vmatpush.bf16.msra.mxu0 %v11395_v57  ;;  %v11375_v57 = vld [vmem:[#allocation5 + $0x50] sm:$0xff] }
 0x658   : > { %v8025_v29 = vmul.f32 %v8009_v11, %v7885_v38  ;;  %v7859_v58 = vpop.f32.mrf.mxu1  ;;  %v16187_v0 = vadd.f32 %v8020_v56, %v16022_v25  ;;  %v11377_v38 = vld [vmem:[#allocation5 + $0x60] sm:$0xff] }
 0x659   : > { %v8039_v62 = vmul.f32 %v8007_v34, %v7859_v58  ;;  %v7901_v10 = vpop.f32.mrf.mxu0  ;;  %9935 = vmatpush.bf16.msra.mxu3 %v11377_v38  ;;  %v8014_v58 = vperm.slane %v15086_v45, 6 }
 0x65a   : > { %v16190_v14 = vadd.f32 %v8025_v29, %v16026_v41  ;;  %v8042_v50 = vmul.f32 %v8010_v8, %v7901_v10  ;;  %v8011_v41 = vperm.slane %v17169_v19, 6  ;;  %9971 = vmatpush.bf16.msra.mxu2 %v11404_v32 }
 0x65b   : > { %v16193_v18 = vadd.f32 %v8039_v62, %v16029_v28  ;;  %v11394_v28 = vld [vmem:[#allocation5 + $0xe8] sm:$0xff] }
 0x65c   : > { %v16196_v7 = vadd.f32 %v8042_v50, %v16032_v39  ;;  %9960 = vmatpush.bf16.msra.mxu0 %v11394_v28  ;;  %v11393_v50 = vld [vmem:[#allocation5 + $0xe0] sm:$0xff] }
 0x65d   : > { %v7817_v25 = vpop.f32.mrf.mxu2  ;;  %9936 = vmatpush.bf16.msra.mxu3 %v11376_v6 }
 0x65e   : > { %v8036_v34 = vmul.f32 %v8004_v30, %v7817_v25  ;;  %v11403_v30 = vld [vmem:[#allocation5 + $0x130] sm:$0xff] }
 0x65f   : > { %v7887_v56 = vpop.f32.mrf.mxu3  ;;  %9972 = vmatpush.bf16.msra.mxu2 %v11403_v30 }
 0x660   : > { %v8041_v8 = vmul.f32 %v8009_v11, %v7887_v56  ;;  %v7913_v29 = vpop.f32.mrf.mxu1  ;;  %v16201_v35 = vadd.f32 %v8036_v34, %v16041_v2  ;;  %v8008_v2 = vperm.slane %v17268_v12, 6  ;;  %v8013_v34 = vperm.slane %v17270_v13, 6  ;;  %9961 = vmatpush.bf16.msra.mxu0 %v11393_v50 }
 0x661   : > { %v8027_v39 = vmul.f32 %v8011_v41, %v7913_v29  ;;  %v7955_v62 = vpop.f32.mrf.mxu0  ;;  %9937 = vmatpush.bf16.msra.mxu3 %v11375_v57  ;;  %v11401_v57 = vld [vmem:[#allocation5 + $0x120] sm:$0xff] }
 0x662   : > { %v16204_v10 = vadd.f32 %v8041_v8, %v16045_v44  ;;  %v8030_v54 = vmul.f32 %v8014_v58, %v7955_v62  ;;  %v11392_v62 = vld [vmem:[#allocation5 + $0xd8] sm:$0xff] }
 0x663   : > { %v16207_v11 = vadd.f32 %v8027_v39, %v16048_v17  ;;  %v11402_v39 = vld [vmem:[#allocation5 + $0x128] sm:$0xff] }
 0x664   : > { %v16210_v38 = vadd.f32 %v8030_v54, %v16055_v49  ;;  %v11374_v54 = vld [vmem:[#allocation5 + $0x48] sm:$0xff]  ;;  %9973 = vmatpush.bf16.msra.mxu2 %v11402_v39  ;;  %9962 = vmatpush.bf16.msra.mxu0 %v11392_v62  ;;  %v16239_v62 = vpop.permute.xlu0 %8406 }
 0x665   : > { %v7871_v25 = vpop.f32.mrf.mxu2  ;;  %9938 = vmatpush.bf16.msra.mxu3 %v11374_v54  ;;  %v17281_v39 = vld [vmem:[#allocation47_spill] sm:$0xff] }
 0x666   : > { %v8024_v44 = vmul.f32 %v8008_v2, %v7871_v25 }
 0x667   : > { %v7941_v56 = vpop.f32.mrf.mxu3 }
 0x668   : > { %v8029_v8 = vmul.f32 %v8013_v34, %v7941_v56  ;;  %v7915_v29 = vpop.f32.mrf.mxu1  ;;  %v16215_v17 = vadd.f32 %v8024_v44, %v16072_v22  ;;  %v11391_v22 = vld [vmem:[#allocation5 + $0xd0] sm:$0xff]  ;;  %9974 = vmatpush.bf16.msra.mxu2 %v11401_v57 }
 0x669   : > { %v8043_v32 = vmul.f32 %v8011_v41, %v7915_v29  ;;  %v7957_v28 = vpop.f32.mrf.mxu0  ;;  %9963 = vmatpush.bf16.msra.mxu0 %v11391_v22 }
 0x66a   : > { %v16218_v49 = vadd.f32 %v8029_v8, %v16076_v59  ;;  %v8046_v6 = vmul.f32 %v8014_v58, %v7957_v28  ;;  %v8015_v59 = vperm.slane %v17272_v55, 6  ;;  %v8317_v8 = vperm.slane %v17273_v52, 7 }
 0x66b   : > { %v16221_v30 = vadd.f32 %v8043_v32, %v16079_v53  ;;  %v11373_v53 = vld [vmem:[#allocation5 + $0x40] sm:$0xff]  ;;  %v8012_v52 = vperm.slane %v17281_v39, 6 }
 0x66c   : > { %v16224_v50 = vadd.f32 %v8046_v6, %v16082_v33  ;;  %9939 = vmatpush.bf16.msra.mxu3 %v11373_v53  ;;  %v17282_v53 = vld [vmem:[#allocation51_spill] sm:$0xff] }
 0x66d   : > { %v7873_v41 = vpop.f32.mrf.mxu2 }
 0x66e   : > { %v8040_v25 = vmul.f32 %v8008_v2, %v7873_v41 }
 0x66f   : > { %v7943_v44 = vpop.f32.mrf.mxu3 }
 0x670   : > { %v8045_v58 = vmul.f32 %v8013_v34, %v7943_v44  ;;  %v7969_v56 = vpop.f32.mrf.mxu1  ;;  %v16229_v33 = vadd.f32 %v8040_v25, %v16097_v21  ;;  %v8017_v21 = vperm.slane %v17279_v47, 6 }
 0x671   : > { %v8031_v29 = vmul.f32 %v8015_v59, %v7969_v56  ;;  %v8102_v32 = vpop.f32.mrf.mxu0 }
 0x672   : > { %v16232_v28 = vadd.f32 %v8045_v58, %v16100_v27  ;;  %v8333_v6 = vmul.f32 %v8317_v8, %v8102_v32 }
 0x673   : > { %v16235_v2 = vadd.f32 %v8031_v29, %v16103_v5 }
 0x674   : > { %v8365_v34 = vadd.f32 %v8333_v6, %v16110_v26 }
 0x675   : > { %17280 = vst [vmem:[#allocation32_spill] sm:$0xff] %v16235_v2  ;;  %v7927_v54 = vpop.f32.mrf.mxu2  ;;  %v11412_v2 = vld [vmem:[#allocation5 + $0x178] sm:$0xff] }
 0x676   : > { %v8028_v57 = vmul.f32 %v8012_v52, %v7927_v54  ;;  %v8409_v29 = vadd.f32 %v17282_v53, %v8365_v34  ;;  %v8321_v34 = vperm.slane %v14914_v61, 7  ;;  %9984 = vmatpush.bf16.msrb.mxu3 %v11412_v2  ;;  %v11428_v2 = vld [vmem:[#allocation5 + $0x1f8] sm:$0xff] }
 0x677   : > { %v7997_v22 = vpop.f32.mrf.mxu3 }
 0x678   : > { %v8033_v41 = vmul.f32 %v8017_v21, %v7997_v22  ;;  %v7971_v25 = vpop.f32.mrf.mxu1  ;;  %v16243_v27 = vadd.f32 %v8028_v57, %v16117_v23  ;;  %v11400_v22 = vld [vmem:[#allocation5 + $0x118] sm:$0xff]  ;;  %v11390_v23 = vld [vmem:[#allocation5 + $0xc8] sm:$0xff] }
 0x679   : > { %v8047_v44 = vmul.f32 %v8015_v59, %v7971_v25  ;;  %v8104_v58 = vpop.f32.mrf.mxu0  ;;  %v8318_v25 = vperm.slane %v17190_v1, 7  ;;  %9975 = vmatpush.bf16.msra.mxu2 %v11400_v22  ;;  %9964 = vmatpush.bf16.msra.mxu0 %v11390_v23  ;;  %v11389_v1 = vld [vmem:[#allocation5 + $0xc0] sm:$0xff]  ;;  %v11398_v22 = vld [vmem:[#allocation5 + $0x108] sm:$0xff]  ;;  %v8016_v23 = vperm.slane %v15269_v46, 6 }
 0x67a   : > { %v16246_v5 = vadd.f32 %v8033_v41, %v16120_v4  ;;  %v8349_v26 = vmul.f32 %v8317_v8, %v8104_v58  ;;  %v8441_v4 = vmax.f32 %v8409_v29, 0.0  ;;  %v16255_v41 = vpop.permute.xlu0 %8477  ;;  %v11411_v58 = vld [vmem:[#allocation5 + $0x170] sm:$0xff] }
 0x67b   : > { %v16249_v56 = vadd.f32 %v8047_v44, %v16123_v43  ;;  %9985 = vmatpush.bf16.msrb.mxu3 %v11411_v58 }
 0x67c   : > { %v8381_v32 = vadd.f32 %v8349_v26, %v16126_v3  ;;  %v11399_v3 = vld [vmem:[#allocation5 + $0x110] sm:$0xff] }
 0x67d   : > { %v7929_v54 = vpop.f32.mrf.mxu2  ;;  %9976 = vmatpush.bf16.msra.mxu2 %v11399_v3  ;;  %9965 = vmatpush.bf16.msra.mxu0 %v11389_v1 }
 0x67e   : > { %v8425_v6 = vadd.f32 %v16239_v62, %v8381_v32  ;;  %v8044_v57 = vmul.f32 %v8012_v52, %v7929_v54  ;;  %v16261_v32 = vpop.permute.xlu1 %8482 }
 0x67f   : > { %v7999_v59 = vpop.f32.mrf.mxu3 }
 0x680   : > { %v8457_v8 = vmax.f32 %v8425_v6, 0.0  ;;  %v8049_v43 = vmul.f32 %v8017_v21, %v7999_v59  ;;  %v8116_v44 = vpop.f32.mrf.mxu1  ;;  %v16259_v26 = vadd.f32 %v8044_v57, %v16137_v63  ;;  %v11410_v63 = vld [vmem:[#allocation5 + $0x168] sm:$0xff]  ;;  %v8485_v57 = vmul.f32 %v16255_v41, %v8441_v4  ;;  %v11397_v4 = vld [vmem:[#allocation5 + $0x100] sm:$0xff] }
 0x681   : > { %v8334_v52 = vmul.f32 %v8318_v25, %v8116_v44  ;;  %v8158_v54 = vpop.f32.mrf.mxu0  ;;  %10010 = vmatpush.bf16.msrb.mxu0 %v11428_v2  ;;  %9977 = vmatpush.bf16.msra.mxu2 %v11398_v22 }
 0x682   : > { %17283 = vst [vmem:[#allocation46_spill] sm:$0xff] %v16259_v26  ;;  %v16264_v29 = vadd.f32 %v8049_v43, %v16140_v15  ;;  %v8337_v21 = vmul.f32 %v8321_v34, %v8158_v54  ;;  %v8501_v59 = vmul.f32 %v16261_v32, %v8457_v8  ;;  %v17285_v15 = vld [vmem:[#allocation17_spill] sm:$0xff]  ;;  %9986 = vmatpush.bf16.msrb.mxu3 %v11410_v63 }
 0x683   : > { %v8366_v6 = vadd.f32 %v8334_v52, %v16143_v51  ;;  %v8320_v43 = vperm.slane %v17285_v15, 7  ;;  %v11427_v54 = vld [vmem:[#allocation5 + $0x1f0] sm:$0xff] }
 0x684   : > { %17284 = vst [vmem:[#allocation75_spill] sm:$0xff] %v16264_v29  ;;  %v8369_v61 = vadd.f32 %v8337_v21, %v16148_v37  ;;  %v8517_v51 = vadd.f32 %v8501_v59, %v8485_v57  ;;  %v11409_v29 = vld [vmem:[#allocation5 + $0x160] sm:$0xff] }
 0x685   : > { %v7983_v44 = vpop.f32.mrf.mxu2  ;;  %v8410_v3 = vadd.f32 %v17282_v53, %v8366_v6  ;;  %10011 = vmatpush.bf16.msrb.mxu0 %v11427_v54  ;;  %v11426_v6 = vld [vmem:[#allocation5 + $0x1e8] sm:$0xff]  ;;  %9978 = vmatpush.bf16.msra.mxu2 %v11397_v4 }
 0x686   : > { %v8032_v52 = vmul.f32 %v8016_v23, %v7983_v44  ;;  %v8518_v8 = vrot.slane %v8517_v51, 4  ;;  %v8413_v26 = vadd.f32 %v17282_v53, %v8369_v61  ;;  %9987 = vmatpush.bf16.msrb.mxu3 %v11409_v29  ;;  %v11425_v29 = vld [vmem:[#allocation5 + $0x1e0] sm:$0xff] }
 0x687   : > { %v8144_v37 = vpop.f32.mrf.mxu3  ;;  %v8442_v22 = vmax.f32 %v8410_v3, 0.0 }
 0x688   : > { %v8336_v58 = vmul.f32 %v8320_v43, %v8144_v37  ;;  %v8118_v21 = vpop.f32.mrf.mxu1  ;;  %v16275_v1 = vadd.f32 %v8032_v52, %v16156_v36  ;;  %v8519_v44 = vadd.f32 %v8518_v8, %v8517_v51  ;;  %v8445_v61 = vmax.f32 %v8413_v26, 0.0 }
 0x689   : > { %v8350_v15 = vmul.f32 %v8318_v25, %v8118_v21  ;;  %v8160_v2 = vpop.f32.mrf.mxu0  ;;  %10012 = vmatpush.bf16.msrb.mxu0 %v11426_v6  ;;  %v8486_v26 = vmul.f32 %v16255_v41, %v8442_v22 }
 0x68a   : > { %v8368_v57 = vadd.f32 %v8336_v58, %v16159_v48  ;;  %v8353_v59 = vmul.f32 %v8321_v34, %v8160_v2  ;;  %v8520_v46 = vrot.slane %v8519_v44, 2  ;;  %v8322_v48 = vperm.slane %v17151_v60, 7  ;;  %v11408_v58 = vld [vmem:[#allocation5 + $0x158] sm:$0xff] }
 0x68b   : > { %v8382_v37 = vadd.f32 %v8350_v15, %v16162_v31  ;;  %v8489_v2 = vmul.f32 %v16255_v41, %v8445_v61  ;;  %9988 = vmatpush.bf16.msrb.mxu3 %v11408_v58  ;;  %v11436_v58 = vld [vmem:[#allocation5 + $0x238] sm:$0xff] }
 0x68c   : > { %v8385_v63 = vadd.f32 %v8353_v59, %v16165_v16  ;;  %v8521_v34 = vadd.f32 %v8520_v46, %v8519_v44  ;;  %v8412_v54 = vadd.f32 %v17282_v53, %v8368_v57  ;;  %v8325_v16 = vperm.slane %v17152_v42, 7  ;;  %v11407_v59 = vld [vmem:[#allocation5 + $0x150] sm:$0xff] }
 0x68d   : > { %v8426_v36 = vadd.f32 %v16239_v62, %v8382_v37  ;;  %v7985_v52 = vpop.f32.mrf.mxu2  ;;  %10013 = vmatpush.bf16.msrb.mxu0 %v11425_v29 }
 0x68e   : > { %v8429_v25 = vadd.f32 %v16239_v62, %v8385_v63  ;;  %v8048_v31 = vmul.f32 %v8016_v23, %v7985_v52  ;;  %v8522_v15 = vrot.slane %v8521_v34, 1  ;;  %v8444_v22 = vmax.f32 %v8412_v54, 0.0  ;;  %v17286_v52 = vld [vmem:[#allocation58_spill] sm:$0xff]  ;;  %v11406_v54 = vld [vmem:[#allocation5 + $0x148] sm:$0xff] }
 0x68f   : > { %v8458_v51 = vmax.f32 %v8426_v36, 0.0  ;;  %v8146_v3 = vpop.f32.mrf.mxu3  ;;  %9989 = vmatpush.bf16.msrb.mxu3 %v11407_v59 }
 0x690   : > { %v8461_v21 = vmax.f32 %v8429_v25, 0.0  ;;  %v8352_v4 = vmul.f32 %v8320_v43, %v8146_v3  ;;  %v8172_v8 = vpop.f32.mrf.mxu1  ;;  %v16289_v60 = vadd.f32 %v8048_v31, %v16173_v24  ;;  %v8523_v37 = vadd.f32 %v8522_v15, %v8521_v34  ;;  %v11424_v31 = vld [vmem:[#allocation5 + $0x1d8] sm:$0xff]  ;;  %v17288_v34 = vld [vmem:[#allocation64_spill] sm:$0xff] }
 0x691   : > { %v8502_v46 = vmul.f32 %v16261_v32, %v8458_v51  ;;  %v8338_v57 = vmul.f32 %v8322_v48, %v8172_v8  ;;  %v8214_v23 = vpop.f32.mrf.mxu0  ;;  %v8324_v29 = vperm.slane %v17288_v34, 7  ;;  %10014 = vmatpush.bf16.msrb.mxu0 %v11424_v31  ;;  %v11435_v31 = vld [vmem:[#allocation5 + $0x230] sm:$0xff] }
 0x692   : > { %v8505_v44 = vmul.f32 %v16261_v32, %v8461_v21  ;;  %v8384_v6 = vadd.f32 %v8352_v4, %v16176_v20  ;;  %v8341_v43 = vmul.f32 %v8325_v16, %v8214_v23  ;;  %v8629_v51 = vadd.f32 %v8523_v37, %v17286_v52  ;;  %v17287_v21 = vld [vmem:[#allocation63_spill] sm:$0xff] }
 0x693   : > { %v8524_v63 = vadd.f32 %v8502_v46, %v8486_v26  ;;  %v8370_v61 = vadd.f32 %v8338_v57, %v16179_v9  ;;  %v8319_v4 = vperm.slane %v17287_v21, 7  ;;  %9990 = vmatpush.bf16.msrb.mxu3 %v11406_v54 }
 0x694   : > { %v8545_v36 = vadd.f32 %v8505_v44, %v8489_v2  ;;  %v8428_v24 = vadd.f32 %v16239_v62, %v8384_v6  ;;  %v8373_v25 = vadd.f32 %v8341_v43, %v16182_v40  ;;  %v8645_v15 = vpack.c.bf16 %v8629_v51, %v8629_v51  ;;  %v11423_v40 = vld [vmem:[#allocation5 + $0x1d0] sm:$0xff] }
 0x695   : > { %v8525_v3 = vrot.slane %v8524_v63, 4  ;;  %v8414_v20 = vadd.f32 %v17282_v53, %v8370_v61  ;;  %v8130_v2 = vpop.f32.mrf.mxu2  ;;  %v8488_v44 = vmul.f32 %v16255_v41, %v8444_v22  ;;  %10015 = vmatpush.bf16.msrb.mxu0 %v11423_v40  ;;  %v11434_v40 = vld [vmem:[#allocation5 + $0x228] sm:$0xff] }
 0x696   : > { %v8546_v26 = vrot.slane %v8545_v36, 4  ;;  %v8460_v9 = vmax.f32 %v8428_v24, 0.0  ;;  %v8417_v8 = vadd.f32 %v17282_v53, %v8373_v25  ;;  %v8335_v57 = vmul.f32 %v8319_v4, %v8130_v2  ;;  %9927 = vmatmul.bf16.vlgmr.msrb.gmra.mxu2 %v8645_v15 }
 0x697   : > { %v8526_v46 = vadd.f32 %v8525_v3, %v8524_v63  ;;  %v8200_v23 = vpop.f32.mrf.mxu3  ;;  %v8446_v52 = vmax.f32 %v8414_v20, 0.0  ;;  %10023 = vmatpush.bf16.msrb.mxu2 %v11436_v58  ;;  %v11405_v63 = vld [vmem:[#allocation5 + $0x140] sm:$0xff]  ;;  %v8326_v15 = vperm.slane %v17169_v19, 7 }
 0x698   : > { %v8547_v6 = vadd.f32 %v8546_v26, %v8545_v36  ;;  %v8504_v43 = vmul.f32 %v16261_v32, %v8460_v9  ;;  %v8340_v37 = vmul.f32 %v8324_v29, %v8200_v23  ;;  %v8174_v59 = vpop.f32.mrf.mxu1  ;;  %v8367_v24 = vadd.f32 %v8335_v57, %v16187_v0  ;;  %v11422_v36 = vld [vmem:[#allocation5 + $0x1c8] sm:$0xff]  ;;  %9991 = vmatpush.bf16.msrb.mxu3 %v11405_v63 }
 0x699   : > { %v8527_v61 = vrot.slane %v8526_v46, 2  ;;  %v8354_v25 = vmul.f32 %v8322_v48, %v8174_v59  ;;  %v8216_v51 = vpop.f32.mrf.mxu0  ;;  %v8449_v34 = vmax.f32 %v8417_v8, 0.0  ;;  %v8490_v42 = vmul.f32 %v16255_v41, %v8446_v52  ;;  %10016 = vmatpush.bf16.msrb.mxu0 %v11422_v36 }
 0x69a   : > { %v8548_v3 = vrot.slane %v8547_v6, 2  ;;  %v8538_v21 = vadd.f32 %v8504_v43, %v8488_v44  ;;  %v8372_v22 = vadd.f32 %v8340_v37, %v16190_v14  ;;  %v8411_v9 = vadd.f32 %v17282_v53, %v8367_v24 }
 0x69b   : > { %v8528_v26 = vadd.f32 %v8527_v61, %v8526_v46  ;;  %v8386_v20 = vadd.f32 %v8354_v25, %v16193_v18  ;;  %v8357_v0 = vmul.f32 %v8325_v16, %v8216_v51  ;;  %10024 = vmatpush.bf16.msrb.mxu2 %v11435_v31  ;;  %v8329_v46 = vperm.slane %v15086_v45, 7  ;;  %v11421_v31 = vld [vmem:[#allocation5 + $0x1c0] sm:$0xff]  ;;  %v17291_v45 = vld [vmem:[#allocation45_spill] sm:$0xff] }
 0x69c   : > { %v8549_v48 = vadd.f32 %v8548_v3, %v8547_v6  ;;  %v8539_v58 = vrot.slane %v8538_v21, 4  ;;  %v8416_v54 = vadd.f32 %v17282_v53, %v8372_v22  ;;  %v8493_v16 = vmul.f32 %v16255_v41, %v8449_v34  ;;  %v11433_v22 = vld [vmem:[#allocation5 + $0x220] sm:$0xff] }
 0x69d   : > { %v8529_v2 = vrot.slane %v8528_v26, 1  ;;  %v8430_v8 = vadd.f32 %v16239_v62, %v8386_v20  ;;  %v8389_v14 = vadd.f32 %v8357_v0, %v16196_v7  ;;  %v8443_v57 = vmax.f32 %v8411_v9, 0.0  ;;  %v8132_v23 = vpop.f32.mrf.mxu2  ;;  %v17289_v9 = vld [vmem:[#allocation57_spill] sm:$0xff]  ;;  %10017 = vmatpush.bf16.msrb.mxu0 %v11421_v31 }
 0x69e   : > { %v8540_v18 = vadd.f32 %v8539_v58, %v8538_v21  ;;  %v8550_v44 = vrot.slane %v8549_v48, 1  ;;  %v8351_v37 = vmul.f32 %v8319_v4, %v8132_v23  ;;  %v8448_v61 = vmax.f32 %v8416_v54, 0.0  ;;  %v11444_v54 = vld [vmem:[#allocation5 + $0x278] sm:$0xff] }
 0x69f   : > { %v8462_v6 = vmax.f32 %v8430_v8, 0.0  ;;  %v8433_v43 = vadd.f32 %v16239_v62, %v8389_v14  ;;  %v8202_v59 = vpop.f32.mrf.mxu3  ;;  %v8530_v51 = vadd.f32 %v8529_v2, %v8528_v26  ;;  %10025 = vmatpush.bf16.msrb.mxu2 %v11434_v40  ;;  %v11432_v23 = vld [vmem:[#allocation5 + $0x218] sm:$0xff] }
 0x6a0   : > { %v8541_v7 = vrot.slane %v8540_v18, 2  ;;  %v8356_v24 = vmul.f32 %v8324_v29, %v8202_v59  ;;  %v8228_v25 = vpop.f32.mrf.mxu1  ;;  %v8383_v3 = vadd.f32 %v8351_v37, %v16201_v35 }
 0x6a1   : > { %v8506_v63 = vmul.f32 %v16261_v32, %v8462_v6  ;;  %v8465_v52 = vmax.f32 %v8433_v43, 0.0  ;;  %v8342_v21 = vmul.f32 %v8326_v15, %v8228_v25  ;;  %v8270_v34 = vpop.f32.mrf.mxu0  ;;  %v8630_v26 = vadd.f32 %v8530_v51, %v17289_v9  ;;  %v11443_v51 = vld [vmem:[#allocation5 + $0x270] sm:$0xff] }
 0x6a2   : > { %v8542_v36 = vadd.f32 %v8541_v7, %v8540_v18  ;;  %v8388_v4 = vadd.f32 %v8356_v24, %v16204_v10  ;;  %v8345_v29 = vmul.f32 %v8329_v46, %v8270_v34  ;;  %v8427_v58 = vadd.f32 %v16239_v62, %v8383_v3 }
 0x6a3   : > { %v8552_v20 = vadd.f32 %v8506_v63, %v8490_v42  ;;  %v8509_v0 = vmul.f32 %v16261_v32, %v8465_v52  ;;  %v8374_v35 = vadd.f32 %v8342_v21, %v16207_v11  ;;  %v8646_v14 = vpack.c.bf16 %v8630_v26, %v8630_v26  ;;  %10026 = vmatpush.bf16.msrb.mxu2 %v11433_v22  ;;  %v17290_v52 = vld [vmem:[#allocation53_spill] sm:$0xff] }
 0x6a4   : > { %v8432_v2 = vadd.f32 %v16239_v62, %v8388_v4  ;;  %v8377_v8 = vadd.f32 %v8345_v29, %v16210_v38  ;;  %v8459_v18 = vmax.f32 %v8427_v58, 0.0  ;;  %v8323_v6 = vperm.slane %v17268_v12, 7  ;;  %v11431_v4 = vld [vmem:[#allocation5 + $0x210] sm:$0xff] }
 0x6a5   : > { %v8553_v10 = vrot.slane %v8552_v20, 4  ;;  %v8573_v40 = vadd.f32 %v8509_v0, %v8493_v16  ;;  %v8487_v42 = vmul.f32 %v16255_v41, %v8443_v57  ;;  %v8492_v43 = vmul.f32 %v16255_v41, %v8448_v61  ;;  %9940 = vmatmul.bf16.vlgmr.msra.gmra.mxu3 %v8646_v14  ;;  %v8186_v59 = vpop.f32.mrf.mxu2 }
 0x6a6   : > { %v8464_v37 = vmax.f32 %v8432_v2, 0.0  ;;  %v8551_v11 = vadd.f32 %v8550_v44, %v8549_v48  ;;  %v8543_v7 = vrot.slane %v8542_v36, 1  ;;  %v8503_v38 = vmul.f32 %v16261_v32, %v8459_v18  ;;  %10036 = vmatpush.bf16.msra.mxu3 %v11444_v54  ;;  %v11442_v54 = vld [vmem:[#allocation5 + $0x268] sm:$0xff] }
 0x6a7   : > { %v8554_v24 = vadd.f32 %v8553_v10, %v8552_v20  ;;  %v8574_v25 = vrot.slane %v8573_v40, 4  ;;  %v8256_v16 = vpop.f32.mrf.mxu3  ;;  %v8418_v63 = vadd.f32 %v17282_v53, %v8374_v35  ;;  %v8339_v61 = vmul.f32 %v8323_v6, %v8186_v59  ;;  %10027 = vmatpush.bf16.msrb.mxu2 %v11432_v23 }
 0x6a8   : > { %v8508_v31 = vmul.f32 %v16261_v32, %v8464_v37  ;;  %v8633_v57 = vadd.f32 %v8551_v11, %v17290_v52  ;;  %v8230_v3 = vpop.f32.mrf.mxu1  ;;  %v16341_v21 = vadd.f32 %v8503_v38, %v8487_v42  ;;  %v8328_v34 = vperm.slane %v17270_v13, 7 }
 0x6a9   : > { %v8555_v48 = vrot.slane %v8554_v24, 2  ;;  %v8575_v44 = vadd.f32 %v8574_v25, %v8573_v40  ;;  %v8272_v22 = vpop.f32.mrf.mxu0  ;;  %v8371_v26 = vadd.f32 %v8339_v61, %v16215_v17  ;;  %v8421_v0 = vadd.f32 %v17282_v53, %v8377_v8  ;;  %v11430_v17 = vld [vmem:[#allocation5 + $0x208] sm:$0xff]  ;;  %v11460_v25 = vld [vmem:[#allocation5 + $0x2f8] sm:$0xff] }
 0x6aa   : > { %v8566_v29 = vadd.f32 %v8508_v31, %v8492_v43  ;;  %v8649_v9 = vpack.c.bf16 %v8633_v57, %v8633_v57  ;;  %v8344_v58 = vmul.f32 %v8328_v34, %v8256_v16  ;;  %10037 = vmatpush.bf16.msra.mxu3 %v11443_v51  ;;  %v8544_v35 = vadd.f32 %v8543_v7, %v8542_v36  ;;  %v11429_v57 = vld [vmem:[#allocation5 + $0x200] sm:$0xff] }
 0x6ab   : > { %v8576_v20 = vrot.slane %v8575_v44, 2  ;;  %v8450_v14 = vmax.f32 %v8418_v63, 0.0  ;;  %v8358_v10 = vmul.f32 %v8326_v15, %v8230_v3  ;;  %v8361_v13 = vmul.f32 %v8329_v46, %v8272_v22  ;;  %10028 = vmatpush.bf16.msrb.mxu2 %v11431_v4  ;;  %v11468_v22 = vld [vmem:[#allocation5 + $0x338] sm:$0xff] }
 0x6ac   : > { %v8567_v2 = vrot.slane %v8566_v29, 4  ;;  %9979 = vmatmul.bf16.vlgmr.msra.gmra.mxu2 %v8649_v9  ;;  %v8556_v40 = vadd.f32 %v8555_v48, %v8554_v24  ;;  %v8376_v18 = vadd.f32 %v8344_v58, %v16218_v49  ;;  %v8330_v8 = vperm.slane %v17272_v55, 7  ;;  %v11441_v49 = vld [vmem:[#allocation5 + $0x260] sm:$0xff]  ;;  %v11459_v58 = vld [vmem:[#allocation5 + $0x2f0] sm:$0xff] }
 0x6ad   : > { %v8577_v23 = vadd.f32 %v8576_v20, %v8575_v44  ;;  %v8390_v36 = vadd.f32 %v8358_v10, %v16221_v30  ;;  %v8393_v42 = vadd.f32 %v8361_v13, %v16224_v50  ;;  %v8188_v43 = vpop.f32.mrf.mxu2  ;;  %v8327_v37 = vperm.slane %v17281_v39, 7  ;;  %v11440_v20 = vld [vmem:[#allocation5 + $0x258] sm:$0xff] }
 0x6ae   : > { %v8568_v19 = vadd.f32 %v8567_v2, %v8566_v29  ;;  %v8415_v15 = vadd.f32 %v17282_v53, %v8371_v26  ;;  %v8632_v46 = vadd.f32 %v8544_v35, %v17291_v45  ;;  %10038 = vmatpush.bf16.msra.mxu3 %v11442_v54  ;;  %v8332_v59 = vperm.slane %v17279_v47, 7  ;;  %v17292_v2 = vld [vmem:[#allocation32_spill] sm:$0xff]  ;;  %v17293_v45 = vld [vmem:[#allocation73_spill] sm:$0xff]  ;;  %v17298_v39 = vld [vmem:[#allocation46_spill] sm:$0xff] }
 0x6af   : > { %v8258_v11 = vpop.f32.mrf.mxu3  ;;  %v8494_v7 = vmul.f32 %v16255_v41, %v8450_v14  ;;  %v8453_v24 = vmax.f32 %v8421_v0, 0.0  ;;  %v8434_v30 = vadd.f32 %v16239_v62, %v8390_v36  ;;  %v8437_v50 = vadd.f32 %v16239_v62, %v8393_v42  ;;  %10029 = vmatpush.bf16.msrb.mxu2 %v11430_v17  ;;  %v11467_v42 = vld [vmem:[#allocation5 + $0x330] sm:$0xff] }
 0x6b0   : > { %v8284_v38 = vpop.f32.mrf.mxu1  ;;  %v8557_v16 = vrot.slane %v8556_v40, 1  ;;  %v8420_v51 = vadd.f32 %v17282_v53, %v8376_v18  ;;  %v8648_v31 = vpack.c.bf16 %v8632_v46, %v8632_v46  ;;  %v8355_v63 = vmul.f32 %v8323_v6, %v8188_v43 }
 0x6b1   : > { %v16364_v52 = vpop.f32.mrf.mxu0  ;;  %v8578_v61 = vrot.slane %v8577_v23, 1  ;;  %v8466_v3 = vmax.f32 %v8434_v30, 0.0  ;;  %v8469_v48 = vmax.f32 %v8437_v50, 0.0  ;;  %v8360_v44 = vmul.f32 %v8328_v34, %v8258_v11  ;;  %v17294_v30 = vld [vmem:[#allocation74_spill] sm:$0xff] }
 0x6b2   : > { %v8569_v4 = vrot.slane %v8568_v19, 2  ;;  %v8447_v29 = vmax.f32 %v8415_v15, 0.0  ;;  %9966 = vmatmul.bf16.vlgmr.msra.gmra.mxu0 %v8648_v31  ;;  %v8387_v9 = vadd.f32 %v8355_v63, %v16229_v33  ;;  %v8346_v26 = vmul.f32 %v8330_v8, %v8284_v38  ;;  %10039 = vmatpush.bf16.msra.mxu3 %v11441_v49  ;;  %v11439_v31 = vld [vmem:[#allocation5 + $0x250] sm:$0xff] }
 0x6b3   : > { %v8497_v12 = vmul.f32 %v16255_v41, %v8453_v24  ;;  %v8510_v6 = vmul.f32 %v16261_v32, %v8466_v3  ;;  %v8513_v0 = vmul.f32 %v16261_v32, %v8469_v48  ;;  %10062 = vmatpush.bf16.msra.mxu0 %v11460_v25  ;;  %v8392_v34 = vadd.f32 %v8360_v44, %v16232_v28  ;;  %v11466_v48 = vld [vmem:[#allocation5 + $0x328] sm:$0xff] }
 0x6b4   : > { %v8452_v35 = vmax.f32 %v8420_v51, 0.0  ;;  %v8431_v54 = vadd.f32 %v16239_v62, %v8387_v9  ;;  %v8378_v33 = vadd.f32 %v8346_v26, %v17292_v2  ;;  %10030 = vmatpush.bf16.msrb.mxu2 %v11429_v57  ;;  %v8558_v14 = vadd.f32 %v8557_v16, %v8556_v40 }
 0x6b5   : > { %v8580_v10 = vadd.f32 %v8510_v6, %v8494_v7  ;;  %v8601_v13 = vadd.f32 %v8513_v0, %v8497_v12  ;;  %v8436_v18 = vadd.f32 %v16239_v62, %v8392_v34  ;;  %v8579_v17 = vadd.f32 %v8578_v61, %v8577_v23  ;;  %v8242_v36 = vpop.f32.mrf.mxu2  ;;  %v11458_v7 = vld [vmem:[#allocation5 + $0x2e8] sm:$0xff]  ;;  %v11457_v12 = vld [vmem:[#allocation5 + $0x2e0] sm:$0xff] }
 0x6b6   : > { %v16376_v43 = vadd.f32 %v8569_v4, %v8568_v19  ;;  %v8491_v28 = vmul.f32 %v16255_v41, %v8447_v29  ;;  %v8463_v15 = vmax.f32 %v8431_v54, 0.0  ;;  %v8634_v46 = vadd.f32 %v8558_v14, %v17293_v45  ;;  %10040 = vmatpush.bf16.msra.mxu3 %v11440_v20 }
 0x6b7   : > { %v8312_v11 = vpop.f32.mrf.mxu3  ;;  %v8581_v49 = vrot.slane %v8580_v10, 4  ;;  %v8602_v24 = vrot.slane %v8601_v13, 4  ;;  %v8468_v40 = vmax.f32 %v8436_v18, 0.0  ;;  %10063 = vmatpush.bf16.msra.mxu0 %v11459_v58  ;;  %v8637_v50 = vadd.f32 %v8579_v17, %v17294_v30  ;;  %v11456_v17 = vld [vmem:[#allocation5 + $0x2d8] sm:$0xff] }
 0x6b8   : > { %10075 = vmatpush.bf16.msra.mxu2 %v11468_v22  ;;  %v8496_v23 = vmul.f32 %v16255_v41, %v8452_v35  ;;  %v8507_v25 = vmul.f32 %v16261_v32, %v8463_v15  ;;  %v8650_v19 = vpack.c.bf16 %v8634_v46, %v8634_v46  ;;  %v8343_v38 = vmul.f32 %v8327_v37, %v8242_v36  ;;  %v8286_v16 = vpop.f32.mrf.mxu1  ;;  %v11464_v30 = vld [vmem:[#allocation5 + $0x318] sm:$0xff] }
 0x6b9   : > { %v9032_v51 = vpop.f32.mrf.mxu0  ;;  %v8582_v63 = vadd.f32 %v8581_v49, %v8580_v10  ;;  %v8603_v57 = vadd.f32 %v8602_v24, %v8601_v13  ;;  %v8512_v61 = vmul.f32 %v16261_v32, %v8468_v40  ;;  %v8653_v3 = vpack.c.bf16 %v8637_v50, %v8637_v50  ;;  %v11465_v10 = vld [vmem:[#allocation5 + $0x320] sm:$0xff]  ;;  %v11476_v50 = vld [vmem:[#allocation5 + $0x378] sm:$0xff] }
 0x6ba   : > { %v16386_v44 = vadd.f32 %v8507_v25, %v8491_v28  ;;  %v8422_v22 = vadd.f32 %v17282_v53, %v8378_v33  ;;  %9992 = vmatmul.bf16.vlgmr.msrb.gmra.mxu3 %v8650_v19  ;;  %v8375_v4 = vadd.f32 %v8343_v38, %v16243_v27  ;;  %v8348_v29 = vmul.f32 %v8332_v59, %v8312_v11  ;;  %v11438_v27 = vld [vmem:[#allocation5 + $0x248] sm:$0xff]  ;;  %v11437_v11 = vld [vmem:[#allocation5 + $0x240] sm:$0xff] }
 0x6bb   : > { %v8583_v9 = vrot.slane %v8582_v63, 2  ;;  %v8604_v26 = vrot.slane %v8603_v57, 2  ;;  %v8594_v20 = vadd.f32 %v8512_v61, %v8496_v23  ;;  %10064 = vmatpush.bf16.msra.mxu0 %v11458_v7  ;;  %v8362_v6 = vmul.f32 %v8330_v8, %v8286_v16  ;;  %10041 = vmatpush.bf16.msra.mxu3 %v11439_v31  ;;  %v17296_v25 = vld [vmem:[#allocation59_spill] sm:$0xff] }
 0x6bc   : > { %10076 = vmatpush.bf16.msra.mxu2 %v11467_v42  ;;  %v8532_v0 = vrot.slane %v16341_v21, 4  ;;  %v8419_v34 = vadd.f32 %v17282_v53, %v8375_v4  ;;  %v8380_v58 = vadd.f32 %v8348_v29, %v16246_v5  ;;  %v8571_v35 = vrot.slane %v16376_v43, 1  ;;  %v17295_v5 = vld [vmem:[#allocation79_spill] sm:$0xff] }
 0x6bd   : > { %10031 = vmatmul.bf16.vlgmr.msrb.gmra.mxu2 %v8653_v3  ;;  %v8584_v54 = vadd.f32 %v8583_v9, %v8582_v63  ;;  %v8595_v2 = vrot.slane %v8594_v20, 4  ;;  %v8394_v33 = vadd.f32 %v8362_v6, %v16249_v56  ;;  %v8244_v14 = vpop.f32.mrf.mxu2  ;;  %v8605_v13 = vadd.f32 %v8604_v26, %v8603_v57  ;;  %v17297_v63 = vld [vmem:[#allocation76_spill] sm:$0xff]  ;;  %v17299_v3 = vld [vmem:[#allocation75_spill] sm:$0xff] }
 0x6be   : > { %v8454_v55 = vmax.f32 %v8422_v22, 0.0  ;;  %v8331_v42 = vperm.slane %v17295_v5, 7  ;;  %v16402_v28 = vadd.f32 %v8532_v0, %v16341_v21  ;;  %v8451_v45 = vmax.f32 %v8419_v34, 0.0  ;;  %v11455_v22 = vld [vmem:[#allocation5 + $0x2d0] sm:$0xff]  ;;  %v17300_v6 = vld [vmem:[#allocation55_spill] sm:$0xff] }
 0x6bf   : > { %v8596_v8 = vadd.f32 %v8595_v2, %v8594_v20  ;;  %10065 = vmatpush.bf16.msra.mxu0 %v11457_v12  ;;  %v8438_v18 = vadd.f32 %v16239_v62, %v8394_v33  ;;  %v8314_v36 = vpop.f32.mrf.mxu3  ;;  %v8585_v15 = vrot.slane %v8584_v54, 1  ;;  %v8424_v56 = vadd.f32 %v17282_v53, %v8380_v58  ;;  %10042 = vmatpush.bf16.msra.mxu3 %v11438_v27  ;;  %v11463_v26 = vld [vmem:[#allocation5 + $0x310] sm:$0xff] }
 0x6c0   : > { %10077 = vmatpush.bf16.msra.mxu2 %v11466_v48  ;;  %v8572_v40 = vadd.f32 %v8571_v35, %v16376_v43  ;;  %v8359_v7 = vmul.f32 %v8327_v37, %v8244_v14  ;;  %v8606_v23 = vrot.slane %v8605_v13, 1  ;;  %v8498_v21 = vmul.f32 %v16255_v41, %v8454_v55  ;;  %v11475_v20 = vld [vmem:[#allocation5 + $0x370] sm:$0xff] }
 0x6c1   : > { %v9035_v46 = vpop.f32.mrf.mxu0  ;;  %v8597_v49 = vrot.slane %v8596_v8, 2  ;;  %v8470_v24 = vmax.f32 %v8438_v18, 0.0  ;;  %v16410_v19 = vadd.f32 %v9032_v51, %v17296_v25  ;;  %v8364_v38 = vmul.f32 %v8332_v59, %v8314_v36 }
 0x6c2   : > { %v8636_v43 = vadd.f32 %v8572_v40, %v17297_v63  ;;  %v8391_v37 = vadd.f32 %v8359_v7, %v17298_v39  ;;  %v8495_v57 = vmul.f32 %v16255_v41, %v8451_v45  ;;  %v8456_v61 = vmax.f32 %v8424_v56, 0.0  ;;  %v17303_v56 = vld [vmem:[#allocation56_spill] sm:$0xff] }
 0x6c3   : > { %v8598_v16 = vadd.f32 %v8597_v49, %v8596_v8  ;;  %v8514_v31 = vmul.f32 %v16261_v32, %v8470_v24  ;;  %10066 = vmatpush.bf16.msra.mxu0 %v11456_v17  ;;  %v8396_v48 = vadd.f32 %v8364_v38, %v17299_v3  ;;  %10043 = vmatpush.bf16.msra.mxu3 %v11437_v11  ;;  %v17302_v17 = vld [vmem:[#allocation42_spill] sm:$0xff]  ;;  %v11474_v49 = vld [vmem:[#allocation5 + $0x368] sm:$0xff] }
 0x6c4   : > { %10078 = vmatpush.bf16.msra.mxu2 %v11465_v10  ;;  %v8586_v51 = vadd.f32 %v8585_v15, %v8584_v54  ;;  %v8652_v47 = vpack.c.bf16 %v8636_v43, %v8636_v43  ;;  %v8435_v59 = vadd.f32 %v16239_v62, %v8391_v37  ;;  %v8607_v58 = vadd.f32 %v8606_v23, %v8605_v13  ;;  %v17301_v54 = vld [vmem:[#allocation52_spill] sm:$0xff]  ;;  %v17304_v24 = vld [vmem:[#allocation15_spill] sm:$0xff]  ;;  %v11492_v37 = vld [vmem:[#allocation5 + $0x3f8] sm:$0xff] }
 0x6c5   : > { %v8599_v4 = vrot.slane %v8598_v16, 1  ;;  %v8608_v29 = vadd.f32 %v8514_v31, %v8498_v21  ;;  %v8298_v9 = vpop.f32.mrf.mxu2  ;;  %v8440_v12 = vadd.f32 %v16239_v62, %v8396_v48  ;;  %v9036_v2 = vadd.f32 %v9035_v46, %v17301_v54  ;;  %v11454_v10 = vld [vmem:[#allocation5 + $0x2c8] sm:$0xff]  ;;  %v11453_v31 = vld [vmem:[#allocation5 + $0x2c0] sm:$0xff]  ;;  %v11387_v54 = vld [vmem:[#allocation5 + $0xb0] sm:$0xff] }
 0x6c6   : > { %v8638_v0 = vadd.f32 %v8586_v51, %v17300_v6  ;;  %v8347_v34 = vmul.f32 %v8331_v42, %v8298_v9  ;;  %10018 = vmatmul.bf16.vlgmr.msrb.gmra.mxu0 %v8652_v47  ;;  %v8467_v35 = vmax.f32 %v8435_v59, 0.0  ;;  %v8641_v36 = vadd.f32 %v8607_v58, %v17302_v17  ;;  %v11462_v46 = vld [vmem:[#allocation5 + $0x308] sm:$0xff]  ;;  %v11461_v3 = vld [vmem:[#allocation5 + $0x300] sm:$0xff]  ;;  %v11388_v47 = vld [vmem:[#allocation5 + $0xb8] sm:$0xff] }
 0x6c7   : > { %10088 = vmatpush.bf16.msrb.mxu3 %v11476_v50  ;;  %v8609_v27 = vrot.slane %v8608_v29, 4  ;;  %v8600_v33 = vadd.f32 %v8599_v4, %v8598_v16  ;;  %v8472_v14 = vmax.f32 %v8440_v12, 0.0  ;;  %10067 = vmatpush.bf16.msra.mxu0 %v11455_v22  ;;  %v8534_v15 = vrot.slane %v16402_v28, 2  ;;  %v11473_v51 = vld [vmem:[#allocation5 + $0x360] sm:$0xff]  ;;  %v11472_v6 = vld [vmem:[#allocation5 + $0x358] sm:$0xff] }
 0x6c8   : > { %10079 = vmatpush.bf16.msra.mxu2 %v11464_v30  ;;  %v8654_v55 = vpack.c.bf16 %v8638_v0, %v8638_v0  ;;  %v8379_v8 = vadd.f32 %v8347_v34, %v16275_v1  ;;  %v8511_v13 = vmul.f32 %v16261_v32, %v8467_v35  ;;  %v9031_v40 = vadd.f32 %v16364_v52, %v17304_v24  ;;  %v17305_v30 = vld [vmem:[#allocation48_spill] sm:$0xff]  ;;  %v11503_v0 = vld [vmem:[%s16532_s7] sm:$0xff] }
 0x6c9   : > { %v9037_v18 = vpop.f32.mrf.mxu0  ;;  %v8610_v45 = vadd.f32 %v8609_v27, %v8608_v29  ;;  %v8500_v7 = vmul.f32 %v16255_v41, %v8456_v61  ;;  %v8516_v1 = vmul.f32 %v16261_v32, %v8472_v14  ;;  %v8640_v50 = vadd.f32 %v8600_v33, %v17305_v30  ;;  %v11469_v24 = vld [vmem:[#allocation5 + $0x340] sm:$0xff]  ;;  %v11504_v30 = vld [vmem:[%s16532_s7 + $0x8] sm:$0xff] }
 0x6ca   : > { %v9038_v11 = vadd.f32 %v9037_v18, %v17303_v56  ;;  %10044 = vmatmul.bf16.vlgmr.msra.gmra.mxu3 %v8654_v55  ;;  %v16435_v21 = vadd.f32 %v8511_v13, %v8495_v57  ;;  %v9042_v25 = vmax.f32 %v9036_v2, 0.0  ;;  %v8535_v63 = vadd.f32 %v8534_v15, %v16402_v28  ;;  %v11490_v2 = vld [vmem:[#allocation5 + $0x3e8] sm:$0xff]  ;;  %v11471_v55 = vld [vmem:[#allocation5 + $0x350] sm:$0xff] }
 0x6cb   : > { %10089 = vmatpush.bf16.msrb.mxu3 %v11475_v20  ;;  %v8611_v23 = vrot.slane %v8610_v45, 2  ;;  %v8622_v16 = vadd.f32 %v8516_v1, %v8500_v7  ;;  %10068 = vmatpush.bf16.msra.mxu0 %v11454_v10  ;;  %v9041_v52 = vmax.f32 %v16410_v19, 0.0  ;;  %v8423_v57 = vadd.f32 %v17282_v53, %v8379_v8  ;;  %v17307_v8 = vld [vmem:[#allocation77_spill] sm:$0xff] }
 0x6cc   : > { %10080 = vmatpush.bf16.msra.mxu2 %v11463_v26  ;;  %v9043_v38 = vmax.f32 %v9038_v11, 0.0  ;;  %v9040_v4 = vmax.f32 %v9031_v40, 0.0  ;;  %v8536_v59 = vrot.slane %v8535_v63, 1  ;;  %v11491_v26 = vld [vmem:[#allocation5 + $0x3f0] sm:$0xff]  ;;  %v8656_v34 = vpack.c.bf16 %v8640_v50, %v8640_v50  ;;  %v11385_v11 = vld [vmem:[#allocation5 + $0xa0] sm:$0xff]  ;;  %v11384_v40 = vld [vmem:[#allocation5 + $0x98] sm:$0xff] }
 0x6cd   : > { %v8612_v43 = vadd.f32 %v8611_v23, %v8610_v45  ;;  %v8300_v61 = vpop.f32.mrf.mxu2  ;;  %v8623_v48 = vrot.slane %v8622_v16, 4  ;;  %v8455_v53 = vmax.f32 %v8423_v57, 0.0  ;;  %v11489_v45 = vld [vmem:[#allocation5 + $0x3e0] sm:$0xff]  ;;  %v8560_v13 = vrot.slane %v16386_v44, 4  ;;  %v17308_v56 = vld [vmem:[#allocation29_spill] sm:$0xff]  ;;  %v11418_v57 = vld [vmem:[#allocation5 + $0x1a8] sm:$0xff] }
 0x6ce   : > { %v9049_v39 = vpack.c.bf16 %v9043_v38, %v9042_v25  ;;  %v8363_v22 = vmul.f32 %v8331_v42, %v8300_v61  ;;  %v9048_v9 = vpack.c.bf16 %v9041_v52, %v9040_v4  ;;  %v8657_v42 = vpack.c.bf16 %v8641_v36, %v8641_v36  ;;  %v11386_v36 = vld [vmem:[#allocation5 + $0xa8] sm:$0xff]  ;;  %v11487_v7 = vld [vmem:[#allocation5 + $0x3d0] sm:$0xff]  ;;  %v11416_v4 = vld [vmem:[#allocation5 + $0x198] sm:$0xff] }
 0x6cf   : > { %10090 = vmatpush.bf16.msrb.mxu3 %v11474_v49  ;;  %v8613_v29 = vrot.slane %v8612_v43, 1  ;;  %v8624_v28 = vadd.f32 %v8623_v48, %v8622_v16  ;;  %10069 = vmatpush.bf16.msra.mxu0 %v11453_v31  ;;  %v8499_v14 = vmul.f32 %v16255_v41, %v8455_v53  ;;  %v11470_v41 = vld [vmem:[#allocation5 + $0x348] sm:$0xff]  ;;  %v8561_v49 = vadd.f32 %v8560_v13, %v16386_v44  ;;  %v11383_v23 = vld [vmem:[#allocation5 + $0x90] sm:$0xff]  ;;  %v11485_v16 = vld [vmem:[#allocation5 + $0x3c0] sm:$0xff] }
 0x6d0   : > { %10081 = vmatpush.bf16.msra.mxu2 %v11462_v46  ;;  %9097 = vmatpush.bf16.msra.mxu1 %v9049_v39  ;;  %v8395_v19 = vadd.f32 %v8363_v22, %v16289_v60  ;;  %v17306_v60 = vld [vmem:[#allocation28_spill] sm:$0xff]  ;;  %v11488_v46 = vld [vmem:[#allocation5 + $0x3d8] sm:$0xff]  ;;  %v11417_v22 = vld [vmem:[#allocation5 + $0x1a0] sm:$0xff] }
 0x6d1   : > { %v8614_v20 = vadd.f32 %v8613_v29, %v8612_v43  ;;  %v8625_v12 = vrot.slane %v8624_v28, 2  ;;  %v8562_v1 = vrot.slane %v8561_v49, 2  ;;  %v11486_v25 = vld [vmem:[#allocation5 + $0x3c8] sm:$0xff]  ;;  %v11420_v43 = vld [vmem:[#allocation5 + $0x1b8] sm:$0xff]  ;;  %v11451_v53 = vld [vmem:[#allocation5 + $0x2b0] sm:$0xff] }
 0x6d2   : > { %v8439_v5 = vadd.f32 %v16239_v62, %v8395_v19  ;;  %v8537_v62 = vadd.f32 %v8536_v59, %v8535_v63  ;;  %v11382_v44 = vld [vmem:[#allocation5 + $0x88] sm:$0xff]  ;;  %v11381_v63 = vld [vmem:[#allocation5 + $0x80] sm:$0xff] }
 0x6d3   : > { %10114 = vmatpush.bf16.msrb.mxu0 %v11492_v37  ;;  %10091 = vmatpush.bf16.msrb.mxu3 %v11473_v51  ;;  %v8642_v58 = vadd.f32 %v8614_v20, %v17306_v60  ;;  %v8626_v27 = vadd.f32 %v8625_v12, %v8624_v28  ;;  %v8563_v38 = vadd.f32 %v8562_v1, %v8561_v49  ;;  %v17309_v37 = vld [vmem:[#allocation27_spill] sm:$0xff]  ;;  %v8588_v51 = vrot.slane %v16435_v21, 4  ;;  %v11415_v28 = vld [vmem:[#allocation5 + $0x190] sm:$0xff] }
 0x6d4   : > { %10082 = vmatpush.bf16.msra.mxu2 %v11461_v3  ;;  %9098 = vmatpush.bf16.msra.mxu1 %v9048_v9  ;;  %v8471_v35 = vmax.f32 %v8439_v5, 0.0  ;;  %v8631_v18 = vadd.f32 %v8537_v62, %v17307_v8  ;;  %v11419_v3 = vld [vmem:[#allocation5 + $0x1b0] sm:$0xff]  ;;  %v11413_v9 = vld [vmem:[#allocation5 + $0x180] sm:$0xff]  ;;  %v11484_v8 = vld [vmem:[#allocation5 + $0x3b8] sm:$0xff] }
 0x6d5   : > { %v8627_v33 = vrot.slane %v8626_v27, 1  ;;  %v8658_v50 = vpack.c.bf16 %v8642_v58, %v8642_v58  ;;  %v8564_v31 = vrot.slane %v8563_v38, 1  ;;  %v8589_v29 = vadd.f32 %v8588_v51, %v16435_v21  ;;  %v11449_v60 = vld [vmem:[#allocation5 + $0x2a0] sm:$0xff] }
 0x6d6   : > { %v8515_v10 = vmul.f32 %v16261_v32, %v8471_v35  ;;  %10070 = vmatmul.bf16.vlgmr.msra.gmra.mxu0 %v8656_v34  ;;  %v8647_v48 = vpack.c.bf16 %v8631_v18, %v8631_v18  ;;  %v11448_v35 = vld [vmem:[#allocation5 + $0x298] sm:$0xff] }
 0x6d7   : > { %10083 = vmatmul.bf16.vlgmr.msra.gmra.mxu2 %v8657_v42  ;;  %10115 = vmatpush.bf16.msrb.mxu0 %v11491_v26  ;;  %v8628_v15 = vadd.f32 %v8627_v33, %v8626_v27  ;;  %v8565_v39 = vadd.f32 %v8564_v31, %v8563_v38  ;;  %v8590_v19 = vrot.slane %v8589_v29, 2  ;;  %v11452_v26 = vld [vmem:[#allocation5 + $0x2b8] sm:$0xff]  ;;  %v17310_v42 = vld [vmem:[#allocation31_spill] sm:$0xff] }
 0x6d8   : > { %9945 = vmatpush.bf16.msrb.mxu1 %v11388_v47  ;;  %10092 = vmatpush.bf16.msrb.mxu3 %v11472_v6  ;;  %v16452_v17 = vadd.f32 %v8515_v10, %v8499_v14  ;;  %v11414_v47 = vld [vmem:[#allocation5 + $0x188] sm:$0xff]  ;;  %v11445_v10 = vld [vmem:[#allocation5 + $0x280] sm:$0xff] }
 0x6d9   : > { %10825 = vmatmul.msk.bf16.vlgmr.msra.gmra.mxu1 %vm9084_vm2, %v11503_v0  ;;  %v8644_v32 = vadd.f32 %v8628_v15, %v17308_v56  ;;  %v8635_v61 = vadd.f32 %v8565_v39, %v17309_v37  ;;  %v8591_v59 = vadd.f32 %v8590_v19, %v8589_v29  ;;  %v11450_v0 = vld [vmem:[#allocation5 + $0x2a8] sm:$0xff]  ;;  %v9057_v39 = vpop.permute.xlu2 %9056 }
 0x6da   : > { %v8616_v21 = vrot.slane %v16452_v17, 4  ;;  %v11446_v14 = vld [vmem:[#allocation5 + $0x288] sm:$0xff] }
 0x6db   : > { %10116 = vmatpush.bf16.msrb.mxu0 %v11490_v2  ;;  %v8660_v52 = vpack.c.bf16 %v8644_v32, %v8644_v32  ;;  %v8592_v20 = vrot.slane %v8591_v59, 1  ;;  %v8651_v12 = vpack.c.bf16 %v8635_v61, %v8635_v61  ;;  %v11447_v2 = vld [vmem:[#allocation5 + $0x290] sm:$0xff]  ;;  %v11482_v56 = vld [vmem:[#allocation5 + $0x3a8] sm:$0xff]  ;;  %v9062_v61 = vpop.permute.xlu0 %9061 }
 0x6dc   : > { %9946 = vmatpush.bf16.msrb.mxu1 %v11387_v54  ;;  %10093 = vmatpush.bf16.msrb.mxu3 %v11471_v55  ;;  %v8617_v34 = vadd.f32 %v8616_v21, %v16452_v17  ;;  %v17311_v17 = vld [vmem:[#allocation43_spill] sm:$0xff] }
 0x6dd   : > { %v8593_v5 = vadd.f32 %v8592_v20, %v8591_v59 }
 0x6de   : > { %v8618_v58 = vrot.slane %v8617_v34, 2 }
 0x6df   : > { %10117 = vmatpush.bf16.msrb.mxu0 %v11489_v45  ;;  %v8639_v6 = vadd.f32 %v8593_v5, %v17310_v42  ;;  %v11483_v45 = vld [vmem:[#allocation5 + $0x3b0] sm:$0xff] }
 0x6e0   : > { %9947 = vmatpush.bf16.msrb.mxu1 %v11386_v36  ;;  %10094 = vmatpush.bf16.msrb.mxu3 %v11470_v41  ;;  %v8619_v54 = vadd.f32 %v8618_v58, %v8617_v34 }
 0x6e1   : > { %v8655_v15 = vpack.c.bf16 %v8639_v6, %v8639_v6  ;;  %v9072_v51 = vpop.permute.xlu2 %9071 }
 0x6e2   : > { %v8620_v62 = vrot.slane %v8619_v54, 1 }
 0x6e3   : > { %10118 = vmatpush.bf16.msrb.mxu0 %v11488_v46 }
 0x6e4   : > { %9948 = vmatpush.bf16.msrb.mxu1 %v11385_v11  ;;  %10095 = vmatpush.bf16.msrb.mxu3 %v11469_v24  ;;  %v8621_v55 = vadd.f32 %v8620_v62, %v8619_v54  ;;  %v11481_v11 = vld [vmem:[#allocation5 + $0x3a0] sm:$0xff]  ;;  %v11480_v24 = vld [vmem:[#allocation5 + $0x398] sm:$0xff] }
 0x6e6   : > { %v8643_v36 = vadd.f32 %v8621_v55, %v17311_v17 }
 0x6e7   : > { %10119 = vmatpush.bf16.msrb.mxu0 %v11487_v7  ;;  %10096 = vmatmul.bf16.vlgmr.msrb.gmra.mxu3 %v8658_v50  ;;  %v11477_v50 = vld [vmem:[#allocation5 + $0x380] sm:$0xff] }
 0x6e8   : > { %9949 = vmatpush.bf16.msrb.mxu1 %v11384_v40  ;;  %v11479_v40 = vld [vmem:[#allocation5 + $0x390] sm:$0xff] }
 0x6e9   : > { %10826 = vmatmul.msk.bf16.gmra.mxu1 %vm9084_vm2, %v11504_v30  ;;  %v11478_v30 = vld [vmem:[#allocation5 + $0x388] sm:$0xff]  ;;  %v9131_v5 = vpop.permute.xlu2 %9130 }
 0x6eb   : > { %10120 = vmatpush.bf16.msrb.mxu0 %v11486_v25 }
 0x6ec   : > { %9950 = vmatpush.bf16.msrb.mxu1 %v11383_v23 }
 0x6ef   : > { %10121 = vmatpush.bf16.msrb.mxu0 %v11485_v16 }
 0x6f0   : > { %9951 = vmatpush.bf16.msrb.mxu1 %v11382_v44  ;;  %v8659_v44 = vpack.c.bf16 %v8643_v36, %v8643_v36 }
 0x6f2   : > { %10122 = vmatmul.bf16.vlgmr.msrb.gmra.mxu0 %v8660_v52 }
 0x6f4   : > { %9952 = vmatpush.bf16.msrb.mxu1 %v11381_v63 }
 0x6f8   : > { %9997 = vmatpush.bf16.msra.mxu1 %v11420_v43 }
 0x6f9   : > { %9953 = vmatmul.bf16.vlgmr.msrb.gmra.mxu1 %v8647_v48 }
 0x6fc   : > { %9998 = vmatpush.bf16.msra.mxu1 %v11419_v3 }
 0x700   : > { %9999 = vmatpush.bf16.msra.mxu1 %v11418_v57  ;;  %v9067_v57 = vpop.permute.xlu1 %9066 }
 0x704   : > { %10000 = vmatpush.bf16.msra.mxu1 %v11417_v22 }
 0x708   : > { %10001 = vmatpush.bf16.msra.mxu1 %v11416_v4 }
 0x70c   : > { %10002 = vmatpush.bf16.msra.mxu1 %v11415_v28 }
 0x710   : > { %10003 = vmatpush.bf16.msra.mxu1 %v11414_v47  ;;  %v9121_v47 = vpop.permute.xlu0 %9120 }
 0x714   : > { %10004 = vmatpush.bf16.msra.mxu1 %v11413_v9 }
 0x717   : > { %10005 = vmatmul.bf16.vlgmr.msra.gmra.mxu1 %v8651_v12  ;;  %v9126_v12 = vpop.permute.xlu1 %9125 }
 0x718   : > { %10049 = vmatpush.bf16.msrb.mxu1 %v11452_v26 }
 0x719   : > { %v16467_v27 = vpop.f32.mrf.mxu2 }
 0x71c   : > { %10050 = vmatpush.bf16.msrb.mxu1 %v11451_v53 }
 0x720   : > { %10051 = vmatpush.bf16.msrb.mxu1 %v11450_v0 }
 0x721   : > { %v9930_v33 = vpop.f32.mrf.mxu2 }
 0x724   : > { %10052 = vmatpush.bf16.msrb.mxu1 %v11449_v60 }
 0x728   : > { %10053 = vmatpush.bf16.msrb.mxu1 %v11448_v35  ;;  %v16469_v18 = vpop.f32.mrf.mxu3  ;;  %v9136_v35 = vpop.permute.xlu0 %9135 }
 0x72c   : > { %10054 = vmatpush.bf16.msrb.mxu1 %v11447_v2 }
 0x72f   : > { %v16472_v13 = vpop.f32.mrf.mxu2  ;;  %v16474_v41 = vpop.f32.mrf.mxu0 }
 0x730   : > { %10055 = vmatpush.bf16.msrb.mxu1 %v11446_v14  ;;  %v9943_v32 = vpop.f32.mrf.mxu3 }
 0x734   : > { %10056 = vmatpush.bf16.msrb.mxu1 %v11445_v10 }
 0x737   : > { %10057 = vmatmul.bf16.vlgmr.msrb.gmra.mxu1 %v8655_v15  ;;  %v9982_v46 = vpop.f32.mrf.mxu2  ;;  %v9969_v49 = vpop.f32.mrf.mxu0 }
 0x738   : > { %10101 = vmatpush.bf16.msra.mxu1 %v11484_v8 }
 0x73c   : > { %10102 = vmatpush.bf16.msra.mxu1 %v11483_v45 }
 0x73d   : > { %v16476_v7 = vpop.f32.mrf.mxu3 }
 0x740   : > { %10103 = vmatpush.bf16.msra.mxu1 %v11482_v56  ;;  %v16478_v1 = vpop.f32.mrf.mxu2 }
 0x743   : > { %v10019_v23 = vpop.f32.mrf.mxu0 }
 0x744   : > { %10104 = vmatpush.bf16.msra.mxu1 %v11481_v11 }
 0x745   : > { %v9995_v25 = vpop.f32.mrf.mxu3 }
 0x748   : > { %10105 = vmatpush.bf16.msra.mxu1 %v11480_v24  ;;  %v10034_v38 = vpop.f32.mrf.mxu2 }
 0x74b   : > { %v10021_v16 = vpop.f32.mrf.mxu0 }
 0x74c   : > { %10106 = vmatpush.bf16.msra.mxu1 %v11479_v40 }
 0x74d   : > { %v10045_v31 = vpop.f32.mrf.mxu3 }
 0x750   : > { %10107 = vmatpush.bf16.msra.mxu1 %v11478_v30 }
 0x753   : > { %v10071_v43 = vpop.f32.mrf.mxu0 }
 0x754   : > { %10108 = vmatpush.bf16.msra.mxu1 %v11477_v50 }
 0x755   : > { %v10047_v52 = vpop.f32.mrf.mxu3 }
 0x756   : > { %v9100_v63 = vpop.f32.mrf.mxu1 }
 0x757   : > { %10109 = vmatmul.bf16.vlgmr.msra.gmra.mxu1 %v8659_v44  ;;  %v9101_v28 = vadd.f32 %v9100_v63, %v9057_v39 }
 0x759   : > { %v9110_v9 = vmax.f32 %v9101_v28, 0.0 }
 0x75a   : > { %v10084_v37 = vpop.f32.mrf.mxu2 }
 0x75b   : > { %v10073_v48 = vpop.f32.mrf.mxu0  ;;  %v9138_v6 = vmul.f32 %v9121_v47, %v9110_v9 }
 0x75e   : > { %v9102_v3 = vpop.f32.mrf.mxu1 }
 0x75f   : > { %v9103_v4 = vadd.f32 %v9102_v3, %v9062_v61 }
 0x761   : > { %v9111_v59 = vmax.f32 %v9103_v4, 0.0 }
 0x762   : > { %v10086_v22 = vpop.f32.mrf.mxu2 }
 0x763   : > { %v9139_v53 = vmul.f32 %v9126_v12, %v9111_v59 }
 0x765   : > { %v9142_v60 = vadd.f32 %v9139_v53, %v9138_v6 }
 0x766   : > { %v9105_v29 = vpop.f32.mrf.mxu1 }
 0x767   : > { %v9106_v19 = vadd.f32 %v9105_v29, %v9067_v57 }
 0x769   : > { %v9112_v26 = vmax.f32 %v9106_v19, 0.0 }
 0x76a   : > { %v10097_v20 = vpop.f32.mrf.mxu3 }
 0x76b   : > { %v9140_v21 = vmul.f32 %v9131_v5, %v9112_v26 }
 0x76d   : > { %v9143_v54 = vadd.f32 %v9142_v60, %v9140_v21 }
 0x76e   : > { %v9107_v42 = vpop.f32.mrf.mxu1 }
 0x76f   : > { %v9108_v0 = vadd.f32 %v9107_v42, %v9072_v51  ;;  %v10123_v34 = vpop.f32.mrf.mxu0 }
 0x771   : > { %v9113_v58 = vmax.f32 %v9108_v0, 0.0 }
 0x772   : > { %v10099_v62 = vpop.f32.mrf.mxu3 }
 0x773   : > { %v9141_v2 = vmul.f32 %v9136_v35, %v9113_v58 }
 0x775   : > { %v9144_v33 = vadd.f32 %v9143_v54, %v9141_v2 }
 0x776   : > { %v9954_v14 = vpop.f32.mrf.mxu1 }
 0x777   : > { %v9145_v10 = vrot.slane %v9144_v33, 4  ;;  %v10125_v55 = vpop.f32.mrf.mxu0 }
 0x779   : > { %v9146_v8 = vadd.f32 %v9145_v10, %v9144_v33 }
 0x77b   : > { %v9147_v17 = vrot.slane %v9146_v8, 2 }
 0x77d   : > { %v9148_v36 = vadd.f32 %v9147_v17, %v9146_v8 }
 0x77e   : > { %v9956_v15 = vpop.f32.mrf.mxu1 }
 0x77f   : > { %v9149_v45 = vrot.slane %v9148_v36, 1 }
 0x781   : > { %v9150_v56 = vadd.f32 %v9149_v45, %v9148_v36 }
 0x783   : > { %v9929_v32 = vadd.f32 %v16467_v27, %v9150_v56 }
 0x785   : > { %v9942_v11 = vadd.f32 %v16469_v18, %v9929_v32 }
 0x787   : > { %v9955_v46 = vadd.f32 %v9954_v14, %v9942_v11 }
 0x789   : > { %v9968_v49 = vadd.f32 %v16474_v41, %v9955_v46 }
 0x78b   : > { %v9981_v24 = vadd.f32 %v16472_v13, %v9968_v49 }
 0x78d   : > { %v9994_v40 = vadd.f32 %v16476_v7, %v9981_v24 }
 0x794   : > { %v10006_v30 = vpop.f32.mrf.mxu1 }
 0x795   : > { %v10007_v50 = vadd.f32 %v10006_v30, %v9994_v40 }
 0x797   : > { %v10020_v25 = vadd.f32 %v10019_v23, %v10007_v50  ;;  %v10127_v23 = vld [vmem:[%s430_s22] sm:$0x1] }
 0x799   : > { %v10033_v38 = vadd.f32 %v16478_v1, %v10020_v25 }
 0x79b   : > { %v10046_v44 = vadd.f32 %v10045_v31, %v10033_v38 }
 0x79c   : > { %v10008_v16 = vpop.f32.mrf.mxu1 }
 0x7b4   : > { %v10058_v27 = vpop.f32.mrf.mxu1 }
 0x7b5   : > { %v10059_v18 = vadd.f32 %v10058_v27, %v10046_v44 }
 0x7b7   : > { %v10072_v52 = vadd.f32 %v10071_v43, %v10059_v18 }
 0x7b9   : > { %v10085_v41 = vadd.f32 %v10084_v37, %v10072_v52 }
 0x7bb   : > { %v10098_v13 = vadd.f32 %v10097_v20, %v10085_v41 }
 0x7bc   : > { %v10060_v63 = vpop.f32.mrf.mxu1 }
 0x7d4   : > { %v10110_v7 = vpop.f32.mrf.mxu1 }
 0x7d5   : > { %v10111_v1 = vadd.f32 %v10110_v7, %v10098_v13 }
 0x7d7   : > { %v10124_v31 = vadd.f32 %v10123_v34, %v10111_v1 }
 0x7d9   : > { %v10128_v43 = vadd.f32 %v10127_v23, %v10124_v31 }
 0x7db   : > { %10129 = vst [vmem:[%s421_s16] sm:$0x1] %v10128_v43 }
 0x7dc   : > { %v10112_v39 = vpop.f32.mrf.mxu1 }
 0x7dd   : > { %11687 = shalt.err (!%p11684_p13)
}
 0x7de   : > { %11511 = dma.vmem_to_hbm [thread:$0]  (%p11862_p7), %s10142_s30, 16, %s10144_s24, %s10131_s29  }
 0x7df PF: > { %s17312_s3 = sld [smem:[#allocation12_spill]]  ;;  %s10155_s21 = sand.u32 1, %s11718_s13  }
 0x7e0   : > { %s10156_s22 = scalar_lea.sflag [#allocation4], %s10155_s21 }
 0x7e5   : > { %p17313_p0 = scmp.ge.s32.totalorder %s17312_s3, 2 }
 0x7e7   : > { %p11522_p3 = pnand %p17313_p0, %p11827_p6 }
 0x7e9   : > { %p11523_p5 = pneg %p11522_p3 }
 0x7eb   : > { %11713 = dma.done.wait (%p11523_p5), %s10156_s22, 16  }
 0x7ec   : > { %11715 = vsyncadd (%p11523_p5), %s10156_s22, 4294967280  ;;  %s17314_s16 = sld [smem:[#allocation13_spill]]  ;;  %s17317_s13 = smov %s11722_s14 }
 0x7ed   : > { %s17315_s26 = sld [smem:[#allocation11_spill]] }
 0x7ee   : > { %s17316_s15 = sld [smem:[#allocation14_spill]] }
 0x7f2   : > { %p24_p8 = scmp.ge.s32.totalorder %s17314_s16, 4  }
 0x7f3   : > { %s17318_s14 = smov %s17315_s26 }
 0x7f4   :  { %26 = sbr.rel (!%p24_p8) target bundleno = 8 (0x8), region = 138 }
 0x7f9   :  { %10161 = vsyncpa [#allocation3], 1 }
 0x7fa   :  { %10163 = vsyncpa [#allocation3 + $0x1], 1 }
 0x7fb   :  { %10164 = vsyncpa [#allocation6], 1 }
 0x7fc   :  { %10165 = vsyncpa [#allocation4], 1 }
 0x7fd   :  { %10167 = vsyncpa [#allocation4 + $0x1], 1 }

</bundles_post_ra>
